<compile_context>
chip_gen: v7x
topology: tpu7x:2x2x1
jax: 0.10.0
libtpu: 0.0.40
codegen_flags: <defaults>
</compile_context>

<pallas_src>
import jax
import jax.numpy as jnp
from jax.experimental import pallas as pl
from jax.experimental.pallas import tpu as pltpu


def _make_mscnn_kernel(H, W, ch):
    HW = H * W

    def kernel(x_ref, w1_ref, b1_ref, w2_ref, b2_ref, w3_ref, b3_ref,
               wp1_ref, wp2_ref, wp3_ref, bp_ref, o_ref,
               pad0, pad1, pad2, pad3):
        # pad*  : (H+2, W+2, C) f32 VMEM scratch holding a zero-padded image
        # o_ref : (1, H*W, ch)  output slab for one image

        def conv_taps(pad_ref, w_ref, acc):
            """Accumulate a 3x3 'same' conv as 9 (H*W, Cin) @ (Cin, Cout) dots."""
            cin = pad_ref.shape[-1]
            for dy in range(3):
                for dx in range(3):
                    patch = pad_ref[dy:dy + H, dx:dx + W, :]        # (H, W, cin)
                    acc = acc + jnp.dot(
                        patch.reshape(HW, cin), w_ref[dy, dx],
                        preferred_element_type=jnp.float32)
            return acc

        def to_padded(pad_ref, val):
            """Write `val` (H*W, C) or (H, W, C) into the interior of a zeroed pad buffer."""
            cin = pad_ref.shape[-1]
            pad_ref[...] = jnp.zeros_like(pad_ref)
            pad_ref[1:H + 1, 1:W + 1, :] = (
                val.reshape(H, W, cin).astype(pad_ref.dtype))

        # In-kernel zero padding of the input (no jnp.pad / extra HBM passes).
        to_padded(pad0, x_ref[0].astype(jnp.float32))

        # conv1: ch -> 32   (bias seeds the accumulator once; no per-row broadcast)
        acc1 = jnp.broadcast_to(b1_ref[...], (HW, 32)).astype(jnp.float32)
        out1 = conv_taps(pad0, w1_ref, acc1)
        to_padded(pad1, out1)

        # conv2: 32 -> 32
        acc2 = jnp.broadcast_to(b2_ref[...], (HW, 32)).astype(jnp.float32)
        out2 = conv_taps(pad1, w2_ref, acc2)
        to_padded(pad2, out2)

        # conv3: 32 -> 32
        acc3 = jnp.broadcast_to(b3_ref[...], (HW, 32)).astype(jnp.float32)
        out3 = conv_taps(pad2, w3_ref, acc3)
        to_padded(pad3, out3)

        # projection: concat(out1,out2,out3) -> ch, WITHOUT materializing the
        # concat: accumulate the three 32-channel weight blocks directly.
        accp = jnp.broadcast_to(bp_ref[...], (HW, ch)).astype(jnp.float32)
        accp = conv_taps(pad1, wp1_ref, accp)
        accp = conv_taps(pad2, wp2_ref, accp)
        accp = conv_taps(pad3, wp3_ref, accp)

        # Single slab store per image (instead of H masked row stores).
        o_ref[0] = accp.astype(o_ref.dtype)

    return kernel


@jax.jit
def mscnn_forward(x_nchw, params):
    N, ch, H, W = x_nchw.shape
    HW = H * W
    x = jnp.transpose(x_nchw, (0, 2, 3, 1))            # NCHW -> NHWC

    w1, b1 = params["conv1"]
    w2, b2 = params["conv2"]
    w3, b3 = params["conv3"]
    wp, bp = params["projection"]
    # torch.cat order: [out1 | out2 | out3] along channels -> split HWIO weight.
    wp1 = wp[:, :, 0:32, :]
    wp2 = wp[:, :, 32:64, :]
    wp3 = wp[:, :, 64:96, :]

    def b2d(b):
        return b.reshape(1, -1)

    def const_spec(shape):
        return pl.BlockSpec(shape, lambda n, _s=len(shape): (0,) * _s)

    kernel = _make_mscnn_kernel(H, W, ch)

    out_flat = pl.pallas_call(
        kernel,
        out_shape=jax.ShapeDtypeStruct((N, HW, ch), x.dtype),
        grid_spec=pltpu.PrefetchScalarGridSpec(
            num_scalar_prefetch=0,
            grid=(N,),                                   # one image per step
            in_specs=[
                pl.BlockSpec((1, H, W, ch), lambda n: (n, 0, 0, 0)),
                const_spec((3, 3, ch, 32)), const_spec((1, 32)),
                const_spec((3, 3, 32, 32)), const_spec((1, 32)),
                const_spec((3, 3, 32, 32)), const_spec((1, 32)),
                const_spec((3, 3, 32, ch)),
                const_spec((3, 3, 32, ch)),
                const_spec((3, 3, 32, ch)),
                const_spec((1, ch)),
            ],
            out_specs=pl.BlockSpec((1, HW, ch), lambda n: (n, 0, 0)),
            scratch_shapes=[
                pltpu.VMEM((H + 2, W + 2, ch), jnp.float32),   # padded input
                pltpu.VMEM((H + 2, W + 2, 32), jnp.float32),   # padded out1
                pltpu.VMEM((H + 2, W + 2, 32), jnp.float32),   # padded out2
                pltpu.VMEM((H + 2, W + 2, 32), jnp.float32),   # padded out3
            ],
        ),
        compiler_params=pltpu.CompilerParams(
            dimension_semantics=("parallel",)),          # batch shards across TCs (v7x)
    )(x, w1, b2d(b1), w2, b2d(b2), w3, b2d(b3), wp1, wp2, wp3, b2d(bp))

    # (N, H*W, ch) -> (N, ch, H, W)
    return jnp.transpose(out_flat.reshape(N, H, W, ch), (0, 3, 1, 2))


def init_mscnn_params(ch, key):
    """Deterministic PyTorch-style (kaiming-uniform-ish) init, HWIO layout."""
    def conv_init(k, cin, cout):
        kw, kb = jax.random.split(k)
        bound = 1.0 / jnp.sqrt(jnp.float32(cin * 9))
        w = jax.random.uniform(kw, (3, 3, cin, cout), jnp.float32, -bound, bound)
        b = jax.random.uniform(kb, (cout,), jnp.float32, -bound, bound)
        return w, b

    k1, k2, k3, k4 = jax.random.split(key, 4)
    return {
        "conv1": conv_init(k1, ch, 32),
        "conv2": conv_init(k2, 32, 32),
        "conv3": conv_init(k3, 32, 32),
        "projection": conv_init(k4, 96, ch),
    }


# ----------------------- pure-JAX reference for checking -----------------------
def _conv_ref(x_nhwc, w_hwio, b):
    y = jax.lax.conv_general_dilated(
        x_nhwc, w_hwio, window_strides=(1, 1), padding="SAME",
        dimension_numbers=("NHWC", "HWIO", "NHWC"))
    return y + b


def _mscnn_ref(x_nchw, params):
    x = jnp.transpose(x_nchw, (0, 2, 3, 1))
    o1 = _conv_ref(x, *params["conv1"])
    o2 = _conv_ref(o1, *params["conv2"])
    o3 = _conv_ref(o2, *params["conv3"])
    cat = jnp.concatenate([o1, o2, o3], axis=-1)
    out = _conv_ref(cat, *params["projection"])
    return jnp.transpose(out, (0, 3, 1, 2))


if __name__ == "__main__":
    key = jax.random.PRNGKey(0)
    kx, kp = jax.random.split(key)

    N, CH, H, W = 2, 4, 16, 16
    x = jax.random.normal(kx, (N, CH, H, W), jnp.float32)
    params = init_mscnn_params(CH, kp)

    out = mscnn_forward(x, params)
    out = jax.block_until_ready(out)

    ref = _mscnn_ref(x, params)
    assert out.shape == (N, CH, H, W), out.shape
    assert jnp.allclose(out, ref, rtol=1e-4, atol=1e-4), (
        float(jnp.max(jnp.abs(out - ref))))

    print("KERNEL_OK")
</pallas_src>

<mosaic_0001>
module attributes {stable_mosaic.version = 11 : i64} {
  func.func @kernel(%arg0: i32, %arg1: memref<1x16x16x4xf32, #tpu.memory_space<vmem>>, %arg2: memref<3x3x4x32xf32, #tpu.memory_space<vmem>>, %arg3: memref<1x32xf32, #tpu.memory_space<vmem>>, %arg4: memref<3x3x32x32xf32, #tpu.memory_space<vmem>>, %arg5: memref<1x32xf32, #tpu.memory_space<vmem>>, %arg6: memref<3x3x32x32xf32, #tpu.memory_space<vmem>>, %arg7: memref<1x32xf32, #tpu.memory_space<vmem>>, %arg8: memref<3x3x32x4xf32, #tpu.memory_space<vmem>>, %arg9: memref<3x3x32x4xf32, #tpu.memory_space<vmem>>, %arg10: memref<3x3x32x4xf32, #tpu.memory_space<vmem>>, %arg11: memref<1x4xf32, #tpu.memory_space<vmem>>, %arg12: memref<1x256x4xf32, #tpu.memory_space<vmem>>, %arg13: memref<18x18x4xf32, #tpu.memory_space<vmem>>, %arg14: memref<18x18x32xf32, #tpu.memory_space<vmem>>, %arg15: memref<18x18x32xf32, #tpu.memory_space<vmem>>, %arg16: memref<18x18x32xf32, #tpu.memory_space<vmem>>) attributes {dimension_semantics = [#tpu.dimension_semantics<parallel>], iteration_bounds = array<i64: 2>, scalar_prefetch = 0 : i64, scratch_operands = 4 : i64, tpu.core_type = #tpu.core_type<tc>, window_params = [{transform_indices = @transform_0, window_bounds = array<i64: 1, 16, 16, 4>}, {pipeline_mode = #tpu.pipeline_mode<synchronous>, transform_indices = @transform_1, window_bounds = array<i64: 3, 3, 4, 32>}, {pipeline_mode = #tpu.pipeline_mode<synchronous>, transform_indices = @transform_2, window_bounds = array<i64: 1, 32>}, {pipeline_mode = #tpu.pipeline_mode<synchronous>, transform_indices = @transform_3, window_bounds = array<i64: 3, 3, 32, 32>}, {pipeline_mode = #tpu.pipeline_mode<synchronous>, transform_indices = @transform_4, window_bounds = array<i64: 1, 32>}, {pipeline_mode = #tpu.pipeline_mode<synchronous>, transform_indices = @transform_5, window_bounds = array<i64: 3, 3, 32, 32>}, {pipeline_mode = #tpu.pipeline_mode<synchronous>, transform_indices = @transform_6, window_bounds = array<i64: 1, 32>}, {pipeline_mode = #tpu.pipeline_mode<synchronous>, transform_indices = @transform_7, window_bounds = array<i64: 3, 3, 32, 4>}, {pipeline_mode = #tpu.pipeline_mode<synchronous>, transform_indices = @transform_8, window_bounds = array<i64: 3, 3, 32, 4>}, {pipeline_mode = #tpu.pipeline_mode<synchronous>, transform_indices = @transform_9, window_bounds = array<i64: 3, 3, 32, 4>}, {pipeline_mode = #tpu.pipeline_mode<synchronous>, transform_indices = @transform_10, window_bounds = array<i64: 1, 4>}, {transform_indices = @transform_11, window_bounds = array<i64: 1, 256, 4>}]} {
    %c0 = arith.constant 0 : index
    %c0_0 = arith.constant 0 : index
    %c0_1 = arith.constant 0 : index
    %c0_2 = arith.constant 0 : index
    %0 = vector.load %arg1[%c0, %c0_0, %c0_1, %c0_2] : memref<1x16x16x4xf32, #tpu.memory_space<vmem>>, vector<1x16x16x4xf32>
    %1 = vector.shape_cast %0 : vector<1x16x16x4xf32> to vector<16x16x4xf32>
    %cst = arith.constant 0.000000e+00 : f32
    %2 = vector.broadcast %cst : f32 to vector<18x18x4xf32>
    %c0_3 = arith.constant 0 : index
    %c0_4 = arith.constant 0 : index
    %c0_5 = arith.constant 0 : index
    %3 = vector.load %arg13[%c0_3, %c0_4, %c0_5] : memref<18x18x4xf32, #tpu.memory_space<vmem>>, vector<18x18x4xf32>
    tpu.vector_store %arg13[%c0_3, %c0_4, %c0_5], %2 {strides = array<i32>} : memref<18x18x4xf32, #tpu.memory_space<vmem>>, vector<18x18x4xf32>,
    %c1 = arith.constant 1 : index
    %c1_6 = arith.constant 1 : index
    %c0_7 = arith.constant 0 : index
    %4 = vector.load %arg13[%c1, %c1_6, %c0_7] : memref<18x18x4xf32, #tpu.memory_space<vmem>>, vector<16x16x4xf32>
    tpu.vector_store %arg13[%c1, %c1_6, %c0_7], %1 {strides = array<i32>} : memref<18x18x4xf32, #tpu.memory_space<vmem>>, vector<16x16x4xf32>,
    %c0_8 = arith.constant 0 : index
    %c0_9 = arith.constant 0 : index
    %5 = vector.load %arg3[%c0_8, %c0_9] : memref<1x32xf32, #tpu.memory_space<vmem>>, vector<1x32xf32>
    %6 = vector.shape_cast %5 : vector<1x32xf32> to vector<1x32xf32>
    %7 = vector.broadcast %6 : vector<1x32xf32> to vector<256x32xf32>
    %c0_10 = arith.constant 0 : index
    %c0_11 = arith.constant 0 : index
    %c0_12 = arith.constant 0 : index
    %8 = vector.load %arg13[%c0_10, %c0_11, %c0_12] : memref<18x18x4xf32, #tpu.memory_space<vmem>>, vector<16x16x4xf32>
    %9 = vector.shape_cast %8 : vector<16x16x4xf32> to vector<256x4xf32>
    %c0_13 = arith.constant 0 : index
    %c0_14 = arith.constant 0 : index
    %c0_15 = arith.constant 0 : index
    %c0_16 = arith.constant 0 : index
    %10 = vector.load %arg2[%c0_13, %c0_14, %c0_15, %c0_16] : memref<3x3x4x32xf32, #tpu.memory_space<vmem>>, vector<1x1x4x32xf32>
    %11 = vector.shape_cast %10 : vector<1x1x4x32xf32> to vector<4x32xf32>
    %cst_17 = arith.constant dense<0.000000e+00> : vector<256x32xf32>
    %12 = tpu.matmul %9, %11, %cst_17 {dimension_numbers = #tpu.dot_dimension_numbers<[1], [0], [0], [1], [0, 0, 1, 1], [], []>} : vector<256x4xf32>, vector<4x32xf32>, vector<256x32xf32> -> vector<256x32xf32>
    %13 = arith.addf %7, %12 : vector<256x32xf32>
    %c0_18 = arith.constant 0 : index
    %c1_19 = arith.constant 1 : index
    %c0_20 = arith.constant 0 : index
    %14 = vector.load %arg13[%c0_18, %c1_19, %c0_20] : memref<18x18x4xf32, #tpu.memory_space<vmem>>, vector<16x16x4xf32>
    %15 = vector.shape_cast %14 : vector<16x16x4xf32> to vector<256x4xf32>
    %c0_21 = arith.constant 0 : index
    %c1_22 = arith.constant 1 : index
    %c0_23 = arith.constant 0 : index
    %c0_24 = arith.constant 0 : index
    %16 = vector.load %arg2[%c0_21, %c1_22, %c0_23, %c0_24] : memref<3x3x4x32xf32, #tpu.memory_space<vmem>>, vector<1x1x4x32xf32>
    %17 = vector.shape_cast %16 : vector<1x1x4x32xf32> to vector<4x32xf32>
    %cst_25 = arith.constant dense<0.000000e+00> : vector<256x32xf32>
    %18 = tpu.matmul %15, %17, %cst_25 {dimension_numbers = #tpu.dot_dimension_numbers<[1], [0], [0], [1], [0, 0, 1, 1], [], []>} : vector<256x4xf32>, vector<4x32xf32>, vector<256x32xf32> -> vector<256x32xf32>
    %19 = arith.addf %13, %18 : vector<256x32xf32>
    %c0_26 = arith.constant 0 : index
    %c2 = arith.constant 2 : index
    %c0_27 = arith.constant 0 : index
    %20 = vector.load %arg13[%c0_26, %c2, %c0_27] : memref<18x18x4xf32, #tpu.memory_space<vmem>>, vector<16x16x4xf32>
    %21 = vector.shape_cast %20 : vector<16x16x4xf32> to vector<256x4xf32>
    %c0_28 = arith.constant 0 : index
    %c2_29 = arith.constant 2 : index
    %c0_30 = arith.constant 0 : index
    %c0_31 = arith.constant 0 : index
    %22 = vector.load %arg2[%c0_28, %c2_29, %c0_30, %c0_31] : memref<3x3x4x32xf32, #tpu.memory_space<vmem>>, vector<1x1x4x32xf32>
    %23 = vector.shape_cast %22 : vector<1x1x4x32xf32> to vector<4x32xf32>
    %cst_32 = arith.constant dense<0.000000e+00> : vector<256x32xf32>
    %24 = tpu.matmul %21, %23, %cst_32 {dimension_numbers = #tpu.dot_dimension_numbers<[1], [0], [0], [1], [0, 0, 1, 1], [], []>} : vector<256x4xf32>, vector<4x32xf32>, vector<256x32xf32> -> vector<256x32xf32>
    %25 = arith.addf %19, %24 : vector<256x32xf32>
    %c1_33 = arith.constant 1 : index
    %c0_34 = arith.constant 0 : index
    %c0_35 = arith.constant 0 : index
    %26 = vector.load %arg13[%c1_33, %c0_34, %c0_35] : memref<18x18x4xf32, #tpu.memory_space<vmem>>, vector<16x16x4xf32>
    %27 = vector.shape_cast %26 : vector<16x16x4xf32> to vector<256x4xf32>
    %c1_36 = arith.constant 1 : index
    %c0_37 = arith.constant 0 : index
    %c0_38 = arith.constant 0 : index
    %c0_39 = arith.constant 0 : index
    %28 = vector.load %arg2[%c1_36, %c0_37, %c0_38, %c0_39] : memref<3x3x4x32xf32, #tpu.memory_space<vmem>>, vector<1x1x4x32xf32>
    %29 = vector.shape_cast %28 : vector<1x1x4x32xf32> to vector<4x32xf32>
    %cst_40 = arith.constant dense<0.000000e+00> : vector<256x32xf32>
    %30 = tpu.matmul %27, %29, %cst_40 {dimension_numbers = #tpu.dot_dimension_numbers<[1], [0], [0], [1], [0, 0, 1, 1], [], []>} : vector<256x4xf32>, vector<4x32xf32>, vector<256x32xf32> -> vector<256x32xf32>
    %31 = arith.addf %25, %30 : vector<256x32xf32>
    %c1_41 = arith.constant 1 : index
    %c1_42 = arith.constant 1 : index
    %c0_43 = arith.constant 0 : index
    %32 = vector.load %arg13[%c1_41, %c1_42, %c0_43] : memref<18x18x4xf32, #tpu.memory_space<vmem>>, vector<16x16x4xf32>
    %33 = vector.shape_cast %32 : vector<16x16x4xf32> to vector<256x4xf32>
    %c1_44 = arith.constant 1 : index
    %c1_45 = arith.constant 1 : index
    %c0_46 = arith.constant 0 : index
    %c0_47 = arith.constant 0 : index
    %34 = vector.load %arg2[%c1_44, %c1_45, %c0_46, %c0_47] : memref<3x3x4x32xf32, #tpu.memory_space<vmem>>, vector<1x1x4x32xf32>
    %35 = vector.shape_cast %34 : vector<1x1x4x32xf32> to vector<4x32xf32>
    %cst_48 = arith.constant dense<0.000000e+00> : vector<256x32xf32>
    %36 = tpu.matmul %33, %35, %cst_48 {dimension_numbers = #tpu.dot_dimension_numbers<[1], [0], [0], [1], [0, 0, 1, 1], [], []>} : vector<256x4xf32>, vector<4x32xf32>, vector<256x32xf32> -> vector<256x32xf32>
    %37 = arith.addf %31, %36 : vector<256x32xf32>
    %c1_49 = arith.constant 1 : index
    %c2_50 = arith.constant 2 : index
    %c0_51 = arith.constant 0 : index
    %38 = vector.load %arg13[%c1_49, %c2_50, %c0_51] : memref<18x18x4xf32, #tpu.memory_space<vmem>>, vector<16x16x4xf32>
    %39 = vector.shape_cast %38 : vector<16x16x4xf32> to vector<256x4xf32>
    %c1_52 = arith.constant 1 : index
    %c2_53 = arith.constant 2 : index
    %c0_54 = arith.constant 0 : index
    %c0_55 = arith.constant 0 : index
    %40 = vector.load %arg2[%c1_52, %c2_53, %c0_54, %c0_55] : memref<3x3x4x32xf32, #tpu.memory_space<vmem>>, vector<1x1x4x32xf32>
    %41 = vector.shape_cast %40 : vector<1x1x4x32xf32> to vector<4x32xf32>
    %cst_56 = arith.constant dense<0.000000e+00> : vector<256x32xf32>
    %42 = tpu.matmul %39, %41, %cst_56 {dimension_numbers = #tpu.dot_dimension_numbers<[1], [0], [0], [1], [0, 0, 1, 1], [], []>} : vector<256x4xf32>, vector<4x32xf32>, vector<256x32xf32> -> vector<256x32xf32>
    %43 = arith.addf %37, %42 : vector<256x32xf32>
    %c2_57 = arith.constant 2 : index
    %c0_58 = arith.constant 0 : index
    %c0_59 = arith.constant 0 : index
    %44 = vector.load %arg13[%c2_57, %c0_58, %c0_59] : memref<18x18x4xf32, #tpu.memory_space<vmem>>, vector<16x16x4xf32>
    %45 = vector.shape_cast %44 : vector<16x16x4xf32> to vector<256x4xf32>
    %c2_60 = arith.constant 2 : index
    %c0_61 = arith.constant 0 : index
    %c0_62 = arith.constant 0 : index
    %c0_63 = arith.constant 0 : index
    %46 = vector.load %arg2[%c2_60, %c0_61, %c0_62, %c0_63] : memref<3x3x4x32xf32, #tpu.memory_space<vmem>>, vector<1x1x4x32xf32>
    %47 = vector.shape_cast %46 : vector<1x1x4x32xf32> to vector<4x32xf32>
    %cst_64 = arith.constant dense<0.000000e+00> : vector<256x32xf32>
    %48 = tpu.matmul %45, %47, %cst_64 {dimension_numbers = #tpu.dot_dimension_numbers<[1], [0], [0], [1], [0, 0, 1, 1], [], []>} : vector<256x4xf32>, vector<4x32xf32>, vector<256x32xf32> -> vector<256x32xf32>
    %49 = arith.addf %43, %48 : vector<256x32xf32>
    %c2_65 = arith.constant 2 : index
    %c1_66 = arith.constant 1 : index
    %c0_67 = arith.constant 0 : index
    %50 = vector.load %arg13[%c2_65, %c1_66, %c0_67] : memref<18x18x4xf32, #tpu.memory_space<vmem>>, vector<16x16x4xf32>
    %51 = vector.shape_cast %50 : vector<16x16x4xf32> to vector<256x4xf32>
    %c2_68 = arith.constant 2 : index
    %c1_69 = arith.constant 1 : index
    %c0_70 = arith.constant 0 : index
    %c0_71 = arith.constant 0 : index
    %52 = vector.load %arg2[%c2_68, %c1_69, %c0_70, %c0_71] : memref<3x3x4x32xf32, #tpu.memory_space<vmem>>, vector<1x1x4x32xf32>
    %53 = vector.shape_cast %52 : vector<1x1x4x32xf32> to vector<4x32xf32>
    %cst_72 = arith.constant dense<0.000000e+00> : vector<256x32xf32>
    %54 = tpu.matmul %51, %53, %cst_72 {dimension_numbers = #tpu.dot_dimension_numbers<[1], [0], [0], [1], [0, 0, 1, 1], [], []>} : vector<256x4xf32>, vector<4x32xf32>, vector<256x32xf32> -> vector<256x32xf32>
    %55 = arith.addf %49, %54 : vector<256x32xf32>
    %c2_73 = arith.constant 2 : index
    %c2_74 = arith.constant 2 : index
    %c0_75 = arith.constant 0 : index
    %56 = vector.load %arg13[%c2_73, %c2_74, %c0_75] : memref<18x18x4xf32, #tpu.memory_space<vmem>>, vector<16x16x4xf32>
    %57 = vector.shape_cast %56 : vector<16x16x4xf32> to vector<256x4xf32>
    %c2_76 = arith.constant 2 : index
    %c2_77 = arith.constant 2 : index
    %c0_78 = arith.constant 0 : index
    %c0_79 = arith.constant 0 : index
    %58 = vector.load %arg2[%c2_76, %c2_77, %c0_78, %c0_79] : memref<3x3x4x32xf32, #tpu.memory_space<vmem>>, vector<1x1x4x32xf32>
    %59 = vector.shape_cast %58 : vector<1x1x4x32xf32> to vector<4x32xf32>
    %cst_80 = arith.constant dense<0.000000e+00> : vector<256x32xf32>
    %60 = tpu.matmul %57, %59, %cst_80 {dimension_numbers = #tpu.dot_dimension_numbers<[1], [0], [0], [1], [0, 0, 1, 1], [], []>} : vector<256x4xf32>, vector<4x32xf32>, vector<256x32xf32> -> vector<256x32xf32>
    %61 = arith.addf %55, %60 : vector<256x32xf32>
    %cst_81 = arith.constant 0.000000e+00 : f32
    %62 = vector.broadcast %cst_81 : f32 to vector<18x18x32xf32>
    %c0_82 = arith.constant 0 : index
    %c0_83 = arith.constant 0 : index
    %c0_84 = arith.constant 0 : index
    %63 = vector.load %arg14[%c0_82, %c0_83, %c0_84] : memref<18x18x32xf32, #tpu.memory_space<vmem>>, vector<18x18x32xf32>
    tpu.vector_store %arg14[%c0_82, %c0_83, %c0_84], %62 {strides = array<i32>} : memref<18x18x32xf32, #tpu.memory_space<vmem>>, vector<18x18x32xf32>,
    %64 = vector.shape_cast %61 : vector<256x32xf32> to vector<16x16x32xf32>
    %c1_85 = arith.constant 1 : index
    %c1_86 = arith.constant 1 : index
    %c0_87 = arith.constant 0 : index
    %65 = vector.load %arg14[%c1_85, %c1_86, %c0_87] : memref<18x18x32xf32, #tpu.memory_space<vmem>>, vector<16x16x32xf32>
    tpu.vector_store %arg14[%c1_85, %c1_86, %c0_87], %64 {strides = array<i32>} : memref<18x18x32xf32, #tpu.memory_space<vmem>>, vector<16x16x32xf32>,
    %c0_88 = arith.constant 0 : index
    %c0_89 = arith.constant 0 : index
    %66 = vector.load %arg5[%c0_88, %c0_89] : memref<1x32xf32, #tpu.memory_space<vmem>>, vector<1x32xf32>
    %67 = vector.shape_cast %66 : vector<1x32xf32> to vector<1x32xf32>
    %68 = vector.broadcast %67 : vector<1x32xf32> to vector<256x32xf32>
    %c0_90 = arith.constant 0 : index
    %c0_91 = arith.constant 0 : index
    %c0_92 = arith.constant 0 : index
    %69 = vector.load %arg14[%c0_90, %c0_91, %c0_92] : memref<18x18x32xf32, #tpu.memory_space<vmem>>, vector<16x16x32xf32>
    %70 = vector.shape_cast %69 : vector<16x16x32xf32> to vector<256x32xf32>
    %c0_93 = arith.constant 0 : index
    %c0_94 = arith.constant 0 : index
    %c0_95 = arith.constant 0 : index
    %c0_96 = arith.constant 0 : index
    %71 = vector.load %arg4[%c0_93, %c0_94, %c0_95, %c0_96] : memref<3x3x32x32xf32, #tpu.memory_space<vmem>>, vector<1x1x32x32xf32>
    %72 = vector.shape_cast %71 : vector<1x1x32x32xf32> to vector<32x32xf32>
    %cst_97 = arith.constant dense<0.000000e+00> : vector<256x32xf32>
    %73 = tpu.matmul %70, %72, %cst_97 {dimension_numbers = #tpu.dot_dimension_numbers<[1], [0], [0], [1], [0, 0, 1, 1], [], []>} : vector<256x32xf32>, vector<32x32xf32>, vector<256x32xf32> -> vector<256x32xf32>
    %74 = arith.addf %68, %73 : vector<256x32xf32>
    %c0_98 = arith.constant 0 : index
    %c1_99 = arith.constant 1 : index
    %c0_100 = arith.constant 0 : index
    %75 = vector.load %arg14[%c0_98, %c1_99, %c0_100] : memref<18x18x32xf32, #tpu.memory_space<vmem>>, vector<16x16x32xf32>
    %76 = vector.shape_cast %75 : vector<16x16x32xf32> to vector<256x32xf32>
    %c0_101 = arith.constant 0 : index
    %c1_102 = arith.constant 1 : index
    %c0_103 = arith.constant 0 : index
    %c0_104 = arith.constant 0 : index
    %77 = vector.load %arg4[%c0_101, %c1_102, %c0_103, %c0_104] : memref<3x3x32x32xf32, #tpu.memory_space<vmem>>, vector<1x1x32x32xf32>
    %78 = vector.shape_cast %77 : vector<1x1x32x32xf32> to vector<32x32xf32>
    %cst_105 = arith.constant dense<0.000000e+00> : vector<256x32xf32>
    %79 = tpu.matmul %76, %78, %cst_105 {dimension_numbers = #tpu.dot_dimension_numbers<[1], [0], [0], [1], [0, 0, 1, 1], [], []>} : vector<256x32xf32>, vector<32x32xf32>, vector<256x32xf32> -> vector<256x32xf32>
    %80 = arith.addf %74, %79 : vector<256x32xf32>
    %c0_106 = arith.constant 0 : index
    %c2_107 = arith.constant 2 : index
    %c0_108 = arith.constant 0 : index
    %81 = vector.load %arg14[%c0_106, %c2_107, %c0_108] : memref<18x18x32xf32, #tpu.memory_space<vmem>>, vector<16x16x32xf32>
    %82 = vector.shape_cast %81 : vector<16x16x32xf32> to vector<256x32xf32>
    %c0_109 = arith.constant 0 : index
    %c2_110 = arith.constant 2 : index
    %c0_111 = arith.constant 0 : index
    %c0_112 = arith.constant 0 : index
    %83 = vector.load %arg4[%c0_109, %c2_110, %c0_111, %c0_112] : memref<3x3x32x32xf32, #tpu.memory_space<vmem>>, vector<1x1x32x32xf32>
    %84 = vector.shape_cast %83 : vector<1x1x32x32xf32> to vector<32x32xf32>
    %cst_113 = arith.constant dense<0.000000e+00> : vector<256x32xf32>
    %85 = tpu.matmul %82, %84, %cst_113 {dimension_numbers = #tpu.dot_dimension_numbers<[1], [0], [0], [1], [0, 0, 1, 1], [], []>} : vector<256x32xf32>, vector<32x32xf32>, vector<256x32xf32> -> vector<256x32xf32>
    %86 = arith.addf %80, %85 : vector<256x32xf32>
    %c1_114 = arith.constant 1 : index
    %c0_115 = arith.constant 0 : index
    %c0_116 = arith.constant 0 : index
    %87 = vector.load %arg14[%c1_114, %c0_115, %c0_116] : memref<18x18x32xf32, #tpu.memory_space<vmem>>, vector<16x16x32xf32>
    %88 = vector.shape_cast %87 : vector<16x16x32xf32> to vector<256x32xf32>
    %c1_117 = arith.constant 1 : index
    %c0_118 = arith.constant 0 : index
    %c0_119 = arith.constant 0 : index
    %c0_120 = arith.constant 0 : index
    %89 = vector.load %arg4[%c1_117, %c0_118, %c0_119, %c0_120] : memref<3x3x32x32xf32, #tpu.memory_space<vmem>>, vector<1x1x32x32xf32>
    %90 = vector.shape_cast %89 : vector<1x1x32x32xf32> to vector<32x32xf32>
    %cst_121 = arith.constant dense<0.000000e+00> : vector<256x32xf32>
    %91 = tpu.matmul %88, %90, %cst_121 {dimension_numbers = #tpu.dot_dimension_numbers<[1], [0], [0], [1], [0, 0, 1, 1], [], []>} : vector<256x32xf32>, vector<32x32xf32>, vector<256x32xf32> -> vector<256x32xf32>
    %92 = arith.addf %86, %91 : vector<256x32xf32>
    %c1_122 = arith.constant 1 : index
    %c1_123 = arith.constant 1 : index
    %c0_124 = arith.constant 0 : index
    %93 = vector.load %arg14[%c1_122, %c1_123, %c0_124] : memref<18x18x32xf32, #tpu.memory_space<vmem>>, vector<16x16x32xf32>
    %94 = vector.shape_cast %93 : vector<16x16x32xf32> to vector<256x32xf32>
    %c1_125 = arith.constant 1 : index
    %c1_126 = arith.constant 1 : index
    %c0_127 = arith.constant 0 : index
    %c0_128 = arith.constant 0 : index
    %95 = vector.load %arg4[%c1_125, %c1_126, %c0_127, %c0_128] : memref<3x3x32x32xf32, #tpu.memory_space<vmem>>, vector<1x1x32x32xf32>
    %96 = vector.shape_cast %95 : vector<1x1x32x32xf32> to vector<32x32xf32>
    %cst_129 = arith.constant dense<0.000000e+00> : vector<256x32xf32>
    %97 = tpu.matmul %94, %96, %cst_129 {dimension_numbers = #tpu.dot_dimension_numbers<[1], [0], [0], [1], [0, 0, 1, 1], [], []>} : vector<256x32xf32>, vector<32x32xf32>, vector<256x32xf32> -> vector<256x32xf32>
    %98 = arith.addf %92, %97 : vector<256x32xf32>
    %c1_130 = arith.constant 1 : index
    %c2_131 = arith.constant 2 : index
    %c0_132 = arith.constant 0 : index
    %99 = vector.load %arg14[%c1_130, %c2_131, %c0_132] : memref<18x18x32xf32, #tpu.memory_space<vmem>>, vector<16x16x32xf32>
    %100 = vector.shape_cast %99 : vector<16x16x32xf32> to vector<256x32xf32>
    %c1_133 = arith.constant 1 : index
    %c2_134 = arith.constant 2 : index
    %c0_135 = arith.constant 0 : index
    %c0_136 = arith.constant 0 : index
    %101 = vector.load %arg4[%c1_133, %c2_134, %c0_135, %c0_136] : memref<3x3x32x32xf32, #tpu.memory_space<vmem>>, vector<1x1x32x32xf32>
    %102 = vector.shape_cast %101 : vector<1x1x32x32xf32> to vector<32x32xf32>
    %cst_137 = arith.constant dense<0.000000e+00> : vector<256x32xf32>
    %103 = tpu.matmul %100, %102, %cst_137 {dimension_numbers = #tpu.dot_dimension_numbers<[1], [0], [0], [1], [0, 0, 1, 1], [], []>} : vector<256x32xf32>, vector<32x32xf32>, vector<256x32xf32> -> vector<256x32xf32>
    %104 = arith.addf %98, %103 : vector<256x32xf32>
    %c2_138 = arith.constant 2 : index
    %c0_139 = arith.constant 0 : index
    %c0_140 = arith.constant 0 : index
    %105 = vector.load %arg14[%c2_138, %c0_139, %c0_140] : memref<18x18x32xf32, #tpu.memory_space<vmem>>, vector<16x16x32xf32>
    %106 = vector.shape_cast %105 : vector<16x16x32xf32> to vector<256x32xf32>
    %c2_141 = arith.constant 2 : index
    %c0_142 = arith.constant 0 : index
    %c0_143 = arith.constant 0 : index
    %c0_144 = arith.constant 0 : index
    %107 = vector.load %arg4[%c2_141, %c0_142, %c0_143, %c0_144] : memref<3x3x32x32xf32, #tpu.memory_space<vmem>>, vector<1x1x32x32xf32>
    %108 = vector.shape_cast %107 : vector<1x1x32x32xf32> to vector<32x32xf32>
    %cst_145 = arith.constant dense<0.000000e+00> : vector<256x32xf32>
    %109 = tpu.matmul %106, %108, %cst_145 {dimension_numbers = #tpu.dot_dimension_numbers<[1], [0], [0], [1], [0, 0, 1, 1], [], []>} : vector<256x32xf32>, vector<32x32xf32>, vector<256x32xf32> -> vector<256x32xf32>
    %110 = arith.addf %104, %109 : vector<256x32xf32>
    %c2_146 = arith.constant 2 : index
    %c1_147 = arith.constant 1 : index
    %c0_148 = arith.constant 0 : index
    %111 = vector.load %arg14[%c2_146, %c1_147, %c0_148] : memref<18x18x32xf32, #tpu.memory_space<vmem>>, vector<16x16x32xf32>
    %112 = vector.shape_cast %111 : vector<16x16x32xf32> to vector<256x32xf32>
    %c2_149 = arith.constant 2 : index
    %c1_150 = arith.constant 1 : index
    %c0_151 = arith.constant 0 : index
    %c0_152 = arith.constant 0 : index
    %113 = vector.load %arg4[%c2_149, %c1_150, %c0_151, %c0_152] : memref<3x3x32x32xf32, #tpu.memory_space<vmem>>, vector<1x1x32x32xf32>
    %114 = vector.shape_cast %113 : vector<1x1x32x32xf32> to vector<32x32xf32>
    %cst_153 = arith.constant dense<0.000000e+00> : vector<256x32xf32>
    %115 = tpu.matmul %112, %114, %cst_153 {dimension_numbers = #tpu.dot_dimension_numbers<[1], [0], [0], [1], [0, 0, 1, 1], [], []>} : vector<256x32xf32>, vector<32x32xf32>, vector<256x32xf32> -> vector<256x32xf32>
    %116 = arith.addf %110, %115 : vector<256x32xf32>
    %c2_154 = arith.constant 2 : index
    %c2_155 = arith.constant 2 : index
    %c0_156 = arith.constant 0 : index
    %117 = vector.load %arg14[%c2_154, %c2_155, %c0_156] : memref<18x18x32xf32, #tpu.memory_space<vmem>>, vector<16x16x32xf32>
    %118 = vector.shape_cast %117 : vector<16x16x32xf32> to vector<256x32xf32>
    %c2_157 = arith.constant 2 : index
    %c2_158 = arith.constant 2 : index
    %c0_159 = arith.constant 0 : index
    %c0_160 = arith.constant 0 : index
    %119 = vector.load %arg4[%c2_157, %c2_158, %c0_159, %c0_160] : memref<3x3x32x32xf32, #tpu.memory_space<vmem>>, vector<1x1x32x32xf32>
    %120 = vector.shape_cast %119 : vector<1x1x32x32xf32> to vector<32x32xf32>
    %cst_161 = arith.constant dense<0.000000e+00> : vector<256x32xf32>
    %121 = tpu.matmul %118, %120, %cst_161 {dimension_numbers = #tpu.dot_dimension_numbers<[1], [0], [0], [1], [0, 0, 1, 1], [], []>} : vector<256x32xf32>, vector<32x32xf32>, vector<256x32xf32> -> vector<256x32xf32>
    %122 = arith.addf %116, %121 : vector<256x32xf32>
    %cst_162 = arith.constant 0.000000e+00 : f32
    %123 = vector.broadcast %cst_162 : f32 to vector<18x18x32xf32>
    %c0_163 = arith.constant 0 : index
    %c0_164 = arith.constant 0 : index
    %c0_165 = arith.constant 0 : index
    %124 = vector.load %arg15[%c0_163, %c0_164, %c0_165] : memref<18x18x32xf32, #tpu.memory_space<vmem>>, vector<18x18x32xf32>
    tpu.vector_store %arg15[%c0_163, %c0_164, %c0_165], %123 {strides = array<i32>} : memref<18x18x32xf32, #tpu.memory_space<vmem>>, vector<18x18x32xf32>,
    %125 = vector.shape_cast %122 : vector<256x32xf32> to vector<16x16x32xf32>
    %c1_166 = arith.constant 1 : index
    %c1_167 = arith.constant 1 : index
    %c0_168 = arith.constant 0 : index
    %126 = vector.load %arg15[%c1_166, %c1_167, %c0_168] : memref<18x18x32xf32, #tpu.memory_space<vmem>>, vector<16x16x32xf32>
    tpu.vector_store %arg15[%c1_166, %c1_167, %c0_168], %125 {strides = array<i32>} : memref<18x18x32xf32, #tpu.memory_space<vmem>>, vector<16x16x32xf32>,
    %c0_169 = arith.constant 0 : index
    %c0_170 = arith.constant 0 : index
    %127 = vector.load %arg7[%c0_169, %c0_170] : memref<1x32xf32, #tpu.memory_space<vmem>>, vector<1x32xf32>
    %128 = vector.shape_cast %127 : vector<1x32xf32> to vector<1x32xf32>
    %129 = vector.broadcast %128 : vector<1x32xf32> to vector<256x32xf32>
    %c0_171 = arith.constant 0 : index
    %c0_172 = arith.constant 0 : index
    %c0_173 = arith.constant 0 : index
    %130 = vector.load %arg15[%c0_171, %c0_172, %c0_173] : memref<18x18x32xf32, #tpu.memory_space<vmem>>, vector<16x16x32xf32>
    %131 = vector.shape_cast %130 : vector<16x16x32xf32> to vector<256x32xf32>
    %c0_174 = arith.constant 0 : index
    %c0_175 = arith.constant 0 : index
    %c0_176 = arith.constant 0 : index
    %c0_177 = arith.constant 0 : index
    %132 = vector.load %arg6[%c0_174, %c0_175, %c0_176, %c0_177] : memref<3x3x32x32xf32, #tpu.memory_space<vmem>>, vector<1x1x32x32xf32>
    %133 = vector.shape_cast %132 : vector<1x1x32x32xf32> to vector<32x32xf32>
    %cst_178 = arith.constant dense<0.000000e+00> : vector<256x32xf32>
    %134 = tpu.matmul %131, %133, %cst_178 {dimension_numbers = #tpu.dot_dimension_numbers<[1], [0], [0], [1], [0, 0, 1, 1], [], []>} : vector<256x32xf32>, vector<32x32xf32>, vector<256x32xf32> -> vector<256x32xf32>
    %135 = arith.addf %129, %134 : vector<256x32xf32>
    %c0_179 = arith.constant 0 : index
    %c1_180 = arith.constant 1 : index
    %c0_181 = arith.constant 0 : index
    %136 = vector.load %arg15[%c0_179, %c1_180, %c0_181] : memref<18x18x32xf32, #tpu.memory_space<vmem>>, vector<16x16x32xf32>
    %137 = vector.shape_cast %136 : vector<16x16x32xf32> to vector<256x32xf32>
    %c0_182 = arith.constant 0 : index
    %c1_183 = arith.constant 1 : index
    %c0_184 = arith.constant 0 : index
    %c0_185 = arith.constant 0 : index
    %138 = vector.load %arg6[%c0_182, %c1_183, %c0_184, %c0_185] : memref<3x3x32x32xf32, #tpu.memory_space<vmem>>, vector<1x1x32x32xf32>
    %139 = vector.shape_cast %138 : vector<1x1x32x32xf32> to vector<32x32xf32>
    %cst_186 = arith.constant dense<0.000000e+00> : vector<256x32xf32>
    %140 = tpu.matmul %137, %139, %cst_186 {dimension_numbers = #tpu.dot_dimension_numbers<[1], [0], [0], [1], [0, 0, 1, 1], [], []>} : vector<256x32xf32>, vector<32x32xf32>, vector<256x32xf32> -> vector<256x32xf32>
    %141 = arith.addf %135, %140 : vector<256x32xf32>
    %c0_187 = arith.constant 0 : index
    %c2_188 = arith.constant 2 : index
    %c0_189 = arith.constant 0 : index
    %142 = vector.load %arg15[%c0_187, %c2_188, %c0_189] : memref<18x18x32xf32, #tpu.memory_space<vmem>>, vector<16x16x32xf32>
    %143 = vector.shape_cast %142 : vector<16x16x32xf32> to vector<256x32xf32>
    %c0_190 = arith.constant 0 : index
    %c2_191 = arith.constant 2 : index
    %c0_192 = arith.constant 0 : index
    %c0_193 = arith.constant 0 : index
    %144 = vector.load %arg6[%c0_190, %c2_191, %c0_192, %c0_193] : memref<3x3x32x32xf32, #tpu.memory_space<vmem>>, vector<1x1x32x32xf32>
    %145 = vector.shape_cast %144 : vector<1x1x32x32xf32> to vector<32x32xf32>
    %cst_194 = arith.constant dense<0.000000e+00> : vector<256x32xf32>
    %146 = tpu.matmul %143, %145, %cst_194 {dimension_numbers = #tpu.dot_dimension_numbers<[1], [0], [0], [1], [0, 0, 1, 1], [], []>} : vector<256x32xf32>, vector<32x32xf32>, vector<256x32xf32> -> vector<256x32xf32>
    %147 = arith.addf %141, %146 : vector<256x32xf32>
    %c1_195 = arith.constant 1 : index
    %c0_196 = arith.constant 0 : index
    %c0_197 = arith.constant 0 : index
    %148 = vector.load %arg15[%c1_195, %c0_196, %c0_197] : memref<18x18x32xf32, #tpu.memory_space<vmem>>, vector<16x16x32xf32>
    %149 = vector.shape_cast %148 : vector<16x16x32xf32> to vector<256x32xf32>
    %c1_198 = arith.constant 1 : index
    %c0_199 = arith.constant 0 : index
    %c0_200 = arith.constant 0 : index
    %c0_201 = arith.constant 0 : index
    %150 = vector.load %arg6[%c1_198, %c0_199, %c0_200, %c0_201] : memref<3x3x32x32xf32, #tpu.memory_space<vmem>>, vector<1x1x32x32xf32>
    %151 = vector.shape_cast %150 : vector<1x1x32x32xf32> to vector<32x32xf32>
    %cst_202 = arith.constant dense<0.000000e+00> : vector<256x32xf32>
    %152 = tpu.matmul %149, %151, %cst_202 {dimension_numbers = #tpu.dot_dimension_numbers<[1], [0], [0], [1], [0, 0, 1, 1], [], []>} : vector<256x32xf32>, vector<32x32xf32>, vector<256x32xf32> -> vector<256x32xf32>
    %153 = arith.addf %147, %152 : vector<256x32xf32>
    %c1_203 = arith.constant 1 : index
    %c1_204 = arith.constant 1 : index
    %c0_205 = arith.constant 0 : index
    %154 = vector.load %arg15[%c1_203, %c1_204, %c0_205] : memref<18x18x32xf32, #tpu.memory_space<vmem>>, vector<16x16x32xf32>
    %155 = vector.shape_cast %154 : vector<16x16x32xf32> to vector<256x32xf32>
    %c1_206 = arith.constant 1 : index
    %c1_207 = arith.constant 1 : index
    %c0_208 = arith.constant 0 : index
    %c0_209 = arith.constant 0 : index
    %156 = vector.load %arg6[%c1_206, %c1_207, %c0_208, %c0_209] : memref<3x3x32x32xf32, #tpu.memory_space<vmem>>, vector<1x1x32x32xf32>
    %157 = vector.shape_cast %156 : vector<1x1x32x32xf32> to vector<32x32xf32>
    %cst_210 = arith.constant dense<0.000000e+00> : vector<256x32xf32>
    %158 = tpu.matmul %155, %157, %cst_210 {dimension_numbers = #tpu.dot_dimension_numbers<[1], [0], [0], [1], [0, 0, 1, 1], [], []>} : vector<256x32xf32>, vector<32x32xf32>, vector<256x32xf32> -> vector<256x32xf32>
    %159 = arith.addf %153, %158 : vector<256x32xf32>
    %c1_211 = arith.constant 1 : index
    %c2_212 = arith.constant 2 : index
    %c0_213 = arith.constant 0 : index
    %160 = vector.load %arg15[%c1_211, %c2_212, %c0_213] : memref<18x18x32xf32, #tpu.memory_space<vmem>>, vector<16x16x32xf32>
    %161 = vector.shape_cast %160 : vector<16x16x32xf32> to vector<256x32xf32>
    %c1_214 = arith.constant 1 : index
    %c2_215 = arith.constant 2 : index
    %c0_216 = arith.constant 0 : index
    %c0_217 = arith.constant 0 : index
    %162 = vector.load %arg6[%c1_214, %c2_215, %c0_216, %c0_217] : memref<3x3x32x32xf32, #tpu.memory_space<vmem>>, vector<1x1x32x32xf32>
    %163 = vector.shape_cast %162 : vector<1x1x32x32xf32> to vector<32x32xf32>
    %cst_218 = arith.constant dense<0.000000e+00> : vector<256x32xf32>
    %164 = tpu.matmul %161, %163, %cst_218 {dimension_numbers = #tpu.dot_dimension_numbers<[1], [0], [0], [1], [0, 0, 1, 1], [], []>} : vector<256x32xf32>, vector<32x32xf32>, vector<256x32xf32> -> vector<256x32xf32>
    %165 = arith.addf %159, %164 : vector<256x32xf32>
    %c2_219 = arith.constant 2 : index
    %c0_220 = arith.constant 0 : index
    %c0_221 = arith.constant 0 : index
    %166 = vector.load %arg15[%c2_219, %c0_220, %c0_221] : memref<18x18x32xf32, #tpu.memory_space<vmem>>, vector<16x16x32xf32>
    %167 = vector.shape_cast %166 : vector<16x16x32xf32> to vector<256x32xf32>
    %c2_222 = arith.constant 2 : index
    %c0_223 = arith.constant 0 : index
    %c0_224 = arith.constant 0 : index
    %c0_225 = arith.constant 0 : index
    %168 = vector.load %arg6[%c2_222, %c0_223, %c0_224, %c0_225] : memref<3x3x32x32xf32, #tpu.memory_space<vmem>>, vector<1x1x32x32xf32>
    %169 = vector.shape_cast %168 : vector<1x1x32x32xf32> to vector<32x32xf32>
    %cst_226 = arith.constant dense<0.000000e+00> : vector<256x32xf32>
    %170 = tpu.matmul %167, %169, %cst_226 {dimension_numbers = #tpu.dot_dimension_numbers<[1], [0], [0], [1], [0, 0, 1, 1], [], []>} : vector<256x32xf32>, vector<32x32xf32>, vector<256x32xf32> -> vector<256x32xf32>
    %171 = arith.addf %165, %170 : vector<256x32xf32>
    %c2_227 = arith.constant 2 : index
    %c1_228 = arith.constant 1 : index
    %c0_229 = arith.constant 0 : index
    %172 = vector.load %arg15[%c2_227, %c1_228, %c0_229] : memref<18x18x32xf32, #tpu.memory_space<vmem>>, vector<16x16x32xf32>
    %173 = vector.shape_cast %172 : vector<16x16x32xf32> to vector<256x32xf32>
    %c2_230 = arith.constant 2 : index
    %c1_231 = arith.constant 1 : index
    %c0_232 = arith.constant 0 : index
    %c0_233 = arith.constant 0 : index
    %174 = vector.load %arg6[%c2_230, %c1_231, %c0_232, %c0_233] : memref<3x3x32x32xf32, #tpu.memory_space<vmem>>, vector<1x1x32x32xf32>
    %175 = vector.shape_cast %174 : vector<1x1x32x32xf32> to vector<32x32xf32>
    %cst_234 = arith.constant dense<0.000000e+00> : vector<256x32xf32>
    %176 = tpu.matmul %173, %175, %cst_234 {dimension_numbers = #tpu.dot_dimension_numbers<[1], [0], [0], [1], [0, 0, 1, 1], [], []>} : vector<256x32xf32>, vector<32x32xf32>, vector<256x32xf32> -> vector<256x32xf32>
    %177 = arith.addf %171, %176 : vector<256x32xf32>
    %c2_235 = arith.constant 2 : index
    %c2_236 = arith.constant 2 : index
    %c0_237 = arith.constant 0 : index
    %178 = vector.load %arg15[%c2_235, %c2_236, %c0_237] : memref<18x18x32xf32, #tpu.memory_space<vmem>>, vector<16x16x32xf32>
    %179 = vector.shape_cast %178 : vector<16x16x32xf32> to vector<256x32xf32>
    %c2_238 = arith.constant 2 : index
    %c2_239 = arith.constant 2 : index
    %c0_240 = arith.constant 0 : index
    %c0_241 = arith.constant 0 : index
    %180 = vector.load %arg6[%c2_238, %c2_239, %c0_240, %c0_241] : memref<3x3x32x32xf32, #tpu.memory_space<vmem>>, vector<1x1x32x32xf32>
    %181 = vector.shape_cast %180 : vector<1x1x32x32xf32> to vector<32x32xf32>
    %cst_242 = arith.constant dense<0.000000e+00> : vector<256x32xf32>
    %182 = tpu.matmul %179, %181, %cst_242 {dimension_numbers = #tpu.dot_dimension_numbers<[1], [0], [0], [1], [0, 0, 1, 1], [], []>} : vector<256x32xf32>, vector<32x32xf32>, vector<256x32xf32> -> vector<256x32xf32>
    %183 = arith.addf %177, %182 : vector<256x32xf32>
    %cst_243 = arith.constant 0.000000e+00 : f32
    %184 = vector.broadcast %cst_243 : f32 to vector<18x18x32xf32>
    %c0_244 = arith.constant 0 : index
    %c0_245 = arith.constant 0 : index
    %c0_246 = arith.constant 0 : index
    %185 = vector.load %arg16[%c0_244, %c0_245, %c0_246] : memref<18x18x32xf32, #tpu.memory_space<vmem>>, vector<18x18x32xf32>
    tpu.vector_store %arg16[%c0_244, %c0_245, %c0_246], %184 {strides = array<i32>} : memref<18x18x32xf32, #tpu.memory_space<vmem>>, vector<18x18x32xf32>,
    %186 = vector.shape_cast %183 : vector<256x32xf32> to vector<16x16x32xf32>
    %c1_247 = arith.constant 1 : index
    %c1_248 = arith.constant 1 : index
    %c0_249 = arith.constant 0 : index
    %187 = vector.load %arg16[%c1_247, %c1_248, %c0_249] : memref<18x18x32xf32, #tpu.memory_space<vmem>>, vector<16x16x32xf32>
    tpu.vector_store %arg16[%c1_247, %c1_248, %c0_249], %186 {strides = array<i32>} : memref<18x18x32xf32, #tpu.memory_space<vmem>>, vector<16x16x32xf32>,
    %c0_250 = arith.constant 0 : index
    %c0_251 = arith.constant 0 : index
    %188 = vector.load %arg11[%c0_250, %c0_251] : memref<1x4xf32, #tpu.memory_space<vmem>>, vector<1x4xf32>
    %189 = vector.shape_cast %188 : vector<1x4xf32> to vector<1x4xf32>
    %190 = vector.broadcast %189 : vector<1x4xf32> to vector<256x4xf32>
    %c0_252 = arith.constant 0 : index
    %c0_253 = arith.constant 0 : index
    %c0_254 = arith.constant 0 : index
    %191 = vector.load %arg14[%c0_252, %c0_253, %c0_254] : memref<18x18x32xf32, #tpu.memory_space<vmem>>, vector<16x16x32xf32>
    %192 = vector.shape_cast %191 : vector<16x16x32xf32> to vector<256x32xf32>
    %c0_255 = arith.constant 0 : index
    %c0_256 = arith.constant 0 : index
    %c0_257 = arith.constant 0 : index
    %c0_258 = arith.constant 0 : index
    %193 = vector.load %arg8[%c0_255, %c0_256, %c0_257, %c0_258] : memref<3x3x32x4xf32, #tpu.memory_space<vmem>>, vector<1x1x32x4xf32>
    %194 = vector.shape_cast %193 : vector<1x1x32x4xf32> to vector<32x4xf32>
    %cst_259 = arith.constant dense<0.000000e+00> : vector<256x4xf32>
    %195 = tpu.matmul %192, %194, %cst_259 {dimension_numbers = #tpu.dot_dimension_numbers<[1], [0], [0], [1], [0, 0, 1, 1], [], []>} : vector<256x32xf32>, vector<32x4xf32>, vector<256x4xf32> -> vector<256x4xf32>
    %196 = arith.addf %190, %195 : vector<256x4xf32>
    %c0_260 = arith.constant 0 : index
    %c1_261 = arith.constant 1 : index
    %c0_262 = arith.constant 0 : index
    %197 = vector.load %arg14[%c0_260, %c1_261, %c0_262] : memref<18x18x32xf32, #tpu.memory_space<vmem>>, vector<16x16x32xf32>
    %198 = vector.shape_cast %197 : vector<16x16x32xf32> to vector<256x32xf32>
    %c0_263 = arith.constant 0 : index
    %c1_264 = arith.constant 1 : index
    %c0_265 = arith.constant 0 : index
    %c0_266 = arith.constant 0 : index
    %199 = vector.load %arg8[%c0_263, %c1_264, %c0_265, %c0_266] : memref<3x3x32x4xf32, #tpu.memory_space<vmem>>, vector<1x1x32x4xf32>
    %200 = vector.shape_cast %199 : vector<1x1x32x4xf32> to vector<32x4xf32>
    %cst_267 = arith.constant dense<0.000000e+00> : vector<256x4xf32>
    %201 = tpu.matmul %198, %200, %cst_267 {dimension_numbers = #tpu.dot_dimension_numbers<[1], [0], [0], [1], [0, 0, 1, 1], [], []>} : vector<256x32xf32>, vector<32x4xf32>, vector<256x4xf32> -> vector<256x4xf32>
    %202 = arith.addf %196, %201 : vector<256x4xf32>
    %c0_268 = arith.constant 0 : index
    %c2_269 = arith.constant 2 : index
    %c0_270 = arith.constant 0 : index
    %203 = vector.load %arg14[%c0_268, %c2_269, %c0_270] : memref<18x18x32xf32, #tpu.memory_space<vmem>>, vector<16x16x32xf32>
    %204 = vector.shape_cast %203 : vector<16x16x32xf32> to vector<256x32xf32>
    %c0_271 = arith.constant 0 : index
    %c2_272 = arith.constant 2 : index
    %c0_273 = arith.constant 0 : index
    %c0_274 = arith.constant 0 : index
    %205 = vector.load %arg8[%c0_271, %c2_272, %c0_273, %c0_274] : memref<3x3x32x4xf32, #tpu.memory_space<vmem>>, vector<1x1x32x4xf32>
    %206 = vector.shape_cast %205 : vector<1x1x32x4xf32> to vector<32x4xf32>
    %cst_275 = arith.constant dense<0.000000e+00> : vector<256x4xf32>
    %207 = tpu.matmul %204, %206, %cst_275 {dimension_numbers = #tpu.dot_dimension_numbers<[1], [0], [0], [1], [0, 0, 1, 1], [], []>} : vector<256x32xf32>, vector<32x4xf32>, vector<256x4xf32> -> vector<256x4xf32>
    %208 = arith.addf %202, %207 : vector<256x4xf32>
    %c1_276 = arith.constant 1 : index
    %c0_277 = arith.constant 0 : index
    %c0_278 = arith.constant 0 : index
    %209 = vector.load %arg14[%c1_276, %c0_277, %c0_278] : memref<18x18x32xf32, #tpu.memory_space<vmem>>, vector<16x16x32xf32>
    %210 = vector.shape_cast %209 : vector<16x16x32xf32> to vector<256x32xf32>
    %c1_279 = arith.constant 1 : index
    %c0_280 = arith.constant 0 : index
    %c0_281 = arith.constant 0 : index
    %c0_282 = arith.constant 0 : index
    %211 = vector.load %arg8[%c1_279, %c0_280, %c0_281, %c0_282] : memref<3x3x32x4xf32, #tpu.memory_space<vmem>>, vector<1x1x32x4xf32>
    %212 = vector.shape_cast %211 : vector<1x1x32x4xf32> to vector<32x4xf32>
    %cst_283 = arith.constant dense<0.000000e+00> : vector<256x4xf32>
    %213 = tpu.matmul %210, %212, %cst_283 {dimension_numbers = #tpu.dot_dimension_numbers<[1], [0], [0], [1], [0, 0, 1, 1], [], []>} : vector<256x32xf32>, vector<32x4xf32>, vector<256x4xf32> -> vector<256x4xf32>
    %214 = arith.addf %208, %213 : vector<256x4xf32>
    %c1_284 = arith.constant 1 : index
    %c1_285 = arith.constant 1 : index
    %c0_286 = arith.constant 0 : index
    %215 = vector.load %arg14[%c1_284, %c1_285, %c0_286] : memref<18x18x32xf32, #tpu.memory_space<vmem>>, vector<16x16x32xf32>
    %216 = vector.shape_cast %215 : vector<16x16x32xf32> to vector<256x32xf32>
    %c1_287 = arith.constant 1 : index
    %c1_288 = arith.constant 1 : index
    %c0_289 = arith.constant 0 : index
    %c0_290 = arith.constant 0 : index
    %217 = vector.load %arg8[%c1_287, %c1_288, %c0_289, %c0_290] : memref<3x3x32x4xf32, #tpu.memory_space<vmem>>, vector<1x1x32x4xf32>
    %218 = vector.shape_cast %217 : vector<1x1x32x4xf32> to vector<32x4xf32>
    %cst_291 = arith.constant dense<0.000000e+00> : vector<256x4xf32>
    %219 = tpu.matmul %216, %218, %cst_291 {dimension_numbers = #tpu.dot_dimension_numbers<[1], [0], [0], [1], [0, 0, 1, 1], [], []>} : vector<256x32xf32>, vector<32x4xf32>, vector<256x4xf32> -> vector<256x4xf32>
    %220 = arith.addf %214, %219 : vector<256x4xf32>
    %c1_292 = arith.constant 1 : index
    %c2_293 = arith.constant 2 : index
    %c0_294 = arith.constant 0 : index
    %221 = vector.load %arg14[%c1_292, %c2_293, %c0_294] : memref<18x18x32xf32, #tpu.memory_space<vmem>>, vector<16x16x32xf32>
    %222 = vector.shape_cast %221 : vector<16x16x32xf32> to vector<256x32xf32>
    %c1_295 = arith.constant 1 : index
    %c2_296 = arith.constant 2 : index
    %c0_297 = arith.constant 0 : index
    %c0_298 = arith.constant 0 : index
    %223 = vector.load %arg8[%c1_295, %c2_296, %c0_297, %c0_298] : memref<3x3x32x4xf32, #tpu.memory_space<vmem>>, vector<1x1x32x4xf32>
    %224 = vector.shape_cast %223 : vector<1x1x32x4xf32> to vector<32x4xf32>
    %cst_299 = arith.constant dense<0.000000e+00> : vector<256x4xf32>
    %225 = tpu.matmul %222, %224, %cst_299 {dimension_numbers = #tpu.dot_dimension_numbers<[1], [0], [0], [1], [0, 0, 1, 1], [], []>} : vector<256x32xf32>, vector<32x4xf32>, vector<256x4xf32> -> vector<256x4xf32>
    %226 = arith.addf %220, %225 : vector<256x4xf32>
    %c2_300 = arith.constant 2 : index
    %c0_301 = arith.constant 0 : index
    %c0_302 = arith.constant 0 : index
    %227 = vector.load %arg14[%c2_300, %c0_301, %c0_302] : memref<18x18x32xf32, #tpu.memory_space<vmem>>, vector<16x16x32xf32>
    %228 = vector.shape_cast %227 : vector<16x16x32xf32> to vector<256x32xf32>
    %c2_303 = arith.constant 2 : index
    %c0_304 = arith.constant 0 : index
    %c0_305 = arith.constant 0 : index
    %c0_306 = arith.constant 0 : index
    %229 = vector.load %arg8[%c2_303, %c0_304, %c0_305, %c0_306] : memref<3x3x32x4xf32, #tpu.memory_space<vmem>>, vector<1x1x32x4xf32>
    %230 = vector.shape_cast %229 : vector<1x1x32x4xf32> to vector<32x4xf32>
    %cst_307 = arith.constant dense<0.000000e+00> : vector<256x4xf32>
    %231 = tpu.matmul %228, %230, %cst_307 {dimension_numbers = #tpu.dot_dimension_numbers<[1], [0], [0], [1], [0, 0, 1, 1], [], []>} : vector<256x32xf32>, vector<32x4xf32>, vector<256x4xf32> -> vector<256x4xf32>
    %232 = arith.addf %226, %231 : vector<256x4xf32>
    %c2_308 = arith.constant 2 : index
    %c1_309 = arith.constant 1 : index
    %c0_310 = arith.constant 0 : index
    %233 = vector.load %arg14[%c2_308, %c1_309, %c0_310] : memref<18x18x32xf32, #tpu.memory_space<vmem>>, vector<16x16x32xf32>
    %234 = vector.shape_cast %233 : vector<16x16x32xf32> to vector<256x32xf32>
    %c2_311 = arith.constant 2 : index
    %c1_312 = arith.constant 1 : index
    %c0_313 = arith.constant 0 : index
    %c0_314 = arith.constant 0 : index
    %235 = vector.load %arg8[%c2_311, %c1_312, %c0_313, %c0_314] : memref<3x3x32x4xf32, #tpu.memory_space<vmem>>, vector<1x1x32x4xf32>
    %236 = vector.shape_cast %235 : vector<1x1x32x4xf32> to vector<32x4xf32>
    %cst_315 = arith.constant dense<0.000000e+00> : vector<256x4xf32>
    %237 = tpu.matmul %234, %236, %cst_315 {dimension_numbers = #tpu.dot_dimension_numbers<[1], [0], [0], [1], [0, 0, 1, 1], [], []>} : vector<256x32xf32>, vector<32x4xf32>, vector<256x4xf32> -> vector<256x4xf32>
    %238 = arith.addf %232, %237 : vector<256x4xf32>
    %c2_316 = arith.constant 2 : index
    %c2_317 = arith.constant 2 : index
    %c0_318 = arith.constant 0 : index
    %239 = vector.load %arg14[%c2_316, %c2_317, %c0_318] : memref<18x18x32xf32, #tpu.memory_space<vmem>>, vector<16x16x32xf32>
    %240 = vector.shape_cast %239 : vector<16x16x32xf32> to vector<256x32xf32>
    %c2_319 = arith.constant 2 : index
    %c2_320 = arith.constant 2 : index
    %c0_321 = arith.constant 0 : index
    %c0_322 = arith.constant 0 : index
    %241 = vector.load %arg8[%c2_319, %c2_320, %c0_321, %c0_322] : memref<3x3x32x4xf32, #tpu.memory_space<vmem>>, vector<1x1x32x4xf32>
    %242 = vector.shape_cast %241 : vector<1x1x32x4xf32> to vector<32x4xf32>
    %cst_323 = arith.constant dense<0.000000e+00> : vector<256x4xf32>
    %243 = tpu.matmul %240, %242, %cst_323 {dimension_numbers = #tpu.dot_dimension_numbers<[1], [0], [0], [1], [0, 0, 1, 1], [], []>} : vector<256x32xf32>, vector<32x4xf32>, vector<256x4xf32> -> vector<256x4xf32>
    %244 = arith.addf %238, %243 : vector<256x4xf32>
    %c0_324 = arith.constant 0 : index
    %c0_325 = arith.constant 0 : index
    %c0_326 = arith.constant 0 : index
    %245 = vector.load %arg15[%c0_324, %c0_325, %c0_326] : memref<18x18x32xf32, #tpu.memory_space<vmem>>, vector<16x16x32xf32>
    %246 = vector.shape_cast %245 : vector<16x16x32xf32> to vector<256x32xf32>
    %c0_327 = arith.constant 0 : index
    %c0_328 = arith.constant 0 : index
    %c0_329 = arith.constant 0 : index
    %c0_330 = arith.constant 0 : index
    %247 = vector.load %arg9[%c0_327, %c0_328, %c0_329, %c0_330] : memref<3x3x32x4xf32, #tpu.memory_space<vmem>>, vector<1x1x32x4xf32>
    %248 = vector.shape_cast %247 : vector<1x1x32x4xf32> to vector<32x4xf32>
    %cst_331 = arith.constant dense<0.000000e+00> : vector<256x4xf32>
    %249 = tpu.matmul %246, %248, %cst_331 {dimension_numbers = #tpu.dot_dimension_numbers<[1], [0], [0], [1], [0, 0, 1, 1], [], []>} : vector<256x32xf32>, vector<32x4xf32>, vector<256x4xf32> -> vector<256x4xf32>
    %250 = arith.addf %244, %249 : vector<256x4xf32>
    %c0_332 = arith.constant 0 : index
    %c1_333 = arith.constant 1 : index
    %c0_334 = arith.constant 0 : index
    %251 = vector.load %arg15[%c0_332, %c1_333, %c0_334] : memref<18x18x32xf32, #tpu.memory_space<vmem>>, vector<16x16x32xf32>
    %252 = vector.shape_cast %251 : vector<16x16x32xf32> to vector<256x32xf32>
    %c0_335 = arith.constant 0 : index
    %c1_336 = arith.constant 1 : index
    %c0_337 = arith.constant 0 : index
    %c0_338 = arith.constant 0 : index
    %253 = vector.load %arg9[%c0_335, %c1_336, %c0_337, %c0_338] : memref<3x3x32x4xf32, #tpu.memory_space<vmem>>, vector<1x1x32x4xf32>
    %254 = vector.shape_cast %253 : vector<1x1x32x4xf32> to vector<32x4xf32>
    %cst_339 = arith.constant dense<0.000000e+00> : vector<256x4xf32>
    %255 = tpu.matmul %252, %254, %cst_339 {dimension_numbers = #tpu.dot_dimension_numbers<[1], [0], [0], [1], [0, 0, 1, 1], [], []>} : vector<256x32xf32>, vector<32x4xf32>, vector<256x4xf32> -> vector<256x4xf32>
    %256 = arith.addf %250, %255 : vector<256x4xf32>
    %c0_340 = arith.constant 0 : index
    %c2_341 = arith.constant 2 : index
    %c0_342 = arith.constant 0 : index
    %257 = vector.load %arg15[%c0_340, %c2_341, %c0_342] : memref<18x18x32xf32, #tpu.memory_space<vmem>>, vector<16x16x32xf32>
    %258 = vector.shape_cast %257 : vector<16x16x32xf32> to vector<256x32xf32>
    %c0_343 = arith.constant 0 : index
    %c2_344 = arith.constant 2 : index
    %c0_345 = arith.constant 0 : index
    %c0_346 = arith.constant 0 : index
    %259 = vector.load %arg9[%c0_343, %c2_344, %c0_345, %c0_346] : memref<3x3x32x4xf32, #tpu.memory_space<vmem>>, vector<1x1x32x4xf32>
    %260 = vector.shape_cast %259 : vector<1x1x32x4xf32> to vector<32x4xf32>
    %cst_347 = arith.constant dense<0.000000e+00> : vector<256x4xf32>
    %261 = tpu.matmul %258, %260, %cst_347 {dimension_numbers = #tpu.dot_dimension_numbers<[1], [0], [0], [1], [0, 0, 1, 1], [], []>} : vector<256x32xf32>, vector<32x4xf32>, vector<256x4xf32> -> vector<256x4xf32>
    %262 = arith.addf %256, %261 : vector<256x4xf32>
    %c1_348 = arith.constant 1 : index
    %c0_349 = arith.constant 0 : index
    %c0_350 = arith.constant 0 : index
    %263 = vector.load %arg15[%c1_348, %c0_349, %c0_350] : memref<18x18x32xf32, #tpu.memory_space<vmem>>, vector<16x16x32xf32>
    %264 = vector.shape_cast %263 : vector<16x16x32xf32> to vector<256x32xf32>
    %c1_351 = arith.constant 1 : index
    %c0_352 = arith.constant 0 : index
    %c0_353 = arith.constant 0 : index
    %c0_354 = arith.constant 0 : index
    %265 = vector.load %arg9[%c1_351, %c0_352, %c0_353, %c0_354] : memref<3x3x32x4xf32, #tpu.memory_space<vmem>>, vector<1x1x32x4xf32>
    %266 = vector.shape_cast %265 : vector<1x1x32x4xf32> to vector<32x4xf32>
    %cst_355 = arith.constant dense<0.000000e+00> : vector<256x4xf32>
    %267 = tpu.matmul %264, %266, %cst_355 {dimension_numbers = #tpu.dot_dimension_numbers<[1], [0], [0], [1], [0, 0, 1, 1], [], []>} : vector<256x32xf32>, vector<32x4xf32>, vector<256x4xf32> -> vector<256x4xf32>
    %268 = arith.addf %262, %267 : vector<256x4xf32>
    %c1_356 = arith.constant 1 : index
    %c1_357 = arith.constant 1 : index
    %c0_358 = arith.constant 0 : index
    %269 = vector.load %arg15[%c1_356, %c1_357, %c0_358] : memref<18x18x32xf32, #tpu.memory_space<vmem>>, vector<16x16x32xf32>
    %270 = vector.shape_cast %269 : vector<16x16x32xf32> to vector<256x32xf32>
    %c1_359 = arith.constant 1 : index
    %c1_360 = arith.constant 1 : index
    %c0_361 = arith.constant 0 : index
    %c0_362 = arith.constant 0 : index
    %271 = vector.load %arg9[%c1_359, %c1_360, %c0_361, %c0_362] : memref<3x3x32x4xf32, #tpu.memory_space<vmem>>, vector<1x1x32x4xf32>
    %272 = vector.shape_cast %271 : vector<1x1x32x4xf32> to vector<32x4xf32>
    %cst_363 = arith.constant dense<0.000000e+00> : vector<256x4xf32>
    %273 = tpu.matmul %270, %272, %cst_363 {dimension_numbers = #tpu.dot_dimension_numbers<[1], [0], [0], [1], [0, 0, 1, 1], [], []>} : vector<256x32xf32>, vector<32x4xf32>, vector<256x4xf32> -> vector<256x4xf32>
    %274 = arith.addf %268, %273 : vector<256x4xf32>
    %c1_364 = arith.constant 1 : index
    %c2_365 = arith.constant 2 : index
    %c0_366 = arith.constant 0 : index
    %275 = vector.load %arg15[%c1_364, %c2_365, %c0_366] : memref<18x18x32xf32, #tpu.memory_space<vmem>>, vector<16x16x32xf32>
    %276 = vector.shape_cast %275 : vector<16x16x32xf32> to vector<256x32xf32>
    %c1_367 = arith.constant 1 : index
    %c2_368 = arith.constant 2 : index
    %c0_369 = arith.constant 0 : index
    %c0_370 = arith.constant 0 : index
    %277 = vector.load %arg9[%c1_367, %c2_368, %c0_369, %c0_370] : memref<3x3x32x4xf32, #tpu.memory_space<vmem>>, vector<1x1x32x4xf32>
    %278 = vector.shape_cast %277 : vector<1x1x32x4xf32> to vector<32x4xf32>
    %cst_371 = arith.constant dense<0.000000e+00> : vector<256x4xf32>
    %279 = tpu.matmul %276, %278, %cst_371 {dimension_numbers = #tpu.dot_dimension_numbers<[1], [0], [0], [1], [0, 0, 1, 1], [], []>} : vector<256x32xf32>, vector<32x4xf32>, vector<256x4xf32> -> vector<256x4xf32>
    %280 = arith.addf %274, %279 : vector<256x4xf32>
    %c2_372 = arith.constant 2 : index
    %c0_373 = arith.constant 0 : index
    %c0_374 = arith.constant 0 : index
    %281 = vector.load %arg15[%c2_372, %c0_373, %c0_374] : memref<18x18x32xf32, #tpu.memory_space<vmem>>, vector<16x16x32xf32>
    %282 = vector.shape_cast %281 : vector<16x16x32xf32> to vector<256x32xf32>
    %c2_375 = arith.constant 2 : index
    %c0_376 = arith.constant 0 : index
    %c0_377 = arith.constant 0 : index
    %c0_378 = arith.constant 0 : index
    %283 = vector.load %arg9[%c2_375, %c0_376, %c0_377, %c0_378] : memref<3x3x32x4xf32, #tpu.memory_space<vmem>>, vector<1x1x32x4xf32>
    %284 = vector.shape_cast %283 : vector<1x1x32x4xf32> to vector<32x4xf32>
    %cst_379 = arith.constant dense<0.000000e+00> : vector<256x4xf32>
    %285 = tpu.matmul %282, %284, %cst_379 {dimension_numbers = #tpu.dot_dimension_numbers<[1], [0], [0], [1], [0, 0, 1, 1], [], []>} : vector<256x32xf32>, vector<32x4xf32>, vector<256x4xf32> -> vector<256x4xf32>
    %286 = arith.addf %280, %285 : vector<256x4xf32>
    %c2_380 = arith.constant 2 : index
    %c1_381 = arith.constant 1 : index
    %c0_382 = arith.constant 0 : index
    %287 = vector.load %arg15[%c2_380, %c1_381, %c0_382] : memref<18x18x32xf32, #tpu.memory_space<vmem>>, vector<16x16x32xf32>
    %288 = vector.shape_cast %287 : vector<16x16x32xf32> to vector<256x32xf32>
    %c2_383 = arith.constant 2 : index
    %c1_384 = arith.constant 1 : index
    %c0_385 = arith.constant 0 : index
    %c0_386 = arith.constant 0 : index
    %289 = vector.load %arg9[%c2_383, %c1_384, %c0_385, %c0_386] : memref<3x3x32x4xf32, #tpu.memory_space<vmem>>, vector<1x1x32x4xf32>
    %290 = vector.shape_cast %289 : vector<1x1x32x4xf32> to vector<32x4xf32>
    %cst_387 = arith.constant dense<0.000000e+00> : vector<256x4xf32>
    %291 = tpu.matmul %288, %290, %cst_387 {dimension_numbers = #tpu.dot_dimension_numbers<[1], [0], [0], [1], [0, 0, 1, 1], [], []>} : vector<256x32xf32>, vector<32x4xf32>, vector<256x4xf32> -> vector<256x4xf32>
    %292 = arith.addf %286, %291 : vector<256x4xf32>
    %c2_388 = arith.constant 2 : index
    %c2_389 = arith.constant 2 : index
    %c0_390 = arith.constant 0 : index
    %293 = vector.load %arg15[%c2_388, %c2_389, %c0_390] : memref<18x18x32xf32, #tpu.memory_space<vmem>>, vector<16x16x32xf32>
    %294 = vector.shape_cast %293 : vector<16x16x32xf32> to vector<256x32xf32>
    %c2_391 = arith.constant 2 : index
    %c2_392 = arith.constant 2 : index
    %c0_393 = arith.constant 0 : index
    %c0_394 = arith.constant 0 : index
    %295 = vector.load %arg9[%c2_391, %c2_392, %c0_393, %c0_394] : memref<3x3x32x4xf32, #tpu.memory_space<vmem>>, vector<1x1x32x4xf32>
    %296 = vector.shape_cast %295 : vector<1x1x32x4xf32> to vector<32x4xf32>
    %cst_395 = arith.constant dense<0.000000e+00> : vector<256x4xf32>
    %297 = tpu.matmul %294, %296, %cst_395 {dimension_numbers = #tpu.dot_dimension_numbers<[1], [0], [0], [1], [0, 0, 1, 1], [], []>} : vector<256x32xf32>, vector<32x4xf32>, vector<256x4xf32> -> vector<256x4xf32>
    %298 = arith.addf %292, %297 : vector<256x4xf32>
    %c0_396 = arith.constant 0 : index
    %c0_397 = arith.constant 0 : index
    %c0_398 = arith.constant 0 : index
    %299 = vector.load %arg16[%c0_396, %c0_397, %c0_398] : memref<18x18x32xf32, #tpu.memory_space<vmem>>, vector<16x16x32xf32>
    %300 = vector.shape_cast %299 : vector<16x16x32xf32> to vector<256x32xf32>
    %c0_399 = arith.constant 0 : index
    %c0_400 = arith.constant 0 : index
    %c0_401 = arith.constant 0 : index
    %c0_402 = arith.constant 0 : index
    %301 = vector.load %arg10[%c0_399, %c0_400, %c0_401, %c0_402] : memref<3x3x32x4xf32, #tpu.memory_space<vmem>>, vector<1x1x32x4xf32>
    %302 = vector.shape_cast %301 : vector<1x1x32x4xf32> to vector<32x4xf32>
    %cst_403 = arith.constant dense<0.000000e+00> : vector<256x4xf32>
    %303 = tpu.matmul %300, %302, %cst_403 {dimension_numbers = #tpu.dot_dimension_numbers<[1], [0], [0], [1], [0, 0, 1, 1], [], []>} : vector<256x32xf32>, vector<32x4xf32>, vector<256x4xf32> -> vector<256x4xf32>
    %304 = arith.addf %298, %303 : vector<256x4xf32>
    %c0_404 = arith.constant 0 : index
    %c1_405 = arith.constant 1 : index
    %c0_406 = arith.constant 0 : index
    %305 = vector.load %arg16[%c0_404, %c1_405, %c0_406] : memref<18x18x32xf32, #tpu.memory_space<vmem>>, vector<16x16x32xf32>
    %306 = vector.shape_cast %305 : vector<16x16x32xf32> to vector<256x32xf32>
    %c0_407 = arith.constant 0 : index
    %c1_408 = arith.constant 1 : index
    %c0_409 = arith.constant 0 : index
    %c0_410 = arith.constant 0 : index
    %307 = vector.load %arg10[%c0_407, %c1_408, %c0_409, %c0_410] : memref<3x3x32x4xf32, #tpu.memory_space<vmem>>, vector<1x1x32x4xf32>
    %308 = vector.shape_cast %307 : vector<1x1x32x4xf32> to vector<32x4xf32>
    %cst_411 = arith.constant dense<0.000000e+00> : vector<256x4xf32>
    %309 = tpu.matmul %306, %308, %cst_411 {dimension_numbers = #tpu.dot_dimension_numbers<[1], [0], [0], [1], [0, 0, 1, 1], [], []>} : vector<256x32xf32>, vector<32x4xf32>, vector<256x4xf32> -> vector<256x4xf32>
    %310 = arith.addf %304, %309 : vector<256x4xf32>
    %c0_412 = arith.constant 0 : index
    %c2_413 = arith.constant 2 : index
    %c0_414 = arith.constant 0 : index
    %311 = vector.load %arg16[%c0_412, %c2_413, %c0_414] : memref<18x18x32xf32, #tpu.memory_space<vmem>>, vector<16x16x32xf32>
    %312 = vector.shape_cast %311 : vector<16x16x32xf32> to vector<256x32xf32>
    %c0_415 = arith.constant 0 : index
    %c2_416 = arith.constant 2 : index
    %c0_417 = arith.constant 0 : index
    %c0_418 = arith.constant 0 : index
    %313 = vector.load %arg10[%c0_415, %c2_416, %c0_417, %c0_418] : memref<3x3x32x4xf32, #tpu.memory_space<vmem>>, vector<1x1x32x4xf32>
    %314 = vector.shape_cast %313 : vector<1x1x32x4xf32> to vector<32x4xf32>
    %cst_419 = arith.constant dense<0.000000e+00> : vector<256x4xf32>
    %315 = tpu.matmul %312, %314, %cst_419 {dimension_numbers = #tpu.dot_dimension_numbers<[1], [0], [0], [1], [0, 0, 1, 1], [], []>} : vector<256x32xf32>, vector<32x4xf32>, vector<256x4xf32> -> vector<256x4xf32>
    %316 = arith.addf %310, %315 : vector<256x4xf32>
    %c1_420 = arith.constant 1 : index
    %c0_421 = arith.constant 0 : index
    %c0_422 = arith.constant 0 : index
    %317 = vector.load %arg16[%c1_420, %c0_421, %c0_422] : memref<18x18x32xf32, #tpu.memory_space<vmem>>, vector<16x16x32xf32>
    %318 = vector.shape_cast %317 : vector<16x16x32xf32> to vector<256x32xf32>
    %c1_423 = arith.constant 1 : index
    %c0_424 = arith.constant 0 : index
    %c0_425 = arith.constant 0 : index
    %c0_426 = arith.constant 0 : index
    %319 = vector.load %arg10[%c1_423, %c0_424, %c0_425, %c0_426] : memref<3x3x32x4xf32, #tpu.memory_space<vmem>>, vector<1x1x32x4xf32>
    %320 = vector.shape_cast %319 : vector<1x1x32x4xf32> to vector<32x4xf32>
    %cst_427 = arith.constant dense<0.000000e+00> : vector<256x4xf32>
    %321 = tpu.matmul %318, %320, %cst_427 {dimension_numbers = #tpu.dot_dimension_numbers<[1], [0], [0], [1], [0, 0, 1, 1], [], []>} : vector<256x32xf32>, vector<32x4xf32>, vector<256x4xf32> -> vector<256x4xf32>
    %322 = arith.addf %316, %321 : vector<256x4xf32>
    %c1_428 = arith.constant 1 : index
    %c1_429 = arith.constant 1 : index
    %c0_430 = arith.constant 0 : index
    %323 = vector.load %arg16[%c1_428, %c1_429, %c0_430] : memref<18x18x32xf32, #tpu.memory_space<vmem>>, vector<16x16x32xf32>
    %324 = vector.shape_cast %323 : vector<16x16x32xf32> to vector<256x32xf32>
    %c1_431 = arith.constant 1 : index
    %c1_432 = arith.constant 1 : index
    %c0_433 = arith.constant 0 : index
    %c0_434 = arith.constant 0 : index
    %325 = vector.load %arg10[%c1_431, %c1_432, %c0_433, %c0_434] : memref<3x3x32x4xf32, #tpu.memory_space<vmem>>, vector<1x1x32x4xf32>
    %326 = vector.shape_cast %325 : vector<1x1x32x4xf32> to vector<32x4xf32>
    %cst_435 = arith.constant dense<0.000000e+00> : vector<256x4xf32>
    %327 = tpu.matmul %324, %326, %cst_435 {dimension_numbers = #tpu.dot_dimension_numbers<[1], [0], [0], [1], [0, 0, 1, 1], [], []>} : vector<256x32xf32>, vector<32x4xf32>, vector<256x4xf32> -> vector<256x4xf32>
    %328 = arith.addf %322, %327 : vector<256x4xf32>
    %c1_436 = arith.constant 1 : index
    %c2_437 = arith.constant 2 : index
    %c0_438 = arith.constant 0 : index
    %329 = vector.load %arg16[%c1_436, %c2_437, %c0_438] : memref<18x18x32xf32, #tpu.memory_space<vmem>>, vector<16x16x32xf32>
    %330 = vector.shape_cast %329 : vector<16x16x32xf32> to vector<256x32xf32>
    %c1_439 = arith.constant 1 : index
    %c2_440 = arith.constant 2 : index
    %c0_441 = arith.constant 0 : index
    %c0_442 = arith.constant 0 : index
    %331 = vector.load %arg10[%c1_439, %c2_440, %c0_441, %c0_442] : memref<3x3x32x4xf32, #tpu.memory_space<vmem>>, vector<1x1x32x4xf32>
    %332 = vector.shape_cast %331 : vector<1x1x32x4xf32> to vector<32x4xf32>
    %cst_443 = arith.constant dense<0.000000e+00> : vector<256x4xf32>
    %333 = tpu.matmul %330, %332, %cst_443 {dimension_numbers = #tpu.dot_dimension_numbers<[1], [0], [0], [1], [0, 0, 1, 1], [], []>} : vector<256x32xf32>, vector<32x4xf32>, vector<256x4xf32> -> vector<256x4xf32>
    %334 = arith.addf %328, %333 : vector<256x4xf32>
    %c2_444 = arith.constant 2 : index
    %c0_445 = arith.constant 0 : index
    %c0_446 = arith.constant 0 : index
    %335 = vector.load %arg16[%c2_444, %c0_445, %c0_446] : memref<18x18x32xf32, #tpu.memory_space<vmem>>, vector<16x16x32xf32>
    %336 = vector.shape_cast %335 : vector<16x16x32xf32> to vector<256x32xf32>
    %c2_447 = arith.constant 2 : index
    %c0_448 = arith.constant 0 : index
    %c0_449 = arith.constant 0 : index
    %c0_450 = arith.constant 0 : index
    %337 = vector.load %arg10[%c2_447, %c0_448, %c0_449, %c0_450] : memref<3x3x32x4xf32, #tpu.memory_space<vmem>>, vector<1x1x32x4xf32>
    %338 = vector.shape_cast %337 : vector<1x1x32x4xf32> to vector<32x4xf32>
    %cst_451 = arith.constant dense<0.000000e+00> : vector<256x4xf32>
    %339 = tpu.matmul %336, %338, %cst_451 {dimension_numbers = #tpu.dot_dimension_numbers<[1], [0], [0], [1], [0, 0, 1, 1], [], []>} : vector<256x32xf32>, vector<32x4xf32>, vector<256x4xf32> -> vector<256x4xf32>
    %340 = arith.addf %334, %339 : vector<256x4xf32>
    %c2_452 = arith.constant 2 : index
    %c1_453 = arith.constant 1 : index
    %c0_454 = arith.constant 0 : index
    %341 = vector.load %arg16[%c2_452, %c1_453, %c0_454] : memref<18x18x32xf32, #tpu.memory_space<vmem>>, vector<16x16x32xf32>
    %342 = vector.shape_cast %341 : vector<16x16x32xf32> to vector<256x32xf32>
    %c2_455 = arith.constant 2 : index
    %c1_456 = arith.constant 1 : index
    %c0_457 = arith.constant 0 : index
    %c0_458 = arith.constant 0 : index
    %343 = vector.load %arg10[%c2_455, %c1_456, %c0_457, %c0_458] : memref<3x3x32x4xf32, #tpu.memory_space<vmem>>, vector<1x1x32x4xf32>
    %344 = vector.shape_cast %343 : vector<1x1x32x4xf32> to vector<32x4xf32>
    %cst_459 = arith.constant dense<0.000000e+00> : vector<256x4xf32>
    %345 = tpu.matmul %342, %344, %cst_459 {dimension_numbers = #tpu.dot_dimension_numbers<[1], [0], [0], [1], [0, 0, 1, 1], [], []>} : vector<256x32xf32>, vector<32x4xf32>, vector<256x4xf32> -> vector<256x4xf32>
    %346 = arith.addf %340, %345 : vector<256x4xf32>
    %c2_460 = arith.constant 2 : index
    %c2_461 = arith.constant 2 : index
    %c0_462 = arith.constant 0 : index
    %347 = vector.load %arg16[%c2_460, %c2_461, %c0_462] : memref<18x18x32xf32, #tpu.memory_space<vmem>>, vector<16x16x32xf32>
    %348 = vector.shape_cast %347 : vector<16x16x32xf32> to vector<256x32xf32>
    %c2_463 = arith.constant 2 : index
    %c2_464 = arith.constant 2 : index
    %c0_465 = arith.constant 0 : index
    %c0_466 = arith.constant 0 : index
    %349 = vector.load %arg10[%c2_463, %c2_464, %c0_465, %c0_466] : memref<3x3x32x4xf32, #tpu.memory_space<vmem>>, vector<1x1x32x4xf32>
    %350 = vector.shape_cast %349 : vector<1x1x32x4xf32> to vector<32x4xf32>
    %cst_467 = arith.constant dense<0.000000e+00> : vector<256x4xf32>
    %351 = tpu.matmul %348, %350, %cst_467 {dimension_numbers = #tpu.dot_dimension_numbers<[1], [0], [0], [1], [0, 0, 1, 1], [], []>} : vector<256x32xf32>, vector<32x4xf32>, vector<256x4xf32> -> vector<256x4xf32>
    %352 = arith.addf %346, %351 : vector<256x4xf32>
    %c0_468 = arith.constant 0 : index
    %c0_469 = arith.constant 0 : index
    %c0_470 = arith.constant 0 : index
    %353 = vector.load %arg12[%c0_468, %c0_469, %c0_470] : memref<1x256x4xf32, #tpu.memory_space<vmem>>, vector<1x256x4xf32>
    %354 = vector.shape_cast %353 : vector<1x256x4xf32> to vector<256x4xf32>
    %355 = vector.shape_cast %352 : vector<256x4xf32> to vector<1x256x4xf32>
    tpu.vector_store %arg12[%c0_468, %c0_469, %c0_470], %355 {strides = array<i32>} : memref<1x256x4xf32, #tpu.memory_space<vmem>>, vector<1x256x4xf32>,
    return
  }
  func.func @transform_0(%arg0: i32) -> (i32, i32, i32, i32) {
    %c0_i32 = arith.constant 0 : i32
    %c0_i32_0 = arith.constant 0 : i32
    %c0_i32_1 = arith.constant 0 : i32
    %c0_i32_2 = arith.constant 0 : i32
    return %arg0, %c0_i32, %c0_i32_0, %c0_i32_1 : i32, i32, i32, i32
  }
  func.func @transform_1(%arg0: i32) -> (i32, i32, i32, i32) {
    %c0_i32 = arith.constant 0 : i32
    %c0_i32_0 = arith.constant 0 : i32
    %c0_i32_1 = arith.constant 0 : i32
    %c0_i32_2 = arith.constant 0 : i32
    %c0_i32_3 = arith.constant 0 : i32
    return %c0_i32, %c0_i32_0, %c0_i32_1, %c0_i32_2 : i32, i32, i32, i32
  }
  func.func @transform_2(%arg0: i32) -> (i32, i32) {
    %c0_i32 = arith.constant 0 : i32
    %c0_i32_0 = arith.constant 0 : i32
    %c0_i32_1 = arith.constant 0 : i32
    return %c0_i32, %c0_i32_0 : i32, i32
  }
  func.func @transform_3(%arg0: i32) -> (i32, i32, i32, i32) {
    %c0_i32 = arith.constant 0 : i32
    %c0_i32_0 = arith.constant 0 : i32
    %c0_i32_1 = arith.constant 0 : i32
    %c0_i32_2 = arith.constant 0 : i32
    %c0_i32_3 = arith.constant 0 : i32
    return %c0_i32, %c0_i32_0, %c0_i32_1, %c0_i32_2 : i32, i32, i32, i32
  }
  func.func @transform_4(%arg0: i32) -> (i32, i32) {
    %c0_i32 = arith.constant 0 : i32
    %c0_i32_0 = arith.constant 0 : i32
    %c0_i32_1 = arith.constant 0 : i32
    return %c0_i32, %c0_i32_0 : i32, i32
  }
  func.func @transform_5(%arg0: i32) -> (i32, i32, i32, i32) {
    %c0_i32 = arith.constant 0 : i32
    %c0_i32_0 = arith.constant 0 : i32
    %c0_i32_1 = arith.constant 0 : i32
    %c0_i32_2 = arith.constant 0 : i32
    %c0_i32_3 = arith.constant 0 : i32
    return %c0_i32, %c0_i32_0, %c0_i32_1, %c0_i32_2 : i32, i32, i32, i32
  }
  func.func @transform_6(%arg0: i32) -> (i32, i32) {
    %c0_i32 = arith.constant 0 : i32
    %c0_i32_0 = arith.constant 0 : i32
    %c0_i32_1 = arith.constant 0 : i32
    return %c0_i32, %c0_i32_0 : i32, i32
  }
  func.func @transform_7(%arg0: i32) -> (i32, i32, i32, i32) {
    %c0_i32 = arith.constant 0 : i32
    %c0_i32_0 = arith.constant 0 : i32
    %c0_i32_1 = arith.constant 0 : i32
    %c0_i32_2 = arith.constant 0 : i32
    %c0_i32_3 = arith.constant 0 : i32
    return %c0_i32, %c0_i32_0, %c0_i32_1, %c0_i32_2 : i32, i32, i32, i32
  }
  func.func @transform_8(%arg0: i32) -> (i32, i32, i32, i32) {
    %c0_i32 = arith.constant 0 : i32
    %c0_i32_0 = arith.constant 0 : i32
    %c0_i32_1 = arith.constant 0 : i32
    %c0_i32_2 = arith.constant 0 : i32
    %c0_i32_3 = arith.constant 0 : i32
    return %c0_i32, %c0_i32_0, %c0_i32_1, %c0_i32_2 : i32, i32, i32, i32
  }
  func.func @transform_9(%arg0: i32) -> (i32, i32, i32, i32) {
    %c0_i32 = arith.constant 0 : i32
    %c0_i32_0 = arith.constant 0 : i32
    %c0_i32_1 = arith.constant 0 : i32
    %c0_i32_2 = arith.constant 0 : i32
    %c0_i32_3 = arith.constant 0 : i32
    return %c0_i32, %c0_i32_0, %c0_i32_1, %c0_i32_2 : i32, i32, i32, i32
  }
  func.func @transform_10(%arg0: i32) -> (i32, i32) {
    %c0_i32 = arith.constant 0 : i32
    %c0_i32_0 = arith.constant 0 : i32
    %c0_i32_1 = arith.constant 0 : i32
    return %c0_i32, %c0_i32_0 : i32, i32
  }
  func.func @transform_11(%arg0: i32) -> (i32, i32, i32) {
    %c0_i32 = arith.constant 0 : i32
    %c0_i32_0 = arith.constant 0 : i32
    %c0_i32_1 = arith.constant 0 : i32
    return %arg0, %c0_i32, %c0_i32_0 : i32, i32, i32
  }
}

</mosaic_0001>

<bundles_post_ra>
// kernel: mscnn_forward.1
= control target key start
LH: loop header
LB: loop body
LE: loop exit
PB: predicated region body
PF: predicated region fallthrough
CT: control target
= control target key end

     0   :  { %s30920_s17 = smov 0   ;;  %s36311_s0 = inlined_call_operand.vmem [shape: f32[2,16,16,4], index: 0, kind: input, shape index: {}]   ;;  %s36312_s1 = inlined_call_operand.vmem [shape: f32[3,3,4,32], index: 1, kind: input, shape index: {}]   ;;  %s36313_s2 = inlined_call_operand.vmem [shape: f32[1,32], index: 2, kind: input, shape index: {}]   ;;  %s36314_s3 = inlined_call_operand.vmem [shape: f32[3,3,32,32], index: 3, kind: input, shape index: {}]   ;;  %s36315_s4 = inlined_call_operand.vmem [shape: f32[1,32], index: 4, kind: input, shape index: {}]   ;;  %s36316_s5 = inlined_call_operand.vmem [shape: f32[3,3,32,32], index: 5, kind: input, shape index: {}]   ;;  %s36317_s6 = inlined_call_operand.vmem [shape: f32[1,32], index: 6, kind: input, shape index: {}]   ;;  %s36318_s7 = inlined_call_operand.vmem [shape: f32[3,3,32,4], index: 7, kind: input, shape index: {}]   ;;  %s36319_s8 = inlined_call_operand.vmem [shape: f32[3,3,32,4], index: 8, kind: input, shape index: {}]   ;;  %s36320_s9 = inlined_call_operand.vmem [shape: f32[3,3,32,4], index: 9, kind: input, shape index: {}]   ;;  %s36321_s10 = inlined_call_operand.vmem [shape: f32[1,4], index: 10, kind: input, shape index: {}]   ;;  %s36322_s11 = inlined_call_operand.vmem [shape: f32[2,256,4], index: 11, kind: output, shape index: {}]  }
   0x1 LB: > { %s21945_s18 = sadd.s32 4294967295, %s30857_s17   ;;  %p21949_p0 = scmp.ge.s32.totalorder %s30857_s17, 1  ;;  %s30857_s17 = sphi %s30920_s17, %s21_s17  }
   0x2   : > { %p337_p1 = scmp.lt.s32.totalorder %s30857_s17, 3 }
   0x4   : > { %p338_p2 = pnand %p21949_p0, %p337_p1 }
   0x6   : > { %341 = sbr.rel (%p338_p2) target bundleno = 3030 (0xbd6), region = 64 }
   0xd   : > { %v547_v0 = vld [vmem:[%s36312_s1] sm:$0xf]  ;;  %vm644_vm0 = vcmask 1043456   ;;  %vm419_vm1 = vcmask 31744   ;;  %p30933_p3 = scmp.lt.s32.totalorder %s21945_s18, 1  ;;  %v36323_v1 = vmov 0.0  }
   0xe   : > { %25784 = vmatprep.subr.msk.mxu0 %vm644_vm0, %v547_v0  ;;  %420 = vst.msk [vmem:[#allocation2] sm:$0xff] %vm419_vm1, %v36323_v1  ;;  %421 = vst.msk [vmem:[#allocation2 + $0x8] sm:$0xff] %vm419_vm1, %v36323_v1  ;;  %v21988_v2 = vld [vmem:[%s36312_s1 + $0x4] sm:$0xf]  ;;  %vm422_vm2 = vcmask 25600   ;;  %vm4026_vm3 = vcmask 261120  }
   0xf   : > { %424 = vst.msk [vmem:[#allocation2 + $0x18] sm:$0xff] %vm419_vm1, %v36323_v1  ;;  %425 = vst.msk [vmem:[#allocation2 + $0x20] sm:$0xff] %vm419_vm1, %v36323_v1  ;;  %25785 = vmatpush3.msk.msra.mxu0 %vm644_vm0, %v547_v0  ;;  %s36929_s18 = smov (!%p30933_p3, %s21945_s18), 1  ;;  %v31077_v9 = vld [vmem:[%s36312_s1 + $0x8] sm:$0xf]  ;;  %vm4029_vm4 = vcmask 254976  }
  0x10   : > { %427 = vst.msk [vmem:[#allocation2 + $0x30] sm:$0xff] %vm419_vm1, %v36323_v1  ;;  %428 = vst.msk [vmem:[#allocation2 + $0x38] sm:$0xff] %vm419_vm1, %v36323_v1  ;;  %25834 = vmatprep.subr.msk.mxu0 %vm644_vm0, %v21988_v2  ;;  %s23865_s24 = sshll.u32 %s36929_s18, 8 }
  0x11   : > { %430 = vst.msk [vmem:[#allocation2 + $0x48] sm:$0xff] %vm419_vm1, %v36323_v1  ;;  %431 = vst.msk [vmem:[#allocation2 + $0x50] sm:$0xff] %vm419_vm1, %v36323_v1  ;;  %s31063_s27 = scalar_lea.vmem %s36311_s0, %s23865_s24  ;;  %s36210_s28 = scalar_lea.vmem %s36322_s11, %s23865_s24 }
  0x12   : > { %433 = vst.msk [vmem:[#allocation2 + $0x60] sm:$0xff] %vm419_vm1, %v36323_v1  ;;  %434 = vst.msk [vmem:[#allocation2 + $0x68] sm:$0xff] %vm419_vm1, %v36323_v1  ;;  %v387_v3 = vld [vmem:[%s31063_s27] sm:$0xff]  ;;  %v388_v4 = vld [vmem:[%s31063_s27 + $0x8] sm:$0xff] }
  0x13   : > { %436 = vst.msk [vmem:[#allocation2 + $0x78] sm:$0xff] %vm419_vm1, %v36323_v1  ;;  %437 = vst.msk [vmem:[#allocation2 + $0x80] sm:$0xff] %vm419_vm1, %v36323_v1  ;;  %v389_v5 = vld [vmem:[%s31063_s27 + $0x10] sm:$0xff]  ;;  %v390_v6 = vld [vmem:[%s31063_s27 + $0x18] sm:$0xff] }
  0x14   : > { %439 = vst.msk [vmem:[#allocation2 + $0x90] sm:$0xff] %vm419_vm1, %v36323_v1  ;;  %440 = vst.msk [vmem:[#allocation2 + $0x98] sm:$0xff] %vm419_vm1, %v36323_v1  ;;  %v391_v7 = vld [vmem:[%s31063_s27 + $0x20] sm:$0xff]  ;;  %v392_v8 = vld [vmem:[%s31063_s27 + $0x28] sm:$0xff] }
  0x15   : > { %442 = vst.msk [vmem:[#allocation2 + $0xa8] sm:$0xff] %vm419_vm1, %v36323_v1  ;;  %443 = vst.msk [vmem:[#allocation2 + $0xb0] sm:$0xff] %vm419_vm1, %v36323_v1  ;;  %v515_v10 = vld [vmem:[#allocation2] sm:$0xff]  ;;  %v516_v11 = vld [vmem:[#allocation2 + $0x8] sm:$0xff] }
  0x16   : > { %445 = vst.msk [vmem:[#allocation2 + $0xc0] sm:$0xff] %vm419_vm1, %v36323_v1  ;;  %446 = vst.msk [vmem:[#allocation2 + $0xc8] sm:$0xff] %vm419_vm1, %v36323_v1  ;;  %v393_v12 = vld [vmem:[%s31063_s27 + $0x30] sm:$0xff]  ;;  %25786 = vmatprep.mubr.msk.f32.mxu0 %vm419_vm1, %v515_v10  ;;  %v394_v13 = vld [vmem:[%s31063_s27 + $0x38] sm:$0xff] }
  0x17   : > { %448 = vst.msk [vmem:[#allocation2 + $0xd8] sm:$0xff] %vm419_vm1, %v36323_v1  ;;  %449 = vst.msk [vmem:[#allocation2 + $0xe0] sm:$0xff] %vm419_vm1, %v36323_v1  ;;  %v395_v14 = vld [vmem:[%s31063_s27 + $0x40] sm:$0xff]  ;;  %v396_v15 = vld [vmem:[%s31063_s27 + $0x48] sm:$0xff]  ;;  %25787 = vmatmul.mubr.msk.f32.vlgmr.msra.gmra.mrb[0].mxu0 %vm419_vm1, %v516_v11 }
  0x18   : > { %451 = vst.msk [vmem:[#allocation2 + $0xf0] sm:$0xff] %vm419_vm1, %v36323_v1  ;;  %452 = vst.msk [vmem:[#allocation2 + $0xf8] sm:$0xff] %vm419_vm1, %v36323_v1  ;;  %v397_v16 = vld [vmem:[%s31063_s27 + $0x50] sm:$0xff]  ;;  %v398_v17 = vld [vmem:[%s31063_s27 + $0x58] sm:$0xff]  ;;  %25835 = vmatpush3.msk.msra.mxu0 %vm644_vm0, %v21988_v2 }
  0x19   : > { %454 = vst.msk [vmem:[#allocation2 + $0x108] sm:$0xff] %vm419_vm1, %v36323_v1  ;;  %455 = vst.msk [vmem:[#allocation2 + $0x110] sm:$0xff] %vm419_vm1, %v36323_v1  ;;  %v399_v18 = vld [vmem:[%s31063_s27 + $0x60] sm:$0xff]  ;;  %v400_v19 = vld [vmem:[%s31063_s27 + $0x68] sm:$0xff]  ;;  %25884 = vmatprep.subr.msk.mxu0 %vm644_vm0, %v31077_v9 }
  0x1a   : > { %457 = vst.msk [vmem:[#allocation2 + $0x120] sm:$0xff] %vm419_vm1, %v36323_v1  ;;  %458 = vst.msk [vmem:[#allocation2 + $0x128] sm:$0xff] %vm419_vm1, %v36323_v1  ;;  %v401_v20 = vld [vmem:[%s31063_s27 + $0x70] sm:$0xff]  ;;  %v402_v21 = vld [vmem:[%s31063_s27 + $0x78] sm:$0xff] }
  0x1b   : > { %460 = vst.msk [vmem:[#allocation2 + $0x138] sm:$0xff] %vm419_vm1, %v36323_v1  ;;  %461 = vst.msk [vmem:[#allocation2 + $0x140] sm:$0xff] %vm419_vm1, %v36323_v1  ;;  %v403_v22 = vld [vmem:[%s31063_s27 + $0x80] sm:$0xff]  ;;  %v404_v23 = vld [vmem:[%s31063_s27 + $0x88] sm:$0xff] }
  0x1c   : > { %463 = vst.msk [vmem:[#allocation2 + $0x150] sm:$0xff] %vm419_vm1, %v36323_v1  ;;  %464 = vst.msk [vmem:[#allocation2 + $0x158] sm:$0xff] %vm419_vm1, %v36323_v1  ;;  %v405_v24 = vld [vmem:[%s31063_s27 + $0x90] sm:$0xff]  ;;  %v406_v25 = vld [vmem:[%s31063_s27 + $0x98] sm:$0xff] }
  0x1d   : > { %466 = vst.msk [vmem:[#allocation2 + $0x168] sm:$0xff] %vm419_vm1, %v36323_v1  ;;  %467 = vst.msk [vmem:[#allocation2 + $0x170] sm:$0xff] %vm419_vm1, %v36323_v1  ;;  %v407_v26 = vld [vmem:[%s31063_s27 + $0xa0] sm:$0xff]  ;;  %v408_v27 = vld [vmem:[%s31063_s27 + $0xa8] sm:$0xff] }
  0x1e   : > { %469 = vst.msk [vmem:[#allocation2 + $0x180] sm:$0xff] %vm419_vm1, %v36323_v1  ;;  %470 = vst.msk [vmem:[#allocation2 + $0x188] sm:$0xff] %vm419_vm1, %v36323_v1  ;;  %v409_v31 = vld [vmem:[%s31063_s27 + $0xb0] sm:$0xff]  ;;  %v410_v32 = vld [vmem:[%s31063_s27 + $0xb8] sm:$0xff] }
  0x1f   : > { %472 = vst.msk [vmem:[#allocation2 + $0x198] sm:$0xff] %vm419_vm1, %v36323_v1  ;;  %473 = vst.msk [vmem:[#allocation2 + $0x1a0] sm:$0xff] %vm419_vm1, %v36323_v1  ;;  %v411_v37 = vld [vmem:[%s31063_s27 + $0xc0] sm:$0xff]  ;;  %v412_v38 = vld [vmem:[%s31063_s27 + $0xc8] sm:$0xff] }
  0x20   : > { %426 = vst.msk [vmem:[#allocation2 + $0x28] sm:$0x3] %vm422_vm2, %v36323_v1  ;;  %423 = vst.msk [vmem:[#allocation2 + $0x10] sm:$0x3] %vm422_vm2, %v36323_v1  ;;  %v413_v39 = vld [vmem:[%s31063_s27 + $0xd0] sm:$0xff]  ;;  %v414_v40 = vld [vmem:[%s31063_s27 + $0xd8] sm:$0xff] }
  0x21   : > { %429 = vst.msk [vmem:[#allocation2 + $0x40] sm:$0x3] %vm422_vm2, %v36323_v1  ;;  %432 = vst.msk [vmem:[#allocation2 + $0x58] sm:$0x3] %vm422_vm2, %v36323_v1  ;;  %v415_v41 = vld [vmem:[%s31063_s27 + $0xe0] sm:$0xff]  ;;  %v416_v42 = vld [vmem:[%s31063_s27 + $0xe8] sm:$0xff] }
  0x22   : > { %435 = vst.msk [vmem:[#allocation2 + $0x70] sm:$0x3] %vm422_vm2, %v36323_v1  ;;  %438 = vst.msk [vmem:[#allocation2 + $0x88] sm:$0x3] %vm422_vm2, %v36323_v1 }
  0x23   : > { %441 = vst.msk [vmem:[#allocation2 + $0xa0] sm:$0x3] %vm422_vm2, %v36323_v1  ;;  %444 = vst.msk [vmem:[#allocation2 + $0xb8] sm:$0x3] %vm422_vm2, %v36323_v1 }
  0x24   : > { %447 = vst.msk [vmem:[#allocation2 + $0xd0] sm:$0x3] %vm422_vm2, %v36323_v1  ;;  %450 = vst.msk [vmem:[#allocation2 + $0xe8] sm:$0x3] %vm422_vm2, %v36323_v1 }
  0x25   : > { %453 = vst.msk [vmem:[#allocation2 + $0x100] sm:$0x3] %vm422_vm2, %v36323_v1  ;;  %456 = vst.msk [vmem:[#allocation2 + $0x118] sm:$0x3] %vm422_vm2, %v36323_v1 }
  0x26   : > { %459 = vst.msk [vmem:[#allocation2 + $0x130] sm:$0x3] %vm422_vm2, %v36323_v1  ;;  %462 = vst.msk [vmem:[#allocation2 + $0x148] sm:$0x3] %vm422_vm2, %v36323_v1 }
  0x27   : > { %465 = vst.msk [vmem:[#allocation2 + $0x160] sm:$0x3] %vm422_vm2, %v36323_v1  ;;  %468 = vst.msk [vmem:[#allocation2 + $0x178] sm:$0x3] %vm422_vm2, %v36323_v1 }
  0x28   : > { %471 = vst.msk [vmem:[#allocation2 + $0x190] sm:$0x3] %vm422_vm2, %v36323_v1  ;;  %474 = vst.msk [vmem:[#allocation2 + $0x1a8] sm:$0x3] %vm422_vm2, %v36323_v1 }
  0x29   : > { %476 = vst.msk [vmem:[#allocation2 + $0x19] sm:$0xff] %vm419_vm1, %v387_v3  ;;  %477 = vst.msk [vmem:[#allocation2 + $0x21] sm:$0xff] %vm419_vm1, %v388_v4  ;;  %v905_v3 = vld [vmem:[#allocation2 + $0x1] sm:$0xff]  ;;  %v906_v4 = vld [vmem:[#allocation2 + $0x9] sm:$0xff] }
  0x2a   : > { %478 = vst.msk [vmem:[#allocation2 + $0x31] sm:$0xff] %vm419_vm1, %v389_v5  ;;  %479 = vst.msk [vmem:[#allocation2 + $0x39] sm:$0xff] %vm419_vm1, %v390_v6  ;;  %v31261_v6 = vld [vmem:[%s36312_s1 + $0xc] sm:$0xf] }
  0x2b   : > { %480 = vst.msk [vmem:[#allocation2 + $0x49] sm:$0xff] %vm419_vm1, %v391_v7  ;;  %481 = vst.msk [vmem:[#allocation2 + $0x51] sm:$0xff] %vm419_vm1, %v392_v8 }
  0x2c   : > { %482 = vst.msk [vmem:[#allocation2 + $0x61] sm:$0xff] %vm419_vm1, %v393_v12  ;;  %483 = vst.msk [vmem:[#allocation2 + $0x69] sm:$0xff] %vm419_vm1, %v394_v13 }
  0x2d   : > { %484 = vst.msk [vmem:[#allocation2 + $0x79] sm:$0xff] %vm419_vm1, %v395_v14  ;;  %485 = vst.msk [vmem:[#allocation2 + $0x81] sm:$0xff] %vm419_vm1, %v396_v15 }
  0x2e   : > { %486 = vst.msk [vmem:[#allocation2 + $0x91] sm:$0xff] %vm419_vm1, %v397_v16  ;;  %487 = vst.msk [vmem:[#allocation2 + $0x99] sm:$0xff] %vm419_vm1, %v398_v17 }
  0x2f   : > { %488 = vst.msk [vmem:[#allocation2 + $0xa9] sm:$0xff] %vm419_vm1, %v399_v18  ;;  %489 = vst.msk [vmem:[#allocation2 + $0xb1] sm:$0xff] %vm419_vm1, %v400_v19 }
  0x30   : > { %490 = vst.msk [vmem:[#allocation2 + $0xc1] sm:$0xff] %vm419_vm1, %v401_v20  ;;  %491 = vst.msk [vmem:[#allocation2 + $0xc9] sm:$0xff] %vm419_vm1, %v402_v21  ;;  %v31116_v28 = vld [vmem:[#allocation2 + $0x18] sm:$0xff]  ;;  %v31118_v29 = vld [vmem:[#allocation2 + $0x20] sm:$0xff] }
  0x31   : > { %492 = vst.msk [vmem:[#allocation2 + $0xd9] sm:$0xff] %vm419_vm1, %v403_v22  ;;  %493 = vst.msk [vmem:[#allocation2 + $0xe1] sm:$0xff] %vm419_vm1, %v404_v23  ;;  %v31120_v30 = vld [vmem:[#allocation2 + $0x30] sm:$0xff]  ;;  %25789 = vmatprep.mubr.msk.f32.mxu0 %vm419_vm1, %v31116_v28  ;;  %v31133_v33 = vld [vmem:[#allocation2 + $0x38] sm:$0xff] }
  0x32   : > { %494 = vst.msk [vmem:[#allocation2 + $0xf1] sm:$0xff] %vm419_vm1, %v405_v24  ;;  %495 = vst.msk [vmem:[#allocation2 + $0xf9] sm:$0xff] %vm419_vm1, %v406_v25  ;;  %25790 = vmatmul.mubr.msk.f32.gmra.mrb[2].mxu0 %vm419_vm1, %v31118_v29  ;;  %v31137_v34 = vld [vmem:[#allocation2 + $0x48] sm:$0xff]  ;;  %v31143_v35 = vld [vmem:[#allocation2 + $0x50] sm:$0xff] }
  0x33   : > { %496 = vst.msk [vmem:[#allocation2 + $0x109] sm:$0xff] %vm419_vm1, %v407_v26  ;;  %497 = vst.msk [vmem:[#allocation2 + $0x111] sm:$0xff] %vm419_vm1, %v408_v27  ;;  %25792 = vmatprep.mubr.msk.f32.mxu0 %vm419_vm1, %v31120_v30  ;;  %v31145_v36 = vld [vmem:[#allocation2 + $0x60] sm:$0xff]  ;;  %v31163_v43 = vld [vmem:[#allocation2 + $0x68] sm:$0xff] }
  0x34   : > { %498 = vst.msk [vmem:[#allocation2 + $0x121] sm:$0xff] %vm419_vm1, %v409_v31  ;;  %499 = vst.msk [vmem:[#allocation2 + $0x129] sm:$0xff] %vm419_vm1, %v410_v32  ;;  %v31165_v44 = vld [vmem:[#allocation2 + $0x78] sm:$0xff]  ;;  %v31171_v45 = vld [vmem:[#allocation2 + $0x80] sm:$0xff] }
  0x35   : > { %500 = vst.msk [vmem:[#allocation2 + $0x139] sm:$0xff] %vm419_vm1, %v411_v37  ;;  %501 = vst.msk [vmem:[#allocation2 + $0x141] sm:$0xff] %vm419_vm1, %v412_v38  ;;  %v31173_v46 = vld [vmem:[#allocation2 + $0x90] sm:$0xff]  ;;  %v31179_v47 = vld [vmem:[#allocation2 + $0x98] sm:$0xff] }
  0x36   : > { %25793 = vmatmul.mubr.msk.f32.gmra.mrb[4].mxu0 %vm419_vm1, %v31133_v33  ;;  %502 = vst.msk [vmem:[#allocation2 + $0x151] sm:$0xff] %vm419_vm1, %v413_v39  ;;  %503 = vst.msk [vmem:[#allocation2 + $0x159] sm:$0xff] %vm419_vm1, %v414_v40  ;;  %v31181_v48 = vld [vmem:[#allocation2 + $0xa8] sm:$0xff]  ;;  %v31187_v49 = vld [vmem:[#allocation2 + $0xb0] sm:$0xff] }
  0x37   : > { %25795 = vmatprep.mubr.msk.f32.mxu0 %vm419_vm1, %v31137_v34  ;;  %504 = vst.msk [vmem:[#allocation2 + $0x169] sm:$0xff] %vm419_vm1, %v415_v41  ;;  %505 = vst.msk [vmem:[#allocation2 + $0x171] sm:$0xff] %vm419_vm1, %v416_v42  ;;  %v31189_v50 = vld [vmem:[#allocation2 + $0xc0] sm:$0xff]  ;;  %v31195_v51 = vld [vmem:[#allocation2 + $0xc8] sm:$0xff] }
  0x38   : > { %v31197_v52 = vld [vmem:[#allocation2 + $0xd8] sm:$0xff]  ;;  %v31203_v53 = vld [vmem:[#allocation2 + $0xe0] sm:$0xff]  ;;  %v31280_v11 = vld [vmem:[#allocation2 + $0x49] sm:$0xff] }
  0x39   : > { %v31205_v54 = vld [vmem:[#allocation2 + $0xf0] sm:$0xff]  ;;  %v31211_v55 = vld [vmem:[#allocation2 + $0xf8] sm:$0xff]  ;;  %v31268_v7 = vld [vmem:[#allocation2 + $0x21] sm:$0xff] }
  0x3a   : > { %25796 = vmatmul.mubr.msk.f32.gmra.mrb[6].mxu0 %vm419_vm1, %v31143_v35  ;;  %v31213_v56 = vld [vmem:[#allocation2 + $0x108] sm:$0xff]  ;;  %v31219_v57 = vld [vmem:[#allocation2 + $0x110] sm:$0xff]  ;;  %v31256_v5 = vld [vmem:[#allocation2 + $0x19] sm:$0xff] }
  0x3b   : > { %25798 = vmatprep.mubr.msk.f32.mxu0 %vm419_vm1, %v31145_v36  ;;  %v31221_v58 = vld [vmem:[#allocation2 + $0x120] sm:$0xff]  ;;  %v31227_v59 = vld [vmem:[#allocation2 + $0x128] sm:$0xff]  ;;  %v31270_v8 = vld [vmem:[#allocation2 + $0x31] sm:$0xff] }
  0x3c   : > { %v31229_v60 = vld [vmem:[#allocation2 + $0x138] sm:$0xff]  ;;  %v31235_v61 = vld [vmem:[#allocation2 + $0x140] sm:$0xff]  ;;  %v31294_v13 = vld [vmem:[#allocation2 + $0x69] sm:$0xff] }
  0x3d   : > { %v31237_v62 = vld [vmem:[#allocation2 + $0x150] sm:$0xff]  ;;  %v31243_v63 = vld [vmem:[#allocation2 + $0x158] sm:$0xff]  ;;  %v31288_v12 = vld [vmem:[#allocation2 + $0x61] sm:$0xff] }
  0x3e   : > { %25799 = vmatmul.mubr.msk.f32.gmra.mrb[8].mxu0 %vm419_vm1, %v31163_v43  ;;  %v31245_v0 = vld [vmem:[#allocation2 + $0x168] sm:$0xff]  ;;  %v31251_v2 = vld [vmem:[#allocation2 + $0x170] sm:$0xff]  ;;  %v31278_v10 = vld [vmem:[#allocation2 + $0x39] sm:$0xff] }
  0x3f   : > { %25801 = vmatprep.mubr.msk.f32.mxu0 %vm419_vm1, %v31165_v44  ;;  %v31296_v14 = vld [vmem:[#allocation2 + $0x79] sm:$0xff]  ;;  %v31302_v15 = vld [vmem:[#allocation2 + $0x81] sm:$0xff]  ;;  %v31304_v16 = vld [vmem:[#allocation2 + $0x91] sm:$0xff] }
  0x40   : > { %v31310_v17 = vld [vmem:[#allocation2 + $0x99] sm:$0xff]  ;;  %v31312_v18 = vld [vmem:[#allocation2 + $0xa9] sm:$0xff]  ;;  %v31318_v19 = vld [vmem:[#allocation2 + $0xb1] sm:$0xff] }
  0x41   : > { %v31320_v20 = vld [vmem:[#allocation2 + $0xc1] sm:$0xff]  ;;  %v31326_v21 = vld [vmem:[#allocation2 + $0xc9] sm:$0xff]  ;;  %v31328_v22 = vld [vmem:[#allocation2 + $0xd9] sm:$0xff] }
  0x42   : > { %25802 = vmatmul.mubr.msk.f32.gmra.mrb[10].mxu0 %vm419_vm1, %v31171_v45  ;;  %v31334_v23 = vld [vmem:[#allocation2 + $0xe1] sm:$0xff]  ;;  %v31336_v24 = vld [vmem:[#allocation2 + $0xf1] sm:$0xff]  ;;  %v31342_v25 = vld [vmem:[#allocation2 + $0xf9] sm:$0xff] }
  0x43   : > { %25804 = vmatprep.mubr.msk.f32.mxu0 %vm419_vm1, %v31173_v46  ;;  %v31344_v26 = vld [vmem:[#allocation2 + $0x109] sm:$0xff]  ;;  %v31350_v27 = vld [vmem:[#allocation2 + $0x111] sm:$0xff]  ;;  %v31352_v31 = vld [vmem:[#allocation2 + $0x121] sm:$0xff] }
  0x44   : > { %36595 = vst [vmem:[#allocation6_spill] sm:$0xff] %v31352_v31  ;;  %v31358_v32 = vld [vmem:[#allocation2 + $0x129] sm:$0xff]  ;;  %v31360_v37 = vld [vmem:[#allocation2 + $0x139] sm:$0xff]  ;;  %v31366_v38 = vld [vmem:[#allocation2 + $0x141] sm:$0xff] }
  0x45   : > { %36596 = vst [vmem:[#allocation7_spill] sm:$0xff] %v31358_v32  ;;  %36597 = vst [vmem:[#allocation8_spill] sm:$0xff] %v31360_v37  ;;  %v31368_v39 = vld [vmem:[#allocation2 + $0x151] sm:$0xff]  ;;  %v31378_v42 = vld [vmem:[#allocation2 + $0x159] sm:$0xff] }
  0x46   : > { %25805 = vmatmul.mubr.msk.f32.gmra.mrb[12].mxu0 %vm419_vm1, %v31179_v47  ;;  %36598 = vst [vmem:[#allocation9_spill] sm:$0xff] %v31366_v38  ;;  %36599 = vst [vmem:[#allocation10_spill] sm:$0xff] %v31368_v39  ;;  %v417_v40 = vld [vmem:[%s31063_s27 + $0xf0] sm:$0xff]  ;;  %v418_v41 = vld [vmem:[%s31063_s27 + $0xf8] sm:$0xff] }
  0x47   : > { %25807 = vmatprep.mubr.msk.f32.mxu0 %vm419_vm1, %v31181_v48  ;;  %506 = vst.msk [vmem:[#allocation2 + $0x181] sm:$0xff] %vm419_vm1, %v417_v40  ;;  %507 = vst.msk [vmem:[#allocation2 + $0x189] sm:$0xff] %vm419_vm1, %v418_v41  ;;  %v1295_v40 = vld [vmem:[#allocation2 + $0x2] sm:$0xff]  ;;  %v1296_v41 = vld [vmem:[#allocation2 + $0xa] sm:$0xff] }
  0x48   : > { %36600 = vst [vmem:[#allocation11_spill] sm:$0xff] %v31378_v42  ;;  %v31391_v1 = vld [vmem:[#allocation2 + $0x1a] sm:$0xff] }
  0x49   : > { %36603 = vst [vmem:[#allocation14_spill] sm:$0xff] %v31391_v1 }
  0x4a   : > { %25808 = vmatmul.mubr.msk.f32.gmra.mrb[14].mxu0 %vm419_vm1, %v31187_v49 }
  0x4b   : > { %25810 = vmatprep.mubr.msk.f32.mxu0 %vm419_vm1, %v31189_v50 }
  0x4e   : > { %25811 = vmatmul.mubr.msk.f32.gmra.mrb[16].mxu0 %vm419_vm1, %v31195_v51 }
  0x4f   : > { %25813 = vmatprep.mubr.msk.f32.mxu0 %vm419_vm1, %v31197_v52 }
  0x52   : > { %25814 = vmatmul.mubr.msk.f32.gmra.mrb[18].mxu0 %vm419_vm1, %v31203_v53 }
  0x53   : > { %25816 = vmatprep.mubr.msk.f32.mxu0 %vm419_vm1, %v31205_v54 }
  0x56   : > { %25817 = vmatmul.mubr.msk.f32.gmra.mrb[20].mxu0 %vm419_vm1, %v31211_v55 }
  0x57   : > { %25819 = vmatprep.mubr.msk.f32.mxu0 %vm419_vm1, %v31213_v56 }
  0x5a   : > { %25820 = vmatmul.mubr.msk.f32.gmra.mrb[22].mxu0 %vm419_vm1, %v31219_v57 }
  0x5b   : > { %25822 = vmatprep.mubr.msk.f32.mxu0 %vm419_vm1, %v31221_v58 }
  0x5e   : > { %25823 = vmatmul.mubr.msk.f32.gmra.mrb[24].mxu0 %vm419_vm1, %v31227_v59 }
  0x5f   : > { %25825 = vmatprep.mubr.msk.f32.mxu0 %vm419_vm1, %v31229_v60 }
  0x62   : > { %25826 = vmatmul.mubr.msk.f32.gmra.mrb[26].mxu0 %vm419_vm1, %v31235_v61 }
  0x63   : > { %25828 = vmatprep.mubr.msk.f32.mxu0 %vm419_vm1, %v31237_v62 }
  0x66   : > { %25829 = vmatmul.mubr.msk.f32.gmra.mrb[28].mxu0 %vm419_vm1, %v31243_v63 }
  0x67   : > { %25831 = vmatprep.mubr.msk.f32.mxu0 %vm419_vm1, %v31245_v0 }
  0x6a   : > { %25832 = vmatmul.mubr.msk.f32.gmra.mrb[30].mxu0 %vm419_vm1, %v31251_v2 }
  0x6b   : > { %25836 = vmatprep.mubr.msk.f32.mxu0 %vm419_vm1, %v905_v3  ;;  %v31380_v3 = vld [vmem:[#allocation2 + $0x169] sm:$0xff] }
  0x6c   : > { %36601 = vst [vmem:[#allocation12_spill] sm:$0xff] %v31380_v3 }
  0x6e   : > { %25837 = vmatmul.mubr.msk.f32.vlgmr.msra.gmra.mrb[0].mxu0 %vm419_vm1, %v906_v4  ;;  %v31386_v4 = vld [vmem:[#allocation2 + $0x171] sm:$0xff] }
  0x6f   : > { %25885 = vmatpush3.msk.msra.mxu0 %vm644_vm0, %v31077_v9  ;;  %25839 = vmatprep.mubr.msk.f32.mxu0 %vm419_vm1, %v31256_v5  ;;  %v31286_v9 = vld [vmem:[#allocation2 + $0x51] sm:$0xff]  ;;  %36602 = vst [vmem:[#allocation13_spill] sm:$0xff] %v31386_v4 }
  0x70   : > { %25934 = vmatprep.subr.msk.mxu0 %vm644_vm0, %v31261_v6 }
  0x72   : > { %25840 = vmatmul.mubr.msk.f32.gmra.mrb[2].mxu0 %vm419_vm1, %v31268_v7 }
  0x73   : > { %25842 = vmatprep.mubr.msk.f32.mxu0 %vm419_vm1, %v31270_v8 }
  0x76   : > { %25843 = vmatmul.mubr.msk.f32.gmra.mrb[4].mxu0 %vm419_vm1, %v31278_v10 }
  0x77   : > { %25845 = vmatprep.mubr.msk.f32.mxu0 %vm419_vm1, %v31280_v11 }
  0x7a   : > { %25846 = vmatmul.mubr.msk.f32.gmra.mrb[6].mxu0 %vm419_vm1, %v31286_v9 }
  0x7b   : > { %25848 = vmatprep.mubr.msk.f32.mxu0 %vm419_vm1, %v31288_v12 }
  0x7e   : > { %25849 = vmatmul.mubr.msk.f32.gmra.mrb[8].mxu0 %vm419_vm1, %v31294_v13 }
  0x7f   : > { %25851 = vmatprep.mubr.msk.f32.mxu0 %vm419_vm1, %v31296_v14 }
  0x82   : > { %25852 = vmatmul.mubr.msk.f32.gmra.mrb[10].mxu0 %vm419_vm1, %v31302_v15 }
  0x83   : > { %25854 = vmatprep.mubr.msk.f32.mxu0 %vm419_vm1, %v31304_v16 }
  0x86   : > { %25855 = vmatmul.mubr.msk.f32.gmra.mrb[12].mxu0 %vm419_vm1, %v31310_v17 }
  0x87   : > { %25857 = vmatprep.mubr.msk.f32.mxu0 %vm419_vm1, %v31312_v18 }
  0x8a   : > { %25858 = vmatmul.mubr.msk.f32.gmra.mrb[14].mxu0 %vm419_vm1, %v31318_v19 }
  0x8b   : > { %25860 = vmatprep.mubr.msk.f32.mxu0 %vm419_vm1, %v31320_v20 }
  0x8e   : > { %25861 = vmatmul.mubr.msk.f32.gmra.mrb[16].mxu0 %vm419_vm1, %v31326_v21 }
  0x8f   : > { %25863 = vmatprep.mubr.msk.f32.mxu0 %vm419_vm1, %v31328_v22 }
  0x92   : > { %25864 = vmatmul.mubr.msk.f32.gmra.mrb[18].mxu0 %vm419_vm1, %v31334_v23 }
  0x93   : > { %25866 = vmatprep.mubr.msk.f32.mxu0 %vm419_vm1, %v31336_v24 }
  0x96   : > { %25867 = vmatmul.mubr.msk.f32.gmra.mrb[20].mxu0 %vm419_vm1, %v31342_v25 }
  0x97   : > { %25869 = vmatprep.mubr.msk.f32.mxu0 %vm419_vm1, %v31344_v26 }
  0x9a   : > { %25870 = vmatmul.mubr.msk.f32.gmra.mrb[22].mxu0 %vm419_vm1, %v31350_v27 }
  0x9b   : > { %25872 = vmatprep.mubr.msk.f32.mxu0 %vm419_vm1, %v31352_v31 }
  0x9e   : > { %25873 = vmatmul.mubr.msk.f32.gmra.mrb[24].mxu0 %vm419_vm1, %v31358_v32 }
  0x9f   : > { %25875 = vmatprep.mubr.msk.f32.mxu0 %vm419_vm1, %v31360_v37 }
  0xa2   : > { %25876 = vmatmul.mubr.msk.f32.gmra.mrb[26].mxu0 %vm419_vm1, %v31366_v38 }
  0xa3   : > { %25878 = vmatprep.mubr.msk.f32.mxu0 %vm419_vm1, %v31368_v39  ;;  %v31396_v39 = vld [vmem:[%s36312_s1 + $0x10] sm:$0xf] }
  0xa6   : > { %25879 = vmatmul.mubr.msk.f32.gmra.mrb[28].mxu0 %vm419_vm1, %v31378_v42 }
  0xa7   : > { %25881 = vmatprep.mubr.msk.f32.mxu0 %vm419_vm1, %v31380_v3  ;;  %v31403_v3 = vld [vmem:[#allocation2 + $0x22] sm:$0xff] }
  0xa8   : > { %36604 = vst [vmem:[#allocation15_spill] sm:$0xff] %v31403_v3 }
  0xaa   : > { %25882 = vmatmul.mubr.msk.f32.gmra.mrb[30].mxu0 %vm419_vm1, %v31386_v4  ;;  %v31405_v4 = vld [vmem:[#allocation2 + $0x32] sm:$0xff] }
  0xab   : > { %25886 = vmatprep.mubr.msk.f32.mxu0 %vm419_vm1, %v1295_v40  ;;  %36605 = vst [vmem:[#allocation16_spill] sm:$0xff] %v31405_v4  ;;  %v31413_v40 = vld [vmem:[#allocation2 + $0x3a] sm:$0xff] }
  0xac   : > { %36606 = vst [vmem:[#allocation17_spill] sm:$0xff] %v31413_v40 }
  0xae   : > { %25887 = vmatmul.mubr.msk.f32.vlgmr.msra.gmra.mrb[0].mxu0 %vm419_vm1, %v1296_v41  ;;  %v31415_v41 = vld [vmem:[#allocation2 + $0x4a] sm:$0xff] }
  0xaf   : > { %25935 = vmatpush3.msk.msra.mxu0 %vm644_vm0, %v31261_v6  ;;  %25889 = vmatprep.mubr.msk.f32.mxu0 %vm419_vm1, %v31391_v1  ;;  %36607 = vst [vmem:[#allocation18_spill] sm:$0xff] %v31415_v41  ;;  %v31421_v6 = vld [vmem:[#allocation2 + $0x52] sm:$0xff]  ;;  %v31423_v1 = vld [vmem:[#allocation2 + $0x62] sm:$0xff] }
  0xb0   : > { %25984 = vmatprep.subr.msk.mxu0 %vm644_vm0, %v31396_v39  ;;  %36608 = vst [vmem:[#allocation19_spill] sm:$0xff] %v31421_v6  ;;  %36609 = vst [vmem:[#allocation20_spill] sm:$0xff] %v31423_v1 }
  0xb2   : > { %25890 = vmatmul.mubr.msk.f32.gmra.mrb[2].mxu0 %vm419_vm1, %v31403_v3  ;;  %v31431_v3 = vld [vmem:[#allocation2 + $0x7a] sm:$0xff] }
  0xb3   : > { %25892 = vmatprep.mubr.msk.f32.mxu0 %vm419_vm1, %v31405_v4  ;;  %v31429_v4 = vld [vmem:[#allocation2 + $0x6a] sm:$0xff]  ;;  %36611 = vst [vmem:[#allocation22_spill] sm:$0xff] %v31431_v3 }
  0xb4   : > { %36610 = vst [vmem:[#allocation21_spill] sm:$0xff] %v31429_v4 }
  0xb6   : > { %25893 = vmatmul.mubr.msk.f32.gmra.mrb[4].mxu0 %vm419_vm1, %v31413_v40  ;;  %v31439_v40 = vld [vmem:[#allocation2 + $0x92] sm:$0xff] }
  0xb7   : > { %25895 = vmatprep.mubr.msk.f32.mxu0 %vm419_vm1, %v31415_v41  ;;  %v31437_v41 = vld [vmem:[#allocation2 + $0x82] sm:$0xff]  ;;  %36613 = vst [vmem:[#allocation24_spill] sm:$0xff] %v31439_v40 }
  0xb8   : > { %36612 = vst [vmem:[#allocation23_spill] sm:$0xff] %v31437_v41 }
  0xba   : > { %25896 = vmatmul.mubr.msk.f32.gmra.mrb[6].mxu0 %vm419_vm1, %v31421_v6  ;;  %v31447_v6 = vld [vmem:[#allocation2 + $0xaa] sm:$0xff] }
  0xbb   : > { %25898 = vmatprep.mubr.msk.f32.mxu0 %vm419_vm1, %v31423_v1  ;;  %v31445_v1 = vld [vmem:[#allocation2 + $0x9a] sm:$0xff]  ;;  %36615 = vst [vmem:[#allocation26_spill] sm:$0xff] %v31447_v6 }
  0xbc   : > { %36614 = vst [vmem:[#allocation25_spill] sm:$0xff] %v31445_v1 }
  0xbe   : > { %25899 = vmatmul.mubr.msk.f32.gmra.mrb[8].mxu0 %vm419_vm1, %v31429_v4  ;;  %v31455_v4 = vld [vmem:[#allocation2 + $0xc2] sm:$0xff] }
  0xbf   : > { %25901 = vmatprep.mubr.msk.f32.mxu0 %vm419_vm1, %v31431_v3  ;;  %v31453_v3 = vld [vmem:[#allocation2 + $0xb2] sm:$0xff]  ;;  %36617 = vst [vmem:[#allocation28_spill] sm:$0xff] %v31455_v4 }
  0xc0   : > { %36616 = vst [vmem:[#allocation27_spill] sm:$0xff] %v31453_v3 }
  0xc2   : > { %25902 = vmatmul.mubr.msk.f32.gmra.mrb[10].mxu0 %vm419_vm1, %v31437_v41  ;;  %v31463_v41 = vld [vmem:[#allocation2 + $0xda] sm:$0xff] }
  0xc3   : > { %25904 = vmatprep.mubr.msk.f32.mxu0 %vm419_vm1, %v31439_v40  ;;  %v31461_v40 = vld [vmem:[#allocation2 + $0xca] sm:$0xff]  ;;  %36619 = vst [vmem:[#allocation30_spill] sm:$0xff] %v31463_v41 }
  0xc4   : > { %36618 = vst [vmem:[#allocation29_spill] sm:$0xff] %v31461_v40 }
  0xc6   : > { %25905 = vmatmul.mubr.msk.f32.gmra.mrb[12].mxu0 %vm419_vm1, %v31445_v1  ;;  %v31471_v1 = vld [vmem:[#allocation2 + $0xf2] sm:$0xff] }
  0xc7   : > { %25907 = vmatprep.mubr.msk.f32.mxu0 %vm419_vm1, %v31447_v6  ;;  %v31469_v6 = vld [vmem:[#allocation2 + $0xe2] sm:$0xff]  ;;  %36621 = vst [vmem:[#allocation32_spill] sm:$0xff] %v31471_v1 }
  0xc8   : > { %36620 = vst [vmem:[#allocation31_spill] sm:$0xff] %v31469_v6 }
  0xca   : > { %25908 = vmatmul.mubr.msk.f32.gmra.mrb[14].mxu0 %vm419_vm1, %v31453_v3  ;;  %v31479_v3 = vld [vmem:[#allocation2 + $0x10a] sm:$0xff] }
  0xcb   : > { %25910 = vmatprep.mubr.msk.f32.mxu0 %vm419_vm1, %v31455_v4  ;;  %v31477_v4 = vld [vmem:[#allocation2 + $0xfa] sm:$0xff]  ;;  %36623 = vst [vmem:[#allocation34_spill] sm:$0xff] %v31479_v3 }
  0xcc   : > { %36622 = vst [vmem:[#allocation33_spill] sm:$0xff] %v31477_v4 }
  0xce   : > { %25911 = vmatmul.mubr.msk.f32.gmra.mrb[16].mxu0 %vm419_vm1, %v31461_v40  ;;  %v31487_v40 = vld [vmem:[#allocation2 + $0x122] sm:$0xff] }
  0xcf   : > { %25913 = vmatprep.mubr.msk.f32.mxu0 %vm419_vm1, %v31463_v41  ;;  %v31485_v41 = vld [vmem:[#allocation2 + $0x112] sm:$0xff]  ;;  %36625 = vst [vmem:[#allocation36_spill] sm:$0xff] %v31487_v40 }
  0xd0   : > { %36624 = vst [vmem:[#allocation35_spill] sm:$0xff] %v31485_v41 }
  0xd2   : > { %25914 = vmatmul.mubr.msk.f32.gmra.mrb[18].mxu0 %vm419_vm1, %v31469_v6  ;;  %v31495_v6 = vld [vmem:[#allocation2 + $0x13a] sm:$0xff] }
  0xd3   : > { %25916 = vmatprep.mubr.msk.f32.mxu0 %vm419_vm1, %v31471_v1  ;;  %v31493_v1 = vld [vmem:[#allocation2 + $0x12a] sm:$0xff]  ;;  %36626 = vst [vmem:[#allocation37_spill] sm:$0xff] %v31495_v6 }
  0xd6   : > { %25917 = vmatmul.mubr.msk.f32.gmra.mrb[20].mxu0 %vm419_vm1, %v31477_v4  ;;  %v31503_v4 = vld [vmem:[#allocation2 + $0x152] sm:$0xff] }
  0xd7   : > { %25919 = vmatprep.mubr.msk.f32.mxu0 %vm419_vm1, %v31479_v3  ;;  %v31501_v3 = vld [vmem:[#allocation2 + $0x142] sm:$0xff]  ;;  %36627 = vst [vmem:[#allocation38_spill] sm:$0xff] %v31503_v4 }
  0xda   : > { %25920 = vmatmul.mubr.msk.f32.gmra.mrb[22].mxu0 %vm419_vm1, %v31485_v41  ;;  %v31511_v41 = vld [vmem:[#allocation2 + $0x16a] sm:$0xff] }
  0xdb   : > { %25922 = vmatprep.mubr.msk.f32.mxu0 %vm419_vm1, %v31487_v40  ;;  %v31509_v40 = vld [vmem:[#allocation2 + $0x15a] sm:$0xff]  ;;  %36628 = vst [vmem:[#allocation39_spill] sm:$0xff] %v31511_v41 }
  0xde   : > { %25923 = vmatmul.mubr.msk.f32.gmra.mrb[24].mxu0 %vm419_vm1, %v31493_v1 }
  0xdf   : > { %25925 = vmatprep.mubr.msk.f32.mxu0 %vm419_vm1, %v31495_v6  ;;  %v31517_v6 = vld [vmem:[#allocation2 + $0x172] sm:$0xff] }
  0xe2   : > { %25926 = vmatmul.mubr.msk.f32.gmra.mrb[26].mxu0 %vm419_vm1, %v31501_v3 }
  0xe3   : > { %25928 = vmatprep.mubr.msk.f32.mxu0 %vm419_vm1, %v31503_v4  ;;  %v22124_v4 = vld [vmem:[%s36312_s1 + $0x14] sm:$0xf] }
  0xe6   : > { %25929 = vmatmul.mubr.msk.f32.gmra.mrb[28].mxu0 %vm419_vm1, %v31509_v40 }
  0xe7   : > { %25931 = vmatprep.mubr.msk.f32.mxu0 %vm419_vm1, %v31511_v41 }
  0xea   : > { %25932 = vmatmul.mubr.msk.f32.gmra.mrb[30].mxu0 %vm419_vm1, %v31517_v6 }
  0xeb   : > { %25936 = vmatprep.mubr.msk.f32.mxu0 %vm419_vm1, %v31116_v28  ;;  %v31585_v28 = vld [vmem:[#allocation2 + $0x180] sm:$0xff] }
  0xee   : > { %25937 = vmatmul.mubr.msk.f32.vlgmr.msra.gmra.mrb[0].mxu0 %vm419_vm1, %v31118_v29  ;;  %v31591_v29 = vld [vmem:[#allocation2 + $0x188] sm:$0xff] }
  0xef   : > { %25985 = vmatpush3.msk.msra.mxu0 %vm644_vm0, %v31396_v39  ;;  %25939 = vmatprep.mubr.msk.f32.mxu0 %vm419_vm1, %v31120_v30  ;;  %v22158_v39 = vld [vmem:[%s36312_s1 + $0x18] sm:$0xf] }
  0xf0   : > { %26034 = vmatprep.subr.msk.mxu0 %vm644_vm0, %v22124_v4 }
  0xf2   : > { %25940 = vmatmul.mubr.msk.f32.gmra.mrb[2].mxu0 %vm419_vm1, %v31133_v33 }
  0xf3   : > { %25942 = vmatprep.mubr.msk.f32.mxu0 %vm419_vm1, %v31137_v34 }
  0xf6   : > { %25943 = vmatmul.mubr.msk.f32.gmra.mrb[4].mxu0 %vm419_vm1, %v31143_v35 }
  0xf7   : > { %25945 = vmatprep.mubr.msk.f32.mxu0 %vm419_vm1, %v31145_v36 }
  0xfa   : > { %25946 = vmatmul.mubr.msk.f32.gmra.mrb[6].mxu0 %vm419_vm1, %v31163_v43 }
  0xfb   : > { %25948 = vmatprep.mubr.msk.f32.mxu0 %vm419_vm1, %v31165_v44 }
  0xfe   : > { %25949 = vmatmul.mubr.msk.f32.gmra.mrb[8].mxu0 %vm419_vm1, %v31171_v45 }
  0xff   : > { %25951 = vmatprep.mubr.msk.f32.mxu0 %vm419_vm1, %v31173_v46 }
 0x102   : > { %25952 = vmatmul.mubr.msk.f32.gmra.mrb[10].mxu0 %vm419_vm1, %v31179_v47 }
 0x103   : > { %25954 = vmatprep.mubr.msk.f32.mxu0 %vm419_vm1, %v31181_v48 }
 0x106   : > { %25955 = vmatmul.mubr.msk.f32.gmra.mrb[12].mxu0 %vm419_vm1, %v31187_v49 }
 0x107   : > { %25957 = vmatprep.mubr.msk.f32.mxu0 %vm419_vm1, %v31189_v50 }
 0x10a   : > { %25958 = vmatmul.mubr.msk.f32.gmra.mrb[14].mxu0 %vm419_vm1, %v31195_v51 }
 0x10b   : > { %25960 = vmatprep.mubr.msk.f32.mxu0 %vm419_vm1, %v31197_v52 }
 0x10e   : > { %25961 = vmatmul.mubr.msk.f32.gmra.mrb[16].mxu0 %vm419_vm1, %v31203_v53 }
 0x10f   : > { %25963 = vmatprep.mubr.msk.f32.mxu0 %vm419_vm1, %v31205_v54 }
 0x112   : > { %25964 = vmatmul.mubr.msk.f32.gmra.mrb[18].mxu0 %vm419_vm1, %v31211_v55 }
 0x113   : > { %25966 = vmatprep.mubr.msk.f32.mxu0 %vm419_vm1, %v31213_v56 }
 0x116   : > { %25967 = vmatmul.mubr.msk.f32.gmra.mrb[20].mxu0 %vm419_vm1, %v31219_v57 }
 0x117   : > { %25969 = vmatprep.mubr.msk.f32.mxu0 %vm419_vm1, %v31221_v58 }
 0x11a   : > { %25970 = vmatmul.mubr.msk.f32.gmra.mrb[22].mxu0 %vm419_vm1, %v31227_v59 }
 0x11b   : > { %25972 = vmatprep.mubr.msk.f32.mxu0 %vm419_vm1, %v31229_v60 }
 0x11e   : > { %25973 = vmatmul.mubr.msk.f32.gmra.mrb[24].mxu0 %vm419_vm1, %v31235_v61 }
 0x11f   : > { %25975 = vmatprep.mubr.msk.f32.mxu0 %vm419_vm1, %v31237_v62 }
 0x122   : > { %25976 = vmatmul.mubr.msk.f32.gmra.mrb[26].mxu0 %vm419_vm1, %v31243_v63 }
 0x123   : > { %25978 = vmatprep.mubr.msk.f32.mxu0 %vm419_vm1, %v31245_v0 }
 0x126   : > { %25979 = vmatmul.mubr.msk.f32.gmra.mrb[28].mxu0 %vm419_vm1, %v31251_v2 }
 0x127   : > { %25981 = vmatprep.mubr.msk.f32.mxu0 %vm419_vm1, %v31585_v28 }
 0x12a   : > { %25982 = vmatmul.mubr.msk.f32.gmra.mrb[30].mxu0 %vm419_vm1, %v31591_v29 }
 0x12b   : > { %25986 = vmatprep.mubr.msk.f32.mxu0 %vm419_vm1, %v31256_v5  ;;  %v36629_v5 = vld [vmem:[#allocation10_spill] sm:$0xff] }
 0x12e   : > { %25987 = vmatmul.mubr.msk.f32.vlgmr.msra.gmra.mrb[0].mxu0 %vm419_vm1, %v31268_v7  ;;  %v36630_v7 = vld [vmem:[#allocation12_spill] sm:$0xff] }
 0x12f   : > { %26035 = vmatpush3.msk.msra.mxu0 %vm644_vm0, %v22124_v4  ;;  %25989 = vmatprep.mubr.msk.f32.mxu0 %vm419_vm1, %v31270_v8  ;;  %v31658_v4 = vld [vmem:[#allocation2 + $0x181] sm:$0xff] }
 0x130   : > { %26084 = vmatprep.subr.msk.mxu0 %vm644_vm0, %v22158_v39  ;;  %36631 = vst [vmem:[#allocation40_spill] sm:$0xff] %v31658_v4 }
 0x132   : > { %25990 = vmatmul.mubr.msk.f32.gmra.mrb[2].mxu0 %vm419_vm1, %v31278_v10 }
 0x133   : > { %25992 = vmatprep.mubr.msk.f32.mxu0 %vm419_vm1, %v31280_v11 }
 0x136   : > { %25993 = vmatmul.mubr.msk.f32.gmra.mrb[4].mxu0 %vm419_vm1, %v31286_v9 }
 0x137   : > { %25995 = vmatprep.mubr.msk.f32.mxu0 %vm419_vm1, %v31288_v12 }
 0x13a   : > { %25996 = vmatmul.mubr.msk.f32.gmra.mrb[6].mxu0 %vm419_vm1, %v31294_v13 }
 0x13b   : > { %25998 = vmatprep.mubr.msk.f32.mxu0 %vm419_vm1, %v31296_v14 }
 0x13e   : > { %25999 = vmatmul.mubr.msk.f32.gmra.mrb[8].mxu0 %vm419_vm1, %v31302_v15 }
 0x13f   : > { %26001 = vmatprep.mubr.msk.f32.mxu0 %vm419_vm1, %v31304_v16 }
 0x142   : > { %26002 = vmatmul.mubr.msk.f32.gmra.mrb[10].mxu0 %vm419_vm1, %v31310_v17 }
 0x143   : > { %26004 = vmatprep.mubr.msk.f32.mxu0 %vm419_vm1, %v31312_v18 }
 0x146   : > { %26005 = vmatmul.mubr.msk.f32.gmra.mrb[12].mxu0 %vm419_vm1, %v31318_v19 }
 0x147   : > { %26007 = vmatprep.mubr.msk.f32.mxu0 %vm419_vm1, %v31320_v20 }
 0x14a   : > { %26008 = vmatmul.mubr.msk.f32.gmra.mrb[14].mxu0 %vm419_vm1, %v31326_v21 }
 0x14b   : > { %26010 = vmatprep.mubr.msk.f32.mxu0 %vm419_vm1, %v31328_v22 }
 0x14e   : > { %26011 = vmatmul.mubr.msk.f32.gmra.mrb[16].mxu0 %vm419_vm1, %v31334_v23 }
 0x14f   : > { %26013 = vmatprep.mubr.msk.f32.mxu0 %vm419_vm1, %v31336_v24 }
 0x152   : > { %26014 = vmatmul.mubr.msk.f32.gmra.mrb[18].mxu0 %vm419_vm1, %v31342_v25 }
 0x153   : > { %26016 = vmatprep.mubr.msk.f32.mxu0 %vm419_vm1, %v31344_v26 }
 0x156   : > { %26017 = vmatmul.mubr.msk.f32.gmra.mrb[20].mxu0 %vm419_vm1, %v31350_v27 }
 0x157   : > { %26019 = vmatprep.mubr.msk.f32.mxu0 %vm419_vm1, %v31352_v31  ;;  %v36632_v31 = vld [vmem:[#allocation13_spill] sm:$0xff] }
 0x15a   : > { %26020 = vmatmul.mubr.msk.f32.gmra.mrb[22].mxu0 %vm419_vm1, %v31358_v32  ;;  %v36644_v32 = vld [vmem:[#allocation24_spill] sm:$0xff] }
 0x15b   : > { %26022 = vmatprep.mubr.msk.f32.mxu0 %vm419_vm1, %v31360_v37  ;;  %v31664_v37 = vld [vmem:[#allocation2 + $0x189] sm:$0xff] }
 0x15c   : > { %36633 = vst [vmem:[#allocation41_spill] sm:$0xff] %v31664_v37 }
 0x15e   : > { %26023 = vmatmul.mubr.msk.f32.gmra.mrb[24].mxu0 %vm419_vm1, %v31366_v38  ;;  %v36640_v38 = vld [vmem:[#allocation20_spill] sm:$0xff] }
 0x15f   : > { %26025 = vmatprep.mubr.msk.f32.mxu0 %vm419_vm1, %v36629_v5  ;;  %v36634_v5 = vld [vmem:[#allocation14_spill] sm:$0xff] }
 0x162   : > { %26026 = vmatmul.mubr.msk.f32.gmra.mrb[26].mxu0 %vm419_vm1, %v31378_v42  ;;  %v36635_v42 = vld [vmem:[#allocation15_spill] sm:$0xff] }
 0x163   : > { %26028 = vmatprep.mubr.msk.f32.mxu0 %vm419_vm1, %v36630_v7  ;;  %v22192_v7 = vld [vmem:[%s36312_s1 + $0x1c] sm:$0xf] }
 0x166   : > { %26029 = vmatmul.mubr.msk.f32.gmra.mrb[28].mxu0 %vm419_vm1, %v36632_v31  ;;  %v36636_v31 = vld [vmem:[#allocation16_spill] sm:$0xff] }
 0x167   : > { %26031 = vmatprep.mubr.msk.f32.mxu0 %vm419_vm1, %v31658_v4  ;;  %v36637_v4 = vld [vmem:[#allocation17_spill] sm:$0xff] }
 0x16a   : > { %26032 = vmatmul.mubr.msk.f32.gmra.mrb[30].mxu0 %vm419_vm1, %v31664_v37  ;;  %v36638_v37 = vld [vmem:[#allocation18_spill] sm:$0xff] }
 0x16b   : > { %26036 = vmatprep.mubr.msk.f32.mxu0 %vm419_vm1, %v36634_v5  ;;  %v36639_v5 = vld [vmem:[#allocation19_spill] sm:$0xff] }
 0x16e   : > { %26037 = vmatmul.mubr.msk.f32.vlgmr.msra.gmra.mrb[0].mxu0 %vm419_vm1, %v36635_v42  ;;  %v36641_v42 = vld [vmem:[#allocation21_spill] sm:$0xff] }
 0x16f   : > { %26085 = vmatpush3.msk.msra.mxu0 %vm644_vm0, %v22158_v39  ;;  %26039 = vmatprep.mubr.msk.f32.mxu0 %vm419_vm1, %v36636_v31  ;;  %v36642_v39 = vld [vmem:[#allocation22_spill] sm:$0xff]  ;;  %v36643_v31 = vld [vmem:[#allocation23_spill] sm:$0xff] }
 0x170   : > { %26134 = vmatprep.subr.msk.mxu0 %vm644_vm0, %v22192_v7 }
 0x172   : > { %26040 = vmatmul.mubr.msk.f32.gmra.mrb[2].mxu0 %vm419_vm1, %v36637_v4  ;;  %v36645_v4 = vld [vmem:[#allocation25_spill] sm:$0xff] }
 0x173   : > { %26042 = vmatprep.mubr.msk.f32.mxu0 %vm419_vm1, %v36638_v37  ;;  %v36646_v37 = vld [vmem:[#allocation26_spill] sm:$0xff] }
 0x176   : > { %26043 = vmatmul.mubr.msk.f32.gmra.mrb[4].mxu0 %vm419_vm1, %v36639_v5  ;;  %v36647_v5 = vld [vmem:[#allocation27_spill] sm:$0xff] }
 0x177   : > { %26045 = vmatprep.mubr.msk.f32.mxu0 %vm419_vm1, %v36640_v38  ;;  %v36648_v38 = vld [vmem:[#allocation28_spill] sm:$0xff] }
 0x17a   : > { %26046 = vmatmul.mubr.msk.f32.gmra.mrb[6].mxu0 %vm419_vm1, %v36641_v42  ;;  %v36649_v42 = vld [vmem:[#allocation29_spill] sm:$0xff] }
 0x17b   : > { %26048 = vmatprep.mubr.msk.f32.mxu0 %vm419_vm1, %v36642_v39  ;;  %v36650_v39 = vld [vmem:[#allocation30_spill] sm:$0xff] }
 0x17e   : > { %26049 = vmatmul.mubr.msk.f32.gmra.mrb[8].mxu0 %vm419_vm1, %v36643_v31  ;;  %v36651_v31 = vld [vmem:[#allocation31_spill] sm:$0xff] }
 0x17f   : > { %26051 = vmatprep.mubr.msk.f32.mxu0 %vm419_vm1, %v36644_v32  ;;  %v36652_v32 = vld [vmem:[#allocation32_spill] sm:$0xff] }
 0x182   : > { %26052 = vmatmul.mubr.msk.f32.gmra.mrb[10].mxu0 %vm419_vm1, %v36645_v4  ;;  %v36653_v4 = vld [vmem:[#allocation33_spill] sm:$0xff] }
 0x183   : > { %26054 = vmatprep.mubr.msk.f32.mxu0 %vm419_vm1, %v36646_v37  ;;  %v36654_v37 = vld [vmem:[#allocation34_spill] sm:$0xff] }
 0x186   : > { %26055 = vmatmul.mubr.msk.f32.gmra.mrb[12].mxu0 %vm419_vm1, %v36647_v5  ;;  %v36655_v5 = vld [vmem:[#allocation35_spill] sm:$0xff] }
 0x187   : > { %26057 = vmatprep.mubr.msk.f32.mxu0 %vm419_vm1, %v36648_v38  ;;  %v36656_v38 = vld [vmem:[#allocation36_spill] sm:$0xff] }
 0x18a   : > { %26058 = vmatmul.mubr.msk.f32.gmra.mrb[14].mxu0 %vm419_vm1, %v36649_v42 }
 0x18b   : > { %26060 = vmatprep.mubr.msk.f32.mxu0 %vm419_vm1, %v36650_v39  ;;  %v36657_v39 = vld [vmem:[#allocation37_spill] sm:$0xff] }
 0x18e   : > { %26061 = vmatmul.mubr.msk.f32.gmra.mrb[16].mxu0 %vm419_vm1, %v36651_v31 }
 0x18f   : > { %26063 = vmatprep.mubr.msk.f32.mxu0 %vm419_vm1, %v36652_v32  ;;  %v36658_v32 = vld [vmem:[#allocation38_spill] sm:$0xff] }
 0x192   : > { %26064 = vmatmul.mubr.msk.f32.gmra.mrb[18].mxu0 %vm419_vm1, %v36653_v4 }
 0x193   : > { %26066 = vmatprep.mubr.msk.f32.mxu0 %vm419_vm1, %v36654_v37 }
 0x196   : > { %26067 = vmatmul.mubr.msk.f32.gmra.mrb[20].mxu0 %vm419_vm1, %v36655_v5  ;;  %v31731_v5 = vld [vmem:[#allocation2 + $0x182] sm:$0xff] }
 0x197   : > { %26069 = vmatprep.mubr.msk.f32.mxu0 %vm419_vm1, %v36656_v38 }
 0x19a   : > { %26070 = vmatmul.mubr.msk.f32.gmra.mrb[22].mxu0 %vm419_vm1, %v31493_v1 }
 0x19b   : > { %26072 = vmatprep.mubr.msk.f32.mxu0 %vm419_vm1, %v36657_v39  ;;  %v31737_v39 = vld [vmem:[#allocation2 + $0x18a] sm:$0xff] }
 0x19e   : > { %26073 = vmatmul.mubr.msk.f32.gmra.mrb[24].mxu0 %vm419_vm1, %v31501_v3 }
 0x19f   : > { %26075 = vmatprep.mubr.msk.f32.mxu0 %vm419_vm1, %v36658_v32 }
 0x1a2   : > { %26076 = vmatmul.mubr.msk.f32.gmra.mrb[26].mxu0 %vm419_vm1, %v31509_v40 }
 0x1a3   : > { %26078 = vmatprep.mubr.msk.f32.mxu0 %vm419_vm1, %v31511_v41  ;;  %v22226_v41 = vld [vmem:[%s36312_s1 + $0x20] sm:$0xf] }
 0x1a6   : > { %26079 = vmatmul.mubr.msk.f32.gmra.mrb[28].mxu0 %vm419_vm1, %v31517_v6 }
 0x1a7   : > { %26081 = vmatprep.mubr.msk.f32.mxu0 %vm419_vm1, %v31731_v5 }
 0x1aa   : > { %26082 = vmatmul.mubr.msk.f32.gmra.mrb[30].mxu0 %vm419_vm1, %v31737_v39 }
 0x1ab   : > { %26086 = vmatprep.mubr.msk.f32.mxu0 %vm419_vm1, %v31120_v30  ;;  %v2886_v30 = vld [vmem:[#allocation2 + $0x198] sm:$0xff] }
 0x1ae   : > { %26087 = vmatmul.mubr.msk.f32.vlgmr.msra.gmra.mrb[0].mxu0 %vm419_vm1, %v31133_v33  ;;  %v2887_v33 = vld [vmem:[#allocation2 + $0x1a0] sm:$0xff] }
 0x1af   : > { %26135 = vmatpush3.msk.msra.mxu0 %vm644_vm0, %v22192_v7  ;;  %26089 = vmatprep.mubr.msk.f32.mxu0 %vm419_vm1, %v31137_v34  ;;  %v4154_v34 = vld [vmem:[%s36314_s3] sm:$0xff]  ;;  %v22938_v7 = vld [vmem:[%s36318_s7 + $0x38] sm:$0xff] }
 0x1b0   : > { %26184 = vmatprep.subr.msk.mxu0 %vm644_vm0, %v22226_v41 }
 0x1b2   : > { %26090 = vmatmul.mubr.msk.f32.gmra.mrb[2].mxu0 %vm419_vm1, %v31143_v35  ;;  %v4155_v35 = vld [vmem:[%s36314_s3 + $0x8] sm:$0xff] }
 0x1b3   : > { %26092 = vmatprep.mubr.msk.f32.mxu0 %vm419_vm1, %v31145_v36  ;;  %v28754_v36 = vpack.c.bf16 %v4155_v35, %v4154_v34  ;;  %v22972_v34 = vld [vmem:[%s36318_s7 + $0x48] sm:$0xff] }
 0x1b6   : > { %26093 = vmatmul.mubr.msk.f32.gmra.mrb[4].mxu0 %vm419_vm1, %v31163_v43  ;;  %v36659_v43 = vld [vmem:[#allocation6_spill] sm:$0xff] }
 0x1b7   : > { %26095 = vmatprep.mubr.msk.f32.mxu0 %vm419_vm1, %v31165_v44  ;;  %v36660_v44 = vld [vmem:[#allocation7_spill] sm:$0xff] }
 0x1ba   : > { %26096 = vmatmul.mubr.msk.f32.gmra.mrb[6].mxu0 %vm419_vm1, %v31171_v45  ;;  %v36661_v45 = vld [vmem:[#allocation8_spill] sm:$0xff] }
 0x1bb   : > { %26098 = vmatprep.mubr.msk.f32.mxu0 %vm419_vm1, %v31173_v46  ;;  %v36662_v46 = vld [vmem:[#allocation9_spill] sm:$0xff] }
 0x1be   : > { %26099 = vmatmul.mubr.msk.f32.gmra.mrb[8].mxu0 %vm419_vm1, %v31179_v47  ;;  %v36663_v47 = vld [vmem:[#allocation10_spill] sm:$0xff] }
 0x1bf   : > { %26101 = vmatprep.mubr.msk.f32.mxu0 %vm419_vm1, %v31181_v48  ;;  %v36664_v48 = vld [vmem:[#allocation11_spill] sm:$0xff] }
 0x1c2   : > { %26102 = vmatmul.mubr.msk.f32.gmra.mrb[10].mxu0 %vm419_vm1, %v31187_v49  ;;  %v36665_v49 = vld [vmem:[#allocation12_spill] sm:$0xff] }
 0x1c3   : > { %26104 = vmatprep.mubr.msk.f32.mxu0 %vm419_vm1, %v31189_v50  ;;  %v36666_v50 = vld [vmem:[#allocation13_spill] sm:$0xff] }
 0x1c6   : > { %26105 = vmatmul.mubr.msk.f32.gmra.mrb[12].mxu0 %vm419_vm1, %v31195_v51  ;;  %v36667_v51 = vld [vmem:[#allocation40_spill] sm:$0xff] }
 0x1c7   : > { %26107 = vmatprep.mubr.msk.f32.mxu0 %vm419_vm1, %v31197_v52  ;;  %v3276_v52 = vld [vmem:[#allocation2 + $0x199] sm:$0xff] }
 0x1ca   : > { %26108 = vmatmul.mubr.msk.f32.gmra.mrb[14].mxu0 %vm419_vm1, %v31203_v53  ;;  %v36668_v53 = vld [vmem:[#allocation41_spill] sm:$0xff] }
 0x1cb   : > { %26110 = vmatprep.mubr.msk.f32.mxu0 %vm419_vm1, %v31205_v54  ;;  %v3277_v54 = vld [vmem:[#allocation2 + $0x1a1] sm:$0xff] }
 0x1ce   : > { %26111 = vmatmul.mubr.msk.f32.gmra.mrb[16].mxu0 %vm419_vm1, %v31211_v55  ;;  %v4156_v55 = vld [vmem:[%s36314_s3 + $0x10] sm:$0xff] }
 0x1cf   : > { %26113 = vmatprep.mubr.msk.f32.mxu0 %vm419_vm1, %v31213_v56  ;;  %v4157_v56 = vld [vmem:[%s36314_s3 + $0x18] sm:$0xff] }
 0x1d2   : > { %26114 = vmatmul.mubr.msk.f32.gmra.mrb[18].mxu0 %vm419_vm1, %v31219_v57  ;;  %v36669_v57 = vld [vmem:[#allocation16_spill] sm:$0xff] }
 0x1d3   : > { %26116 = vmatprep.mubr.msk.f32.mxu0 %vm419_vm1, %v31221_v58  ;;  %v28758_v58 = vpack.c.bf16 %v4157_v56, %v4156_v55 }
 0x1d6   : > { %26117 = vmatmul.mubr.msk.f32.gmra.mrb[20].mxu0 %vm419_vm1, %v31227_v59  ;;  %v36670_v59 = vld [vmem:[#allocation17_spill] sm:$0xff] }
 0x1d7   : > { %26119 = vmatprep.mubr.msk.f32.mxu0 %vm419_vm1, %v31229_v60  ;;  %v36671_v60 = vld [vmem:[#allocation18_spill] sm:$0xff] }
 0x1da   : > { %26120 = vmatmul.mubr.msk.f32.gmra.mrb[22].mxu0 %vm419_vm1, %v31235_v61  ;;  %v36672_v61 = vld [vmem:[#allocation19_spill] sm:$0xff] }
 0x1db   : > { %26122 = vmatprep.mubr.msk.f32.mxu0 %vm419_vm1, %v31237_v62  ;;  %v36673_v62 = vld [vmem:[#allocation20_spill] sm:$0xff] }
 0x1de   : > { %26123 = vmatmul.mubr.msk.f32.gmra.mrb[24].mxu0 %vm419_vm1, %v31243_v63  ;;  %v36674_v63 = vld [vmem:[#allocation21_spill] sm:$0xff] }
 0x1df   : > { %26125 = vmatprep.mubr.msk.f32.mxu0 %vm419_vm1, %v31245_v0  ;;  %v36675_v0 = vld [vmem:[#allocation22_spill] sm:$0xff] }
 0x1e2   : > { %26126 = vmatmul.mubr.msk.f32.gmra.mrb[26].mxu0 %vm419_vm1, %v31251_v2  ;;  %v36676_v2 = vld [vmem:[#allocation23_spill] sm:$0xff] }
 0x1e3   : > { %26128 = vmatprep.mubr.msk.f32.mxu0 %vm419_vm1, %v31585_v28 }
 0x1e6   : > { %26129 = vmatmul.mubr.msk.f32.gmra.mrb[28].mxu0 %vm419_vm1, %v31591_v29  ;;  %v22937_v29 = vld [vmem:[%s36318_s7 + $0x30] sm:$0xff] }
 0x1e7   : > { %26131 = vmatprep.mubr.msk.f32.mxu0 %vm419_vm1, %v2886_v30  ;;  %v32325_v30 = vld [vmem:[%s36313_s2] ss:$0 sm:$0xff] }
 0x1ea   : > { %26132 = vmatmul.mubr.msk.f32.gmra.mrb[30].mxu0 %vm419_vm1, %v2887_v33  ;;  %v22971_v33 = vld [vmem:[%s36318_s7 + $0x40] sm:$0xff] }
 0x1eb   : > { %26136 = vmatprep.mubr.msk.f32.mxu0 %vm419_vm1, %v31270_v8  ;;  %v36677_v8 = vld [vmem:[#allocation24_spill] sm:$0xff] }
 0x1ee   : > { %26137 = vmatmul.mubr.msk.f32.vlgmr.msra.gmra.mrb[0].mxu0 %vm419_vm1, %v31278_v10  ;;  %v36678_v10 = vld [vmem:[#allocation25_spill] sm:$0xff] }
 0x1ef   : > { %26185 = vmatpush3.msk.msra.mxu0 %vm644_vm0, %v22226_v41  ;;  %26139 = vmatprep.mubr.msk.f32.mxu0 %vm419_vm1, %v31280_v11  ;;  %v36679_v11 = vld [vmem:[#allocation26_spill] sm:$0xff] }
 0x1f0   : > { %28755 = vmatprep.subr.bf16.mxu0 %v28754_v36  ;;  %v22935_v41 = vld [vmem:[%s36318_s7 + $0x20] sm:$0xff] }
 0x1f2   : > { %26140 = vmatmul.mubr.msk.f32.gmra.mrb[2].mxu0 %vm419_vm1, %v31286_v9  ;;  %v36680_v9 = vld [vmem:[#allocation27_spill] sm:$0xff] }
 0x1f3   : > { %26142 = vmatprep.mubr.msk.f32.mxu0 %vm419_vm1, %v31288_v12  ;;  %v36681_v12 = vld [vmem:[#allocation28_spill] sm:$0xff] }
 0x1f6   : > { %26143 = vmatmul.mubr.msk.f32.gmra.mrb[4].mxu0 %vm419_vm1, %v31294_v13  ;;  %v36682_v13 = vld [vmem:[#allocation30_spill] sm:$0xff] }
 0x1f7   : > { %26145 = vmatprep.mubr.msk.f32.mxu0 %vm419_vm1, %v31296_v14  ;;  %v36683_v14 = vld [vmem:[#allocation32_spill] sm:$0xff] }
 0x1fa   : > { %26146 = vmatmul.mubr.msk.f32.gmra.mrb[6].mxu0 %vm419_vm1, %v31302_v15  ;;  %v36684_v15 = vld [vmem:[#allocation35_spill] sm:$0xff] }
 0x1fb   : > { %26148 = vmatprep.mubr.msk.f32.mxu0 %vm419_vm1, %v31304_v16  ;;  %v36685_v16 = vld [vmem:[#allocation37_spill] sm:$0xff] }
 0x1fe   : > { %26149 = vmatmul.mubr.msk.f32.gmra.mrb[8].mxu0 %vm419_vm1, %v31310_v17  ;;  %v36686_v17 = vld [vmem:[#allocation39_spill] sm:$0xff] }
 0x1ff   : > { %26151 = vmatprep.mubr.msk.f32.mxu0 %vm419_vm1, %v31312_v18  ;;  %v3667_v18 = vld [vmem:[#allocation2 + $0x1a2] sm:$0xff] }
 0x202   : > { %26152 = vmatmul.mubr.msk.f32.gmra.mrb[10].mxu0 %vm419_vm1, %v31318_v19  ;;  %v11362_v19 = vld [vmem:[%s36318_s7] sm:$0xff] }
 0x203   : > { %26154 = vmatprep.mubr.msk.f32.mxu0 %vm419_vm1, %v31320_v20  ;;  %v11363_v20 = vld [vmem:[%s36318_s7 + $0x8] sm:$0xff] }
 0x206   : > { %26155 = vmatmul.mubr.msk.f32.gmra.mrb[12].mxu0 %vm419_vm1, %v31326_v21  ;;  %v31951_v21 = vpack.c.bf16 %v11363_v20, %v11362_v19 }
 0x207   : > { %26157 = vmatprep.mubr.msk.f32.mxu0 %vm419_vm1, %v31328_v22  ;;  %v36687_v22 = vmov 0.0  }
 0x208   : > { %4032 = vst.msk [vmem:[#allocation3 + $0x20] sm:$0xff] %vm4026_vm3, %v36687_v22  ;;  %4027 = vst.msk [vmem:[#allocation3] sm:$0xff] %vm4026_vm3, %v36687_v22  ;;  %28899 = vmatprep.subr.bf16.mxu1 %v31951_v21 }
 0x209   : > { %4028 = vst.msk [vmem:[#allocation3 + $0x8] sm:$0xff] %vm4026_vm3, %v36687_v22  ;;  %4031 = vst.msk [vmem:[#allocation3 + $0x18] sm:$0xff] %vm4026_vm3, %v36687_v22  ;;  %28901 = vmatpush3.bf16.msra.mxu1 %v31951_v21 }
 0x20a   : > { %26158 = vmatmul.mubr.msk.f32.gmra.mrb[14].mxu0 %vm419_vm1, %v31334_v23  ;;  %4034 = vst.msk [vmem:[#allocation3 + $0x30] sm:$0xff] %vm4026_vm3, %v36687_v22  ;;  %4035 = vst.msk [vmem:[#allocation3 + $0x38] sm:$0xff] %vm4026_vm3, %v36687_v22  ;;  %v11364_v23 = vld [vmem:[%s36318_s7 + $0x10] sm:$0xff] }
 0x20b   : > { %26160 = vmatprep.mubr.msk.f32.mxu0 %vm419_vm1, %v31336_v24  ;;  %4037 = vst.msk [vmem:[#allocation3 + $0x48] sm:$0xff] %vm4026_vm3, %v36687_v22  ;;  %4038 = vst.msk [vmem:[#allocation3 + $0x50] sm:$0xff] %vm4026_vm3, %v36687_v22  ;;  %v11365_v24 = vld [vmem:[%s36318_s7 + $0x18] sm:$0xff] }
 0x20c   : > { %4040 = vst.msk [vmem:[#allocation3 + $0x60] sm:$0xff] %vm4026_vm3, %v36687_v22  ;;  %4041 = vst.msk [vmem:[#allocation3 + $0x68] sm:$0xff] %vm4026_vm3, %v36687_v22 }
 0x20d   : > { %4043 = vst.msk [vmem:[#allocation3 + $0x78] sm:$0xff] %vm4026_vm3, %v36687_v22  ;;  %4044 = vst.msk [vmem:[#allocation3 + $0x80] sm:$0xff] %vm4026_vm3, %v36687_v22 }
 0x20e   : > { %26161 = vmatmul.mubr.msk.f32.gmra.mrb[16].mxu0 %vm419_vm1, %v31342_v25  ;;  %4046 = vst.msk [vmem:[#allocation3 + $0x90] sm:$0xff] %vm4026_vm3, %v36687_v22  ;;  %4047 = vst.msk [vmem:[#allocation3 + $0x98] sm:$0xff] %vm4026_vm3, %v36687_v22  ;;  %v28902_v25 = vpack.c.bf16 %v11365_v24, %v11364_v23 }
 0x20f   : > { %26163 = vmatprep.mubr.msk.f32.mxu0 %vm419_vm1, %v31344_v26  ;;  %4049 = vst.msk [vmem:[#allocation3 + $0xa8] sm:$0xff] %vm4026_vm3, %v36687_v22  ;;  %4050 = vst.msk [vmem:[#allocation3 + $0xb0] sm:$0xff] %vm4026_vm3, %v36687_v22  ;;  %v4122_v26 = vld [vmem:[#allocation3] sm:$0xff] }
 0x210   : > { %4052 = vst.msk [vmem:[#allocation3 + $0xc0] sm:$0xff] %vm4026_vm3, %v36687_v22  ;;  %4053 = vst.msk [vmem:[#allocation3 + $0xc8] sm:$0xff] %vm4026_vm3, %v36687_v22  ;;  %28903 = vmatprep.subr.bf16.mxu1 %v28902_v25  ;;  %27250 = vmatprep.mubr.msk.f32.mxu1 %vm4026_vm3, %v4122_v26 }
 0x211   : > { %4055 = vst.msk [vmem:[#allocation3 + $0xd8] sm:$0xff] %vm4026_vm3, %v36687_v22  ;;  %4056 = vst.msk [vmem:[#allocation3 + $0xe0] sm:$0xff] %vm4026_vm3, %v36687_v22  ;;  %28905 = vmatpush3.bf16.msra.mxu1 %v28902_v25 }
 0x212   : > { %26164 = vmatmul.mubr.msk.f32.gmra.mrb[18].mxu0 %vm419_vm1, %v31350_v27  ;;  %4058 = vst.msk [vmem:[#allocation3 + $0xf0] sm:$0xff] %vm4026_vm3, %v36687_v22  ;;  %4059 = vst.msk [vmem:[#allocation3 + $0xf8] sm:$0xff] %vm4026_vm3, %v36687_v22  ;;  %v4123_v27 = vld [vmem:[#allocation3 + $0x8] sm:$0xff] }
 0x213   : > { %26166 = vmatprep.mubr.msk.f32.mxu0 %vm419_vm1, %v36659_v43  ;;  %4061 = vst.msk [vmem:[#allocation3 + $0x108] sm:$0xff] %vm4026_vm3, %v36687_v22  ;;  %4062 = vst.msk [vmem:[#allocation3 + $0x110] sm:$0xff] %vm4026_vm3, %v36687_v22 }
 0x214   : > { %4064 = vst.msk [vmem:[#allocation3 + $0x120] sm:$0xff] %vm4026_vm3, %v36687_v22  ;;  %4065 = vst.msk [vmem:[#allocation3 + $0x128] sm:$0xff] %vm4026_vm3, %v36687_v22  ;;  %27251 = vmatmul.mubr.msk.f32.vlgmr.msra.gmra.mrb[0].mxu1 %vm4026_vm3, %v4123_v27 }
 0x215   : > { %4067 = vst.msk [vmem:[#allocation3 + $0x138] sm:$0xff] %vm4026_vm3, %v36687_v22  ;;  %4068 = vst.msk [vmem:[#allocation3 + $0x140] sm:$0xff] %vm4026_vm3, %v36687_v22 }
 0x216   : > { %26167 = vmatmul.mubr.msk.f32.gmra.mrb[20].mxu0 %vm419_vm1, %v36660_v44  ;;  %4070 = vst.msk [vmem:[#allocation3 + $0x150] sm:$0xff] %vm4026_vm3, %v36687_v22  ;;  %4071 = vst.msk [vmem:[#allocation3 + $0x158] sm:$0xff] %vm4026_vm3, %v36687_v22 }
 0x217   : > { %26169 = vmatprep.mubr.msk.f32.mxu0 %vm419_vm1, %v36661_v45  ;;  %4073 = vst.msk [vmem:[#allocation3 + $0x168] sm:$0xff] %vm4026_vm3, %v36687_v22  ;;  %4074 = vst.msk [vmem:[#allocation3 + $0x170] sm:$0xff] %vm4026_vm3, %v36687_v22 }
 0x218   : > { %4076 = vst.msk [vmem:[#allocation3 + $0x180] sm:$0xff] %vm4026_vm3, %v36687_v22  ;;  %4077 = vst.msk [vmem:[#allocation3 + $0x188] sm:$0xff] %vm4026_vm3, %v36687_v22 }
 0x219   : > { %4079 = vst.msk [vmem:[#allocation3 + $0x198] sm:$0xff] %vm4026_vm3, %v36687_v22  ;;  %4080 = vst.msk [vmem:[#allocation3 + $0x1a0] sm:$0xff] %vm4026_vm3, %v36687_v22 }
 0x21a   : > { %26170 = vmatmul.mubr.msk.f32.gmra.mrb[22].mxu0 %vm419_vm1, %v36662_v46  ;;  %7632 = vst.msk [vmem:[#allocation4] sm:$0xff] %vm4026_vm3, %v36687_v22  ;;  %7633 = vst.msk [vmem:[#allocation4 + $0x8] sm:$0xff] %vm4026_vm3, %v36687_v22 }
 0x21b   : > { %26172 = vmatprep.mubr.msk.f32.mxu0 %vm419_vm1, %v36663_v47  ;;  %7635 = vst.msk [vmem:[#allocation4 + $0x18] sm:$0xff] %vm4026_vm3, %v36687_v22  ;;  %7636 = vst.msk [vmem:[#allocation4 + $0x20] sm:$0xff] %vm4026_vm3, %v36687_v22 }
 0x21c   : > { %7638 = vst.msk [vmem:[#allocation4 + $0x30] sm:$0xff] %vm4026_vm3, %v36687_v22  ;;  %7639 = vst.msk [vmem:[#allocation4 + $0x38] sm:$0xff] %vm4026_vm3, %v36687_v22 }
 0x21d   : > { %7641 = vst.msk [vmem:[#allocation4 + $0x48] sm:$0xff] %vm4026_vm3, %v36687_v22  ;;  %7642 = vst.msk [vmem:[#allocation4 + $0x50] sm:$0xff] %vm4026_vm3, %v36687_v22 }
 0x21e   : > { %26173 = vmatmul.mubr.msk.f32.gmra.mrb[24].mxu0 %vm419_vm1, %v36664_v48  ;;  %7644 = vst.msk [vmem:[#allocation4 + $0x60] sm:$0xff] %vm4026_vm3, %v36687_v22  ;;  %7645 = vst.msk [vmem:[#allocation4 + $0x68] sm:$0xff] %vm4026_vm3, %v36687_v22 }
 0x21f   : > { %26175 = vmatprep.mubr.msk.f32.mxu0 %vm419_vm1, %v36665_v49  ;;  %7647 = vst.msk [vmem:[#allocation4 + $0x78] sm:$0xff] %vm4026_vm3, %v36687_v22  ;;  %7648 = vst.msk [vmem:[#allocation4 + $0x80] sm:$0xff] %vm4026_vm3, %v36687_v22 }
 0x220   : > { %7650 = vst.msk [vmem:[#allocation4 + $0x90] sm:$0xff] %vm4026_vm3, %v36687_v22  ;;  %7651 = vst.msk [vmem:[#allocation4 + $0x98] sm:$0xff] %vm4026_vm3, %v36687_v22 }
 0x221   : > { %7653 = vst.msk [vmem:[#allocation4 + $0xa8] sm:$0xff] %vm4026_vm3, %v36687_v22  ;;  %7654 = vst.msk [vmem:[#allocation4 + $0xb0] sm:$0xff] %vm4026_vm3, %v36687_v22 }
 0x222   : > { %26176 = vmatmul.mubr.msk.f32.gmra.mrb[26].mxu0 %vm419_vm1, %v36666_v50  ;;  %7656 = vst.msk [vmem:[#allocation4 + $0xc0] sm:$0xff] %vm4026_vm3, %v36687_v22  ;;  %7657 = vst.msk [vmem:[#allocation4 + $0xc8] sm:$0xff] %vm4026_vm3, %v36687_v22 }
 0x223   : > { %26178 = vmatprep.mubr.msk.f32.mxu0 %vm419_vm1, %v36667_v51  ;;  %7659 = vst.msk [vmem:[#allocation4 + $0xd8] sm:$0xff] %vm4026_vm3, %v36687_v22  ;;  %7660 = vst.msk [vmem:[#allocation4 + $0xe0] sm:$0xff] %vm4026_vm3, %v36687_v22 }
 0x224   : > { %7662 = vst.msk [vmem:[#allocation4 + $0xf0] sm:$0xff] %vm4026_vm3, %v36687_v22  ;;  %7663 = vst.msk [vmem:[#allocation4 + $0xf8] sm:$0xff] %vm4026_vm3, %v36687_v22 }
 0x225   : > { %7665 = vst.msk [vmem:[#allocation4 + $0x108] sm:$0xff] %vm4026_vm3, %v36687_v22  ;;  %7666 = vst.msk [vmem:[#allocation4 + $0x110] sm:$0xff] %vm4026_vm3, %v36687_v22 }
 0x226   : > { %26179 = vmatmul.mubr.msk.f32.gmra.mrb[28].mxu0 %vm419_vm1, %v36668_v53  ;;  %7668 = vst.msk [vmem:[#allocation4 + $0x120] sm:$0xff] %vm4026_vm3, %v36687_v22  ;;  %7669 = vst.msk [vmem:[#allocation4 + $0x128] sm:$0xff] %vm4026_vm3, %v36687_v22 }
 0x227   : > { %26181 = vmatprep.mubr.msk.f32.mxu0 %vm419_vm1, %v3276_v52  ;;  %7671 = vst.msk [vmem:[#allocation4 + $0x138] sm:$0xff] %vm4026_vm3, %v36687_v22  ;;  %7672 = vst.msk [vmem:[#allocation4 + $0x140] sm:$0xff] %vm4026_vm3, %v36687_v22 }
 0x228   : > { %7674 = vst.msk [vmem:[#allocation4 + $0x150] sm:$0xff] %vm4026_vm3, %v36687_v22  ;;  %7675 = vst.msk [vmem:[#allocation4 + $0x158] sm:$0xff] %vm4026_vm3, %v36687_v22 }
 0x229   : > { %7677 = vst.msk [vmem:[#allocation4 + $0x168] sm:$0xff] %vm4026_vm3, %v36687_v22  ;;  %7678 = vst.msk [vmem:[#allocation4 + $0x170] sm:$0xff] %vm4026_vm3, %v36687_v22 }
 0x22a   : > { %26182 = vmatmul.mubr.msk.f32.gmra.mrb[30].mxu0 %vm419_vm1, %v3277_v54  ;;  %7680 = vst.msk [vmem:[#allocation4 + $0x180] sm:$0xff] %vm4026_vm3, %v36687_v22  ;;  %7681 = vst.msk [vmem:[#allocation4 + $0x188] sm:$0xff] %vm4026_vm3, %v36687_v22 }
 0x22b   : > { %26186 = vmatprep.mubr.msk.f32.mxu0 %vm419_vm1, %v36669_v57  ;;  %7683 = vst.msk [vmem:[#allocation4 + $0x198] sm:$0xff] %vm4026_vm3, %v36687_v22  ;;  %7684 = vst.msk [vmem:[#allocation4 + $0x1a0] sm:$0xff] %vm4026_vm3, %v36687_v22 }
 0x22c   : > { %11236 = vst.msk [vmem:[#allocation5] sm:$0xff] %vm4026_vm3, %v36687_v22  ;;  %11237 = vst.msk [vmem:[#allocation5 + $0x8] sm:$0xff] %vm4026_vm3, %v36687_v22 }
 0x22d   : > { %11239 = vst.msk [vmem:[#allocation5 + $0x18] sm:$0xff] %vm4026_vm3, %v36687_v22  ;;  %11240 = vst.msk [vmem:[#allocation5 + $0x20] sm:$0xff] %vm4026_vm3, %v36687_v22 }
 0x22e   : > { %26187 = vmatmul.mubr.msk.f32.vlgmr.msra.gmra.mrb[0].mxu0 %vm419_vm1, %v36670_v59  ;;  %11242 = vst.msk [vmem:[#allocation5 + $0x30] sm:$0xff] %vm4026_vm3, %v36687_v22  ;;  %11243 = vst.msk [vmem:[#allocation5 + $0x38] sm:$0xff] %vm4026_vm3, %v36687_v22 }
 0x22f   : > { %26189 = vmatprep.mubr.msk.f32.mxu0 %vm419_vm1, %v36671_v60  ;;  %28757 = vmatpush3.bf16.msra.mxu0 %v28754_v36  ;;  %11245 = vst.msk [vmem:[#allocation5 + $0x48] sm:$0xff] %vm4026_vm3, %v36687_v22  ;;  %11246 = vst.msk [vmem:[#allocation5 + $0x50] sm:$0xff] %vm4026_vm3, %v36687_v22  ;;  %v32333_v36 = vpack.c.bf16 %v22972_v34, %v22971_v33 }
 0x230   : > { %28759 = vmatprep.subr.bf16.mxu0 %v28758_v58  ;;  %11248 = vst.msk [vmem:[#allocation5 + $0x60] sm:$0xff] %vm4026_vm3, %v36687_v22  ;;  %11249 = vst.msk [vmem:[#allocation5 + $0x68] sm:$0xff] %vm4026_vm3, %v36687_v22 }
 0x231   : > { %11251 = vst.msk [vmem:[#allocation5 + $0x78] sm:$0xff] %vm4026_vm3, %v36687_v22  ;;  %11252 = vst.msk [vmem:[#allocation5 + $0x80] sm:$0xff] %vm4026_vm3, %v36687_v22 }
 0x232   : > { %26190 = vmatmul.mubr.msk.f32.gmra.mrb[2].mxu0 %vm419_vm1, %v36672_v61  ;;  %11254 = vst.msk [vmem:[#allocation5 + $0x90] sm:$0xff] %vm4026_vm3, %v36687_v22  ;;  %11255 = vst.msk [vmem:[#allocation5 + $0x98] sm:$0xff] %vm4026_vm3, %v36687_v22 }
 0x233   : > { %26192 = vmatprep.mubr.msk.f32.mxu0 %vm419_vm1, %v36673_v62  ;;  %28761 = vmatpush3.bf16.msra.mxu0 %v28758_v58  ;;  %11257 = vst.msk [vmem:[#allocation5 + $0xa8] sm:$0xff] %vm4026_vm3, %v36687_v22  ;;  %11258 = vst.msk [vmem:[#allocation5 + $0xb0] sm:$0xff] %vm4026_vm3, %v36687_v22 }
 0x234   : > { %11260 = vst.msk [vmem:[#allocation5 + $0xc0] sm:$0xff] %vm4026_vm3, %v36687_v22  ;;  %11261 = vst.msk [vmem:[#allocation5 + $0xc8] sm:$0xff] %vm4026_vm3, %v36687_v22 }
 0x235   : > { %11263 = vst.msk [vmem:[#allocation5 + $0xd8] sm:$0xff] %vm4026_vm3, %v36687_v22  ;;  %11264 = vst.msk [vmem:[#allocation5 + $0xe0] sm:$0xff] %vm4026_vm3, %v36687_v22 }
 0x236   : > { %26193 = vmatmul.mubr.msk.f32.gmra.mrb[4].mxu0 %vm419_vm1, %v36674_v63  ;;  %11266 = vst.msk [vmem:[#allocation5 + $0xf0] sm:$0xff] %vm4026_vm3, %v36687_v22  ;;  %11267 = vst.msk [vmem:[#allocation5 + $0xf8] sm:$0xff] %vm4026_vm3, %v36687_v22 }
 0x237   : > { %26195 = vmatprep.mubr.msk.f32.mxu0 %vm419_vm1, %v36675_v0  ;;  %11269 = vst.msk [vmem:[#allocation5 + $0x108] sm:$0xff] %vm4026_vm3, %v36687_v22  ;;  %11270 = vst.msk [vmem:[#allocation5 + $0x110] sm:$0xff] %vm4026_vm3, %v36687_v22 }
 0x238   : > { %11272 = vst.msk [vmem:[#allocation5 + $0x120] sm:$0xff] %vm4026_vm3, %v36687_v22  ;;  %11273 = vst.msk [vmem:[#allocation5 + $0x128] sm:$0xff] %vm4026_vm3, %v36687_v22 }
 0x239   : > { %11275 = vst.msk [vmem:[#allocation5 + $0x138] sm:$0xff] %vm4026_vm3, %v36687_v22  ;;  %11276 = vst.msk [vmem:[#allocation5 + $0x140] sm:$0xff] %vm4026_vm3, %v36687_v22 }
 0x23a   : > { %26196 = vmatmul.mubr.msk.f32.gmra.mrb[6].mxu0 %vm419_vm1, %v36676_v2  ;;  %11278 = vst.msk [vmem:[#allocation5 + $0x150] sm:$0xff] %vm4026_vm3, %v36687_v22  ;;  %11279 = vst.msk [vmem:[#allocation5 + $0x158] sm:$0xff] %vm4026_vm3, %v36687_v22 }
 0x23b   : > { %26198 = vmatprep.mubr.msk.f32.mxu0 %vm419_vm1, %v36677_v8  ;;  %11281 = vst.msk [vmem:[#allocation5 + $0x168] sm:$0xff] %vm4026_vm3, %v36687_v22  ;;  %11282 = vst.msk [vmem:[#allocation5 + $0x170] sm:$0xff] %vm4026_vm3, %v36687_v22 }
 0x23c   : > { %11284 = vst.msk [vmem:[#allocation5 + $0x180] sm:$0xff] %vm4026_vm3, %v36687_v22  ;;  %11285 = vst.msk [vmem:[#allocation5 + $0x188] sm:$0xff] %vm4026_vm3, %v36687_v22 }
 0x23d   : > { %11287 = vst.msk [vmem:[#allocation5 + $0x198] sm:$0xff] %vm4026_vm3, %v36687_v22  ;;  %11288 = vst.msk [vmem:[#allocation5 + $0x1a0] sm:$0xff] %vm4026_vm3, %v36687_v22 }
 0x23e   : > { %26199 = vmatmul.mubr.msk.f32.gmra.mrb[8].mxu0 %vm419_vm1, %v36678_v10  ;;  %4033 = vst.msk [vmem:[#allocation3 + $0x28] sm:$0x3] %vm4029_vm4, %v36687_v22  ;;  %4030 = vst.msk [vmem:[#allocation3 + $0x10] sm:$0x3] %vm4029_vm4, %v36687_v22 }
 0x23f   : > { %26201 = vmatprep.mubr.msk.f32.mxu0 %vm419_vm1, %v36679_v11  ;;  %4036 = vst.msk [vmem:[#allocation3 + $0x40] sm:$0x3] %vm4029_vm4, %v36687_v22  ;;  %4039 = vst.msk [vmem:[#allocation3 + $0x58] sm:$0x3] %vm4029_vm4, %v36687_v22 }
 0x240   : > { %4042 = vst.msk [vmem:[#allocation3 + $0x70] sm:$0x3] %vm4029_vm4, %v36687_v22  ;;  %4045 = vst.msk [vmem:[#allocation3 + $0x88] sm:$0x3] %vm4029_vm4, %v36687_v22 }
 0x241   : > { %4048 = vst.msk [vmem:[#allocation3 + $0xa0] sm:$0x3] %vm4029_vm4, %v36687_v22  ;;  %4051 = vst.msk [vmem:[#allocation3 + $0xb8] sm:$0x3] %vm4029_vm4, %v36687_v22 }
 0x242   : > { %26202 = vmatmul.mubr.msk.f32.gmra.mrb[10].mxu0 %vm419_vm1, %v36680_v9  ;;  %4054 = vst.msk [vmem:[#allocation3 + $0xd0] sm:$0x3] %vm4029_vm4, %v36687_v22  ;;  %4057 = vst.msk [vmem:[#allocation3 + $0xe8] sm:$0x3] %vm4029_vm4, %v36687_v22 }
 0x243   : > { %26204 = vmatprep.mubr.msk.f32.mxu0 %vm419_vm1, %v36681_v12  ;;  %4060 = vst.msk [vmem:[#allocation3 + $0x100] sm:$0x3] %vm4029_vm4, %v36687_v22  ;;  %4063 = vst.msk [vmem:[#allocation3 + $0x118] sm:$0x3] %vm4029_vm4, %v36687_v22 }
 0x244   : > { %4066 = vst.msk [vmem:[#allocation3 + $0x130] sm:$0x3] %vm4029_vm4, %v36687_v22  ;;  %4069 = vst.msk [vmem:[#allocation3 + $0x148] sm:$0x3] %vm4029_vm4, %v36687_v22 }
 0x245   : > { %4072 = vst.msk [vmem:[#allocation3 + $0x160] sm:$0x3] %vm4029_vm4, %v36687_v22  ;;  %4075 = vst.msk [vmem:[#allocation3 + $0x178] sm:$0x3] %vm4029_vm4, %v36687_v22 }
 0x246   : > { %26205 = vmatmul.mubr.msk.f32.gmra.mrb[12].mxu0 %vm419_vm1, %v36649_v42  ;;  %4078 = vst.msk [vmem:[#allocation3 + $0x190] sm:$0x3] %vm4029_vm4, %v36687_v22  ;;  %4081 = vst.msk [vmem:[#allocation3 + $0x1a8] sm:$0x3] %vm4029_vm4, %v36687_v22  ;;  %v22330_v42 = vld [vmem:[%s36314_s3 + $0x48] sm:$0xff] }
 0x247   : > { %26207 = vmatprep.mubr.msk.f32.mxu0 %vm419_vm1, %v36682_v13  ;;  %7634 = vst.msk [vmem:[#allocation4 + $0x10] sm:$0x3] %vm4029_vm4, %v36687_v22  ;;  %7637 = vst.msk [vmem:[#allocation4 + $0x28] sm:$0x3] %vm4029_vm4, %v36687_v22 }
 0x248   : > { %7640 = vst.msk [vmem:[#allocation4 + $0x40] sm:$0x3] %vm4029_vm4, %v36687_v22  ;;  %7643 = vst.msk [vmem:[#allocation4 + $0x58] sm:$0x3] %vm4029_vm4, %v36687_v22 }
 0x249   : > { %7646 = vst.msk [vmem:[#allocation4 + $0x70] sm:$0x3] %vm4029_vm4, %v36687_v22  ;;  %7649 = vst.msk [vmem:[#allocation4 + $0x88] sm:$0x3] %vm4029_vm4, %v36687_v22 }
 0x24a   : > { %26208 = vmatmul.mubr.msk.f32.gmra.mrb[14].mxu0 %vm419_vm1, %v36651_v31  ;;  %7652 = vst.msk [vmem:[#allocation4 + $0xa0] sm:$0x3] %vm4029_vm4, %v36687_v22  ;;  %7655 = vst.msk [vmem:[#allocation4 + $0xb8] sm:$0x3] %vm4029_vm4, %v36687_v22  ;;  %v22293_v31 = vld [vmem:[%s36314_s3 + $0x20] sm:$0xff] }
 0x24b   : > { %26210 = vmatprep.mubr.msk.f32.mxu0 %vm419_vm1, %v36683_v14  ;;  %7658 = vst.msk [vmem:[#allocation4 + $0xd0] sm:$0x3] %vm4029_vm4, %v36687_v22  ;;  %7661 = vst.msk [vmem:[#allocation4 + $0xe8] sm:$0x3] %vm4029_vm4, %v36687_v22 }
 0x24c   : > { %7664 = vst.msk [vmem:[#allocation4 + $0x100] sm:$0x3] %vm4029_vm4, %v36687_v22  ;;  %7667 = vst.msk [vmem:[#allocation4 + $0x118] sm:$0x3] %vm4029_vm4, %v36687_v22 }
 0x24d   : > { %7670 = vst.msk [vmem:[#allocation4 + $0x130] sm:$0x3] %vm4029_vm4, %v36687_v22  ;;  %7673 = vst.msk [vmem:[#allocation4 + $0x148] sm:$0x3] %vm4029_vm4, %v36687_v22 }
 0x24e   : > { %26211 = vmatmul.mubr.msk.f32.gmra.mrb[16].mxu0 %vm419_vm1, %v36653_v4  ;;  %7676 = vst.msk [vmem:[#allocation4 + $0x160] sm:$0x3] %vm4029_vm4, %v36687_v22  ;;  %7679 = vst.msk [vmem:[#allocation4 + $0x178] sm:$0x3] %vm4029_vm4, %v36687_v22  ;;  %v28910_v4 = vpack.c.bf16 %v22938_v7, %v22937_v29 }
 0x24f   : > { %26213 = vmatprep.mubr.msk.f32.mxu0 %vm419_vm1, %v36654_v37  ;;  %7682 = vst.msk [vmem:[#allocation4 + $0x190] sm:$0x3] %vm4029_vm4, %v36687_v22  ;;  %7685 = vst.msk [vmem:[#allocation4 + $0x1a8] sm:$0x3] %vm4029_vm4, %v36687_v22 }
 0x250   : > { %11238 = vst.msk [vmem:[#allocation5 + $0x10] sm:$0x3] %vm4029_vm4, %v36687_v22  ;;  %11241 = vst.msk [vmem:[#allocation5 + $0x28] sm:$0x3] %vm4029_vm4, %v36687_v22 }
 0x251   : > { %11244 = vst.msk [vmem:[#allocation5 + $0x40] sm:$0x3] %vm4029_vm4, %v36687_v22  ;;  %11247 = vst.msk [vmem:[#allocation5 + $0x58] sm:$0x3] %vm4029_vm4, %v36687_v22 }
 0x252   : > { %26214 = vmatmul.mubr.msk.f32.gmra.mrb[18].mxu0 %vm419_vm1, %v36684_v15  ;;  %11250 = vst.msk [vmem:[#allocation5 + $0x70] sm:$0x3] %vm4029_vm4, %v36687_v22  ;;  %11253 = vst.msk [vmem:[#allocation5 + $0x88] sm:$0x3] %vm4029_vm4, %v36687_v22 }
 0x253   : > { %26216 = vmatprep.mubr.msk.f32.mxu0 %vm419_vm1, %v36656_v38  ;;  %11256 = vst.msk [vmem:[#allocation5 + $0xa0] sm:$0x3] %vm4029_vm4, %v36687_v22  ;;  %11259 = vst.msk [vmem:[#allocation5 + $0xb8] sm:$0x3] %vm4029_vm4, %v36687_v22  ;;  %v22295_v38 = vld [vmem:[%s36314_s3 + $0x30] sm:$0xff] }
 0x254   : > { %11262 = vst.msk [vmem:[#allocation5 + $0xd0] sm:$0x3] %vm4029_vm4, %v36687_v22  ;;  %11265 = vst.msk [vmem:[#allocation5 + $0xe8] sm:$0x3] %vm4029_vm4, %v36687_v22 }
 0x255   : > { %11268 = vst.msk [vmem:[#allocation5 + $0x100] sm:$0x3] %vm4029_vm4, %v36687_v22  ;;  %11271 = vst.msk [vmem:[#allocation5 + $0x118] sm:$0x3] %vm4029_vm4, %v36687_v22 }
 0x256   : > { %26217 = vmatmul.mubr.msk.f32.gmra.mrb[20].mxu0 %vm419_vm1, %v31493_v1  ;;  %v3666_v1 = vld [vmem:[#allocation2 + $0x19a] sm:$0xff]  ;;  %11274 = vst.msk [vmem:[#allocation5 + $0x130] sm:$0x3] %vm4029_vm4, %v36687_v22  ;;  %11277 = vst.msk [vmem:[#allocation5 + $0x148] sm:$0x3] %vm4029_vm4, %v36687_v22 }
 0x257   : > { %26219 = vmatprep.mubr.msk.f32.mxu0 %vm419_vm1, %v36685_v16  ;;  %11280 = vst.msk [vmem:[#allocation5 + $0x160] sm:$0x3] %vm4029_vm4, %v36687_v22  ;;  %11283 = vst.msk [vmem:[#allocation5 + $0x178] sm:$0x3] %vm4029_vm4, %v36687_v22 }
 0x258   : > { %11286 = vst.msk [vmem:[#allocation5 + $0x190] sm:$0x3] %vm4029_vm4, %v36687_v22  ;;  %11289 = vst.msk [vmem:[#allocation5 + $0x1a8] sm:$0x3] %vm4029_vm4, %v36687_v22 }
 0x25a   : > { %26220 = vmatmul.mubr.msk.f32.gmra.mrb[22].mxu0 %vm419_vm1, %v31501_v3  ;;  %v22296_v3 = vld [vmem:[%s36314_s3 + $0x38] sm:$0xff] }
 0x25b   : > { %26222 = vmatprep.mubr.msk.f32.mxu0 %vm419_vm1, %v36658_v32  ;;  %v22294_v32 = vld [vmem:[%s36314_s3 + $0x28] sm:$0xff] }
 0x25c   : > { %v28762_v37 = vpack.c.bf16 %v22294_v32, %v22293_v31 }
 0x25e   : > { %26223 = vmatmul.mubr.msk.f32.gmra.mrb[24].mxu0 %vm419_vm1, %v31509_v40  ;;  %28763 = vmatprep.subr.bf16.mxu0 %v28762_v37  ;;  %v28766_v40 = vpack.c.bf16 %v22296_v3, %v22295_v38 }
 0x25f   : > { %26225 = vmatprep.mubr.msk.f32.mxu0 %vm419_vm1, %v36686_v17 }
 0x262   : > { %26226 = vmatmul.mubr.msk.f32.gmra.mrb[26].mxu0 %vm419_vm1, %v31517_v6  ;;  %v22936_v6 = vld [vmem:[%s36318_s7 + $0x28] sm:$0xff] }
 0x263   : > { %26228 = vmatprep.mubr.msk.f32.mxu0 %vm419_vm1, %v31731_v5  ;;  %v28906_v28 = vpack.c.bf16 %v22936_v6, %v22935_v41  ;;  %v22329_v5 = vld [vmem:[%s36314_s3 + $0x40] sm:$0xff] }
 0x265   : > { %28907 = vmatprep.subr.bf16.mxu1 %v28906_v28 }
 0x266   : > { %26229 = vmatmul.mubr.msk.f32.gmra.mrb[28].mxu0 %vm419_vm1, %v31737_v39  ;;  %28909 = vmatpush3.bf16.msra.mxu1 %v28906_v28  ;;  %v32319_v39 = vpack.c.bf16 %v22330_v42, %v22329_v5 }
 0x267   : > { %26231 = vmatprep.mubr.msk.f32.mxu0 %vm419_vm1, %v3666_v1  ;;  %28911 = vmatprep.subr.bf16.mxu1 %v28910_v4 }
 0x26a   : > { %26232 = vmatmul.mubr.msk.f32.gmra.mrb[30].mxu0 %vm419_vm1, %v3667_v18  ;;  %28913 = vmatpush3.bf16.msra.mxu1 %v28910_v4 }
 0x26b   : > { %26242 = vmatprep.mubr.msk.f32.mxu0 %vm4026_vm3, %v4122_v26  ;;  %28915 = vmatprep.subr.bf16.mxu1 %v32333_v36 }
 0x26e   : > { %26243 = vmatmul.mubr.msk.f32.vlgmr.msra.gmra.mrb[32].mxu0 %vm4026_vm3, %v4123_v27 }
 0x26f   : > { %28765 = vmatpush3.bf16.msra.mxu0 %v28762_v37 }
 0x270   : > { %28767 = vmatprep.subr.bf16.mxu0 %v28766_v40 }
 0x273   : > { %28769 = vmatpush3.bf16.msra.mxu0 %v28766_v40 }
 0x274   : > { %28771 = vmatprep.subr.bf16.mxu0 %v32319_v39 }
 0x301   : > { %v26188_v35 = vpop.f32.mrb[0].mxu0 }
 0x302   : > { %v29114_v43 = vadd.f32 %v26188_v35, %v32325_v30  ;;  %v3835_v44 = vpop.f32.mrb[1].mxu0 }
 0x303   : > { %v29115_v45 = vadd.f32 %v32325_v30, %v3835_v44 }
 0x304   : > { %4084 = vst.msk [vmem:[#allocation3 + $0x21] sm:$0xff] %vm4026_vm3, %v29114_v43 }
 0x305   : > { %4083 = vst.msk [vmem:[#allocation3 + $0x19] sm:$0xff] %vm4026_vm3, %v29115_v45  ;;  %v26191_v46 = vpop.f32.mrb[2].mxu0 }
 0x306   : > { %v29116_v47 = vadd.f32 %v26191_v46, %v32325_v30  ;;  %v3845_v48 = vpop.f32.mrb[3].mxu0 }
 0x307   : > { %v29117_v49 = vadd.f32 %v32325_v30, %v3845_v48 }
 0x308   : > { %4086 = vst.msk [vmem:[#allocation3 + $0x39] sm:$0xff] %vm4026_vm3, %v29116_v47 }
 0x309   : > { %4085 = vst.msk [vmem:[#allocation3 + $0x31] sm:$0xff] %vm4026_vm3, %v29117_v49  ;;  %v26194_v50 = vpop.f32.mrb[4].mxu0 }
 0x30a   : > { %v29118_v51 = vadd.f32 %v26194_v50, %v32325_v30  ;;  %v3855_v52 = vpop.f32.mrb[5].mxu0 }
 0x30b   : > { %v29119_v53 = vadd.f32 %v32325_v30, %v3855_v52 }
 0x30c   : > { %4088 = vst.msk [vmem:[#allocation3 + $0x51] sm:$0xff] %vm4026_vm3, %v29118_v51  ;;  %v32347_v54 = vld [vmem:[#allocation3 + $0x18] sm:$0xff]  ;;  %v32349_v55 = vld [vmem:[#allocation3 + $0x20] sm:$0xff] }
 0x30d   : > { %4087 = vst.msk [vmem:[#allocation3 + $0x49] sm:$0xff] %vm4026_vm3, %v29119_v53  ;;  %v26197_v56 = vpop.f32.mrb[6].mxu0  ;;  %26245 = vmatprep.mubr.msk.f32.mxu0 %vm4026_vm3, %v32347_v54  ;;  %27253 = vmatprep.mubr.msk.f32.mxu1 %vm4026_vm3, %v32347_v54 }
 0x30e   : > { %v29120_v57 = vadd.f32 %v26197_v56, %v32325_v30  ;;  %v3865_v58 = vpop.f32.mrb[7].mxu0  ;;  %26246 = vmatmul.mubr.msk.f32.gmra.mrb[34].mxu0 %vm4026_vm3, %v32349_v55  ;;  %27254 = vmatmul.mubr.msk.f32.gmra.mrb[2].mxu1 %vm4026_vm3, %v32349_v55 }
 0x30f   : > { %v29121_v59 = vadd.f32 %v32325_v30, %v3865_v58 }
 0x310   : > { %4090 = vst.msk [vmem:[#allocation3 + $0x69] sm:$0xff] %vm4026_vm3, %v29120_v57  ;;  %v32363_v60 = vld [vmem:[#allocation3 + $0x30] sm:$0xff]  ;;  %v32365_v61 = vld [vmem:[#allocation3 + $0x38] sm:$0xff] }
 0x311   : > { %4089 = vst.msk [vmem:[#allocation3 + $0x61] sm:$0xff] %vm4026_vm3, %v29121_v59  ;;  %v26200_v62 = vpop.f32.mrb[8].mxu0  ;;  %26248 = vmatprep.mubr.msk.f32.mxu0 %vm4026_vm3, %v32363_v60  ;;  %27256 = vmatprep.mubr.msk.f32.mxu1 %vm4026_vm3, %v32363_v60 }
 0x312   : > { %v29122_v63 = vadd.f32 %v26200_v62, %v32325_v30  ;;  %v3875_v0 = vpop.f32.mrb[9].mxu0  ;;  %26249 = vmatmul.mubr.msk.f32.gmra.mrb[36].mxu0 %vm4026_vm3, %v32365_v61  ;;  %27257 = vmatmul.mubr.msk.f32.gmra.mrb[4].mxu1 %vm4026_vm3, %v32365_v61 }
 0x313   : > { %v29123_v2 = vadd.f32 %v32325_v30, %v3875_v0 }
 0x314   : > { %4092 = vst.msk [vmem:[#allocation3 + $0x81] sm:$0xff] %vm4026_vm3, %v29122_v63  ;;  %v32379_v8 = vld [vmem:[#allocation3 + $0x48] sm:$0xff]  ;;  %v32381_v10 = vld [vmem:[#allocation3 + $0x50] sm:$0xff] }
 0x315   : > { %4091 = vst.msk [vmem:[#allocation3 + $0x79] sm:$0xff] %vm4026_vm3, %v29123_v2  ;;  %v26203_v11 = vpop.f32.mrb[10].mxu0  ;;  %26251 = vmatprep.mubr.msk.f32.mxu0 %vm4026_vm3, %v32379_v8  ;;  %27259 = vmatprep.mubr.msk.f32.mxu1 %vm4026_vm3, %v32379_v8 }
 0x316   : > { %v29124_v9 = vadd.f32 %v26203_v11, %v32325_v30  ;;  %v3885_v12 = vpop.f32.mrb[11].mxu0  ;;  %26252 = vmatmul.mubr.msk.f32.gmra.mrb[38].mxu0 %vm4026_vm3, %v32381_v10  ;;  %27260 = vmatmul.mubr.msk.f32.gmra.mrb[6].mxu1 %vm4026_vm3, %v32381_v10 }
 0x317   : > { %v29125_v13 = vadd.f32 %v32325_v30, %v3885_v12 }
 0x318   : > { %4094 = vst.msk [vmem:[#allocation3 + $0x99] sm:$0xff] %vm4026_vm3, %v29124_v9  ;;  %v32395_v14 = vld [vmem:[#allocation3 + $0x60] sm:$0xff]  ;;  %v32397_v15 = vld [vmem:[#allocation3 + $0x68] sm:$0xff] }
 0x319   : > { %4093 = vst.msk [vmem:[#allocation3 + $0x91] sm:$0xff] %vm4026_vm3, %v29125_v13  ;;  %v26206_v16 = vpop.f32.mrb[12].mxu0  ;;  %26254 = vmatprep.mubr.msk.f32.mxu0 %vm4026_vm3, %v32395_v14  ;;  %27262 = vmatprep.mubr.msk.f32.mxu1 %vm4026_vm3, %v32395_v14 }
 0x31a   : > { %v29126_v17 = vadd.f32 %v26206_v16, %v32325_v30  ;;  %v3895_v1 = vpop.f32.mrb[13].mxu0  ;;  %26255 = vmatmul.mubr.msk.f32.gmra.mrb[40].mxu0 %vm4026_vm3, %v32397_v15  ;;  %27263 = vmatmul.mubr.msk.f32.gmra.mrb[8].mxu1 %vm4026_vm3, %v32397_v15 }
 0x31b   : > { %v29127_v18 = vadd.f32 %v32325_v30, %v3895_v1 }
 0x31c   : > { %4096 = vst.msk [vmem:[#allocation3 + $0xb1] sm:$0xff] %vm4026_vm3, %v29126_v17  ;;  %v32411_v19 = vld [vmem:[#allocation3 + $0x78] sm:$0xff]  ;;  %v32413_v20 = vld [vmem:[#allocation3 + $0x80] sm:$0xff] }
 0x31d   : > { %4095 = vst.msk [vmem:[#allocation3 + $0xa9] sm:$0xff] %vm4026_vm3, %v29127_v18  ;;  %v26209_v21 = vpop.f32.mrb[14].mxu0  ;;  %26257 = vmatprep.mubr.msk.f32.mxu0 %vm4026_vm3, %v32411_v19  ;;  %27265 = vmatprep.mubr.msk.f32.mxu1 %vm4026_vm3, %v32411_v19 }
 0x31e   : > { %v29128_v22 = vadd.f32 %v26209_v21, %v32325_v30  ;;  %v3905_v23 = vpop.f32.mrb[15].mxu0  ;;  %26258 = vmatmul.mubr.msk.f32.gmra.mrb[42].mxu0 %vm4026_vm3, %v32413_v20  ;;  %27266 = vmatmul.mubr.msk.f32.gmra.mrb[10].mxu1 %vm4026_vm3, %v32413_v20 }
 0x31f   : > { %v29129_v24 = vadd.f32 %v32325_v30, %v3905_v23 }
 0x320   : > { %4098 = vst.msk [vmem:[#allocation3 + $0xc9] sm:$0xff] %vm4026_vm3, %v29128_v22  ;;  %v32427_v25 = vld [vmem:[#allocation3 + $0x90] sm:$0xff]  ;;  %v32429_v26 = vld [vmem:[#allocation3 + $0x98] sm:$0xff] }
 0x321   : > { %4097 = vst.msk [vmem:[#allocation3 + $0xc1] sm:$0xff] %vm4026_vm3, %v29129_v24  ;;  %v26212_v27 = vpop.f32.mrb[16].mxu0  ;;  %26260 = vmatprep.mubr.msk.f32.mxu0 %vm4026_vm3, %v32427_v25  ;;  %27268 = vmatprep.mubr.msk.f32.mxu1 %vm4026_vm3, %v32427_v25 }
 0x322   : > { %v29130_v31 = vadd.f32 %v26212_v27, %v32325_v30  ;;  %v3915_v32 = vpop.f32.mrb[17].mxu0  ;;  %26261 = vmatmul.mubr.msk.f32.gmra.mrb[44].mxu0 %vm4026_vm3, %v32429_v26  ;;  %27269 = vmatmul.mubr.msk.f32.gmra.mrb[12].mxu1 %vm4026_vm3, %v32429_v26  ;;  %v4511_v27 = vld [vmem:[#allocation3 + $0x1] sm:$0xff] }
 0x323   : > { %v29131_v37 = vadd.f32 %v32325_v30, %v3915_v32  ;;  %v22332_v32 = vld [vmem:[%s36314_s3 + $0x58] sm:$0xff] }
 0x324   : > { %4100 = vst.msk [vmem:[#allocation3 + $0xe1] sm:$0xff] %vm4026_vm3, %v29130_v31  ;;  %v32443_v38 = vld [vmem:[#allocation3 + $0xa8] sm:$0xff]  ;;  %v32445_v3 = vld [vmem:[#allocation3 + $0xb0] sm:$0xff]  ;;  %v22331_v31 = vld [vmem:[%s36314_s3 + $0x50] sm:$0xff] }
 0x325   : > { %4099 = vst.msk [vmem:[#allocation3 + $0xd9] sm:$0xff] %vm4026_vm3, %v29131_v37  ;;  %v26215_v40 = vpop.f32.mrb[18].mxu0  ;;  %26263 = vmatprep.mubr.msk.f32.mxu0 %vm4026_vm3, %v32443_v38  ;;  %27271 = vmatprep.mubr.msk.f32.mxu1 %vm4026_vm3, %v32443_v38  ;;  %v4512_v37 = vld [vmem:[#allocation3 + $0x9] sm:$0xff] }
 0x326   : > { %v29132_v41 = vadd.f32 %v26215_v40, %v32325_v30  ;;  %v3925_v6 = vpop.f32.mrb[19].mxu0  ;;  %26264 = vmatmul.mubr.msk.f32.gmra.mrb[46].mxu0 %vm4026_vm3, %v32445_v3  ;;  %27272 = vmatmul.mubr.msk.f32.gmra.mrb[14].mxu1 %vm4026_vm3, %v32445_v3  ;;  %v28774_v40 = vpack.c.bf16 %v22332_v32, %v22331_v31 }
 0x327   : > { %v29133_v28 = vadd.f32 %v32325_v30, %v3925_v6  ;;  %v22974_v6 = vld [vmem:[%s36318_s7 + $0x58] sm:$0xff] }
 0x328   : > { %4102 = vst.msk [vmem:[#allocation3 + $0xf9] sm:$0xff] %vm4026_vm3, %v29132_v41  ;;  %v32459_v29 = vld [vmem:[#allocation3 + $0xc0] sm:$0xff]  ;;  %v32461_v7 = vld [vmem:[#allocation3 + $0xc8] sm:$0xff] }
 0x329   : > { %4101 = vst.msk [vmem:[#allocation3 + $0xf1] sm:$0xff] %vm4026_vm3, %v29133_v28  ;;  %v26218_v4 = vpop.f32.mrb[20].mxu0  ;;  %26266 = vmatprep.mubr.msk.f32.mxu0 %vm4026_vm3, %v32459_v29  ;;  %27274 = vmatprep.mubr.msk.f32.mxu1 %vm4026_vm3, %v32459_v29  ;;  %v22973_v41 = vld [vmem:[%s36318_s7 + $0x50] sm:$0xff] }
 0x32a   : > { %v29134_v5 = vadd.f32 %v26218_v4, %v32325_v30  ;;  %v3935_v42 = vpop.f32.mrb[21].mxu0  ;;  %26267 = vmatmul.mubr.msk.f32.gmra.mrb[48].mxu0 %vm4026_vm3, %v32461_v7  ;;  %27275 = vmatmul.mubr.msk.f32.gmra.mrb[16].mxu1 %vm4026_vm3, %v32461_v7  ;;  %v32596_v28 = vld [vmem:[#allocation3 + $0x19] sm:$0xff]  ;;  %v22365_v4 = vld [vmem:[%s36314_s3 + $0x60] sm:$0xff] }
 0x32b   : > { %v29135_v33 = vadd.f32 %v32325_v30, %v3935_v42  ;;  %v28918_v42 = vpack.c.bf16 %v22974_v6, %v22973_v41 }
 0x32c   : > { %4104 = vst.msk [vmem:[#allocation3 + $0x111] sm:$0xff] %vm4026_vm3, %v29134_v5  ;;  %v32475_v34 = vld [vmem:[#allocation3 + $0xd8] sm:$0xff]  ;;  %v32477_v35 = vld [vmem:[#allocation3 + $0xe0] sm:$0xff] }
 0x32d   : > { %4103 = vst.msk [vmem:[#allocation3 + $0x109] sm:$0xff] %vm4026_vm3, %v29135_v33  ;;  %v26221_v43 = vpop.f32.mrb[22].mxu0  ;;  %26269 = vmatprep.mubr.msk.f32.mxu0 %vm4026_vm3, %v32475_v34  ;;  %27277 = vmatprep.mubr.msk.f32.mxu1 %vm4026_vm3, %v32475_v34  ;;  %v22366_v5 = vld [vmem:[%s36314_s3 + $0x68] sm:$0xff]  ;;  %v32609_v33 = vld [vmem:[#allocation3 + $0x21] sm:$0xff] }
 0x32e   : > { %v29136_v44 = vadd.f32 %v26221_v43, %v32325_v30  ;;  %v3945_v45 = vpop.f32.mrb[23].mxu0  ;;  %26270 = vmatmul.mubr.msk.f32.gmra.mrb[50].mxu0 %vm4026_vm3, %v32477_v35  ;;  %27278 = vmatmul.mubr.msk.f32.gmra.mrb[18].mxu1 %vm4026_vm3, %v32477_v35  ;;  %v32612_v43 = vpack.c.bf16 %v22366_v5, %v22365_v4 }
 0x32f   : > { %v29137_v46 = vadd.f32 %v32325_v30, %v3945_v45  ;;  %v32624_v45 = vld [vmem:[#allocation3 + $0x31] sm:$0xff] }
 0x330   : > { %4106 = vst.msk [vmem:[#allocation3 + $0x129] sm:$0xff] %vm4026_vm3, %v29136_v44  ;;  %v32491_v47 = vld [vmem:[#allocation3 + $0xf0] sm:$0xff]  ;;  %v32493_v48 = vld [vmem:[#allocation3 + $0xf8] sm:$0xff] }
 0x331   : > { %4105 = vst.msk [vmem:[#allocation3 + $0x121] sm:$0xff] %vm4026_vm3, %v29137_v46  ;;  %v26224_v49 = vpop.f32.mrb[24].mxu0  ;;  %26272 = vmatprep.mubr.msk.f32.mxu0 %vm4026_vm3, %v32491_v47  ;;  %27280 = vmatprep.mubr.msk.f32.mxu1 %vm4026_vm3, %v32491_v47  ;;  %v23007_v44 = vld [vmem:[%s36318_s7 + $0x60] sm:$0xff]  ;;  %v32632_v46 = vld [vmem:[#allocation3 + $0x39] sm:$0xff] }
 0x332   : > { %v29138_v50 = vadd.f32 %v26224_v49, %v32325_v30  ;;  %v3955_v51 = vpop.f32.mrb[25].mxu0  ;;  %26273 = vmatmul.mubr.msk.f32.gmra.mrb[52].mxu0 %vm4026_vm3, %v32493_v48  ;;  %27281 = vmatmul.mubr.msk.f32.gmra.mrb[20].mxu1 %vm4026_vm3, %v32493_v48  ;;  %v32639_v49 = vld [vmem:[#allocation3 + $0x49] sm:$0xff] }
 0x333   : > { %v29139_v52 = vadd.f32 %v32325_v30, %v3955_v51  ;;  %v32652_v51 = vld [vmem:[#allocation3 + $0x61] sm:$0xff]  ;;  %v32742_v31 = vld [vmem:[#allocation3 + $0x111] sm:$0xff] }
 0x334   : > { %4108 = vst.msk [vmem:[#allocation3 + $0x141] sm:$0xff] %vm4026_vm3, %v29138_v50  ;;  %v32507_v53 = vld [vmem:[#allocation3 + $0x108] sm:$0xff]  ;;  %v32509_v56 = vld [vmem:[#allocation3 + $0x110] sm:$0xff] }
 0x335   : > { %4107 = vst.msk [vmem:[#allocation3 + $0x139] sm:$0xff] %vm4026_vm3, %v29139_v52  ;;  %v26227_v57 = vpop.f32.mrb[26].mxu0  ;;  %26275 = vmatprep.mubr.msk.f32.mxu0 %vm4026_vm3, %v32507_v53  ;;  %27283 = vmatprep.mubr.msk.f32.mxu1 %vm4026_vm3, %v32507_v53  ;;  %v32646_v50 = vld [vmem:[#allocation3 + $0x51] sm:$0xff]  ;;  %v32658_v52 = vld [vmem:[#allocation3 + $0x69] sm:$0xff] }
 0x336   : > { %v29140_v58 = vadd.f32 %v26227_v57, %v32325_v30  ;;  %v3965_v59 = vpop.f32.mrb[27].mxu0  ;;  %26276 = vmatmul.mubr.msk.f32.gmra.mrb[54].mxu0 %vm4026_vm3, %v32509_v56  ;;  %27284 = vmatmul.mubr.msk.f32.gmra.mrb[22].mxu1 %vm4026_vm3, %v32509_v56  ;;  %v32664_v57 = vld [vmem:[#allocation3 + $0x79] sm:$0xff] }
 0x337   : > { %v29141_v62 = vadd.f32 %v32325_v30, %v3965_v59  ;;  %v32676_v59 = vld [vmem:[#allocation3 + $0x91] sm:$0xff] }
 0x338   : > { %4110 = vst.msk [vmem:[#allocation3 + $0x159] sm:$0xff] %vm4026_vm3, %v29140_v58  ;;  %v32523_v63 = vld [vmem:[#allocation3 + $0x120] sm:$0xff]  ;;  %v32525_v0 = vld [vmem:[#allocation3 + $0x128] sm:$0xff] }
 0x339   : > { %4109 = vst.msk [vmem:[#allocation3 + $0x151] sm:$0xff] %vm4026_vm3, %v29141_v62  ;;  %v26230_v2 = vpop.f32.mrb[28].mxu0  ;;  %26278 = vmatprep.mubr.msk.f32.mxu0 %vm4026_vm3, %v32523_v63  ;;  %27286 = vmatprep.mubr.msk.f32.mxu1 %vm4026_vm3, %v32523_v63  ;;  %v32670_v58 = vld [vmem:[#allocation3 + $0x81] sm:$0xff]  ;;  %v32682_v62 = vld [vmem:[#allocation3 + $0x99] sm:$0xff] }
 0x33a   : > { %v29142_v11 = vadd.f32 %v26230_v2, %v32325_v30  ;;  %v3975_v9 = vpop.f32.mrb[29].mxu0  ;;  %26279 = vmatmul.mubr.msk.f32.gmra.mrb[56].mxu0 %vm4026_vm3, %v32525_v0  ;;  %27287 = vmatmul.mubr.msk.f32.gmra.mrb[24].mxu1 %vm4026_vm3, %v32525_v0  ;;  %v32688_v2 = vld [vmem:[#allocation3 + $0xa9] sm:$0xff]  ;;  %v32748_v32 = vld [vmem:[#allocation3 + $0x121] sm:$0xff] }
 0x33b   : > { %v29143_v12 = vadd.f32 %v32325_v30, %v3975_v9  ;;  %v32700_v9 = vld [vmem:[#allocation3 + $0xc1] sm:$0xff]  ;;  %36688 = vst [vmem:[#allocation14_spill] sm:$0xff] %v32748_v32 }
 0x33c   : > { %4112 = vst.msk [vmem:[#allocation3 + $0x171] sm:$0xff] %vm4026_vm3, %v29142_v11  ;;  %v32539_v13 = vld [vmem:[#allocation3 + $0x138] sm:$0xff]  ;;  %v32541_v16 = vld [vmem:[#allocation3 + $0x140] sm:$0xff] }
 0x33d   : > { %4111 = vst.msk [vmem:[#allocation3 + $0x169] sm:$0xff] %vm4026_vm3, %v29143_v12  ;;  %v26233_v17 = vpop.f32.mrb[30].mxu0  ;;  %26281 = vmatprep.mubr.msk.f32.mxu0 %vm4026_vm3, %v32539_v13  ;;  %27289 = vmatprep.mubr.msk.f32.mxu1 %vm4026_vm3, %v32539_v13  ;;  %v32694_v11 = vld [vmem:[#allocation3 + $0xb1] sm:$0xff]  ;;  %v32706_v12 = vld [vmem:[#allocation3 + $0xc9] sm:$0xff]  ;;  %v32766_v41 = vld [vmem:[#allocation3 + $0x141] sm:$0xff] }
 0x33e   : > { %v29144_v1 = vadd.f32 %v26233_v17, %v32325_v30  ;;  %v3985_v18 = vpop.f32.mrb[31].mxu0  ;;  %26282 = vmatmul.mubr.msk.f32.gmra.mrb[58].mxu0 %vm4026_vm3, %v32541_v16  ;;  %27290 = vmatmul.mubr.msk.f32.gmra.mrb[26].mxu1 %vm4026_vm3, %v32541_v16  ;;  %v32712_v17 = vld [vmem:[#allocation3 + $0xd9] sm:$0xff]  ;;  %36691 = vst [vmem:[#allocation31_spill] sm:$0xff] %v32766_v41 }
 0x33f   : > { %v29145_v21 = vadd.f32 %v32325_v30, %v3985_v18  ;;  %v32724_v18 = vld [vmem:[#allocation3 + $0xf1] sm:$0xff]  ;;  %v32778_v4 = vld [vmem:[#allocation3 + $0x159] sm:$0xff] }
 0x340   : > { %4114 = vst.msk [vmem:[#allocation3 + $0x189] sm:$0xff] %vm4026_vm3, %v29144_v1  ;;  %v32555_v22 = vld [vmem:[#allocation3 + $0x150] sm:$0xff]  ;;  %v32557_v23 = vld [vmem:[#allocation3 + $0x158] sm:$0xff]  ;;  %v32718_v1 = vld [vmem:[#allocation3 + $0xe1] sm:$0xff] }
 0x341   : > { %4113 = vst.msk [vmem:[#allocation3 + $0x181] sm:$0xff] %vm4026_vm3, %v29145_v21  ;;  %26284 = vmatprep.mubr.msk.f32.mxu0 %vm4026_vm3, %v32555_v22  ;;  %27292 = vmatprep.mubr.msk.f32.mxu1 %vm4026_vm3, %v32555_v22  ;;  %v32730_v21 = vld [vmem:[#allocation3 + $0xf9] sm:$0xff]  ;;  %v32772_v6 = vld [vmem:[#allocation3 + $0x151] sm:$0xff]  ;;  %36693 = vst [vmem:[#allocation34_spill] sm:$0xff] %v32778_v4 }
 0x342   : > { %26285 = vmatmul.mubr.msk.f32.gmra.mrb[60].mxu0 %vm4026_vm3, %v32557_v23  ;;  %27293 = vmatmul.mubr.msk.f32.gmra.mrb[28].mxu1 %vm4026_vm3, %v32557_v23  ;;  %36692 = vst [vmem:[#allocation33_spill] sm:$0xff] %v32772_v6 }
 0x344   : > { %v32568_v30 = vld [vmem:[#allocation3 + $0x168] sm:$0xff]  ;;  %v32570_v24 = vld [vmem:[#allocation3 + $0x170] sm:$0xff] }
 0x345   : > { %26287 = vmatprep.mubr.msk.f32.mxu0 %vm4026_vm3, %v32568_v30  ;;  %27295 = vmatprep.mubr.msk.f32.mxu1 %vm4026_vm3, %v32568_v30  ;;  %v32784_v5 = vld [vmem:[#allocation3 + $0x169] sm:$0xff] }
 0x346   : > { %26288 = vmatmul.mubr.msk.f32.gmra.mrb[62].mxu0 %vm4026_vm3, %v32570_v24  ;;  %27296 = vmatmul.mubr.msk.f32.gmra.mrb[30].mxu1 %vm4026_vm3, %v32570_v24  ;;  %36694 = vst [vmem:[#allocation36_spill] sm:$0xff] %v32784_v5 }
 0x347   : > { %26298 = vmatprep.mubr.msk.f32.mxu0 %vm4026_vm3, %v4511_v27  ;;  %27306 = vmatprep.mubr.msk.f32.mxu1 %vm4026_vm3, %v4511_v27  ;;  %v32736_v27 = vld [vmem:[#allocation3 + $0x109] sm:$0xff] }
 0x34a   : > { %26299 = vmatmul.mubr.msk.f32.vlgmr.msra.gmra.mrb[32].mxu0 %vm4026_vm3, %v4512_v37  ;;  %27307 = vmatmul.mubr.msk.f32.vlgmr.msra.gmra.mrb[0].mxu1 %vm4026_vm3, %v4512_v37  ;;  %v32754_v37 = vld [vmem:[#allocation3 + $0x129] sm:$0xff] }
 0x34b   : > { %28773 = vmatpush3.bf16.msra.mxu0 %v32319_v39  ;;  %26301 = vmatprep.mubr.msk.f32.mxu0 %vm4026_vm3, %v32596_v28  ;;  %v23008_v39 = vld [vmem:[%s36318_s7 + $0x68] sm:$0xff]  ;;  %36689 = vst [vmem:[#allocation15_spill] sm:$0xff] %v32754_v37 }
 0x34c   : > { %27309 = vmatprep.mubr.msk.f32.mxu1 %vm4026_vm3, %v32596_v28  ;;  %28775 = vmatprep.subr.bf16.mxu0 %v28774_v40 }
 0x34d   : > { %28917 = vmatpush3.bf16.msra.mxu1 %v32333_v36  ;;  %v32630_v36 = vpack.c.bf16 %v23008_v39, %v23007_v44  ;;  %v32790_v44 = vld [vmem:[#allocation3 + $0x171] sm:$0xff]  ;;  %v22367_v39 = vld [vmem:[%s36314_s3 + $0x70] sm:$0xff] }
 0x34e   : > { %26302 = vmatmul.mubr.msk.f32.gmra.mrb[34].mxu0 %vm4026_vm3, %v32609_v33  ;;  %27310 = vmatmul.mubr.msk.f32.gmra.mrb[2].mxu1 %vm4026_vm3, %v32609_v33  ;;  %36695 = vst [vmem:[#allocation38_spill] sm:$0xff] %v32790_v44 }
 0x34f   : > { %26304 = vmatprep.mubr.msk.f32.mxu0 %vm4026_vm3, %v32624_v45  ;;  %27312 = vmatprep.mubr.msk.f32.mxu1 %vm4026_vm3, %v32624_v45 }
 0x350   : > { %28777 = vmatpush3.bf16.msra.mxu0 %v28774_v40  ;;  %28919 = vmatprep.subr.bf16.mxu1 %v28918_v42  ;;  %v32760_v40 = vld [vmem:[#allocation3 + $0x139] sm:$0xff] }
 0x351   : > { %28921 = vmatpush3.bf16.msra.mxu1 %v28918_v42  ;;  %28779 = vmatprep.subr.bf16.mxu0 %v32612_v43  ;;  %36690 = vst [vmem:[#allocation29_spill] sm:$0xff] %v32760_v40  ;;  %v4901_v42 = vld [vmem:[#allocation3 + $0x2] sm:$0xff] }
 0x352   : > { %26305 = vmatmul.mubr.msk.f32.gmra.mrb[36].mxu0 %vm4026_vm3, %v32632_v46  ;;  %27313 = vmatmul.mubr.msk.f32.gmra.mrb[4].mxu1 %vm4026_vm3, %v32632_v46 }
 0x353   : > { %26307 = vmatprep.mubr.msk.f32.mxu0 %vm4026_vm3, %v32639_v49  ;;  %27315 = vmatprep.mubr.msk.f32.mxu1 %vm4026_vm3, %v32639_v49 }
 0x354   : > { %28923 = vmatprep.subr.bf16.mxu1 %v32630_v36 }
 0x356   : > { %26308 = vmatmul.mubr.msk.f32.gmra.mrb[38].mxu0 %vm4026_vm3, %v32646_v50  ;;  %27316 = vmatmul.mubr.msk.f32.gmra.mrb[6].mxu1 %vm4026_vm3, %v32646_v50 }
 0x357   : > { %26310 = vmatprep.mubr.msk.f32.mxu0 %vm4026_vm3, %v32652_v51  ;;  %27318 = vmatprep.mubr.msk.f32.mxu1 %vm4026_vm3, %v32652_v51 }
 0x35a   : > { %26311 = vmatmul.mubr.msk.f32.gmra.mrb[40].mxu0 %vm4026_vm3, %v32658_v52  ;;  %27319 = vmatmul.mubr.msk.f32.gmra.mrb[8].mxu1 %vm4026_vm3, %v32658_v52 }
 0x35b   : > { %26313 = vmatprep.mubr.msk.f32.mxu0 %vm4026_vm3, %v32664_v57  ;;  %27321 = vmatprep.mubr.msk.f32.mxu1 %vm4026_vm3, %v32664_v57 }
 0x35e   : > { %26314 = vmatmul.mubr.msk.f32.gmra.mrb[42].mxu0 %vm4026_vm3, %v32670_v58  ;;  %27322 = vmatmul.mubr.msk.f32.gmra.mrb[10].mxu1 %vm4026_vm3, %v32670_v58 }
 0x35f   : > { %26316 = vmatprep.mubr.msk.f32.mxu0 %vm4026_vm3, %v32676_v59  ;;  %27324 = vmatprep.mubr.msk.f32.mxu1 %vm4026_vm3, %v32676_v59 }
 0x362   : > { %26317 = vmatmul.mubr.msk.f32.gmra.mrb[44].mxu0 %vm4026_vm3, %v32682_v62  ;;  %27325 = vmatmul.mubr.msk.f32.gmra.mrb[12].mxu1 %vm4026_vm3, %v32682_v62 }
 0x363   : > { %26319 = vmatprep.mubr.msk.f32.mxu0 %vm4026_vm3, %v32688_v2  ;;  %27327 = vmatprep.mubr.msk.f32.mxu1 %vm4026_vm3, %v32688_v2 }
 0x366   : > { %26320 = vmatmul.mubr.msk.f32.gmra.mrb[46].mxu0 %vm4026_vm3, %v32694_v11  ;;  %27328 = vmatmul.mubr.msk.f32.gmra.mrb[14].mxu1 %vm4026_vm3, %v32694_v11 }
 0x367   : > { %26322 = vmatprep.mubr.msk.f32.mxu0 %vm4026_vm3, %v32700_v9  ;;  %27330 = vmatprep.mubr.msk.f32.mxu1 %vm4026_vm3, %v32700_v9 }
 0x36a   : > { %26323 = vmatmul.mubr.msk.f32.gmra.mrb[48].mxu0 %vm4026_vm3, %v32706_v12  ;;  %27331 = vmatmul.mubr.msk.f32.gmra.mrb[16].mxu1 %vm4026_vm3, %v32706_v12 }
 0x36b   : > { %26325 = vmatprep.mubr.msk.f32.mxu0 %vm4026_vm3, %v32712_v17  ;;  %27333 = vmatprep.mubr.msk.f32.mxu1 %vm4026_vm3, %v32712_v17 }
 0x36e   : > { %26326 = vmatmul.mubr.msk.f32.gmra.mrb[50].mxu0 %vm4026_vm3, %v32718_v1  ;;  %27334 = vmatmul.mubr.msk.f32.gmra.mrb[18].mxu1 %vm4026_vm3, %v32718_v1 }
 0x36f   : > { %26328 = vmatprep.mubr.msk.f32.mxu0 %vm4026_vm3, %v32724_v18  ;;  %27336 = vmatprep.mubr.msk.f32.mxu1 %vm4026_vm3, %v32724_v18 }
 0x372   : > { %26329 = vmatmul.mubr.msk.f32.gmra.mrb[52].mxu0 %vm4026_vm3, %v32730_v21  ;;  %27337 = vmatmul.mubr.msk.f32.gmra.mrb[20].mxu1 %vm4026_vm3, %v32730_v21 }
 0x373   : > { %26331 = vmatprep.mubr.msk.f32.mxu0 %vm4026_vm3, %v32736_v27  ;;  %27339 = vmatprep.mubr.msk.f32.mxu1 %vm4026_vm3, %v32736_v27 }
 0x376   : > { %26332 = vmatmul.mubr.msk.f32.gmra.mrb[54].mxu0 %vm4026_vm3, %v32742_v31  ;;  %27340 = vmatmul.mubr.msk.f32.gmra.mrb[22].mxu1 %vm4026_vm3, %v32742_v31 }
 0x377   : > { %26334 = vmatprep.mubr.msk.f32.mxu0 %vm4026_vm3, %v32748_v32  ;;  %27342 = vmatprep.mubr.msk.f32.mxu1 %vm4026_vm3, %v32748_v32  ;;  %v23043_v32 = vld [vmem:[%s36318_s7 + $0x80] sm:$0xff] }
 0x37a   : > { %26335 = vmatmul.mubr.msk.f32.gmra.mrb[56].mxu0 %vm4026_vm3, %v32754_v37  ;;  %27343 = vmatmul.mubr.msk.f32.gmra.mrb[24].mxu1 %vm4026_vm3, %v32754_v37  ;;  %v32812_v37 = vld [vmem:[#allocation3 + $0x1a] sm:$0xff] }
 0x37b   : > { %26337 = vmatprep.mubr.msk.f32.mxu0 %vm4026_vm3, %v32760_v40  ;;  %27345 = vmatprep.mubr.msk.f32.mxu1 %vm4026_vm3, %v32760_v40  ;;  %v23010_v40 = vld [vmem:[%s36318_s7 + $0x78] sm:$0xff] }
 0x37e   : > { %26338 = vmatmul.mubr.msk.f32.gmra.mrb[58].mxu0 %vm4026_vm3, %v32766_v41  ;;  %27346 = vmatmul.mubr.msk.f32.gmra.mrb[26].mxu1 %vm4026_vm3, %v32766_v41  ;;  %v23009_v41 = vld [vmem:[%s36318_s7 + $0x70] sm:$0xff] }
 0x37f   : > { %26340 = vmatprep.mubr.msk.f32.mxu0 %vm4026_vm3, %v32772_v6  ;;  %27348 = vmatprep.mubr.msk.f32.mxu1 %vm4026_vm3, %v32772_v6  ;;  %v22368_v6 = vld [vmem:[%s36314_s3 + $0x78] sm:$0xff] }
 0x382   : > { %26341 = vmatmul.mubr.msk.f32.gmra.mrb[60].mxu0 %vm4026_vm3, %v32778_v4  ;;  %27349 = vmatmul.mubr.msk.f32.gmra.mrb[28].mxu1 %vm4026_vm3, %v32778_v4  ;;  %v28782_v4 = vpack.c.bf16 %v22368_v6, %v22367_v39  ;;  %v22402_v6 = vld [vmem:[%s36314_s3 + $0x88] sm:$0xff]  ;;  %v32825_v39 = vld [vmem:[#allocation3 + $0x22] sm:$0xff] }
 0x383   : > { %26343 = vmatprep.mubr.msk.f32.mxu0 %vm4026_vm3, %v32784_v5  ;;  %27351 = vmatprep.mubr.msk.f32.mxu1 %vm4026_vm3, %v32784_v5  ;;  %v4902_v5 = vld [vmem:[#allocation3 + $0xa] sm:$0xff] }
 0x386   : > { %26344 = vmatmul.mubr.msk.f32.gmra.mrb[62].mxu0 %vm4026_vm3, %v32790_v44  ;;  %27352 = vmatmul.mubr.msk.f32.gmra.mrb[30].mxu1 %vm4026_vm3, %v32790_v44 }
 0x387   : > { %26354 = vmatprep.mubr.msk.f32.mxu0 %vm4026_vm3, %v4901_v42  ;;  %27362 = vmatprep.mubr.msk.f32.mxu1 %vm4026_vm3, %v4901_v42  ;;  %v22401_v42 = vld [vmem:[%s36314_s3 + $0x80] sm:$0xff] }
 0x388   : > { %v32828_v44 = vpack.c.bf16 %v22402_v6, %v22401_v42  ;;  %v32855_v42 = vld [vmem:[#allocation3 + $0x4a] sm:$0xff] }
 0x389   : > { %36696 = vst [vmem:[#allocation6_spill] sm:$0xff] %v32855_v42  ;;  %v32874_v6 = vld [vmem:[#allocation3 + $0x6a] sm:$0xff] }
 0x38a   : > { %26355 = vmatmul.mubr.msk.f32.vlgmr.msra.gmra.mrb[32].mxu0 %vm4026_vm3, %v4902_v5  ;;  %27363 = vmatmul.mubr.msk.f32.vlgmr.msra.gmra.mrb[0].mxu1 %vm4026_vm3, %v4902_v5  ;;  %v28926_v5 = vpack.c.bf16 %v23010_v40, %v23009_v41  ;;  %v32840_v40 = vld [vmem:[#allocation3 + $0x32] sm:$0xff]  ;;  %v32848_v41 = vld [vmem:[#allocation3 + $0x3a] sm:$0xff]  ;;  %36699 = vst [vmem:[#allocation9_spill] sm:$0xff] %v32874_v6 }
 0x38b   : > { %28781 = vmatpush3.bf16.msra.mxu0 %v32612_v43  ;;  %26357 = vmatprep.mubr.msk.f32.mxu0 %vm4026_vm3, %v32812_v37  ;;  %v23044_v43 = vld [vmem:[%s36318_s7 + $0x88] sm:$0xff] }
 0x38c   : > { %27365 = vmatprep.mubr.msk.f32.mxu1 %vm4026_vm3, %v32812_v37  ;;  %28783 = vmatprep.subr.bf16.mxu0 %v28782_v4 }
 0x38d   : > { %28925 = vmatpush3.bf16.msra.mxu1 %v32630_v36  ;;  %v32846_v36 = vpack.c.bf16 %v23044_v43, %v23043_v32  ;;  %v32862_v32 = vld [vmem:[#allocation3 + $0x52] sm:$0xff]  ;;  %v32886_v43 = vld [vmem:[#allocation3 + $0x82] sm:$0xff] }
 0x38e   : > { %26358 = vmatmul.mubr.msk.f32.gmra.mrb[34].mxu0 %vm4026_vm3, %v32825_v39  ;;  %27366 = vmatmul.mubr.msk.f32.gmra.mrb[2].mxu1 %vm4026_vm3, %v32825_v39  ;;  %36697 = vst [vmem:[#allocation7_spill] sm:$0xff] %v32862_v32  ;;  %36701 = vst [vmem:[#allocation11_spill] sm:$0xff] %v32886_v43 }
 0x38f   : > { %26360 = vmatprep.mubr.msk.f32.mxu0 %vm4026_vm3, %v32840_v40  ;;  %27368 = vmatprep.mubr.msk.f32.mxu1 %vm4026_vm3, %v32840_v40 }
 0x390   : > { %28785 = vmatpush3.bf16.msra.mxu0 %v28782_v4  ;;  %28927 = vmatprep.subr.bf16.mxu1 %v28926_v5  ;;  %v32868_v4 = vld [vmem:[#allocation3 + $0x62] sm:$0xff] }
 0x391   : > { %28929 = vmatpush3.bf16.msra.mxu1 %v28926_v5  ;;  %28787 = vmatprep.subr.bf16.mxu0 %v32828_v44  ;;  %36698 = vst [vmem:[#allocation8_spill] sm:$0xff] %v32868_v4  ;;  %v32880_v5 = vld [vmem:[#allocation3 + $0x7a] sm:$0xff] }
 0x392   : > { %26361 = vmatmul.mubr.msk.f32.gmra.mrb[36].mxu0 %vm4026_vm3, %v32848_v41  ;;  %27369 = vmatmul.mubr.msk.f32.gmra.mrb[4].mxu1 %vm4026_vm3, %v32848_v41  ;;  %36700 = vst [vmem:[#allocation10_spill] sm:$0xff] %v32880_v5 }
 0x393   : > { %26363 = vmatprep.mubr.msk.f32.mxu0 %vm4026_vm3, %v32855_v42  ;;  %27371 = vmatprep.mubr.msk.f32.mxu1 %vm4026_vm3, %v32855_v42  ;;  %v23046_v42 = vld [vmem:[%s36318_s7 + $0x98] sm:$0xff] }
 0x394   : > { %28931 = vmatprep.subr.bf16.mxu1 %v32846_v36 }
 0x396   : > { %26364 = vmatmul.mubr.msk.f32.gmra.mrb[38].mxu0 %vm4026_vm3, %v32862_v32  ;;  %27372 = vmatmul.mubr.msk.f32.gmra.mrb[6].mxu1 %vm4026_vm3, %v32862_v32  ;;  %v22404_v32 = vld [vmem:[%s36314_s3 + $0x98] sm:$0xff] }
 0x397   : > { %26366 = vmatprep.mubr.msk.f32.mxu0 %vm4026_vm3, %v32868_v4  ;;  %27374 = vmatprep.mubr.msk.f32.mxu1 %vm4026_vm3, %v32868_v4  ;;  %v32892_v4 = vld [vmem:[#allocation3 + $0x92] sm:$0xff] }
 0x398   : > { %36702 = vst [vmem:[#allocation12_spill] sm:$0xff] %v32892_v4 }
 0x39a   : > { %26367 = vmatmul.mubr.msk.f32.gmra.mrb[40].mxu0 %vm4026_vm3, %v32874_v6  ;;  %27375 = vmatmul.mubr.msk.f32.gmra.mrb[8].mxu1 %vm4026_vm3, %v32874_v6  ;;  %v32898_v6 = vld [vmem:[#allocation3 + $0x9a] sm:$0xff] }
 0x39b   : > { %26369 = vmatprep.mubr.msk.f32.mxu0 %vm4026_vm3, %v32880_v5  ;;  %27377 = vmatprep.mubr.msk.f32.mxu1 %vm4026_vm3, %v32880_v5  ;;  %36703 = vst [vmem:[#allocation13_spill] sm:$0xff] %v32898_v6  ;;  %v32904_v5 = vld [vmem:[#allocation3 + $0xaa] sm:$0xff] }
 0x39c   : > { %36704 = vst [vmem:[#allocation40_spill] sm:$0xff] %v32904_v5 }
 0x39e   : > { %26370 = vmatmul.mubr.msk.f32.gmra.mrb[42].mxu0 %vm4026_vm3, %v32886_v43  ;;  %27378 = vmatmul.mubr.msk.f32.gmra.mrb[10].mxu1 %vm4026_vm3, %v32886_v43  ;;  %v32910_v43 = vld [vmem:[#allocation3 + $0xb2] sm:$0xff] }
 0x39f   : > { %26372 = vmatprep.mubr.msk.f32.mxu0 %vm4026_vm3, %v32892_v4  ;;  %27380 = vmatprep.mubr.msk.f32.mxu1 %vm4026_vm3, %v32892_v4  ;;  %36705 = vst [vmem:[#allocation41_spill] sm:$0xff] %v32910_v43  ;;  %v32916_v4 = vld [vmem:[#allocation3 + $0xc2] sm:$0xff] }
 0x3a0   : > { %36706 = vst [vmem:[#allocation16_spill] sm:$0xff] %v32916_v4 }
 0x3a2   : > { %26373 = vmatmul.mubr.msk.f32.gmra.mrb[44].mxu0 %vm4026_vm3, %v32898_v6  ;;  %27381 = vmatmul.mubr.msk.f32.gmra.mrb[12].mxu1 %vm4026_vm3, %v32898_v6  ;;  %v32922_v6 = vld [vmem:[#allocation3 + $0xca] sm:$0xff] }
 0x3a3   : > { %26375 = vmatprep.mubr.msk.f32.mxu0 %vm4026_vm3, %v32904_v5  ;;  %27383 = vmatprep.mubr.msk.f32.mxu1 %vm4026_vm3, %v32904_v5  ;;  %36707 = vst [vmem:[#allocation17_spill] sm:$0xff] %v32922_v6  ;;  %v32928_v5 = vld [vmem:[#allocation3 + $0xda] sm:$0xff] }
 0x3a4   : > { %36708 = vst [vmem:[#allocation18_spill] sm:$0xff] %v32928_v5 }
 0x3a6   : > { %26376 = vmatmul.mubr.msk.f32.gmra.mrb[46].mxu0 %vm4026_vm3, %v32910_v43  ;;  %27384 = vmatmul.mubr.msk.f32.gmra.mrb[14].mxu1 %vm4026_vm3, %v32910_v43  ;;  %v32934_v43 = vld [vmem:[#allocation3 + $0xe2] sm:$0xff] }
 0x3a7   : > { %26378 = vmatprep.mubr.msk.f32.mxu0 %vm4026_vm3, %v32916_v4  ;;  %27386 = vmatprep.mubr.msk.f32.mxu1 %vm4026_vm3, %v32916_v4  ;;  %36709 = vst [vmem:[#allocation19_spill] sm:$0xff] %v32934_v43  ;;  %v32940_v4 = vld [vmem:[#allocation3 + $0xf2] sm:$0xff] }
 0x3a8   : > { %36710 = vst [vmem:[#allocation20_spill] sm:$0xff] %v32940_v4 }
 0x3aa   : > { %26379 = vmatmul.mubr.msk.f32.gmra.mrb[48].mxu0 %vm4026_vm3, %v32922_v6  ;;  %27387 = vmatmul.mubr.msk.f32.gmra.mrb[16].mxu1 %vm4026_vm3, %v32922_v6  ;;  %v32946_v6 = vld [vmem:[#allocation3 + $0xfa] sm:$0xff] }
 0x3ab   : > { %26381 = vmatprep.mubr.msk.f32.mxu0 %vm4026_vm3, %v32928_v5  ;;  %27389 = vmatprep.mubr.msk.f32.mxu1 %vm4026_vm3, %v32928_v5  ;;  %36711 = vst [vmem:[#allocation21_spill] sm:$0xff] %v32946_v6  ;;  %v32952_v5 = vld [vmem:[#allocation3 + $0x10a] sm:$0xff] }
 0x3ac   : > { %36712 = vst [vmem:[#allocation22_spill] sm:$0xff] %v32952_v5 }
 0x3ae   : > { %26382 = vmatmul.mubr.msk.f32.gmra.mrb[50].mxu0 %vm4026_vm3, %v32934_v43  ;;  %27390 = vmatmul.mubr.msk.f32.gmra.mrb[18].mxu1 %vm4026_vm3, %v32934_v43  ;;  %v32958_v43 = vld [vmem:[#allocation3 + $0x112] sm:$0xff] }
 0x3af   : > { %26384 = vmatprep.mubr.msk.f32.mxu0 %vm4026_vm3, %v32940_v4  ;;  %27392 = vmatprep.mubr.msk.f32.mxu1 %vm4026_vm3, %v32940_v4  ;;  %36713 = vst [vmem:[#allocation23_spill] sm:$0xff] %v32958_v43  ;;  %v32964_v4 = vld [vmem:[#allocation3 + $0x122] sm:$0xff] }
 0x3b0   : > { %36714 = vst [vmem:[#allocation24_spill] sm:$0xff] %v32964_v4 }
 0x3b2   : > { %26385 = vmatmul.mubr.msk.f32.gmra.mrb[52].mxu0 %vm4026_vm3, %v32946_v6  ;;  %27393 = vmatmul.mubr.msk.f32.gmra.mrb[20].mxu1 %vm4026_vm3, %v32946_v6  ;;  %v32970_v6 = vld [vmem:[#allocation3 + $0x12a] sm:$0xff] }
 0x3b3   : > { %26387 = vmatprep.mubr.msk.f32.mxu0 %vm4026_vm3, %v32952_v5  ;;  %27395 = vmatprep.mubr.msk.f32.mxu1 %vm4026_vm3, %v32952_v5  ;;  %36715 = vst [vmem:[#allocation25_spill] sm:$0xff] %v32970_v6  ;;  %v32976_v5 = vld [vmem:[#allocation3 + $0x13a] sm:$0xff] }
 0x3b4   : > { %36716 = vst [vmem:[#allocation26_spill] sm:$0xff] %v32976_v5 }
 0x3b6   : > { %26388 = vmatmul.mubr.msk.f32.gmra.mrb[54].mxu0 %vm4026_vm3, %v32958_v43  ;;  %27396 = vmatmul.mubr.msk.f32.gmra.mrb[22].mxu1 %vm4026_vm3, %v32958_v43  ;;  %v32982_v43 = vld [vmem:[#allocation3 + $0x142] sm:$0xff] }
 0x3b7   : > { %26390 = vmatprep.mubr.msk.f32.mxu0 %vm4026_vm3, %v32964_v4  ;;  %27398 = vmatprep.mubr.msk.f32.mxu1 %vm4026_vm3, %v32964_v4  ;;  %36717 = vst [vmem:[#allocation27_spill] sm:$0xff] %v32982_v43  ;;  %v32988_v4 = vld [vmem:[#allocation3 + $0x152] sm:$0xff] }
 0x3b8   : > { %36718 = vst [vmem:[#allocation28_spill] sm:$0xff] %v32988_v4 }
 0x3ba   : > { %26391 = vmatmul.mubr.msk.f32.gmra.mrb[56].mxu0 %vm4026_vm3, %v32970_v6  ;;  %27399 = vmatmul.mubr.msk.f32.gmra.mrb[24].mxu1 %vm4026_vm3, %v32970_v6  ;;  %v32994_v6 = vld [vmem:[#allocation3 + $0x15a] sm:$0xff] }
 0x3bb   : > { %26393 = vmatprep.mubr.msk.f32.mxu0 %vm4026_vm3, %v32976_v5  ;;  %27401 = vmatprep.mubr.msk.f32.mxu1 %vm4026_vm3, %v32976_v5  ;;  %36719 = vst [vmem:[#allocation30_spill] sm:$0xff] %v32994_v6  ;;  %v33000_v5 = vld [vmem:[#allocation3 + $0x16a] sm:$0xff] }
 0x3bc   : > { %36720 = vst [vmem:[#allocation32_spill] sm:$0xff] %v33000_v5 }
 0x3be   : > { %26394 = vmatmul.mubr.msk.f32.gmra.mrb[58].mxu0 %vm4026_vm3, %v32982_v43  ;;  %27402 = vmatmul.mubr.msk.f32.gmra.mrb[26].mxu1 %vm4026_vm3, %v32982_v43  ;;  %v33006_v43 = vld [vmem:[#allocation3 + $0x172] sm:$0xff] }
 0x3bf   : > { %26396 = vmatprep.mubr.msk.f32.mxu0 %vm4026_vm3, %v32988_v4  ;;  %27404 = vmatprep.mubr.msk.f32.mxu1 %vm4026_vm3, %v32988_v4  ;;  %36721 = vst [vmem:[#allocation35_spill] sm:$0xff] %v33006_v43  ;;  %v22403_v4 = vld [vmem:[%s36314_s3 + $0x90] sm:$0xff] }
 0x3c2   : > { %26397 = vmatmul.mubr.msk.f32.gmra.mrb[60].mxu0 %vm4026_vm3, %v32994_v6  ;;  %27405 = vmatmul.mubr.msk.f32.gmra.mrb[28].mxu1 %vm4026_vm3, %v32994_v6  ;;  %v23045_v6 = vld [vmem:[%s36318_s7 + $0x90] sm:$0xff] }
 0x3c3   : > { %26399 = vmatprep.mubr.msk.f32.mxu0 %vm4026_vm3, %v33000_v5  ;;  %27407 = vmatprep.mubr.msk.f32.mxu1 %vm4026_vm3, %v33000_v5  ;;  %v28790_v5 = vpack.c.bf16 %v22404_v32, %v22403_v4  ;;  %v28934_v32 = vpack.c.bf16 %v23046_v42, %v23045_v6  ;;  %v23079_v4 = vld [vmem:[%s36318_s7 + $0xa0] sm:$0xff]  ;;  %v36748_v42 = vld [vmem:[#allocation24_spill] sm:$0xff]  ;;  %v36749_v6 = vld [vmem:[#allocation25_spill] sm:$0xff] }
 0x3c6   : > { %26400 = vmatmul.mubr.msk.f32.gmra.mrb[62].mxu0 %vm4026_vm3, %v33006_v43  ;;  %27408 = vmatmul.mubr.msk.f32.gmra.mrb[30].mxu1 %vm4026_vm3, %v33006_v43  ;;  %v22437_v43 = vld [vmem:[%s36314_s3 + $0xa0] sm:$0xff] }
 0x3c7   : > { %26410 = vmatprep.mubr.msk.f32.mxu0 %vm4026_vm3, %v32347_v54  ;;  %27418 = vmatprep.mubr.msk.f32.mxu1 %vm4026_vm3, %v32347_v54  ;;  %v22438_v54 = vld [vmem:[%s36314_s3 + $0xa8] sm:$0xff] }
 0x3ca   : > { %26411 = vmatmul.mubr.msk.f32.vlgmr.msra.gmra.mrb[32].mxu0 %vm4026_vm3, %v32349_v55  ;;  %27419 = vmatmul.mubr.msk.f32.vlgmr.msra.gmra.mrb[0].mxu1 %vm4026_vm3, %v32349_v55  ;;  %v33044_v55 = vpack.c.bf16 %v22438_v54, %v22437_v43  ;;  %v36751_v43 = vld [vmem:[#allocation27_spill] sm:$0xff]  ;;  %v36752_v54 = vld [vmem:[#allocation28_spill] sm:$0xff] }
 0x3cb   : > { %28789 = vmatpush3.bf16.msra.mxu0 %v32828_v44  ;;  %26413 = vmatprep.mubr.msk.f32.mxu0 %vm4026_vm3, %v32363_v60  ;;  %v23080_v44 = vld [vmem:[%s36318_s7 + $0xa8] sm:$0xff] }
 0x3cc   : > { %27421 = vmatprep.mubr.msk.f32.mxu1 %vm4026_vm3, %v32363_v60  ;;  %28791 = vmatprep.subr.bf16.mxu0 %v28790_v5  ;;  %v33060_v60 = vpack.c.bf16 %v23080_v44, %v23079_v4  ;;  %v36755_v4 = vld [vmem:[#allocation35_spill] sm:$0xff]  ;;  %v33492_v44 = vld [vmem:[#allocation3 + $0x182] sm:$0xff] }
 0x3cd   : > { %28933 = vmatpush3.bf16.msra.mxu1 %v32846_v36  ;;  %v36746_v36 = vld [vmem:[#allocation22_spill] sm:$0xff] }
 0x3ce   : > { %26414 = vmatmul.mubr.msk.f32.gmra.mrb[34].mxu0 %vm4026_vm3, %v32365_v61  ;;  %27422 = vmatmul.mubr.msk.f32.gmra.mrb[2].mxu1 %vm4026_vm3, %v32365_v61  ;;  %v33164_v61 = vld [vmem:[#allocation3 + $0x180] sm:$0xff] }
 0x3cf   : > { %26416 = vmatprep.mubr.msk.f32.mxu0 %vm4026_vm3, %v32379_v8  ;;  %27424 = vmatprep.mubr.msk.f32.mxu1 %vm4026_vm3, %v32379_v8  ;;  %v33170_v8 = vld [vmem:[#allocation3 + $0x188] sm:$0xff] }
 0x3d0   : > { %28793 = vmatpush3.bf16.msra.mxu0 %v28790_v5  ;;  %28935 = vmatprep.subr.bf16.mxu1 %v28934_v32  ;;  %v36750_v5 = vld [vmem:[#allocation26_spill] sm:$0xff] }
 0x3d1   : > { %28937 = vmatpush3.bf16.msra.mxu1 %v28934_v32  ;;  %28795 = vmatprep.subr.bf16.mxu0 %v33044_v55  ;;  %v36753_v32 = vld [vmem:[#allocation30_spill] sm:$0xff] }
 0x3d2   : > { %26417 = vmatmul.mubr.msk.f32.gmra.mrb[36].mxu0 %vm4026_vm3, %v32381_v10  ;;  %27425 = vmatmul.mubr.msk.f32.gmra.mrb[4].mxu1 %vm4026_vm3, %v32381_v10  ;;  %v22439_v10 = vld [vmem:[%s36314_s3 + $0xb0] sm:$0xff] }
 0x3d3   : > { %26419 = vmatprep.mubr.msk.f32.mxu0 %vm4026_vm3, %v32395_v14  ;;  %27427 = vmatprep.mubr.msk.f32.mxu1 %vm4026_vm3, %v32395_v14  ;;  %v22440_v14 = vld [vmem:[%s36314_s3 + $0xb8] sm:$0xff] }
 0x3d4   : > { %28939 = vmatprep.subr.bf16.mxu1 %v33060_v60 }
 0x3d6   : > { %26420 = vmatmul.mubr.msk.f32.gmra.mrb[38].mxu0 %vm4026_vm3, %v32397_v15  ;;  %27428 = vmatmul.mubr.msk.f32.gmra.mrb[6].mxu1 %vm4026_vm3, %v32397_v15  ;;  %v28798_v15 = vpack.c.bf16 %v22440_v14, %v22439_v10  ;;  %v22511_v10 = vld [vmem:[%s36314_s3 + $0xf0] sm:$0xff]  ;;  %v22512_v14 = vld [vmem:[%s36314_s3 + $0xf8] sm:$0xff] }
 0x3d7   : > { %26422 = vmatprep.mubr.msk.f32.mxu0 %vm4026_vm3, %v32411_v19  ;;  %27430 = vmatprep.mubr.msk.f32.mxu1 %vm4026_vm3, %v32411_v19  ;;  %v23081_v19 = vld [vmem:[%s36318_s7 + $0xb0] sm:$0xff] }
 0x3da   : > { %26423 = vmatmul.mubr.msk.f32.gmra.mrb[40].mxu0 %vm4026_vm3, %v32413_v20  ;;  %27431 = vmatmul.mubr.msk.f32.gmra.mrb[8].mxu1 %vm4026_vm3, %v32413_v20  ;;  %v23082_v20 = vld [vmem:[%s36318_s7 + $0xb8] sm:$0xff] }
 0x3db   : > { %26425 = vmatprep.mubr.msk.f32.mxu0 %vm4026_vm3, %v32427_v25  ;;  %27433 = vmatprep.mubr.msk.f32.mxu1 %vm4026_vm3, %v32427_v25  ;;  %v22473_v25 = vld [vmem:[%s36314_s3 + $0xc0] sm:$0xff] }
 0x3de   : > { %26426 = vmatmul.mubr.msk.f32.gmra.mrb[42].mxu0 %vm4026_vm3, %v32429_v26  ;;  %27434 = vmatmul.mubr.msk.f32.gmra.mrb[10].mxu1 %vm4026_vm3, %v32429_v26  ;;  %v22474_v26 = vld [vmem:[%s36314_s3 + $0xc8] sm:$0xff] }
 0x3df   : > { %26428 = vmatprep.mubr.msk.f32.mxu0 %vm4026_vm3, %v32443_v38  ;;  %27436 = vmatprep.mubr.msk.f32.mxu1 %vm4026_vm3, %v32443_v38  ;;  %v28942_v38 = vpack.c.bf16 %v23082_v20, %v23081_v19  ;;  %v28814_v19 = vpack.c.bf16 %v22512_v14, %v22511_v10  ;;  %v6463_v20 = vld [vmem:[#allocation3 + $0x38] sm:$0xff]  ;;  %v6862_v14 = vld [vmem:[#allocation3 + $0xa9] sm:$0xff] }
 0x3e0   : > { %v6861_v10 = vld [vmem:[#allocation3 + $0x99] sm:$0xff] }
 0x3e2   : > { %26429 = vmatmul.mubr.msk.f32.gmra.mrb[44].mxu0 %vm4026_vm3, %v32445_v3  ;;  %27437 = vmatmul.mubr.msk.f32.gmra.mrb[12].mxu1 %vm4026_vm3, %v32445_v3  ;;  %v33208_v3 = vpack.c.bf16 %v22474_v26, %v22473_v25  ;;  %v23153_v25 = vld [vmem:[%s36318_s7 + $0xf0] sm:$0xff]  ;;  %v23154_v26 = vld [vmem:[%s36318_s7 + $0xf8] sm:$0xff] }
 0x3e3   : > { %26431 = vmatprep.mubr.msk.f32.mxu0 %vm4026_vm3, %v32459_v29  ;;  %27439 = vmatprep.mubr.msk.f32.mxu1 %vm4026_vm3, %v32459_v29  ;;  %v23115_v29 = vld [vmem:[%s36318_s7 + $0xc0] sm:$0xff] }
 0x3e6   : > { %26432 = vmatmul.mubr.msk.f32.gmra.mrb[46].mxu0 %vm4026_vm3, %v32461_v7  ;;  %27440 = vmatmul.mubr.msk.f32.gmra.mrb[14].mxu1 %vm4026_vm3, %v32461_v7  ;;  %v23116_v7 = vld [vmem:[%s36318_s7 + $0xc8] sm:$0xff] }
 0x3e7   : > { %26434 = vmatprep.mubr.msk.f32.mxu0 %vm4026_vm3, %v32475_v34  ;;  %27442 = vmatprep.mubr.msk.f32.mxu1 %vm4026_vm3, %v32475_v34  ;;  %v33224_v34 = vpack.c.bf16 %v23116_v7, %v23115_v29  ;;  %v22546_v29 = vld [vmem:[%s36314_s3 + $0x108] sm:$0xff]  ;;  %v28958_v7 = vpack.c.bf16 %v23154_v26, %v23153_v25  ;;  %v6867_v26 = vld [vmem:[#allocation3 + $0xe1] sm:$0xff] }
 0x3e8   : > { %v6866_v25 = vld [vmem:[#allocation3 + $0xd9] sm:$0xff] }
 0x3ea   : > { %26435 = vmatmul.mubr.msk.f32.gmra.mrb[48].mxu0 %vm4026_vm3, %v32477_v35  ;;  %27443 = vmatmul.mubr.msk.f32.gmra.mrb[16].mxu1 %vm4026_vm3, %v32477_v35  ;;  %v36722_v35 = vld [vmem:[#allocation14_spill] sm:$0xff] }
 0x3eb   : > { %26437 = vmatprep.mubr.msk.f32.mxu0 %vm4026_vm3, %v32491_v47  ;;  %27445 = vmatprep.mubr.msk.f32.mxu1 %vm4026_vm3, %v32491_v47  ;;  %v36723_v47 = vld [vmem:[#allocation15_spill] sm:$0xff] }
 0x3ee   : > { %26438 = vmatmul.mubr.msk.f32.gmra.mrb[50].mxu0 %vm4026_vm3, %v32493_v48  ;;  %27446 = vmatmul.mubr.msk.f32.gmra.mrb[18].mxu1 %vm4026_vm3, %v32493_v48  ;;  %v36724_v48 = vld [vmem:[#allocation29_spill] sm:$0xff] }
 0x3ef   : > { %26440 = vmatprep.mubr.msk.f32.mxu0 %vm4026_vm3, %v32507_v53  ;;  %27448 = vmatprep.mubr.msk.f32.mxu1 %vm4026_vm3, %v32507_v53  ;;  %v36725_v53 = vld [vmem:[#allocation31_spill] sm:$0xff] }
 0x3f2   : > { %26441 = vmatmul.mubr.msk.f32.gmra.mrb[52].mxu0 %vm4026_vm3, %v32509_v56  ;;  %27449 = vmatmul.mubr.msk.f32.gmra.mrb[20].mxu1 %vm4026_vm3, %v32509_v56  ;;  %v36726_v56 = vld [vmem:[#allocation33_spill] sm:$0xff] }
 0x3f3   : > { %26443 = vmatprep.mubr.msk.f32.mxu0 %vm4026_vm3, %v32523_v63  ;;  %27451 = vmatprep.mubr.msk.f32.mxu1 %vm4026_vm3, %v32523_v63  ;;  %v36727_v63 = vld [vmem:[#allocation34_spill] sm:$0xff] }
 0x3f6   : > { %26444 = vmatmul.mubr.msk.f32.gmra.mrb[54].mxu0 %vm4026_vm3, %v32525_v0  ;;  %27452 = vmatmul.mubr.msk.f32.gmra.mrb[22].mxu1 %vm4026_vm3, %v32525_v0  ;;  %v36728_v0 = vld [vmem:[#allocation36_spill] sm:$0xff] }
 0x3f7   : > { %26446 = vmatprep.mubr.msk.f32.mxu0 %vm4026_vm3, %v32539_v13  ;;  %27454 = vmatprep.mubr.msk.f32.mxu1 %vm4026_vm3, %v32539_v13  ;;  %v36729_v13 = vld [vmem:[#allocation38_spill] sm:$0xff] }
 0x3fa   : > { %26447 = vmatmul.mubr.msk.f32.gmra.mrb[56].mxu0 %vm4026_vm3, %v32541_v16  ;;  %27455 = vmatmul.mubr.msk.f32.gmra.mrb[24].mxu1 %vm4026_vm3, %v32541_v16  ;;  %v33328_v16 = vld [vmem:[#allocation3 + $0x181] sm:$0xff] }
 0x3fb   : > { %26449 = vmatprep.mubr.msk.f32.mxu0 %vm4026_vm3, %v32555_v22  ;;  %27457 = vmatprep.mubr.msk.f32.mxu1 %vm4026_vm3, %v32555_v22  ;;  %v33334_v22 = vld [vmem:[#allocation3 + $0x189] sm:$0xff] }
 0x3fe   : > { %26450 = vmatmul.mubr.msk.f32.gmra.mrb[58].mxu0 %vm4026_vm3, %v32557_v23  ;;  %27458 = vmatmul.mubr.msk.f32.gmra.mrb[26].mxu1 %vm4026_vm3, %v32557_v23  ;;  %v22475_v23 = vld [vmem:[%s36314_s3 + $0xd0] sm:$0xff] }
 0x3ff   : > { %26452 = vmatprep.mubr.msk.f32.mxu0 %vm4026_vm3, %v32568_v30  ;;  %27460 = vmatprep.mubr.msk.f32.mxu1 %vm4026_vm3, %v32568_v30  ;;  %v22476_v30 = vld [vmem:[%s36314_s3 + $0xd8] sm:$0xff] }
 0x402   : > { %26453 = vmatmul.mubr.msk.f32.gmra.mrb[60].mxu0 %vm4026_vm3, %v32570_v24  ;;  %27461 = vmatmul.mubr.msk.f32.gmra.mrb[28].mxu1 %vm4026_vm3, %v32570_v24  ;;  %v28806_v24 = vpack.c.bf16 %v22476_v30, %v22475_v23  ;;  %v6470_v23 = vld [vmem:[#allocation3 + $0x90] sm:$0xff]  ;;  %v6471_v30 = vld [vmem:[#allocation3 + $0x98] sm:$0xff] }
 0x403   : > { %26455 = vmatprep.mubr.msk.f32.mxu0 %vm4026_vm3, %v33164_v61  ;;  %27463 = vmatprep.mubr.msk.f32.mxu1 %vm4026_vm3, %v33164_v61 }
 0x406   : > { %26456 = vmatmul.mubr.msk.f32.gmra.mrb[62].mxu0 %vm4026_vm3, %v33170_v8  ;;  %27464 = vmatmul.mubr.msk.f32.gmra.mrb[30].mxu1 %vm4026_vm3, %v33170_v8 }
 0x407   : > { %26466 = vmatprep.mubr.msk.f32.mxu0 %vm4026_vm3, %v32596_v28  ;;  %27474 = vmatprep.mubr.msk.f32.mxu1 %vm4026_vm3, %v32596_v28  ;;  %v23117_v28 = vld [vmem:[%s36318_s7 + $0xd0] sm:$0xff] }
 0x40a   : > { %26467 = vmatmul.mubr.msk.f32.vlgmr.msra.gmra.mrb[32].mxu0 %vm4026_vm3, %v32609_v33  ;;  %27475 = vmatmul.mubr.msk.f32.vlgmr.msra.gmra.mrb[0].mxu1 %vm4026_vm3, %v32609_v33  ;;  %v23118_v33 = vld [vmem:[%s36318_s7 + $0xd8] sm:$0xff] }
 0x40b   : > { %28797 = vmatpush3.bf16.msra.mxu0 %v33044_v55  ;;  %26469 = vmatprep.mubr.msk.f32.mxu0 %vm4026_vm3, %v32624_v45  ;;  %v36754_v55 = vld [vmem:[#allocation32_spill] sm:$0xff] }
 0x40c   : > { %27477 = vmatprep.mubr.msk.f32.mxu1 %vm4026_vm3, %v32624_v45  ;;  %28799 = vmatprep.subr.bf16.mxu0 %v28798_v15  ;;  %v22509_v45 = vld [vmem:[%s36314_s3 + $0xe0] sm:$0xff] }
 0x40d   : > { %28941 = vmatpush3.bf16.msra.mxu1 %v33060_v60  ;;  %v33498_v60 = vld [vmem:[#allocation3 + $0x18a] sm:$0xff] }
 0x40e   : > { %26470 = vmatmul.mubr.msk.f32.gmra.mrb[34].mxu0 %vm4026_vm3, %v32632_v46  ;;  %27478 = vmatmul.mubr.msk.f32.gmra.mrb[2].mxu1 %vm4026_vm3, %v32632_v46  ;;  %v22510_v46 = vld [vmem:[%s36314_s3 + $0xe8] sm:$0xff] }
 0x40f   : > { %26472 = vmatprep.mubr.msk.f32.mxu0 %vm4026_vm3, %v32639_v49  ;;  %27480 = vmatprep.mubr.msk.f32.mxu1 %vm4026_vm3, %v32639_v49  ;;  %v28950_v49 = vpack.c.bf16 %v23118_v33, %v23117_v28  ;;  %v6473_v28 = vld [vmem:[#allocation3 + $0xb0] sm:$0xff]  ;;  %v6474_v33 = vld [vmem:[#allocation3 + $0xc0] sm:$0xff] }
 0x410   : > { %28801 = vmatpush3.bf16.msra.mxu0 %v28798_v15  ;;  %28943 = vmatprep.subr.bf16.mxu1 %v28942_v38  ;;  %v6462_v15 = vld [vmem:[#allocation3 + $0x30] sm:$0xff] }
 0x411   : > { %28945 = vmatpush3.bf16.msra.mxu1 %v28942_v38  ;;  %28803 = vmatprep.subr.bf16.mxu0 %v33208_v3  ;;  %v6464_v38 = vld [vmem:[#allocation3 + $0x48] sm:$0xff] }
 0x412   : > { %26473 = vmatmul.mubr.msk.f32.gmra.mrb[36].mxu0 %vm4026_vm3, %v32646_v50  ;;  %27481 = vmatmul.mubr.msk.f32.gmra.mrb[4].mxu1 %vm4026_vm3, %v32646_v50  ;;  %v33372_v50 = vpack.c.bf16 %v22510_v46, %v22509_v45  ;;  %v6475_v45 = vld [vmem:[#allocation3 + $0xc8] sm:$0xff]  ;;  %v6476_v46 = vld [vmem:[#allocation3 + $0xd8] sm:$0xff] }
 0x413   : > { %26475 = vmatprep.mubr.msk.f32.mxu0 %vm4026_vm3, %v32652_v51  ;;  %27483 = vmatprep.mubr.msk.f32.mxu1 %vm4026_vm3, %v32652_v51  ;;  %v23151_v51 = vld [vmem:[%s36318_s7 + $0xe0] sm:$0xff] }
 0x414   : > { %28947 = vmatprep.subr.bf16.mxu1 %v33224_v34 }
 0x416   : > { %26476 = vmatmul.mubr.msk.f32.gmra.mrb[38].mxu0 %vm4026_vm3, %v32658_v52  ;;  %27484 = vmatmul.mubr.msk.f32.gmra.mrb[6].mxu1 %vm4026_vm3, %v32658_v52  ;;  %v23152_v52 = vld [vmem:[%s36318_s7 + $0xe8] sm:$0xff] }
 0x417   : > { %26478 = vmatprep.mubr.msk.f32.mxu0 %vm4026_vm3, %v32664_v57  ;;  %27486 = vmatprep.mubr.msk.f32.mxu1 %vm4026_vm3, %v32664_v57  ;;  %v36730_v57 = vld [vmem:[#allocation6_spill] sm:$0xff] }
 0x41a   : > { %26479 = vmatmul.mubr.msk.f32.gmra.mrb[40].mxu0 %vm4026_vm3, %v32670_v58  ;;  %27487 = vmatmul.mubr.msk.f32.gmra.mrb[8].mxu1 %vm4026_vm3, %v32670_v58  ;;  %v33388_v58 = vpack.c.bf16 %v23152_v52, %v23151_v51  ;;  %v6479_v51 = vld [vmem:[#allocation3 + $0xf8] sm:$0xff]  ;;  %v6480_v52 = vld [vmem:[#allocation3 + $0x108] sm:$0xff] }
 0x41b   : > { %26481 = vmatprep.mubr.msk.f32.mxu0 %vm4026_vm3, %v32676_v59  ;;  %27489 = vmatprep.mubr.msk.f32.mxu1 %vm4026_vm3, %v32676_v59  ;;  %v36731_v59 = vld [vmem:[#allocation7_spill] sm:$0xff] }
 0x41e   : > { %26482 = vmatmul.mubr.msk.f32.gmra.mrb[42].mxu0 %vm4026_vm3, %v32682_v62  ;;  %27490 = vmatmul.mubr.msk.f32.gmra.mrb[10].mxu1 %vm4026_vm3, %v32682_v62  ;;  %v36732_v62 = vld [vmem:[#allocation8_spill] sm:$0xff] }
 0x41f   : > { %26484 = vmatprep.mubr.msk.f32.mxu0 %vm4026_vm3, %v32688_v2  ;;  %27492 = vmatprep.mubr.msk.f32.mxu1 %vm4026_vm3, %v32688_v2  ;;  %v36733_v2 = vld [vmem:[#allocation9_spill] sm:$0xff] }
 0x422   : > { %26485 = vmatmul.mubr.msk.f32.gmra.mrb[44].mxu0 %vm4026_vm3, %v32694_v11  ;;  %27493 = vmatmul.mubr.msk.f32.gmra.mrb[12].mxu1 %vm4026_vm3, %v32694_v11  ;;  %v36734_v11 = vld [vmem:[#allocation10_spill] sm:$0xff] }
 0x423   : > { %26487 = vmatprep.mubr.msk.f32.mxu0 %vm4026_vm3, %v32700_v9  ;;  %27495 = vmatprep.mubr.msk.f32.mxu1 %vm4026_vm3, %v32700_v9  ;;  %v36735_v9 = vld [vmem:[#allocation11_spill] sm:$0xff] }
 0x426   : > { %26488 = vmatmul.mubr.msk.f32.gmra.mrb[46].mxu0 %vm4026_vm3, %v32706_v12  ;;  %27496 = vmatmul.mubr.msk.f32.gmra.mrb[14].mxu1 %vm4026_vm3, %v32706_v12  ;;  %v36736_v12 = vld [vmem:[#allocation12_spill] sm:$0xff] }
 0x427   : > { %26490 = vmatprep.mubr.msk.f32.mxu0 %vm4026_vm3, %v32712_v17  ;;  %27498 = vmatprep.mubr.msk.f32.mxu1 %vm4026_vm3, %v32712_v17  ;;  %v36737_v17 = vld [vmem:[#allocation13_spill] sm:$0xff] }
 0x42a   : > { %26491 = vmatmul.mubr.msk.f32.gmra.mrb[48].mxu0 %vm4026_vm3, %v32718_v1  ;;  %27499 = vmatmul.mubr.msk.f32.gmra.mrb[16].mxu1 %vm4026_vm3, %v32718_v1  ;;  %v36738_v1 = vld [vmem:[#allocation40_spill] sm:$0xff] }
 0x42b   : > { %26493 = vmatprep.mubr.msk.f32.mxu0 %vm4026_vm3, %v32724_v18  ;;  %27501 = vmatprep.mubr.msk.f32.mxu1 %vm4026_vm3, %v32724_v18  ;;  %v36739_v18 = vld [vmem:[#allocation41_spill] sm:$0xff] }
 0x42e   : > { %26494 = vmatmul.mubr.msk.f32.gmra.mrb[50].mxu0 %vm4026_vm3, %v32730_v21  ;;  %27502 = vmatmul.mubr.msk.f32.gmra.mrb[18].mxu1 %vm4026_vm3, %v32730_v21  ;;  %v36740_v21 = vld [vmem:[#allocation16_spill] sm:$0xff] }
 0x42f   : > { %26496 = vmatprep.mubr.msk.f32.mxu0 %vm4026_vm3, %v32736_v27  ;;  %27504 = vmatprep.mubr.msk.f32.mxu1 %vm4026_vm3, %v32736_v27  ;;  %v36741_v27 = vld [vmem:[#allocation17_spill] sm:$0xff] }
 0x432   : > { %26497 = vmatmul.mubr.msk.f32.gmra.mrb[52].mxu0 %vm4026_vm3, %v32742_v31  ;;  %27505 = vmatmul.mubr.msk.f32.gmra.mrb[20].mxu1 %vm4026_vm3, %v32742_v31  ;;  %v36742_v31 = vld [vmem:[#allocation18_spill] sm:$0xff] }
 0x433   : > { %26499 = vmatprep.mubr.msk.f32.mxu0 %vm4026_vm3, %v36722_v35  ;;  %27507 = vmatprep.mubr.msk.f32.mxu1 %vm4026_vm3, %v36722_v35 }
 0x436   : > { %26500 = vmatmul.mubr.msk.f32.gmra.mrb[54].mxu0 %vm4026_vm3, %v36723_v47  ;;  %27508 = vmatmul.mubr.msk.f32.gmra.mrb[22].mxu1 %vm4026_vm3, %v36723_v47  ;;  %v23187_v47 = vld [vmem:[%s36318_s7 + $0x100] sm:$0xff] }
 0x437   : > { %26502 = vmatprep.mubr.msk.f32.mxu0 %vm4026_vm3, %v36724_v48  ;;  %27510 = vmatprep.mubr.msk.f32.mxu1 %vm4026_vm3, %v36724_v48  ;;  %v23188_v48 = vld [vmem:[%s36318_s7 + $0x108] sm:$0xff] }
 0x43a   : > { %26503 = vmatmul.mubr.msk.f32.gmra.mrb[56].mxu0 %vm4026_vm3, %v36725_v53  ;;  %27511 = vmatmul.mubr.msk.f32.gmra.mrb[24].mxu1 %vm4026_vm3, %v36725_v53  ;;  %v6466_v53 = vld [vmem:[#allocation3 + $0x60] sm:$0xff] }
 0x43b   : > { %26505 = vmatprep.mubr.msk.f32.mxu0 %vm4026_vm3, %v36726_v56  ;;  %27513 = vmatprep.mubr.msk.f32.mxu1 %vm4026_vm3, %v36726_v56  ;;  %v33542_v56 = vpack.c.bf16 %v23188_v48, %v23187_v47  ;;  %v6874_v47 = vld [vmem:[#allocation3 + $0x139] sm:$0xff]  ;;  %v6875_v48 = vld [vmem:[#allocation3 + $0x141] sm:$0xff] }
 0x43e   : > { %26506 = vmatmul.mubr.msk.f32.gmra.mrb[58].mxu0 %vm4026_vm3, %v36727_v63  ;;  %27514 = vmatmul.mubr.msk.f32.gmra.mrb[26].mxu1 %vm4026_vm3, %v36727_v63  ;;  %v6467_v63 = vld [vmem:[#allocation3 + $0x68] sm:$0xff] }
 0x43f   : > { %26508 = vmatprep.mubr.msk.f32.mxu0 %vm4026_vm3, %v36728_v0  ;;  %27516 = vmatprep.mubr.msk.f32.mxu1 %vm4026_vm3, %v36728_v0  ;;  %v6468_v0 = vld [vmem:[#allocation3 + $0x78] sm:$0xff] }
 0x442   : > { %26509 = vmatmul.mubr.msk.f32.gmra.mrb[60].mxu0 %vm4026_vm3, %v36729_v13  ;;  %27517 = vmatmul.mubr.msk.f32.gmra.mrb[28].mxu1 %vm4026_vm3, %v36729_v13  ;;  %v6469_v13 = vld [vmem:[#allocation3 + $0x80] sm:$0xff] }
 0x443   : > { %26511 = vmatprep.mubr.msk.f32.mxu0 %vm4026_vm3, %v33328_v16  ;;  %27519 = vmatprep.mubr.msk.f32.mxu1 %vm4026_vm3, %v33328_v16 }
 0x446   : > { %26512 = vmatmul.mubr.msk.f32.gmra.mrb[62].mxu0 %vm4026_vm3, %v33334_v22  ;;  %27520 = vmatmul.mubr.msk.f32.gmra.mrb[30].mxu1 %vm4026_vm3, %v33334_v22 }
 0x447   : > { %26522 = vmatprep.mubr.msk.f32.mxu0 %vm4026_vm3, %v32812_v37  ;;  %27530 = vmatprep.mubr.msk.f32.mxu1 %vm4026_vm3, %v32812_v37  ;;  %v36743_v37 = vld [vmem:[#allocation19_spill] sm:$0xff] }
 0x44a   : > { %26523 = vmatmul.mubr.msk.f32.vlgmr.msra.gmra.mrb[32].mxu0 %vm4026_vm3, %v32825_v39  ;;  %27531 = vmatmul.mubr.msk.f32.vlgmr.msra.gmra.mrb[0].mxu1 %vm4026_vm3, %v32825_v39  ;;  %v36744_v39 = vld [vmem:[#allocation20_spill] sm:$0xff] }
 0x44b   : > { %28805 = vmatpush3.bf16.msra.mxu0 %v33208_v3  ;;  %26525 = vmatprep.mubr.msk.f32.mxu0 %vm4026_vm3, %v32840_v40  ;;  %v22545_v3 = vld [vmem:[%s36314_s3 + $0x100] sm:$0xff] }
 0x44c   : > { %27533 = vmatprep.mubr.msk.f32.mxu1 %vm4026_vm3, %v32840_v40  ;;  %28807 = vmatprep.subr.bf16.mxu0 %v28806_v24  ;;  %v36745_v40 = vld [vmem:[#allocation21_spill] sm:$0xff]  ;;  %v33530_v35 = vpack.c.bf16 %v22546_v29, %v22545_v3  ;;  %v6869_v3 = vld [vmem:[#allocation3 + $0xf9] sm:$0xff] }
 0x44d   : > { %28949 = vmatpush3.bf16.msra.mxu1 %v33224_v34  ;;  %v6465_v34 = vld [vmem:[#allocation3 + $0x50] sm:$0xff] }
 0x44e   : > { %26526 = vmatmul.mubr.msk.f32.gmra.mrb[34].mxu0 %vm4026_vm3, %v32848_v41  ;;  %27534 = vmatmul.mubr.msk.f32.gmra.mrb[2].mxu1 %vm4026_vm3, %v32848_v41  ;;  %v36747_v41 = vld [vmem:[#allocation23_spill] sm:$0xff]  ;;  %v6870_v29 = vld [vmem:[#allocation3 + $0x109] sm:$0xff] }
 0x44f   : > { %26528 = vmatprep.mubr.msk.f32.mxu0 %vm4026_vm3, %v36730_v57  ;;  %27536 = vmatprep.mubr.msk.f32.mxu1 %vm4026_vm3, %v36730_v57  ;;  %v6481_v57 = vld [vmem:[#allocation3 + $0x110] sm:$0xff] }
 0x450   : > { %28809 = vmatpush3.bf16.msra.mxu0 %v28806_v24  ;;  %28951 = vmatprep.subr.bf16.mxu1 %v28950_v49  ;;  %v6472_v24 = vld [vmem:[#allocation3 + $0xa8] sm:$0xff] }
 0x451   : > { %28953 = vmatpush3.bf16.msra.mxu1 %v28950_v49  ;;  %28811 = vmatprep.subr.bf16.mxu0 %v33372_v50  ;;  %v6477_v49 = vld [vmem:[#allocation3 + $0xe0] sm:$0xff] }
 0x452   : > { %26529 = vmatmul.mubr.msk.f32.gmra.mrb[36].mxu0 %vm4026_vm3, %v36731_v59  ;;  %27537 = vmatmul.mubr.msk.f32.gmra.mrb[4].mxu1 %vm4026_vm3, %v36731_v59  ;;  %v6483_v59 = vld [vmem:[#allocation3 + $0x128] sm:$0xff] }
 0x453   : > { %26531 = vmatprep.mubr.msk.f32.mxu0 %vm4026_vm3, %v36732_v62  ;;  %27539 = vmatprep.mubr.msk.f32.mxu1 %vm4026_vm3, %v36732_v62  ;;  %v6484_v62 = vld [vmem:[#allocation3 + $0x138] sm:$0xff] }
 0x454   : > { %28955 = vmatprep.subr.bf16.mxu1 %v33388_v58 }
 0x456   : > { %26532 = vmatmul.mubr.msk.f32.gmra.mrb[38].mxu0 %vm4026_vm3, %v36733_v2  ;;  %27540 = vmatmul.mubr.msk.f32.gmra.mrb[6].mxu1 %vm4026_vm3, %v36733_v2  ;;  %v6485_v2 = vld [vmem:[#allocation3 + $0x140] sm:$0xff] }
 0x457   : > { %26534 = vmatprep.mubr.msk.f32.mxu0 %vm4026_vm3, %v36734_v11  ;;  %27542 = vmatprep.mubr.msk.f32.mxu1 %vm4026_vm3, %v36734_v11  ;;  %v6486_v11 = vld [vmem:[#allocation3 + $0x150] sm:$0xff] }
 0x45a   : > { %26535 = vmatmul.mubr.msk.f32.gmra.mrb[40].mxu0 %vm4026_vm3, %v36735_v9  ;;  %27543 = vmatmul.mubr.msk.f32.gmra.mrb[8].mxu1 %vm4026_vm3, %v36735_v9  ;;  %v6487_v9 = vld [vmem:[#allocation3 + $0x158] sm:$0xff] }
 0x45b   : > { %26537 = vmatprep.mubr.msk.f32.mxu0 %vm4026_vm3, %v36736_v12  ;;  %27545 = vmatprep.mubr.msk.f32.mxu1 %vm4026_vm3, %v36736_v12  ;;  %v6488_v12 = vld [vmem:[#allocation3 + $0x168] sm:$0xff] }
 0x45e   : > { %26538 = vmatmul.mubr.msk.f32.gmra.mrb[42].mxu0 %vm4026_vm3, %v36737_v17  ;;  %27546 = vmatmul.mubr.msk.f32.gmra.mrb[10].mxu1 %vm4026_vm3, %v36737_v17  ;;  %v6489_v17 = vld [vmem:[#allocation3 + $0x170] sm:$0xff] }
 0x45f   : > { %26540 = vmatprep.mubr.msk.f32.mxu0 %vm4026_vm3, %v36738_v1  ;;  %27548 = vmatprep.mubr.msk.f32.mxu1 %vm4026_vm3, %v36738_v1  ;;  %v6492_v1 = vld [vmem:[#allocation3 + $0x198] sm:$0xff] }
 0x462   : > { %26541 = vmatmul.mubr.msk.f32.gmra.mrb[44].mxu0 %vm4026_vm3, %v36739_v18  ;;  %27549 = vmatmul.mubr.msk.f32.gmra.mrb[12].mxu1 %vm4026_vm3, %v36739_v18  ;;  %v6493_v18 = vld [vmem:[#allocation3 + $0x1a0] sm:$0xff] }
 0x463   : > { %26543 = vmatprep.mubr.msk.f32.mxu0 %vm4026_vm3, %v36740_v21  ;;  %27551 = vmatprep.mubr.msk.f32.mxu1 %vm4026_vm3, %v36740_v21  ;;  %v22547_v21 = vld [vmem:[%s36314_s3 + $0x110] sm:$0xff] }
 0x466   : > { %26544 = vmatmul.mubr.msk.f32.gmra.mrb[46].mxu0 %vm4026_vm3, %v36741_v27  ;;  %27552 = vmatmul.mubr.msk.f32.gmra.mrb[14].mxu1 %vm4026_vm3, %v36741_v27  ;;  %v6852_v27 = vld [vmem:[#allocation3 + $0x31] sm:$0xff] }
 0x467   : > { %26546 = vmatprep.mubr.msk.f32.mxu0 %vm4026_vm3, %v36742_v31  ;;  %27554 = vmatprep.mubr.msk.f32.mxu1 %vm4026_vm3, %v36742_v31  ;;  %v6853_v31 = vld [vmem:[#allocation3 + $0x39] sm:$0xff] }
 0x46a   : > { %26547 = vmatmul.mubr.msk.f32.gmra.mrb[48].mxu0 %vm4026_vm3, %v36743_v37  ;;  %27555 = vmatmul.mubr.msk.f32.gmra.mrb[16].mxu1 %vm4026_vm3, %v36743_v37  ;;  %v23189_v37 = vld [vmem:[%s36318_s7 + $0x110] sm:$0xff] }
 0x46b   : > { %26549 = vmatprep.mubr.msk.f32.mxu0 %vm4026_vm3, %v36744_v39  ;;  %27557 = vmatprep.mubr.msk.f32.mxu1 %vm4026_vm3, %v36744_v39  ;;  %v23190_v39 = vld [vmem:[%s36318_s7 + $0x118] sm:$0xff] }
 0x46e   : > { %26550 = vmatmul.mubr.msk.f32.gmra.mrb[50].mxu0 %vm4026_vm3, %v36745_v40  ;;  %27558 = vmatmul.mubr.msk.f32.gmra.mrb[18].mxu1 %vm4026_vm3, %v36745_v40  ;;  %v6854_v40 = vld [vmem:[#allocation3 + $0x49] sm:$0xff] }
 0x46f   : > { %26552 = vmatprep.mubr.msk.f32.mxu0 %vm4026_vm3, %v36746_v36  ;;  %27560 = vmatprep.mubr.msk.f32.mxu1 %vm4026_vm3, %v36746_v36  ;;  %v7758_v36 = vld [vmem:[%s36316_s5] sm:$0xff] }
 0x472   : > { %26553 = vmatmul.mubr.msk.f32.gmra.mrb[52].mxu0 %vm4026_vm3, %v36747_v41  ;;  %27561 = vmatmul.mubr.msk.f32.gmra.mrb[20].mxu1 %vm4026_vm3, %v36747_v41  ;;  %v7759_v41 = vld [vmem:[%s36316_s5 + $0x8] sm:$0xff] }
 0x473   : > { %26555 = vmatprep.mubr.msk.f32.mxu0 %vm4026_vm3, %v36748_v42  ;;  %27563 = vmatprep.mubr.msk.f32.mxu1 %vm4026_vm3, %v36748_v42  ;;  %v28966_v42 = vpack.c.bf16 %v23190_v39, %v23189_v37  ;;  %v7267_v37 = vld [vmem:[#allocation3 + $0x15a] sm:$0xff]  ;;  %v7268_v39 = vld [vmem:[#allocation3 + $0x16a] sm:$0xff] }
 0x476   : > { %26556 = vmatmul.mubr.msk.f32.gmra.mrb[54].mxu0 %vm4026_vm3, %v36749_v6  ;;  %27564 = vmatmul.mubr.msk.f32.gmra.mrb[22].mxu1 %vm4026_vm3, %v36749_v6  ;;  %v6855_v6 = vld [vmem:[#allocation3 + $0x51] sm:$0xff] }
 0x477   : > { %26558 = vmatprep.mubr.msk.f32.mxu0 %vm4026_vm3, %v36750_v5  ;;  %27566 = vmatprep.mubr.msk.f32.mxu1 %vm4026_vm3, %v36750_v5  ;;  %v33630_v5 = vpack.c.bf16 %v7759_v41, %v7758_v36  ;;  %v7272_v36 = vld [vmem:[#allocation3 + $0x19a] sm:$0xff]  ;;  %v7273_v41 = vld [vmem:[#allocation3 + $0x1a2] sm:$0xff] }
 0x47a   : > { %26559 = vmatmul.mubr.msk.f32.gmra.mrb[56].mxu0 %vm4026_vm3, %v36751_v43  ;;  %27567 = vmatmul.mubr.msk.f32.gmra.mrb[24].mxu1 %vm4026_vm3, %v36751_v43  ;;  %v6856_v43 = vld [vmem:[#allocation3 + $0x61] sm:$0xff] }
 0x47b   : > { %26561 = vmatprep.mubr.msk.f32.mxu0 %vm4026_vm3, %v36752_v54  ;;  %27569 = vmatprep.mubr.msk.f32.mxu1 %vm4026_vm3, %v36752_v54  ;;  %v6857_v54 = vld [vmem:[#allocation3 + $0x69] sm:$0xff] }
 0x47e   : > { %26562 = vmatmul.mubr.msk.f32.gmra.mrb[58].mxu0 %vm4026_vm3, %v36753_v32  ;;  %27570 = vmatmul.mubr.msk.f32.gmra.mrb[26].mxu1 %vm4026_vm3, %v36753_v32  ;;  %v6858_v32 = vld [vmem:[#allocation3 + $0x79] sm:$0xff] }
 0x47f   : > { %26564 = vmatprep.mubr.msk.f32.mxu0 %vm4026_vm3, %v36754_v55  ;;  %27572 = vmatprep.mubr.msk.f32.mxu1 %vm4026_vm3, %v36754_v55  ;;  %v6859_v55 = vld [vmem:[#allocation3 + $0x81] sm:$0xff] }
 0x482   : > { %26565 = vmatmul.mubr.msk.f32.gmra.mrb[60].mxu0 %vm4026_vm3, %v36755_v4  ;;  %27573 = vmatmul.mubr.msk.f32.gmra.mrb[28].mxu1 %vm4026_vm3, %v36755_v4  ;;  %v6860_v4 = vld [vmem:[#allocation3 + $0x91] sm:$0xff] }
 0x483   : > { %26567 = vmatprep.mubr.msk.f32.mxu0 %vm4026_vm3, %v33492_v44  ;;  %27575 = vmatprep.mubr.msk.f32.mxu1 %vm4026_vm3, %v33492_v44 }
 0x486   : > { %26568 = vmatmul.mubr.msk.f32.gmra.mrb[62].mxu0 %vm4026_vm3, %v33498_v60  ;;  %27576 = vmatmul.mubr.msk.f32.gmra.mrb[30].mxu1 %vm4026_vm3, %v33498_v60 }
 0x487   : > { %26578 = vmatprep.mubr.msk.f32.mxu0 %vm4026_vm3, %v6462_v15  ;;  %27586 = vmatprep.mubr.msk.f32.mxu1 %vm4026_vm3, %v6462_v15  ;;  %v6863_v15 = vld [vmem:[#allocation3 + $0xb1] sm:$0xff] }
 0x48a   : > { %26579 = vmatmul.mubr.msk.f32.vlgmr.msra.gmra.mrb[32].mxu0 %vm4026_vm3, %v6463_v20  ;;  %27587 = vmatmul.mubr.msk.f32.vlgmr.msra.gmra.mrb[0].mxu1 %vm4026_vm3, %v6463_v20  ;;  %v6865_v20 = vld [vmem:[#allocation3 + $0xc9] sm:$0xff] }
 0x48b   : > { %28813 = vmatpush3.bf16.msra.mxu0 %v33372_v50  ;;  %26581 = vmatprep.mubr.msk.f32.mxu0 %vm4026_vm3, %v6464_v38  ;;  %v6478_v50 = vld [vmem:[#allocation3 + $0xf0] sm:$0xff] }
 0x48c   : > { %27589 = vmatprep.mubr.msk.f32.mxu1 %vm4026_vm3, %v6464_v38  ;;  %28815 = vmatprep.subr.bf16.mxu0 %v28814_v19  ;;  %v6868_v38 = vld [vmem:[#allocation3 + $0xf1] sm:$0xff] }
 0x48d   : > { %28957 = vmatpush3.bf16.msra.mxu1 %v33388_v58  ;;  %v6482_v58 = vld [vmem:[#allocation3 + $0x120] sm:$0xff] }
 0x48e   : > { %26582 = vmatmul.mubr.msk.f32.gmra.mrb[34].mxu0 %vm4026_vm3, %v6465_v34  ;;  %27590 = vmatmul.mubr.msk.f32.gmra.mrb[2].mxu1 %vm4026_vm3, %v6465_v34  ;;  %v6872_v34 = vld [vmem:[#allocation3 + $0x121] sm:$0xff] }
 0x48f   : > { %26584 = vmatprep.mubr.msk.f32.mxu0 %vm4026_vm3, %v6466_v53  ;;  %27592 = vmatprep.mubr.msk.f32.mxu1 %vm4026_vm3, %v6466_v53  ;;  %v6876_v53 = vld [vmem:[#allocation3 + $0x151] sm:$0xff] }
 0x490   : > { %28817 = vmatpush3.bf16.msra.mxu0 %v28814_v19  ;;  %28959 = vmatprep.subr.bf16.mxu1 %v28958_v7  ;;  %v6864_v19 = vld [vmem:[#allocation3 + $0xc1] sm:$0xff] }
 0x491   : > { %28961 = vmatpush3.bf16.msra.mxu1 %v28958_v7  ;;  %28819 = vmatprep.subr.bf16.mxu0 %v33530_v35  ;;  %v6871_v7 = vld [vmem:[#allocation3 + $0x111] sm:$0xff] }
 0x492   : > { %26585 = vmatmul.mubr.msk.f32.gmra.mrb[36].mxu0 %vm4026_vm3, %v6467_v63  ;;  %27593 = vmatmul.mubr.msk.f32.gmra.mrb[4].mxu1 %vm4026_vm3, %v6467_v63  ;;  %v6878_v63 = vld [vmem:[#allocation3 + $0x169] sm:$0xff] }
 0x493   : > { %26587 = vmatprep.mubr.msk.f32.mxu0 %vm4026_vm3, %v6468_v0  ;;  %27595 = vmatprep.mubr.msk.f32.mxu1 %vm4026_vm3, %v6468_v0  ;;  %v6879_v0 = vld [vmem:[#allocation3 + $0x171] sm:$0xff] }
 0x494   : > { %28963 = vmatprep.subr.bf16.mxu1 %v33542_v56 }
 0x496   : > { %26588 = vmatmul.mubr.msk.f32.gmra.mrb[38].mxu0 %vm4026_vm3, %v6469_v13  ;;  %27596 = vmatmul.mubr.msk.f32.gmra.mrb[6].mxu1 %vm4026_vm3, %v6469_v13  ;;  %v6882_v13 = vld [vmem:[#allocation3 + $0x199] sm:$0xff] }
 0x497   : > { %26590 = vmatprep.mubr.msk.f32.mxu0 %vm4026_vm3, %v6470_v23  ;;  %27598 = vmatprep.mubr.msk.f32.mxu1 %vm4026_vm3, %v6470_v23  ;;  %v6883_v23 = vld [vmem:[#allocation3 + $0x1a1] sm:$0xff] }
 0x49a   : > { %26591 = vmatmul.mubr.msk.f32.gmra.mrb[40].mxu0 %vm4026_vm3, %v6471_v30  ;;  %27599 = vmatmul.mubr.msk.f32.gmra.mrb[8].mxu1 %vm4026_vm3, %v6471_v30  ;;  %v7242_v30 = vld [vmem:[#allocation3 + $0x32] sm:$0xff] }
 0x49b   : > { %26593 = vmatprep.mubr.msk.f32.mxu0 %vm4026_vm3, %v6472_v24  ;;  %27601 = vmatprep.mubr.msk.f32.mxu1 %vm4026_vm3, %v6472_v24  ;;  %v7761_v24 = vld [vmem:[%s36316_s5 + $0x18] sm:$0xff] }
 0x49e   : > { %26594 = vmatmul.mubr.msk.f32.gmra.mrb[42].mxu0 %vm4026_vm3, %v6473_v28  ;;  %27602 = vmatmul.mubr.msk.f32.gmra.mrb[10].mxu1 %vm4026_vm3, %v6473_v28 }
 0x49f   : > { %26596 = vmatprep.mubr.msk.f32.mxu0 %vm4026_vm3, %v6474_v33  ;;  %27604 = vmatprep.mubr.msk.f32.mxu1 %vm4026_vm3, %v6474_v33  ;;  %v7244_v33 = vld [vmem:[#allocation3 + $0x4a] sm:$0xff] }
 0x4a2   : > { %26597 = vmatmul.mubr.msk.f32.gmra.mrb[44].mxu0 %vm4026_vm3, %v6475_v45  ;;  %27605 = vmatmul.mubr.msk.f32.gmra.mrb[12].mxu1 %vm4026_vm3, %v6475_v45  ;;  %v7245_v45 = vld [vmem:[#allocation3 + $0x52] sm:$0xff] }
 0x4a3   : > { %26599 = vmatprep.mubr.msk.f32.mxu0 %vm4026_vm3, %v6476_v46  ;;  %27607 = vmatprep.mubr.msk.f32.mxu1 %vm4026_vm3, %v6476_v46  ;;  %v7246_v46 = vld [vmem:[#allocation3 + $0x62] sm:$0xff] }
 0x4a6   : > { %26600 = vmatmul.mubr.msk.f32.gmra.mrb[46].mxu0 %vm4026_vm3, %v6477_v49  ;;  %27608 = vmatmul.mubr.msk.f32.gmra.mrb[14].mxu1 %vm4026_vm3, %v6477_v49  ;;  %v7247_v49 = vld [vmem:[#allocation3 + $0x6a] sm:$0xff] }
 0x4a7   : > { %26602 = vmatprep.mubr.msk.f32.mxu0 %vm4026_vm3, %v6478_v50  ;;  %27610 = vmatprep.mubr.msk.f32.mxu1 %vm4026_vm3, %v6478_v50  ;;  %v7248_v50 = vld [vmem:[#allocation3 + $0x7a] sm:$0xff] }
 0x4aa   : > { %26603 = vmatmul.mubr.msk.f32.gmra.mrb[48].mxu0 %vm4026_vm3, %v6479_v51  ;;  %27611 = vmatmul.mubr.msk.f32.gmra.mrb[16].mxu1 %vm4026_vm3, %v6479_v51  ;;  %v7249_v51 = vld [vmem:[#allocation3 + $0x82] sm:$0xff] }
 0x4ab   : > { %26605 = vmatprep.mubr.msk.f32.mxu0 %vm4026_vm3, %v6480_v52  ;;  %27613 = vmatprep.mubr.msk.f32.mxu1 %vm4026_vm3, %v6480_v52  ;;  %v7250_v52 = vld [vmem:[#allocation3 + $0x92] sm:$0xff] }
 0x4ae   : > { %26606 = vmatmul.mubr.msk.f32.gmra.mrb[50].mxu0 %vm4026_vm3, %v6481_v57  ;;  %27614 = vmatmul.mubr.msk.f32.gmra.mrb[18].mxu1 %vm4026_vm3, %v6481_v57  ;;  %v7251_v57 = vld [vmem:[#allocation3 + $0x9a] sm:$0xff] }
 0x4af   : > { %26608 = vmatprep.mubr.msk.f32.mxu0 %vm4026_vm3, %v6482_v58  ;;  %27616 = vmatprep.mubr.msk.f32.mxu1 %vm4026_vm3, %v6482_v58  ;;  %v7252_v58 = vld [vmem:[#allocation3 + $0xaa] sm:$0xff] }
 0x4b2   : > { %26609 = vmatmul.mubr.msk.f32.gmra.mrb[52].mxu0 %vm4026_vm3, %v6483_v59  ;;  %27617 = vmatmul.mubr.msk.f32.gmra.mrb[20].mxu1 %vm4026_vm3, %v6483_v59  ;;  %v7253_v59 = vld [vmem:[#allocation3 + $0xb2] sm:$0xff] }
 0x4b3   : > { %26611 = vmatprep.mubr.msk.f32.mxu0 %vm4026_vm3, %v6484_v62  ;;  %27619 = vmatprep.mubr.msk.f32.mxu1 %vm4026_vm3, %v6484_v62  ;;  %v7254_v62 = vld [vmem:[#allocation3 + $0xc2] sm:$0xff] }
 0x4b6   : > { %26612 = vmatmul.mubr.msk.f32.gmra.mrb[54].mxu0 %vm4026_vm3, %v6485_v2  ;;  %27620 = vmatmul.mubr.msk.f32.gmra.mrb[22].mxu1 %vm4026_vm3, %v6485_v2  ;;  %v7255_v2 = vld [vmem:[#allocation3 + $0xca] sm:$0xff] }
 0x4b7   : > { %26614 = vmatprep.mubr.msk.f32.mxu0 %vm4026_vm3, %v6486_v11  ;;  %27622 = vmatprep.mubr.msk.f32.mxu1 %vm4026_vm3, %v6486_v11  ;;  %v7256_v11 = vld [vmem:[#allocation3 + $0xda] sm:$0xff] }
 0x4ba   : > { %26615 = vmatmul.mubr.msk.f32.gmra.mrb[56].mxu0 %vm4026_vm3, %v6487_v9  ;;  %27623 = vmatmul.mubr.msk.f32.gmra.mrb[24].mxu1 %vm4026_vm3, %v6487_v9  ;;  %v7257_v9 = vld [vmem:[#allocation3 + $0xe2] sm:$0xff] }
 0x4bb   : > { %26617 = vmatprep.mubr.msk.f32.mxu0 %vm4026_vm3, %v6488_v12  ;;  %27625 = vmatprep.mubr.msk.f32.mxu1 %vm4026_vm3, %v6488_v12  ;;  %v7258_v12 = vld [vmem:[#allocation3 + $0xf2] sm:$0xff] }
 0x4be   : > { %26618 = vmatmul.mubr.msk.f32.gmra.mrb[58].mxu0 %vm4026_vm3, %v6489_v17  ;;  %27626 = vmatmul.mubr.msk.f32.gmra.mrb[26].mxu1 %vm4026_vm3, %v6489_v17  ;;  %v7259_v17 = vld [vmem:[#allocation3 + $0xfa] sm:$0xff] }
 0x4bf   : > { %26620 = vmatprep.mubr.msk.f32.mxu0 %vm4026_vm3, %v33164_v61  ;;  %27628 = vmatprep.mubr.msk.f32.mxu1 %vm4026_vm3, %v33164_v61  ;;  %v22548_v61 = vld [vmem:[%s36314_s3 + $0x118] sm:$0xff] }
 0x4c2   : > { %26621 = vmatmul.mubr.msk.f32.gmra.mrb[60].mxu0 %vm4026_vm3, %v33170_v8  ;;  %27629 = vmatmul.mubr.msk.f32.gmra.mrb[28].mxu1 %vm4026_vm3, %v33170_v8  ;;  %v28822_v8 = vpack.c.bf16 %v22548_v61, %v22547_v21  ;;  %v7262_v21 = vld [vmem:[#allocation3 + $0x122] sm:$0xff]  ;;  %v7263_v61 = vld [vmem:[#allocation3 + $0x12a] sm:$0xff] }
 0x4c3   : > { %26623 = vmatprep.mubr.msk.f32.mxu0 %vm4026_vm3, %v6492_v1  ;;  %27631 = vmatprep.mubr.msk.f32.mxu1 %vm4026_vm3, %v6492_v1  ;;  %v7260_v1 = vld [vmem:[#allocation3 + $0x10a] sm:$0xff] }
 0x4c6   : > { %26624 = vmatmul.mubr.msk.f32.gmra.mrb[62].mxu0 %vm4026_vm3, %v6493_v18  ;;  %27632 = vmatmul.mubr.msk.f32.gmra.mrb[30].mxu1 %vm4026_vm3, %v6493_v18  ;;  %v7261_v18 = vld [vmem:[#allocation3 + $0x112] sm:$0xff] }
 0x4c7   : > { %26634 = vmatprep.mubr.msk.f32.mxu0 %vm4026_vm3, %v6852_v27  ;;  %27642 = vmatprep.mubr.msk.f32.mxu1 %vm4026_vm3, %v6852_v27  ;;  %v7264_v27 = vld [vmem:[#allocation3 + $0x13a] sm:$0xff] }
 0x4ca   : > { %26635 = vmatmul.mubr.msk.f32.vlgmr.msra.gmra.mrb[32].mxu0 %vm4026_vm3, %v6853_v31  ;;  %27643 = vmatmul.mubr.msk.f32.vlgmr.msra.gmra.mrb[0].mxu1 %vm4026_vm3, %v6853_v31  ;;  %v7266_v31 = vld [vmem:[#allocation3 + $0x152] sm:$0xff] }
 0x4cb   : > { %28821 = vmatpush3.bf16.msra.mxu0 %v33530_v35  ;;  %26637 = vmatprep.mubr.msk.f32.mxu0 %vm4026_vm3, %v6854_v40  ;;  %v6873_v35 = vld [vmem:[#allocation3 + $0x129] sm:$0xff] }
 0x4cc   : > { %27645 = vmatprep.mubr.msk.f32.mxu1 %vm4026_vm3, %v6854_v40  ;;  %28823 = vmatprep.subr.bf16.mxu0 %v28822_v8  ;;  %v7269_v40 = vld [vmem:[#allocation3 + $0x172] sm:$0xff] }
 0x4cd   : > { %28965 = vmatpush3.bf16.msra.mxu1 %v33542_v56  ;;  %v6877_v56 = vld [vmem:[#allocation3 + $0x159] sm:$0xff] }
 0x4ce   : > { %26638 = vmatmul.mubr.msk.f32.gmra.mrb[34].mxu0 %vm4026_vm3, %v6855_v6  ;;  %27646 = vmatmul.mubr.msk.f32.gmra.mrb[2].mxu1 %vm4026_vm3, %v6855_v6 }
 0x4cf   : > { %26640 = vmatprep.mubr.msk.f32.mxu0 %vm4026_vm3, %v6856_v43  ;;  %27648 = vmatprep.mubr.msk.f32.mxu1 %vm4026_vm3, %v6856_v43 }
 0x4d0   : > { %28825 = vmatpush3.bf16.msra.mxu0 %v28822_v8  ;;  %28967 = vmatprep.subr.bf16.mxu1 %v28966_v42  ;;  %v7265_v8 = vld [vmem:[#allocation3 + $0x142] sm:$0xff] }
 0x4d1   : > { %28969 = vmatpush3.bf16.msra.mxu1 %v28966_v42  ;;  %28827 = vmatprep.subr.bf16.mxu0 %v33630_v5  ;;  %v14872_v42 = vld [vmem:[%s36319_s8 + $0x8] sm:$0xff] }
 0x4d2   : > { %26641 = vmatmul.mubr.msk.f32.gmra.mrb[36].mxu0 %vm4026_vm3, %v6857_v54  ;;  %27649 = vmatmul.mubr.msk.f32.gmra.mrb[4].mxu1 %vm4026_vm3, %v6857_v54  ;;  %v7726_v54 = vld [vmem:[#allocation4] sm:$0xff] }
 0x4d3   : > { %26643 = vmatprep.mubr.msk.f32.mxu0 %vm4026_vm3, %v6858_v32  ;;  %27651 = vmatprep.mubr.msk.f32.mxu1 %vm4026_vm3, %v6858_v32  ;;  %v22614_v32 = vld [vmem:[%s36316_s5 + $0x20] sm:$0xff] }
 0x4d6   : > { %26644 = vmatmul.mubr.msk.f32.gmra.mrb[38].mxu0 %vm4026_vm3, %v6859_v55  ;;  %27652 = vmatmul.mubr.msk.f32.gmra.mrb[6].mxu1 %vm4026_vm3, %v6859_v55  ;;  %v22615_v55 = vld [vmem:[%s36316_s5 + $0x28] sm:$0xff] }
 0x4d7   : > { %26646 = vmatprep.mubr.msk.f32.mxu0 %vm4026_vm3, %v6860_v4  ;;  %27654 = vmatprep.mubr.msk.f32.mxu1 %vm4026_vm3, %v6860_v4  ;;  %v28834_v4 = vpack.c.bf16 %v22615_v55, %v22614_v32 }
 0x4da   : > { %26647 = vmatmul.mubr.msk.f32.gmra.mrb[40].mxu0 %vm4026_vm3, %v6861_v10  ;;  %27655 = vmatmul.mubr.msk.f32.gmra.mrb[8].mxu1 %vm4026_vm3, %v6861_v10  ;;  %v7727_v10 = vld [vmem:[#allocation4 + $0x8] sm:$0xff] }
 0x4db   : > { %26649 = vmatprep.mubr.msk.f32.mxu0 %vm4026_vm3, %v6862_v14  ;;  %27657 = vmatprep.mubr.msk.f32.mxu1 %vm4026_vm3, %v6862_v14  ;;  %v22616_v14 = vld [vmem:[%s36316_s5 + $0x30] sm:$0xff] }
 0x4de   : > { %26650 = vmatmul.mubr.msk.f32.gmra.mrb[42].mxu0 %vm4026_vm3, %v6863_v15  ;;  %27658 = vmatmul.mubr.msk.f32.gmra.mrb[10].mxu1 %vm4026_vm3, %v6863_v15  ;;  %v22617_v15 = vld [vmem:[%s36316_s5 + $0x38] sm:$0xff] }
 0x4df   : > { %26652 = vmatprep.mubr.msk.f32.mxu0 %vm4026_vm3, %v6864_v19  ;;  %27660 = vmatprep.mubr.msk.f32.mxu1 %vm4026_vm3, %v6864_v19  ;;  %v28838_v19 = vpack.c.bf16 %v22617_v15, %v22616_v14 }
 0x4e2   : > { %26653 = vmatmul.mubr.msk.f32.gmra.mrb[44].mxu0 %vm4026_vm3, %v6865_v20  ;;  %27661 = vmatmul.mubr.msk.f32.gmra.mrb[12].mxu1 %vm4026_vm3, %v6865_v20  ;;  %v23255_v20 = vld [vmem:[%s36319_s8 + $0x20] sm:$0xff] }
 0x4e3   : > { %26655 = vmatprep.mubr.msk.f32.mxu0 %vm4026_vm3, %v6866_v25  ;;  %27663 = vmatprep.mubr.msk.f32.mxu1 %vm4026_vm3, %v6866_v25  ;;  %v23256_v25 = vld [vmem:[%s36319_s8 + $0x28] sm:$0xff] }
 0x4e6   : > { %26656 = vmatmul.mubr.msk.f32.gmra.mrb[46].mxu0 %vm4026_vm3, %v6867_v26  ;;  %27664 = vmatmul.mubr.msk.f32.gmra.mrb[14].mxu1 %vm4026_vm3, %v6867_v26  ;;  %v28978_v26 = vpack.c.bf16 %v23256_v25, %v23255_v20 }
 0x4e7   : > { %26658 = vmatprep.mubr.msk.f32.mxu0 %vm4026_vm3, %v6868_v38  ;;  %27666 = vmatprep.mubr.msk.f32.mxu1 %vm4026_vm3, %v6868_v38  ;;  %v23257_v38 = vld [vmem:[%s36319_s8 + $0x30] sm:$0xff] }
 0x4ea   : > { %26659 = vmatmul.mubr.msk.f32.gmra.mrb[48].mxu0 %vm4026_vm3, %v6869_v3  ;;  %27667 = vmatmul.mubr.msk.f32.gmra.mrb[16].mxu1 %vm4026_vm3, %v6869_v3  ;;  %v23258_v3 = vld [vmem:[%s36319_s8 + $0x38] sm:$0xff] }
 0x4eb   : > { %26661 = vmatprep.mubr.msk.f32.mxu0 %vm4026_vm3, %v6870_v29  ;;  %27669 = vmatprep.mubr.msk.f32.mxu1 %vm4026_vm3, %v6870_v29  ;;  %v28982_v29 = vpack.c.bf16 %v23258_v3, %v23257_v38 }
 0x4ee   : > { %26662 = vmatmul.mubr.msk.f32.gmra.mrb[50].mxu0 %vm4026_vm3, %v6871_v7  ;;  %27670 = vmatmul.mubr.msk.f32.gmra.mrb[18].mxu1 %vm4026_vm3, %v6871_v7  ;;  %v22650_v7 = vld [vmem:[%s36316_s5 + $0x40] sm:$0xff] }
 0x4ef   : > { %26664 = vmatprep.mubr.msk.f32.mxu0 %vm4026_vm3, %v6872_v34  ;;  %27672 = vmatprep.mubr.msk.f32.mxu1 %vm4026_vm3, %v6872_v34  ;;  %v22651_v34 = vld [vmem:[%s36316_s5 + $0x48] sm:$0xff] }
 0x4f2   : > { %26665 = vmatmul.mubr.msk.f32.gmra.mrb[52].mxu0 %vm4026_vm3, %v6873_v35  ;;  %27673 = vmatmul.mubr.msk.f32.gmra.mrb[20].mxu1 %vm4026_vm3, %v6873_v35  ;;  %v33816_v35 = vpack.c.bf16 %v22651_v34, %v22650_v7 }
 0x4f3   : > { %26667 = vmatprep.mubr.msk.f32.mxu0 %vm4026_vm3, %v6874_v47  ;;  %27675 = vmatprep.mubr.msk.f32.mxu1 %vm4026_vm3, %v6874_v47  ;;  %v33822_v47 = vld [vmem:[%s36315_s4] ss:$0 sm:$0xff] }
 0x4f6   : > { %26668 = vmatmul.mubr.msk.f32.gmra.mrb[54].mxu0 %vm4026_vm3, %v6875_v48  ;;  %27676 = vmatmul.mubr.msk.f32.gmra.mrb[22].mxu1 %vm4026_vm3, %v6875_v48 }
 0x4f7   : > { %26670 = vmatprep.mubr.msk.f32.mxu0 %vm4026_vm3, %v6876_v53  ;;  %27678 = vmatprep.mubr.msk.f32.mxu1 %vm4026_vm3, %v6876_v53 }
 0x4fa   : > { %26671 = vmatmul.mubr.msk.f32.gmra.mrb[56].mxu0 %vm4026_vm3, %v6877_v56  ;;  %27679 = vmatmul.mubr.msk.f32.gmra.mrb[24].mxu1 %vm4026_vm3, %v6877_v56 }
 0x4fb   : > { %26673 = vmatprep.mubr.msk.f32.mxu0 %vm4026_vm3, %v6878_v63  ;;  %27681 = vmatprep.mubr.msk.f32.mxu1 %vm4026_vm3, %v6878_v63  ;;  %v23291_v63 = vld [vmem:[%s36319_s8 + $0x40] sm:$0xff] }
 0x4fe   : > { %26674 = vmatmul.mubr.msk.f32.gmra.mrb[58].mxu0 %vm4026_vm3, %v6879_v0  ;;  %27682 = vmatmul.mubr.msk.f32.gmra.mrb[26].mxu1 %vm4026_vm3, %v6879_v0  ;;  %v23292_v0 = vld [vmem:[%s36319_s8 + $0x48] sm:$0xff] }
 0x4ff   : > { %26676 = vmatprep.mubr.msk.f32.mxu0 %vm4026_vm3, %v33328_v16  ;;  %27684 = vmatprep.mubr.msk.f32.mxu1 %vm4026_vm3, %v33328_v16  ;;  %v7760_v16 = vld [vmem:[%s36316_s5 + $0x10] sm:$0xff] }
 0x500   : > { %v28830_v28 = vpack.c.bf16 %v7761_v24, %v7760_v16 }
 0x502   : > { %26677 = vmatmul.mubr.msk.f32.gmra.mrb[60].mxu0 %vm4026_vm3, %v33334_v22  ;;  %27685 = vmatmul.mubr.msk.f32.gmra.mrb[28].mxu1 %vm4026_vm3, %v33334_v22  ;;  %v7243_v22 = vld [vmem:[#allocation3 + $0x3a] sm:$0xff] }
 0x503   : > { %26679 = vmatprep.mubr.msk.f32.mxu0 %vm4026_vm3, %v6882_v13  ;;  %27687 = vmatprep.mubr.msk.f32.mxu1 %vm4026_vm3, %v6882_v13 }
 0x506   : > { %26680 = vmatmul.mubr.msk.f32.gmra.mrb[62].mxu0 %vm4026_vm3, %v6883_v23  ;;  %27688 = vmatmul.mubr.msk.f32.gmra.mrb[30].mxu1 %vm4026_vm3, %v6883_v23  ;;  %v33832_v23 = vpack.c.bf16 %v23292_v0, %v23291_v63 }
 0x507   : > { %26690 = vmatprep.mubr.msk.f32.mxu0 %vm4026_vm3, %v7242_v30  ;;  %27698 = vmatprep.mubr.msk.f32.mxu1 %vm4026_vm3, %v7242_v30 }
 0x50a   : > { %26691 = vmatmul.mubr.msk.f32.vlgmr.msra.gmra.mrb[32].mxu0 %vm4026_vm3, %v7243_v22  ;;  %27699 = vmatmul.mubr.msk.f32.vlgmr.msra.gmra.mrb[0].mxu1 %vm4026_vm3, %v7243_v22 }
 0x50b   : > { %26693 = vmatprep.mubr.msk.f32.mxu0 %vm4026_vm3, %v7244_v33  ;;  %27701 = vmatprep.mubr.msk.f32.mxu1 %vm4026_vm3, %v7244_v33 }
 0x50c   : > { %28829 = vmatpush3.bf16.msra.mxu0 %v33630_v5  ;;  %v14874_v5 = vld [vmem:[%s36319_s8 + $0x18] sm:$0xff] }
 0x50d   : > { %28831 = vmatprep.subr.bf16.mxu0 %v28830_v28 }
 0x50e   : > { %26694 = vmatmul.mubr.msk.f32.gmra.mrb[34].mxu0 %vm4026_vm3, %v7245_v45  ;;  %27702 = vmatmul.mubr.msk.f32.gmra.mrb[2].mxu1 %vm4026_vm3, %v7245_v45 }
 0x50f   : > { %26696 = vmatprep.mubr.msk.f32.mxu0 %vm4026_vm3, %v7246_v46  ;;  %27704 = vmatprep.mubr.msk.f32.mxu1 %vm4026_vm3, %v7246_v46 }
 0x510   : > { %28833 = vmatpush3.bf16.msra.mxu0 %v28830_v28 }
 0x511   : > { %28835 = vmatprep.subr.bf16.mxu0 %v28834_v4 }
 0x512   : > { %26697 = vmatmul.mubr.msk.f32.gmra.mrb[36].mxu0 %vm4026_vm3, %v7247_v49  ;;  %27705 = vmatmul.mubr.msk.f32.gmra.mrb[4].mxu1 %vm4026_vm3, %v7247_v49 }
 0x513   : > { %26699 = vmatprep.mubr.msk.f32.mxu0 %vm4026_vm3, %v7248_v50  ;;  %27707 = vmatprep.mubr.msk.f32.mxu1 %vm4026_vm3, %v7248_v50 }
 0x516   : > { %26700 = vmatmul.mubr.msk.f32.gmra.mrb[38].mxu0 %vm4026_vm3, %v7249_v51  ;;  %27708 = vmatmul.mubr.msk.f32.gmra.mrb[6].mxu1 %vm4026_vm3, %v7249_v51 }
 0x517   : > { %26702 = vmatprep.mubr.msk.f32.mxu0 %vm4026_vm3, %v7250_v52  ;;  %27710 = vmatprep.mubr.msk.f32.mxu1 %vm4026_vm3, %v7250_v52 }
 0x51a   : > { %26703 = vmatmul.mubr.msk.f32.gmra.mrb[40].mxu0 %vm4026_vm3, %v7251_v57  ;;  %27711 = vmatmul.mubr.msk.f32.gmra.mrb[8].mxu1 %vm4026_vm3, %v7251_v57 }
 0x51b   : > { %26705 = vmatprep.mubr.msk.f32.mxu0 %vm4026_vm3, %v7252_v58  ;;  %27713 = vmatprep.mubr.msk.f32.mxu1 %vm4026_vm3, %v7252_v58 }
 0x51e   : > { %26706 = vmatmul.mubr.msk.f32.gmra.mrb[42].mxu0 %vm4026_vm3, %v7253_v59  ;;  %27714 = vmatmul.mubr.msk.f32.gmra.mrb[10].mxu1 %vm4026_vm3, %v7253_v59 }
 0x51f   : > { %26708 = vmatprep.mubr.msk.f32.mxu0 %vm4026_vm3, %v7254_v62  ;;  %27716 = vmatprep.mubr.msk.f32.mxu1 %vm4026_vm3, %v7254_v62 }
 0x522   : > { %26709 = vmatmul.mubr.msk.f32.gmra.mrb[44].mxu0 %vm4026_vm3, %v7255_v2  ;;  %27717 = vmatmul.mubr.msk.f32.gmra.mrb[12].mxu1 %vm4026_vm3, %v7255_v2 }
 0x523   : > { %26711 = vmatprep.mubr.msk.f32.mxu0 %vm4026_vm3, %v7256_v11  ;;  %27719 = vmatprep.mubr.msk.f32.mxu1 %vm4026_vm3, %v7256_v11 }
 0x526   : > { %26712 = vmatmul.mubr.msk.f32.gmra.mrb[46].mxu0 %vm4026_vm3, %v7257_v9  ;;  %27720 = vmatmul.mubr.msk.f32.gmra.mrb[14].mxu1 %vm4026_vm3, %v7257_v9 }
 0x527   : > { %26714 = vmatprep.mubr.msk.f32.mxu0 %vm4026_vm3, %v7258_v12  ;;  %27722 = vmatprep.mubr.msk.f32.mxu1 %vm4026_vm3, %v7258_v12 }
 0x52a   : > { %26715 = vmatmul.mubr.msk.f32.gmra.mrb[48].mxu0 %vm4026_vm3, %v7259_v17  ;;  %27723 = vmatmul.mubr.msk.f32.gmra.mrb[16].mxu1 %vm4026_vm3, %v7259_v17 }
 0x52b   : > { %26717 = vmatprep.mubr.msk.f32.mxu0 %vm4026_vm3, %v7260_v1  ;;  %27725 = vmatprep.mubr.msk.f32.mxu1 %vm4026_vm3, %v7260_v1 }
 0x52e   : > { %26718 = vmatmul.mubr.msk.f32.gmra.mrb[50].mxu0 %vm4026_vm3, %v7261_v18  ;;  %27726 = vmatmul.mubr.msk.f32.gmra.mrb[18].mxu1 %vm4026_vm3, %v7261_v18 }
 0x52f   : > { %26720 = vmatprep.mubr.msk.f32.mxu0 %vm4026_vm3, %v7262_v21  ;;  %27728 = vmatprep.mubr.msk.f32.mxu1 %vm4026_vm3, %v7262_v21 }
 0x532   : > { %26721 = vmatmul.mubr.msk.f32.gmra.mrb[52].mxu0 %vm4026_vm3, %v7263_v61  ;;  %27729 = vmatmul.mubr.msk.f32.gmra.mrb[20].mxu1 %vm4026_vm3, %v7263_v61 }
 0x533   : > { %26723 = vmatprep.mubr.msk.f32.mxu0 %vm4026_vm3, %v7264_v27  ;;  %27731 = vmatprep.mubr.msk.f32.mxu1 %vm4026_vm3, %v7264_v27 }
 0x536   : > { %26724 = vmatmul.mubr.msk.f32.gmra.mrb[54].mxu0 %vm4026_vm3, %v7265_v8  ;;  %27732 = vmatmul.mubr.msk.f32.gmra.mrb[22].mxu1 %vm4026_vm3, %v7265_v8 }
 0x537   : > { %26726 = vmatprep.mubr.msk.f32.mxu0 %vm4026_vm3, %v7266_v31  ;;  %27734 = vmatprep.mubr.msk.f32.mxu1 %vm4026_vm3, %v7266_v31 }
 0x53a   : > { %26727 = vmatmul.mubr.msk.f32.gmra.mrb[56].mxu0 %vm4026_vm3, %v7267_v37  ;;  %27735 = vmatmul.mubr.msk.f32.gmra.mrb[24].mxu1 %vm4026_vm3, %v7267_v37 }
 0x53b   : > { %26729 = vmatprep.mubr.msk.f32.mxu0 %vm4026_vm3, %v7268_v39  ;;  %27737 = vmatprep.mubr.msk.f32.mxu1 %vm4026_vm3, %v7268_v39 }
 0x53e   : > { %26730 = vmatmul.mubr.msk.f32.gmra.mrb[58].mxu0 %vm4026_vm3, %v7269_v40  ;;  %27738 = vmatmul.mubr.msk.f32.gmra.mrb[26].mxu1 %vm4026_vm3, %v7269_v40 }
 0x53f   : > { %26732 = vmatprep.mubr.msk.f32.mxu0 %vm4026_vm3, %v33492_v44  ;;  %27740 = vmatprep.mubr.msk.f32.mxu1 %vm4026_vm3, %v33492_v44  ;;  %v14871_v44 = vld [vmem:[%s36319_s8] sm:$0xff] }
 0x540   : > { %v28970_v6 = vpack.c.bf16 %v14872_v42, %v14871_v44 }
 0x542   : > { %26733 = vmatmul.mubr.msk.f32.gmra.mrb[60].mxu0 %vm4026_vm3, %v33498_v60  ;;  %27741 = vmatmul.mubr.msk.f32.gmra.mrb[28].mxu1 %vm4026_vm3, %v33498_v60  ;;  %v14873_v60 = vld [vmem:[%s36319_s8 + $0x10] sm:$0xff] }
 0x543   : > { %26735 = vmatprep.mubr.msk.f32.mxu0 %vm4026_vm3, %v7272_v36  ;;  %27743 = vmatprep.mubr.msk.f32.mxu1 %vm4026_vm3, %v7272_v36  ;;  %v28974_v43 = vpack.c.bf16 %v14874_v5, %v14873_v60 }
 0x544   : > { %28971 = vmatprep.subr.bf16.mxu1 %v28970_v6 }
 0x545   : > { %28973 = vmatpush3.bf16.msra.mxu1 %v28970_v6 }
 0x546   : > { %26736 = vmatmul.mubr.msk.f32.gmra.mrb[62].mxu0 %vm4026_vm3, %v7273_v41  ;;  %27744 = vmatmul.mubr.msk.f32.gmra.mrb[30].mxu1 %vm4026_vm3, %v7273_v41 }
 0x547   : > { %28975 = vmatprep.subr.bf16.mxu1 %v28974_v43  ;;  %26746 = vmatprep.mubr.msk.f32.mxu0 %vm4026_vm3, %v7726_v54 }
 0x548   : > { %27754 = vmatprep.mubr.msk.f32.mxu1 %vm4026_vm3, %v7726_v54 }
 0x549   : > { %28977 = vmatpush3.bf16.msra.mxu1 %v28974_v43 }
 0x54a   : > { %26747 = vmatmul.mubr.msk.f32.vlgmr.msra.gmra.mrb[64].mxu0 %vm4026_vm3, %v7727_v10  ;;  %28979 = vmatprep.subr.bf16.mxu1 %v28978_v26 }
 0x54b   : > { %28837 = vmatpush3.bf16.msra.mxu0 %v28834_v4 }
 0x54c   : > { %27755 = vmatmul.mubr.msk.f32.vlgmr.msra.gmra.mrb[0].mxu1 %vm4026_vm3, %v7727_v10  ;;  %28839 = vmatprep.subr.bf16.mxu0 %v28838_v19 }
 0x54d   : > { %28981 = vmatpush3.bf16.msra.mxu1 %v28978_v26 }
 0x54e   : > { %28983 = vmatprep.subr.bf16.mxu1 %v28982_v29 }
 0x54f   : > { %28841 = vmatpush3.bf16.msra.mxu0 %v28838_v19 }
 0x550   : > { %28843 = vmatprep.subr.bf16.mxu0 %v33816_v35 }
 0x551   : > { %28985 = vmatpush3.bf16.msra.mxu1 %v28982_v29 }
 0x552   : > { %28987 = vmatprep.subr.bf16.mxu1 %v33832_v23 }
 0x5dd   : > { %v26692_v48 = vpop.f32.mrb[32].mxu0 }
 0x5de   : > { %v29146_v53 = vadd.f32 %v26692_v48, %v33822_v47  ;;  %v7441_v56 = vpop.f32.mrb[33].mxu0 }
 0x5df   : > { %v29147_v13 = vadd.f32 %v33822_v47, %v7441_v56 }
 0x5e0   : > { %7688 = vst.msk [vmem:[#allocation4 + $0x21] sm:$0xff] %vm4026_vm3, %v29146_v53 }
 0x5e1   : > { %7687 = vst.msk [vmem:[#allocation4 + $0x19] sm:$0xff] %vm4026_vm3, %v29147_v13  ;;  %v26695_v30 = vpop.f32.mrb[34].mxu0 }
 0x5e2   : > { %v29148_v16 = vadd.f32 %v26695_v30, %v33822_v47  ;;  %v7451_v24 = vpop.f32.mrb[35].mxu0 }
 0x5e3   : > { %v29149_v22 = vadd.f32 %v33822_v47, %v7451_v24 }
 0x5e4   : > { %7690 = vst.msk [vmem:[#allocation4 + $0x39] sm:$0xff] %vm4026_vm3, %v29148_v16 }
 0x5e5   : > { %7689 = vst.msk [vmem:[#allocation4 + $0x31] sm:$0xff] %vm4026_vm3, %v29149_v22  ;;  %v26698_v28 = vpop.f32.mrb[36].mxu0 }
 0x5e6   : > { %v29150_v33 = vadd.f32 %v26698_v28, %v33822_v47  ;;  %v7461_v45 = vpop.f32.mrb[37].mxu0 }
 0x5e7   : > { %v29151_v46 = vadd.f32 %v33822_v47, %v7461_v45 }
 0x5e8   : > { %7692 = vst.msk [vmem:[#allocation4 + $0x51] sm:$0xff] %vm4026_vm3, %v29150_v33  ;;  %v33844_v49 = vld [vmem:[#allocation4 + $0x18] sm:$0xff]  ;;  %v33846_v50 = vld [vmem:[#allocation4 + $0x20] sm:$0xff] }
 0x5e9   : > { %7691 = vst.msk [vmem:[#allocation4 + $0x49] sm:$0xff] %vm4026_vm3, %v29151_v46  ;;  %v26701_v51 = vpop.f32.mrb[38].mxu0  ;;  %26749 = vmatprep.mubr.msk.f32.mxu0 %vm4026_vm3, %v33844_v49  ;;  %27757 = vmatprep.mubr.msk.f32.mxu1 %vm4026_vm3, %v33844_v49 }
 0x5ea   : > { %v29152_v52 = vadd.f32 %v26701_v51, %v33822_v47  ;;  %v7471_v57 = vpop.f32.mrb[39].mxu0  ;;  %26750 = vmatmul.mubr.msk.f32.gmra.mrb[66].mxu0 %vm4026_vm3, %v33846_v50  ;;  %27758 = vmatmul.mubr.msk.f32.gmra.mrb[2].mxu1 %vm4026_vm3, %v33846_v50 }
 0x5eb   : > { %v29153_v58 = vadd.f32 %v33822_v47, %v7471_v57 }
 0x5ec   : > { %7694 = vst.msk [vmem:[#allocation4 + $0x69] sm:$0xff] %vm4026_vm3, %v29152_v52  ;;  %v33860_v59 = vld [vmem:[#allocation4 + $0x30] sm:$0xff]  ;;  %v33862_v62 = vld [vmem:[#allocation4 + $0x38] sm:$0xff] }
 0x5ed   : > { %7693 = vst.msk [vmem:[#allocation4 + $0x61] sm:$0xff] %vm4026_vm3, %v29153_v58  ;;  %v26704_v2 = vpop.f32.mrb[40].mxu0  ;;  %26752 = vmatprep.mubr.msk.f32.mxu0 %vm4026_vm3, %v33860_v59  ;;  %27760 = vmatprep.mubr.msk.f32.mxu1 %vm4026_vm3, %v33860_v59 }
 0x5ee   : > { %v29154_v11 = vadd.f32 %v26704_v2, %v33822_v47  ;;  %v7481_v9 = vpop.f32.mrb[41].mxu0  ;;  %26753 = vmatmul.mubr.msk.f32.gmra.mrb[68].mxu0 %vm4026_vm3, %v33862_v62  ;;  %27761 = vmatmul.mubr.msk.f32.gmra.mrb[4].mxu1 %vm4026_vm3, %v33862_v62 }
 0x5ef   : > { %v29155_v12 = vadd.f32 %v33822_v47, %v7481_v9 }
 0x5f0   : > { %7696 = vst.msk [vmem:[#allocation4 + $0x81] sm:$0xff] %vm4026_vm3, %v29154_v11  ;;  %v33876_v17 = vld [vmem:[#allocation4 + $0x48] sm:$0xff]  ;;  %v33878_v1 = vld [vmem:[#allocation4 + $0x50] sm:$0xff] }
 0x5f1   : > { %7695 = vst.msk [vmem:[#allocation4 + $0x79] sm:$0xff] %vm4026_vm3, %v29155_v12  ;;  %v26707_v18 = vpop.f32.mrb[42].mxu0  ;;  %26755 = vmatprep.mubr.msk.f32.mxu0 %vm4026_vm3, %v33876_v17  ;;  %27763 = vmatprep.mubr.msk.f32.mxu1 %vm4026_vm3, %v33876_v17 }
 0x5f2   : > { %v29156_v21 = vadd.f32 %v26707_v18, %v33822_v47  ;;  %v7491_v61 = vpop.f32.mrb[43].mxu0  ;;  %26756 = vmatmul.mubr.msk.f32.gmra.mrb[70].mxu0 %vm4026_vm3, %v33878_v1  ;;  %27764 = vmatmul.mubr.msk.f32.gmra.mrb[6].mxu1 %vm4026_vm3, %v33878_v1 }
 0x5f3   : > { %v29157_v27 = vadd.f32 %v33822_v47, %v7491_v61 }
 0x5f4   : > { %7698 = vst.msk [vmem:[#allocation4 + $0x99] sm:$0xff] %vm4026_vm3, %v29156_v21  ;;  %v33892_v8 = vld [vmem:[#allocation4 + $0x60] sm:$0xff]  ;;  %v33894_v31 = vld [vmem:[#allocation4 + $0x68] sm:$0xff] }
 0x5f5   : > { %7697 = vst.msk [vmem:[#allocation4 + $0x91] sm:$0xff] %vm4026_vm3, %v29157_v27  ;;  %v26710_v37 = vpop.f32.mrb[44].mxu0  ;;  %26758 = vmatprep.mubr.msk.f32.mxu0 %vm4026_vm3, %v33892_v8  ;;  %27766 = vmatprep.mubr.msk.f32.mxu1 %vm4026_vm3, %v33892_v8 }
 0x5f6   : > { %v29158_v39 = vadd.f32 %v26710_v37, %v33822_v47  ;;  %v7501_v40 = vpop.f32.mrb[45].mxu0  ;;  %26759 = vmatmul.mubr.msk.f32.gmra.mrb[72].mxu0 %vm4026_vm3, %v33894_v31  ;;  %27767 = vmatmul.mubr.msk.f32.gmra.mrb[8].mxu1 %vm4026_vm3, %v33894_v31 }
 0x5f7   : > { %v29159_v36 = vadd.f32 %v33822_v47, %v7501_v40 }
 0x5f8   : > { %7700 = vst.msk [vmem:[#allocation4 + $0xb1] sm:$0xff] %vm4026_vm3, %v29158_v39  ;;  %v33908_v41 = vld [vmem:[#allocation4 + $0x78] sm:$0xff]  ;;  %v33910_v44 = vld [vmem:[#allocation4 + $0x80] sm:$0xff] }
 0x5f9   : > { %7699 = vst.msk [vmem:[#allocation4 + $0xa9] sm:$0xff] %vm4026_vm3, %v29159_v36  ;;  %v26713_v42 = vpop.f32.mrb[46].mxu0  ;;  %26761 = vmatprep.mubr.msk.f32.mxu0 %vm4026_vm3, %v33908_v41  ;;  %27769 = vmatprep.mubr.msk.f32.mxu1 %vm4026_vm3, %v33908_v41 }
 0x5fa   : > { %v29160_v6 = vadd.f32 %v26713_v42, %v33822_v47  ;;  %v7511_v60 = vpop.f32.mrb[47].mxu0  ;;  %26762 = vmatmul.mubr.msk.f32.gmra.mrb[74].mxu0 %vm4026_vm3, %v33910_v44  ;;  %27770 = vmatmul.mubr.msk.f32.gmra.mrb[10].mxu1 %vm4026_vm3, %v33910_v44 }
 0x5fb   : > { %v29161_v5 = vadd.f32 %v33822_v47, %v7511_v60 }
 0x5fc   : > { %7702 = vst.msk [vmem:[#allocation4 + $0xc9] sm:$0xff] %vm4026_vm3, %v29160_v6  ;;  %v33924_v43 = vld [vmem:[#allocation4 + $0x90] sm:$0xff]  ;;  %v33926_v54 = vld [vmem:[#allocation4 + $0x98] sm:$0xff] }
 0x5fd   : > { %7701 = vst.msk [vmem:[#allocation4 + $0xc1] sm:$0xff] %vm4026_vm3, %v29161_v5  ;;  %v26716_v32 = vpop.f32.mrb[48].mxu0  ;;  %26764 = vmatprep.mubr.msk.f32.mxu0 %vm4026_vm3, %v33924_v43  ;;  %27772 = vmatprep.mubr.msk.f32.mxu1 %vm4026_vm3, %v33924_v43 }
 0x5fe   : > { %v29162_v55 = vadd.f32 %v26716_v32, %v33822_v47  ;;  %v7521_v4 = vpop.f32.mrb[49].mxu0  ;;  %26765 = vmatmul.mubr.msk.f32.gmra.mrb[76].mxu0 %vm4026_vm3, %v33926_v54  ;;  %27773 = vmatmul.mubr.msk.f32.gmra.mrb[12].mxu1 %vm4026_vm3, %v33926_v54  ;;  %v8115_v32 = vld [vmem:[#allocation4 + $0x1] sm:$0xff] }
 0x5ff   : > { %v29163_v10 = vadd.f32 %v33822_v47, %v7521_v4  ;;  %v22653_v4 = vld [vmem:[%s36316_s5 + $0x58] sm:$0xff] }
 0x600   : > { %7704 = vst.msk [vmem:[#allocation4 + $0xe1] sm:$0xff] %vm4026_vm3, %v29162_v55  ;;  %v33940_v14 = vld [vmem:[#allocation4 + $0xa8] sm:$0xff]  ;;  %v33942_v15 = vld [vmem:[#allocation4 + $0xb0] sm:$0xff] }
 0x601   : > { %7703 = vst.msk [vmem:[#allocation4 + $0xd9] sm:$0xff] %vm4026_vm3, %v29163_v10  ;;  %v26719_v19 = vpop.f32.mrb[50].mxu0  ;;  %26767 = vmatprep.mubr.msk.f32.mxu0 %vm4026_vm3, %v33940_v14  ;;  %27775 = vmatprep.mubr.msk.f32.mxu1 %vm4026_vm3, %v33940_v14  ;;  %v22652_v55 = vld [vmem:[%s36316_s5 + $0x50] sm:$0xff] }
 0x602   : > { %v29164_v20 = vadd.f32 %v26719_v19, %v33822_v47  ;;  %v7531_v25 = vpop.f32.mrb[51].mxu0  ;;  %26768 = vmatmul.mubr.msk.f32.gmra.mrb[78].mxu0 %vm4026_vm3, %v33942_v15  ;;  %27776 = vmatmul.mubr.msk.f32.gmra.mrb[14].mxu1 %vm4026_vm3, %v33942_v15  ;;  %v8116_v10 = vld [vmem:[#allocation4 + $0x9] sm:$0xff]  ;;  %v28846_v19 = vpack.c.bf16 %v22653_v4, %v22652_v55 }
 0x603   : > { %v29165_v26 = vadd.f32 %v33822_v47, %v7531_v25  ;;  %v23294_v25 = vld [vmem:[%s36319_s8 + $0x58] sm:$0xff] }
 0x604   : > { %7706 = vst.msk [vmem:[#allocation4 + $0xf9] sm:$0xff] %vm4026_vm3, %v29164_v20  ;;  %v33956_v38 = vld [vmem:[#allocation4 + $0xc0] sm:$0xff]  ;;  %v33958_v3 = vld [vmem:[#allocation4 + $0xc8] sm:$0xff]  ;;  %v23293_v20 = vld [vmem:[%s36319_s8 + $0x50] sm:$0xff] }
 0x605   : > { %7705 = vst.msk [vmem:[#allocation4 + $0xf1] sm:$0xff] %vm4026_vm3, %v29165_v26  ;;  %v26722_v29 = vpop.f32.mrb[52].mxu0  ;;  %26770 = vmatprep.mubr.msk.f32.mxu0 %vm4026_vm3, %v33956_v38  ;;  %27778 = vmatprep.mubr.msk.f32.mxu1 %vm4026_vm3, %v33956_v38  ;;  %v34093_v26 = vld [vmem:[#allocation4 + $0x19] sm:$0xff] }
 0x606   : > { %v29166_v7 = vadd.f32 %v26722_v29, %v33822_v47  ;;  %v7541_v34 = vpop.f32.mrb[53].mxu0  ;;  %26771 = vmatmul.mubr.msk.f32.gmra.mrb[80].mxu0 %vm4026_vm3, %v33958_v3  ;;  %27779 = vmatmul.mubr.msk.f32.gmra.mrb[16].mxu1 %vm4026_vm3, %v33958_v3  ;;  %v22686_v29 = vld [vmem:[%s36316_s5 + $0x60] sm:$0xff] }
 0x607   : > { %v29167_v48 = vadd.f32 %v33822_v47, %v7541_v34  ;;  %v28990_v34 = vpack.c.bf16 %v23294_v25, %v23293_v20 }
 0x608   : > { %7708 = vst.msk [vmem:[#allocation4 + $0x111] sm:$0xff] %vm4026_vm3, %v29166_v7  ;;  %v33972_v53 = vld [vmem:[#allocation4 + $0xd8] sm:$0xff]  ;;  %v33974_v56 = vld [vmem:[#allocation4 + $0xe0] sm:$0xff]  ;;  %v22687_v7 = vld [vmem:[%s36316_s5 + $0x68] sm:$0xff] }
 0x609   : > { %7707 = vst.msk [vmem:[#allocation4 + $0x109] sm:$0xff] %vm4026_vm3, %v29167_v48  ;;  %v26725_v63 = vpop.f32.mrb[54].mxu0  ;;  %26773 = vmatprep.mubr.msk.f32.mxu0 %vm4026_vm3, %v33972_v53  ;;  %27781 = vmatprep.mubr.msk.f32.mxu1 %vm4026_vm3, %v33972_v53  ;;  %v34106_v48 = vld [vmem:[#allocation4 + $0x21] sm:$0xff] }
 0x60a   : > { %v29168_v0 = vadd.f32 %v26725_v63, %v33822_v47  ;;  %v7551_v13 = vpop.f32.mrb[55].mxu0  ;;  %26774 = vmatmul.mubr.msk.f32.gmra.mrb[82].mxu0 %vm4026_vm3, %v33974_v56  ;;  %27782 = vmatmul.mubr.msk.f32.gmra.mrb[18].mxu1 %vm4026_vm3, %v33974_v56  ;;  %v34109_v63 = vpack.c.bf16 %v22687_v7, %v22686_v29 }
 0x60b   : > { %v29169_v30 = vadd.f32 %v33822_v47, %v7551_v13  ;;  %v34121_v13 = vld [vmem:[#allocation4 + $0x31] sm:$0xff] }
 0x60c   : > { %7710 = vst.msk [vmem:[#allocation4 + $0x129] sm:$0xff] %vm4026_vm3, %v29168_v0  ;;  %v33988_v16 = vld [vmem:[#allocation4 + $0xf0] sm:$0xff]  ;;  %v33990_v24 = vld [vmem:[#allocation4 + $0xf8] sm:$0xff]  ;;  %v23327_v0 = vld [vmem:[%s36319_s8 + $0x60] sm:$0xff] }
 0x60d   : > { %7709 = vst.msk [vmem:[#allocation4 + $0x121] sm:$0xff] %vm4026_vm3, %v29169_v30  ;;  %v26728_v22 = vpop.f32.mrb[56].mxu0  ;;  %26776 = vmatprep.mubr.msk.f32.mxu0 %vm4026_vm3, %v33988_v16  ;;  %27784 = vmatprep.mubr.msk.f32.mxu1 %vm4026_vm3, %v33988_v16  ;;  %v34129_v30 = vld [vmem:[#allocation4 + $0x39] sm:$0xff] }
 0x60e   : > { %v29170_v28 = vadd.f32 %v26728_v22, %v33822_v47  ;;  %v7561_v33 = vpop.f32.mrb[57].mxu0  ;;  %26777 = vmatmul.mubr.msk.f32.gmra.mrb[84].mxu0 %vm4026_vm3, %v33990_v24  ;;  %27785 = vmatmul.mubr.msk.f32.gmra.mrb[20].mxu1 %vm4026_vm3, %v33990_v24  ;;  %v34136_v22 = vld [vmem:[#allocation4 + $0x49] sm:$0xff] }
 0x60f   : > { %v29171_v45 = vadd.f32 %v33822_v47, %v7561_v33  ;;  %v34149_v33 = vld [vmem:[#allocation4 + $0x61] sm:$0xff]  ;;  %v34239_v55 = vld [vmem:[#allocation4 + $0x111] sm:$0xff] }
 0x610   : > { %7712 = vst.msk [vmem:[#allocation4 + $0x141] sm:$0xff] %vm4026_vm3, %v29170_v28  ;;  %v34004_v46 = vld [vmem:[#allocation4 + $0x108] sm:$0xff]  ;;  %v34006_v51 = vld [vmem:[#allocation4 + $0x110] sm:$0xff] }
 0x611   : > { %7711 = vst.msk [vmem:[#allocation4 + $0x139] sm:$0xff] %vm4026_vm3, %v29171_v45  ;;  %v26731_v52 = vpop.f32.mrb[58].mxu0  ;;  %26779 = vmatprep.mubr.msk.f32.mxu0 %vm4026_vm3, %v34004_v46  ;;  %27787 = vmatprep.mubr.msk.f32.mxu1 %vm4026_vm3, %v34004_v46  ;;  %v34143_v28 = vld [vmem:[#allocation4 + $0x51] sm:$0xff]  ;;  %v34155_v45 = vld [vmem:[#allocation4 + $0x69] sm:$0xff] }
 0x612   : > { %v29172_v57 = vadd.f32 %v26731_v52, %v33822_v47  ;;  %v7571_v58 = vpop.f32.mrb[59].mxu0  ;;  %26780 = vmatmul.mubr.msk.f32.gmra.mrb[86].mxu0 %vm4026_vm3, %v34006_v51  ;;  %27788 = vmatmul.mubr.msk.f32.gmra.mrb[22].mxu1 %vm4026_vm3, %v34006_v51  ;;  %v34161_v52 = vld [vmem:[#allocation4 + $0x79] sm:$0xff] }
 0x613   : > { %v29173_v2 = vadd.f32 %v33822_v47, %v7571_v58  ;;  %v34173_v58 = vld [vmem:[#allocation4 + $0x91] sm:$0xff] }
 0x614   : > { %7714 = vst.msk [vmem:[#allocation4 + $0x159] sm:$0xff] %vm4026_vm3, %v29172_v57  ;;  %v34020_v11 = vld [vmem:[#allocation4 + $0x120] sm:$0xff]  ;;  %v34022_v9 = vld [vmem:[#allocation4 + $0x128] sm:$0xff] }
 0x615   : > { %7713 = vst.msk [vmem:[#allocation4 + $0x151] sm:$0xff] %vm4026_vm3, %v29173_v2  ;;  %v26734_v12 = vpop.f32.mrb[60].mxu0  ;;  %26782 = vmatprep.mubr.msk.f32.mxu0 %vm4026_vm3, %v34020_v11  ;;  %27790 = vmatprep.mubr.msk.f32.mxu1 %vm4026_vm3, %v34020_v11  ;;  %v34167_v57 = vld [vmem:[#allocation4 + $0x81] sm:$0xff]  ;;  %v34179_v2 = vld [vmem:[#allocation4 + $0x99] sm:$0xff] }
 0x616   : > { %v29174_v18 = vadd.f32 %v26734_v12, %v33822_v47  ;;  %v7581_v21 = vpop.f32.mrb[61].mxu0  ;;  %26783 = vmatmul.mubr.msk.f32.gmra.mrb[88].mxu0 %vm4026_vm3, %v34022_v9  ;;  %27791 = vmatmul.mubr.msk.f32.gmra.mrb[24].mxu1 %vm4026_vm3, %v34022_v9  ;;  %v34185_v12 = vld [vmem:[#allocation4 + $0xa9] sm:$0xff]  ;;  %v34245_v4 = vld [vmem:[#allocation4 + $0x121] sm:$0xff] }
 0x617   : > { %v29175_v61 = vadd.f32 %v33822_v47, %v7581_v21  ;;  %v34197_v21 = vld [vmem:[#allocation4 + $0xc1] sm:$0xff]  ;;  %36756 = vst [vmem:[#allocation37_spill] sm:$0xff] %v34245_v4 }
 0x618   : > { %7716 = vst.msk [vmem:[#allocation4 + $0x171] sm:$0xff] %vm4026_vm3, %v29174_v18  ;;  %v34036_v27 = vld [vmem:[#allocation4 + $0x138] sm:$0xff]  ;;  %v34038_v37 = vld [vmem:[#allocation4 + $0x140] sm:$0xff] }
 0x619   : > { %7715 = vst.msk [vmem:[#allocation4 + $0x169] sm:$0xff] %vm4026_vm3, %v29175_v61  ;;  %v26737_v39 = vpop.f32.mrb[62].mxu0  ;;  %26785 = vmatprep.mubr.msk.f32.mxu0 %vm4026_vm3, %v34036_v27  ;;  %27793 = vmatprep.mubr.msk.f32.mxu1 %vm4026_vm3, %v34036_v27  ;;  %v34191_v18 = vld [vmem:[#allocation4 + $0xb1] sm:$0xff]  ;;  %v34203_v61 = vld [vmem:[#allocation4 + $0xc9] sm:$0xff]  ;;  %v34263_v20 = vld [vmem:[#allocation4 + $0x141] sm:$0xff] }
 0x61a   : > { %v29176_v40 = vadd.f32 %v26737_v39, %v33822_v47  ;;  %v7591_v36 = vpop.f32.mrb[63].mxu0  ;;  %26786 = vmatmul.mubr.msk.f32.gmra.mrb[90].mxu0 %vm4026_vm3, %v34038_v37  ;;  %27794 = vmatmul.mubr.msk.f32.gmra.mrb[26].mxu1 %vm4026_vm3, %v34038_v37  ;;  %v34209_v39 = vld [vmem:[#allocation4 + $0xd9] sm:$0xff]  ;;  %36759 = vst [vmem:[#allocation15_spill] sm:$0xff] %v34263_v20 }
 0x61b   : > { %v29177_v42 = vadd.f32 %v33822_v47, %v7591_v36  ;;  %v34221_v36 = vld [vmem:[#allocation4 + $0xf1] sm:$0xff]  ;;  %v34275_v29 = vld [vmem:[#allocation4 + $0x159] sm:$0xff] }
 0x61c   : > { %7718 = vst.msk [vmem:[#allocation4 + $0x189] sm:$0xff] %vm4026_vm3, %v29176_v40  ;;  %v34052_v6 = vld [vmem:[#allocation4 + $0x150] sm:$0xff]  ;;  %v34054_v60 = vld [vmem:[#allocation4 + $0x158] sm:$0xff]  ;;  %v34215_v40 = vld [vmem:[#allocation4 + $0xe1] sm:$0xff] }
 0x61d   : > { %7717 = vst.msk [vmem:[#allocation4 + $0x181] sm:$0xff] %vm4026_vm3, %v29177_v42  ;;  %26788 = vmatprep.mubr.msk.f32.mxu0 %vm4026_vm3, %v34052_v6  ;;  %27796 = vmatprep.mubr.msk.f32.mxu1 %vm4026_vm3, %v34052_v6  ;;  %v34227_v42 = vld [vmem:[#allocation4 + $0xf9] sm:$0xff]  ;;  %v34269_v25 = vld [vmem:[#allocation4 + $0x151] sm:$0xff]  ;;  %36761 = vst [vmem:[#allocation31_spill] sm:$0xff] %v34275_v29 }
 0x61e   : > { %26789 = vmatmul.mubr.msk.f32.gmra.mrb[92].mxu0 %vm4026_vm3, %v34054_v60  ;;  %27797 = vmatmul.mubr.msk.f32.gmra.mrb[28].mxu1 %vm4026_vm3, %v34054_v60  ;;  %36760 = vst [vmem:[#allocation29_spill] sm:$0xff] %v34269_v25 }
 0x620   : > { %v34065_v47 = vld [vmem:[#allocation4 + $0x168] sm:$0xff]  ;;  %v34067_v5 = vld [vmem:[#allocation4 + $0x170] sm:$0xff] }
 0x621   : > { %26791 = vmatprep.mubr.msk.f32.mxu0 %vm4026_vm3, %v34065_v47  ;;  %27799 = vmatprep.mubr.msk.f32.mxu1 %vm4026_vm3, %v34065_v47  ;;  %v34281_v7 = vld [vmem:[#allocation4 + $0x169] sm:$0xff] }
 0x622   : > { %26792 = vmatmul.mubr.msk.f32.gmra.mrb[94].mxu0 %vm4026_vm3, %v34067_v5  ;;  %27800 = vmatmul.mubr.msk.f32.gmra.mrb[30].mxu1 %vm4026_vm3, %v34067_v5  ;;  %36762 = vst [vmem:[#allocation33_spill] sm:$0xff] %v34281_v7 }
 0x623   : > { %26802 = vmatprep.mubr.msk.f32.mxu0 %vm4026_vm3, %v8115_v32  ;;  %27810 = vmatprep.mubr.msk.f32.mxu1 %vm4026_vm3, %v8115_v32  ;;  %v34233_v32 = vld [vmem:[#allocation4 + $0x109] sm:$0xff] }
 0x626   : > { %26803 = vmatmul.mubr.msk.f32.vlgmr.msra.gmra.mrb[64].mxu0 %vm4026_vm3, %v8116_v10  ;;  %27811 = vmatmul.mubr.msk.f32.vlgmr.msra.gmra.mrb[0].mxu1 %vm4026_vm3, %v8116_v10  ;;  %v34251_v10 = vld [vmem:[#allocation4 + $0x129] sm:$0xff] }
 0x627   : > { %28845 = vmatpush3.bf16.msra.mxu0 %v33816_v35  ;;  %26805 = vmatprep.mubr.msk.f32.mxu0 %vm4026_vm3, %v34093_v26  ;;  %v23328_v35 = vld [vmem:[%s36319_s8 + $0x68] sm:$0xff]  ;;  %36757 = vst [vmem:[#allocation39_spill] sm:$0xff] %v34251_v10 }
 0x628   : > { %27813 = vmatprep.mubr.msk.f32.mxu1 %vm4026_vm3, %v34093_v26  ;;  %28847 = vmatprep.subr.bf16.mxu0 %v28846_v19 }
 0x629   : > { %28989 = vmatpush3.bf16.msra.mxu1 %v33832_v23  ;;  %v34127_v23 = vpack.c.bf16 %v23328_v35, %v23327_v0  ;;  %v34287_v0 = vld [vmem:[#allocation4 + $0x171] sm:$0xff] }
 0x62a   : > { %26806 = vmatmul.mubr.msk.f32.gmra.mrb[66].mxu0 %vm4026_vm3, %v34106_v48  ;;  %27814 = vmatmul.mubr.msk.f32.gmra.mrb[2].mxu1 %vm4026_vm3, %v34106_v48  ;;  %36763 = vst [vmem:[#allocation34_spill] sm:$0xff] %v34287_v0  ;;  %v22688_v35 = vld [vmem:[%s36316_s5 + $0x70] sm:$0xff] }
 0x62b   : > { %26808 = vmatprep.mubr.msk.f32.mxu0 %vm4026_vm3, %v34121_v13  ;;  %27816 = vmatprep.mubr.msk.f32.mxu1 %vm4026_vm3, %v34121_v13 }
 0x62c   : > { %28849 = vmatpush3.bf16.msra.mxu0 %v28846_v19  ;;  %28991 = vmatprep.subr.bf16.mxu1 %v28990_v34  ;;  %v34257_v19 = vld [vmem:[#allocation4 + $0x139] sm:$0xff] }
 0x62d   : > { %28993 = vmatpush3.bf16.msra.mxu1 %v28990_v34  ;;  %28851 = vmatprep.subr.bf16.mxu0 %v34109_v63  ;;  %36758 = vst [vmem:[#allocation14_spill] sm:$0xff] %v34257_v19  ;;  %v8505_v34 = vld [vmem:[#allocation4 + $0x2] sm:$0xff] }
 0x62e   : > { %26809 = vmatmul.mubr.msk.f32.gmra.mrb[68].mxu0 %vm4026_vm3, %v34129_v30  ;;  %27817 = vmatmul.mubr.msk.f32.gmra.mrb[4].mxu1 %vm4026_vm3, %v34129_v30 }
 0x62f   : > { %26811 = vmatprep.mubr.msk.f32.mxu0 %vm4026_vm3, %v34136_v22  ;;  %27819 = vmatprep.mubr.msk.f32.mxu1 %vm4026_vm3, %v34136_v22 }
 0x630   : > { %28995 = vmatprep.subr.bf16.mxu1 %v34127_v23 }
 0x632   : > { %26812 = vmatmul.mubr.msk.f32.gmra.mrb[70].mxu0 %vm4026_vm3, %v34143_v28  ;;  %27820 = vmatmul.mubr.msk.f32.gmra.mrb[6].mxu1 %vm4026_vm3, %v34143_v28 }
 0x633   : > { %26814 = vmatprep.mubr.msk.f32.mxu0 %vm4026_vm3, %v34149_v33  ;;  %27822 = vmatprep.mubr.msk.f32.mxu1 %vm4026_vm3, %v34149_v33 }
 0x636   : > { %26815 = vmatmul.mubr.msk.f32.gmra.mrb[72].mxu0 %vm4026_vm3, %v34155_v45  ;;  %27823 = vmatmul.mubr.msk.f32.gmra.mrb[8].mxu1 %vm4026_vm3, %v34155_v45 }
 0x637   : > { %26817 = vmatprep.mubr.msk.f32.mxu0 %vm4026_vm3, %v34161_v52  ;;  %27825 = vmatprep.mubr.msk.f32.mxu1 %vm4026_vm3, %v34161_v52 }
 0x63a   : > { %26818 = vmatmul.mubr.msk.f32.gmra.mrb[74].mxu0 %vm4026_vm3, %v34167_v57  ;;  %27826 = vmatmul.mubr.msk.f32.gmra.mrb[10].mxu1 %vm4026_vm3, %v34167_v57 }
 0x63b   : > { %26820 = vmatprep.mubr.msk.f32.mxu0 %vm4026_vm3, %v34173_v58  ;;  %27828 = vmatprep.mubr.msk.f32.mxu1 %vm4026_vm3, %v34173_v58 }
 0x63e   : > { %26821 = vmatmul.mubr.msk.f32.gmra.mrb[76].mxu0 %vm4026_vm3, %v34179_v2  ;;  %27829 = vmatmul.mubr.msk.f32.gmra.mrb[12].mxu1 %vm4026_vm3, %v34179_v2 }
 0x63f   : > { %26823 = vmatprep.mubr.msk.f32.mxu0 %vm4026_vm3, %v34185_v12  ;;  %27831 = vmatprep.mubr.msk.f32.mxu1 %vm4026_vm3, %v34185_v12 }
 0x642   : > { %26824 = vmatmul.mubr.msk.f32.gmra.mrb[78].mxu0 %vm4026_vm3, %v34191_v18  ;;  %27832 = vmatmul.mubr.msk.f32.gmra.mrb[14].mxu1 %vm4026_vm3, %v34191_v18 }
 0x643   : > { %26826 = vmatprep.mubr.msk.f32.mxu0 %vm4026_vm3, %v34197_v21  ;;  %27834 = vmatprep.mubr.msk.f32.mxu1 %vm4026_vm3, %v34197_v21 }
 0x646   : > { %26827 = vmatmul.mubr.msk.f32.gmra.mrb[80].mxu0 %vm4026_vm3, %v34203_v61  ;;  %27835 = vmatmul.mubr.msk.f32.gmra.mrb[16].mxu1 %vm4026_vm3, %v34203_v61 }
 0x647   : > { %26829 = vmatprep.mubr.msk.f32.mxu0 %vm4026_vm3, %v34209_v39  ;;  %27837 = vmatprep.mubr.msk.f32.mxu1 %vm4026_vm3, %v34209_v39 }
 0x64a   : > { %26830 = vmatmul.mubr.msk.f32.gmra.mrb[82].mxu0 %vm4026_vm3, %v34215_v40  ;;  %27838 = vmatmul.mubr.msk.f32.gmra.mrb[18].mxu1 %vm4026_vm3, %v34215_v40 }
 0x64b   : > { %26832 = vmatprep.mubr.msk.f32.mxu0 %vm4026_vm3, %v34221_v36  ;;  %27840 = vmatprep.mubr.msk.f32.mxu1 %vm4026_vm3, %v34221_v36 }
 0x64e   : > { %26833 = vmatmul.mubr.msk.f32.gmra.mrb[84].mxu0 %vm4026_vm3, %v34227_v42  ;;  %27841 = vmatmul.mubr.msk.f32.gmra.mrb[20].mxu1 %vm4026_vm3, %v34227_v42 }
 0x64f   : > { %26835 = vmatprep.mubr.msk.f32.mxu0 %vm4026_vm3, %v34233_v32  ;;  %27843 = vmatprep.mubr.msk.f32.mxu1 %vm4026_vm3, %v34233_v32 }
 0x652   : > { %26836 = vmatmul.mubr.msk.f32.gmra.mrb[86].mxu0 %vm4026_vm3, %v34239_v55  ;;  %27844 = vmatmul.mubr.msk.f32.gmra.mrb[22].mxu1 %vm4026_vm3, %v34239_v55 }
 0x653   : > { %26838 = vmatprep.mubr.msk.f32.mxu0 %vm4026_vm3, %v34245_v4  ;;  %27846 = vmatprep.mubr.msk.f32.mxu1 %vm4026_vm3, %v34245_v4  ;;  %v23363_v4 = vld [vmem:[%s36319_s8 + $0x80] sm:$0xff] }
 0x656   : > { %26839 = vmatmul.mubr.msk.f32.gmra.mrb[88].mxu0 %vm4026_vm3, %v34251_v10  ;;  %27847 = vmatmul.mubr.msk.f32.gmra.mrb[24].mxu1 %vm4026_vm3, %v34251_v10  ;;  %v34309_v10 = vld [vmem:[#allocation4 + $0x1a] sm:$0xff] }
 0x657   : > { %26841 = vmatprep.mubr.msk.f32.mxu0 %vm4026_vm3, %v34257_v19  ;;  %27849 = vmatprep.mubr.msk.f32.mxu1 %vm4026_vm3, %v34257_v19  ;;  %v23330_v19 = vld [vmem:[%s36319_s8 + $0x78] sm:$0xff] }
 0x65a   : > { %26842 = vmatmul.mubr.msk.f32.gmra.mrb[90].mxu0 %vm4026_vm3, %v34263_v20  ;;  %27850 = vmatmul.mubr.msk.f32.gmra.mrb[26].mxu1 %vm4026_vm3, %v34263_v20  ;;  %v23329_v20 = vld [vmem:[%s36319_s8 + $0x70] sm:$0xff] }
 0x65b   : > { %26844 = vmatprep.mubr.msk.f32.mxu0 %vm4026_vm3, %v34269_v25  ;;  %27852 = vmatprep.mubr.msk.f32.mxu1 %vm4026_vm3, %v34269_v25  ;;  %v22689_v25 = vld [vmem:[%s36316_s5 + $0x78] sm:$0xff] }
 0x65e   : > { %26845 = vmatmul.mubr.msk.f32.gmra.mrb[92].mxu0 %vm4026_vm3, %v34275_v29  ;;  %27853 = vmatmul.mubr.msk.f32.gmra.mrb[28].mxu1 %vm4026_vm3, %v34275_v29  ;;  %v28854_v29 = vpack.c.bf16 %v22689_v25, %v22688_v35  ;;  %v22723_v25 = vld [vmem:[%s36316_s5 + $0x88] sm:$0xff] }
 0x65f   : > { %26847 = vmatprep.mubr.msk.f32.mxu0 %vm4026_vm3, %v34281_v7  ;;  %27855 = vmatprep.mubr.msk.f32.mxu1 %vm4026_vm3, %v34281_v7  ;;  %v8506_v7 = vld [vmem:[#allocation4 + $0xa] sm:$0xff]  ;;  %v34322_v35 = vld [vmem:[#allocation4 + $0x22] sm:$0xff] }
 0x662   : > { %26848 = vmatmul.mubr.msk.f32.gmra.mrb[94].mxu0 %vm4026_vm3, %v34287_v0  ;;  %27856 = vmatmul.mubr.msk.f32.gmra.mrb[30].mxu1 %vm4026_vm3, %v34287_v0 }
 0x663   : > { %26858 = vmatprep.mubr.msk.f32.mxu0 %vm4026_vm3, %v8505_v34  ;;  %27866 = vmatprep.mubr.msk.f32.mxu1 %vm4026_vm3, %v8505_v34  ;;  %v22722_v34 = vld [vmem:[%s36316_s5 + $0x80] sm:$0xff] }
 0x664   : > { %v34325_v0 = vpack.c.bf16 %v22723_v25, %v22722_v34  ;;  %v34352_v34 = vld [vmem:[#allocation4 + $0x4a] sm:$0xff] }
 0x665   : > { %36764 = vst [vmem:[#allocation36_spill] sm:$0xff] %v34352_v34  ;;  %v34371_v25 = vld [vmem:[#allocation4 + $0x6a] sm:$0xff] }
 0x666   : > { %26859 = vmatmul.mubr.msk.f32.vlgmr.msra.gmra.mrb[64].mxu0 %vm4026_vm3, %v8506_v7  ;;  %27867 = vmatmul.mubr.msk.f32.vlgmr.msra.gmra.mrb[0].mxu1 %vm4026_vm3, %v8506_v7  ;;  %v28998_v7 = vpack.c.bf16 %v23330_v19, %v23329_v20  ;;  %v34337_v19 = vld [vmem:[#allocation4 + $0x32] sm:$0xff]  ;;  %v34345_v20 = vld [vmem:[#allocation4 + $0x3a] sm:$0xff]  ;;  %36767 = vst [vmem:[#allocation7_spill] sm:$0xff] %v34371_v25 }
 0x667   : > { %28853 = vmatpush3.bf16.msra.mxu0 %v34109_v63  ;;  %26861 = vmatprep.mubr.msk.f32.mxu0 %vm4026_vm3, %v34309_v10  ;;  %v23364_v63 = vld [vmem:[%s36319_s8 + $0x88] sm:$0xff] }
 0x668   : > { %27869 = vmatprep.mubr.msk.f32.mxu1 %vm4026_vm3, %v34309_v10  ;;  %28855 = vmatprep.subr.bf16.mxu0 %v28854_v29 }
 0x669   : > { %28997 = vmatpush3.bf16.msra.mxu1 %v34127_v23  ;;  %v34343_v23 = vpack.c.bf16 %v23364_v63, %v23363_v4  ;;  %v34359_v4 = vld [vmem:[#allocation4 + $0x52] sm:$0xff]  ;;  %v34383_v63 = vld [vmem:[#allocation4 + $0x82] sm:$0xff] }
 0x66a   : > { %26862 = vmatmul.mubr.msk.f32.gmra.mrb[66].mxu0 %vm4026_vm3, %v34322_v35  ;;  %27870 = vmatmul.mubr.msk.f32.gmra.mrb[2].mxu1 %vm4026_vm3, %v34322_v35  ;;  %36765 = vst [vmem:[#allocation38_spill] sm:$0xff] %v34359_v4  ;;  %36769 = vst [vmem:[#allocation9_spill] sm:$0xff] %v34383_v63 }
 0x66b   : > { %26864 = vmatprep.mubr.msk.f32.mxu0 %vm4026_vm3, %v34337_v19  ;;  %27872 = vmatprep.mubr.msk.f32.mxu1 %vm4026_vm3, %v34337_v19 }
 0x66c   : > { %28857 = vmatpush3.bf16.msra.mxu0 %v28854_v29  ;;  %28999 = vmatprep.subr.bf16.mxu1 %v28998_v7  ;;  %v34365_v29 = vld [vmem:[#allocation4 + $0x62] sm:$0xff] }
 0x66d   : > { %29001 = vmatpush3.bf16.msra.mxu1 %v28998_v7  ;;  %28859 = vmatprep.subr.bf16.mxu0 %v34325_v0  ;;  %36766 = vst [vmem:[#allocation6_spill] sm:$0xff] %v34365_v29  ;;  %v34377_v7 = vld [vmem:[#allocation4 + $0x7a] sm:$0xff] }
 0x66e   : > { %26865 = vmatmul.mubr.msk.f32.gmra.mrb[68].mxu0 %vm4026_vm3, %v34345_v20  ;;  %27873 = vmatmul.mubr.msk.f32.gmra.mrb[4].mxu1 %vm4026_vm3, %v34345_v20  ;;  %36768 = vst [vmem:[#allocation8_spill] sm:$0xff] %v34377_v7 }
 0x66f   : > { %26867 = vmatprep.mubr.msk.f32.mxu0 %vm4026_vm3, %v34352_v34  ;;  %27875 = vmatprep.mubr.msk.f32.mxu1 %vm4026_vm3, %v34352_v34  ;;  %v23366_v34 = vld [vmem:[%s36319_s8 + $0x98] sm:$0xff] }
 0x670   : > { %29003 = vmatprep.subr.bf16.mxu1 %v34343_v23 }
 0x672   : > { %26868 = vmatmul.mubr.msk.f32.gmra.mrb[70].mxu0 %vm4026_vm3, %v34359_v4  ;;  %27876 = vmatmul.mubr.msk.f32.gmra.mrb[6].mxu1 %vm4026_vm3, %v34359_v4  ;;  %v22725_v4 = vld [vmem:[%s36316_s5 + $0x98] sm:$0xff] }
 0x673   : > { %26870 = vmatprep.mubr.msk.f32.mxu0 %vm4026_vm3, %v34365_v29  ;;  %27878 = vmatprep.mubr.msk.f32.mxu1 %vm4026_vm3, %v34365_v29  ;;  %v34389_v29 = vld [vmem:[#allocation4 + $0x92] sm:$0xff] }
 0x674   : > { %36770 = vst [vmem:[#allocation10_spill] sm:$0xff] %v34389_v29 }
 0x676   : > { %26871 = vmatmul.mubr.msk.f32.gmra.mrb[72].mxu0 %vm4026_vm3, %v34371_v25  ;;  %27879 = vmatmul.mubr.msk.f32.gmra.mrb[8].mxu1 %vm4026_vm3, %v34371_v25  ;;  %v34395_v25 = vld [vmem:[#allocation4 + $0x9a] sm:$0xff] }
 0x677   : > { %26873 = vmatprep.mubr.msk.f32.mxu0 %vm4026_vm3, %v34377_v7  ;;  %27881 = vmatprep.mubr.msk.f32.mxu1 %vm4026_vm3, %v34377_v7  ;;  %36771 = vst [vmem:[#allocation11_spill] sm:$0xff] %v34395_v25  ;;  %v34401_v7 = vld [vmem:[#allocation4 + $0xaa] sm:$0xff] }
 0x678   : > { %36772 = vst [vmem:[#allocation12_spill] sm:$0xff] %v34401_v7 }
 0x67a   : > { %26874 = vmatmul.mubr.msk.f32.gmra.mrb[74].mxu0 %vm4026_vm3, %v34383_v63  ;;  %27882 = vmatmul.mubr.msk.f32.gmra.mrb[10].mxu1 %vm4026_vm3, %v34383_v63  ;;  %v34407_v63 = vld [vmem:[#allocation4 + $0xb2] sm:$0xff] }
 0x67b   : > { %26876 = vmatprep.mubr.msk.f32.mxu0 %vm4026_vm3, %v34389_v29  ;;  %27884 = vmatprep.mubr.msk.f32.mxu1 %vm4026_vm3, %v34389_v29  ;;  %36773 = vst [vmem:[#allocation13_spill] sm:$0xff] %v34407_v63  ;;  %v34413_v29 = vld [vmem:[#allocation4 + $0xc2] sm:$0xff] }
 0x67c   : > { %36774 = vst [vmem:[#allocation40_spill] sm:$0xff] %v34413_v29 }
 0x67e   : > { %26877 = vmatmul.mubr.msk.f32.gmra.mrb[76].mxu0 %vm4026_vm3, %v34395_v25  ;;  %27885 = vmatmul.mubr.msk.f32.gmra.mrb[12].mxu1 %vm4026_vm3, %v34395_v25  ;;  %v34419_v25 = vld [vmem:[#allocation4 + $0xca] sm:$0xff] }
 0x67f   : > { %26879 = vmatprep.mubr.msk.f32.mxu0 %vm4026_vm3, %v34401_v7  ;;  %27887 = vmatprep.mubr.msk.f32.mxu1 %vm4026_vm3, %v34401_v7  ;;  %36775 = vst [vmem:[#allocation41_spill] sm:$0xff] %v34419_v25  ;;  %v34425_v7 = vld [vmem:[#allocation4 + $0xda] sm:$0xff] }
 0x680   : > { %36776 = vst [vmem:[#allocation16_spill] sm:$0xff] %v34425_v7 }
 0x682   : > { %26880 = vmatmul.mubr.msk.f32.gmra.mrb[78].mxu0 %vm4026_vm3, %v34407_v63  ;;  %27888 = vmatmul.mubr.msk.f32.gmra.mrb[14].mxu1 %vm4026_vm3, %v34407_v63  ;;  %v34431_v63 = vld [vmem:[#allocation4 + $0xe2] sm:$0xff] }
 0x683   : > { %26882 = vmatprep.mubr.msk.f32.mxu0 %vm4026_vm3, %v34413_v29  ;;  %27890 = vmatprep.mubr.msk.f32.mxu1 %vm4026_vm3, %v34413_v29  ;;  %36777 = vst [vmem:[#allocation17_spill] sm:$0xff] %v34431_v63  ;;  %v34437_v29 = vld [vmem:[#allocation4 + $0xf2] sm:$0xff] }
 0x684   : > { %36778 = vst [vmem:[#allocation18_spill] sm:$0xff] %v34437_v29 }
 0x686   : > { %26883 = vmatmul.mubr.msk.f32.gmra.mrb[80].mxu0 %vm4026_vm3, %v34419_v25  ;;  %27891 = vmatmul.mubr.msk.f32.gmra.mrb[16].mxu1 %vm4026_vm3, %v34419_v25  ;;  %v34443_v25 = vld [vmem:[#allocation4 + $0xfa] sm:$0xff] }
 0x687   : > { %26885 = vmatprep.mubr.msk.f32.mxu0 %vm4026_vm3, %v34425_v7  ;;  %27893 = vmatprep.mubr.msk.f32.mxu1 %vm4026_vm3, %v34425_v7  ;;  %36779 = vst [vmem:[#allocation19_spill] sm:$0xff] %v34443_v25  ;;  %v34449_v7 = vld [vmem:[#allocation4 + $0x10a] sm:$0xff] }
 0x688   : > { %36780 = vst [vmem:[#allocation20_spill] sm:$0xff] %v34449_v7 }
 0x68a   : > { %26886 = vmatmul.mubr.msk.f32.gmra.mrb[82].mxu0 %vm4026_vm3, %v34431_v63  ;;  %27894 = vmatmul.mubr.msk.f32.gmra.mrb[18].mxu1 %vm4026_vm3, %v34431_v63  ;;  %v34455_v63 = vld [vmem:[#allocation4 + $0x112] sm:$0xff] }
 0x68b   : > { %26888 = vmatprep.mubr.msk.f32.mxu0 %vm4026_vm3, %v34437_v29  ;;  %27896 = vmatprep.mubr.msk.f32.mxu1 %vm4026_vm3, %v34437_v29  ;;  %36781 = vst [vmem:[#allocation21_spill] sm:$0xff] %v34455_v63  ;;  %v34461_v29 = vld [vmem:[#allocation4 + $0x122] sm:$0xff] }
 0x68c   : > { %36782 = vst [vmem:[#allocation22_spill] sm:$0xff] %v34461_v29 }
 0x68e   : > { %26889 = vmatmul.mubr.msk.f32.gmra.mrb[84].mxu0 %vm4026_vm3, %v34443_v25  ;;  %27897 = vmatmul.mubr.msk.f32.gmra.mrb[20].mxu1 %vm4026_vm3, %v34443_v25  ;;  %v34467_v25 = vld [vmem:[#allocation4 + $0x12a] sm:$0xff] }
 0x68f   : > { %26891 = vmatprep.mubr.msk.f32.mxu0 %vm4026_vm3, %v34449_v7  ;;  %27899 = vmatprep.mubr.msk.f32.mxu1 %vm4026_vm3, %v34449_v7  ;;  %36783 = vst [vmem:[#allocation23_spill] sm:$0xff] %v34467_v25  ;;  %v34473_v7 = vld [vmem:[#allocation4 + $0x13a] sm:$0xff] }
 0x690   : > { %36784 = vst [vmem:[#allocation24_spill] sm:$0xff] %v34473_v7 }
 0x692   : > { %26892 = vmatmul.mubr.msk.f32.gmra.mrb[86].mxu0 %vm4026_vm3, %v34455_v63  ;;  %27900 = vmatmul.mubr.msk.f32.gmra.mrb[22].mxu1 %vm4026_vm3, %v34455_v63  ;;  %v34479_v63 = vld [vmem:[#allocation4 + $0x142] sm:$0xff] }
 0x693   : > { %26894 = vmatprep.mubr.msk.f32.mxu0 %vm4026_vm3, %v34461_v29  ;;  %27902 = vmatprep.mubr.msk.f32.mxu1 %vm4026_vm3, %v34461_v29  ;;  %36785 = vst [vmem:[#allocation25_spill] sm:$0xff] %v34479_v63  ;;  %v34485_v29 = vld [vmem:[#allocation4 + $0x152] sm:$0xff] }
 0x694   : > { %36786 = vst [vmem:[#allocation26_spill] sm:$0xff] %v34485_v29 }
 0x696   : > { %26895 = vmatmul.mubr.msk.f32.gmra.mrb[88].mxu0 %vm4026_vm3, %v34467_v25  ;;  %27903 = vmatmul.mubr.msk.f32.gmra.mrb[24].mxu1 %vm4026_vm3, %v34467_v25  ;;  %v34491_v25 = vld [vmem:[#allocation4 + $0x15a] sm:$0xff] }
 0x697   : > { %26897 = vmatprep.mubr.msk.f32.mxu0 %vm4026_vm3, %v34473_v7  ;;  %27905 = vmatprep.mubr.msk.f32.mxu1 %vm4026_vm3, %v34473_v7  ;;  %36787 = vst [vmem:[#allocation27_spill] sm:$0xff] %v34491_v25  ;;  %v34497_v7 = vld [vmem:[#allocation4 + $0x16a] sm:$0xff] }
 0x698   : > { %36788 = vst [vmem:[#allocation28_spill] sm:$0xff] %v34497_v7 }
 0x69a   : > { %26898 = vmatmul.mubr.msk.f32.gmra.mrb[90].mxu0 %vm4026_vm3, %v34479_v63  ;;  %27906 = vmatmul.mubr.msk.f32.gmra.mrb[26].mxu1 %vm4026_vm3, %v34479_v63  ;;  %v34503_v63 = vld [vmem:[#allocation4 + $0x172] sm:$0xff] }
 0x69b   : > { %26900 = vmatprep.mubr.msk.f32.mxu0 %vm4026_vm3, %v34485_v29  ;;  %27908 = vmatprep.mubr.msk.f32.mxu1 %vm4026_vm3, %v34485_v29  ;;  %36789 = vst [vmem:[#allocation30_spill] sm:$0xff] %v34503_v63  ;;  %v22724_v29 = vld [vmem:[%s36316_s5 + $0x90] sm:$0xff] }
 0x69e   : > { %26901 = vmatmul.mubr.msk.f32.gmra.mrb[92].mxu0 %vm4026_vm3, %v34491_v25  ;;  %27909 = vmatmul.mubr.msk.f32.gmra.mrb[28].mxu1 %vm4026_vm3, %v34491_v25  ;;  %v23365_v25 = vld [vmem:[%s36319_s8 + $0x90] sm:$0xff] }
 0x69f   : > { %26903 = vmatprep.mubr.msk.f32.mxu0 %vm4026_vm3, %v34497_v7  ;;  %27911 = vmatprep.mubr.msk.f32.mxu1 %vm4026_vm3, %v34497_v7  ;;  %v28862_v7 = vpack.c.bf16 %v22725_v4, %v22724_v29  ;;  %v29006_v4 = vpack.c.bf16 %v23366_v34, %v23365_v25  ;;  %v23399_v29 = vld [vmem:[%s36319_s8 + $0xa0] sm:$0xff]  ;;  %v36817_v25 = vld [vmem:[#allocation23_spill] sm:$0xff] }
 0x6a0   : > { %v36816_v34 = vld [vmem:[#allocation22_spill] sm:$0xff] }
 0x6a2   : > { %26904 = vmatmul.mubr.msk.f32.gmra.mrb[94].mxu0 %vm4026_vm3, %v34503_v63  ;;  %27912 = vmatmul.mubr.msk.f32.gmra.mrb[30].mxu1 %vm4026_vm3, %v34503_v63  ;;  %v22758_v63 = vld [vmem:[%s36316_s5 + $0xa0] sm:$0xff] }
 0x6a3   : > { %26914 = vmatprep.mubr.msk.f32.mxu0 %vm4026_vm3, %v33844_v49  ;;  %27922 = vmatprep.mubr.msk.f32.mxu1 %vm4026_vm3, %v33844_v49  ;;  %v22759_v49 = vld [vmem:[%s36316_s5 + $0xa8] sm:$0xff] }
 0x6a6   : > { %26915 = vmatmul.mubr.msk.f32.vlgmr.msra.gmra.mrb[64].mxu0 %vm4026_vm3, %v33846_v50  ;;  %27923 = vmatmul.mubr.msk.f32.vlgmr.msra.gmra.mrb[0].mxu1 %vm4026_vm3, %v33846_v50  ;;  %v34541_v50 = vpack.c.bf16 %v22759_v49, %v22758_v63  ;;  %v36819_v63 = vld [vmem:[#allocation25_spill] sm:$0xff]  ;;  %v36820_v49 = vld [vmem:[#allocation26_spill] sm:$0xff] }
 0x6a7   : > { %28861 = vmatpush3.bf16.msra.mxu0 %v34325_v0  ;;  %26917 = vmatprep.mubr.msk.f32.mxu0 %vm4026_vm3, %v33860_v59  ;;  %v23400_v0 = vld [vmem:[%s36319_s8 + $0xa8] sm:$0xff] }
 0x6a8   : > { %27925 = vmatprep.mubr.msk.f32.mxu1 %vm4026_vm3, %v33860_v59  ;;  %28863 = vmatprep.subr.bf16.mxu0 %v28862_v7  ;;  %v34557_v59 = vpack.c.bf16 %v23400_v0, %v23399_v29  ;;  %v36823_v29 = vld [vmem:[#allocation30_spill] sm:$0xff] }
 0x6a9   : > { %29005 = vmatpush3.bf16.msra.mxu1 %v34343_v23  ;;  %v36814_v23 = vld [vmem:[#allocation20_spill] sm:$0xff]  ;;  %v34989_v0 = vld [vmem:[#allocation4 + $0x182] sm:$0xff] }
 0x6aa   : > { %26918 = vmatmul.mubr.msk.f32.gmra.mrb[66].mxu0 %vm4026_vm3, %v33862_v62  ;;  %27926 = vmatmul.mubr.msk.f32.gmra.mrb[2].mxu1 %vm4026_vm3, %v33862_v62  ;;  %v34661_v62 = vld [vmem:[#allocation4 + $0x180] sm:$0xff] }
 0x6ab   : > { %26920 = vmatprep.mubr.msk.f32.mxu0 %vm4026_vm3, %v33876_v17  ;;  %27928 = vmatprep.mubr.msk.f32.mxu1 %vm4026_vm3, %v33876_v17  ;;  %v34667_v17 = vld [vmem:[#allocation4 + $0x188] sm:$0xff] }
 0x6ac   : > { %28865 = vmatpush3.bf16.msra.mxu0 %v28862_v7  ;;  %29007 = vmatprep.subr.bf16.mxu1 %v29006_v4  ;;  %v36818_v7 = vld [vmem:[#allocation24_spill] sm:$0xff] }
 0x6ad   : > { %29009 = vmatpush3.bf16.msra.mxu1 %v29006_v4  ;;  %28867 = vmatprep.subr.bf16.mxu0 %v34541_v50  ;;  %v36821_v4 = vld [vmem:[#allocation27_spill] sm:$0xff] }
 0x6ae   : > { %26921 = vmatmul.mubr.msk.f32.gmra.mrb[68].mxu0 %vm4026_vm3, %v33878_v1  ;;  %27929 = vmatmul.mubr.msk.f32.gmra.mrb[4].mxu1 %vm4026_vm3, %v33878_v1  ;;  %v22760_v1 = vld [vmem:[%s36316_s5 + $0xb0] sm:$0xff] }
 0x6af   : > { %26923 = vmatprep.mubr.msk.f32.mxu0 %vm4026_vm3, %v33892_v8  ;;  %27931 = vmatprep.mubr.msk.f32.mxu1 %vm4026_vm3, %v33892_v8  ;;  %v22761_v8 = vld [vmem:[%s36316_s5 + $0xb8] sm:$0xff] }
 0x6b0   : > { %29011 = vmatprep.subr.bf16.mxu1 %v34557_v59 }
 0x6b2   : > { %26924 = vmatmul.mubr.msk.f32.gmra.mrb[70].mxu0 %vm4026_vm3, %v33894_v31  ;;  %27932 = vmatmul.mubr.msk.f32.gmra.mrb[6].mxu1 %vm4026_vm3, %v33894_v31  ;;  %v28870_v31 = vpack.c.bf16 %v22761_v8, %v22760_v1  ;;  %v22832_v1 = vld [vmem:[%s36316_s5 + $0xf0] sm:$0xff]  ;;  %v22833_v8 = vld [vmem:[%s36316_s5 + $0xf8] sm:$0xff] }
 0x6b3   : > { %26926 = vmatprep.mubr.msk.f32.mxu0 %vm4026_vm3, %v33908_v41  ;;  %27934 = vmatprep.mubr.msk.f32.mxu1 %vm4026_vm3, %v33908_v41  ;;  %v23401_v41 = vld [vmem:[%s36319_s8 + $0xb0] sm:$0xff] }
 0x6b6   : > { %26927 = vmatmul.mubr.msk.f32.gmra.mrb[72].mxu0 %vm4026_vm3, %v33910_v44  ;;  %27935 = vmatmul.mubr.msk.f32.gmra.mrb[8].mxu1 %vm4026_vm3, %v33910_v44  ;;  %v23402_v44 = vld [vmem:[%s36319_s8 + $0xb8] sm:$0xff] }
 0x6b7   : > { %26929 = vmatprep.mubr.msk.f32.mxu0 %vm4026_vm3, %v33924_v43  ;;  %27937 = vmatprep.mubr.msk.f32.mxu1 %vm4026_vm3, %v33924_v43  ;;  %v22794_v43 = vld [vmem:[%s36316_s5 + $0xc0] sm:$0xff] }
 0x6ba   : > { %26930 = vmatmul.mubr.msk.f32.gmra.mrb[74].mxu0 %vm4026_vm3, %v33926_v54  ;;  %27938 = vmatmul.mubr.msk.f32.gmra.mrb[10].mxu1 %vm4026_vm3, %v33926_v54  ;;  %v22795_v54 = vld [vmem:[%s36316_s5 + $0xc8] sm:$0xff] }
 0x6bb   : > { %26932 = vmatprep.mubr.msk.f32.mxu0 %vm4026_vm3, %v33940_v14  ;;  %27940 = vmatprep.mubr.msk.f32.mxu1 %vm4026_vm3, %v33940_v14  ;;  %v29014_v14 = vpack.c.bf16 %v23402_v44, %v23401_v41  ;;  %v28886_v41 = vpack.c.bf16 %v22833_v8, %v22832_v1  ;;  %v10067_v44 = vld [vmem:[#allocation4 + $0x38] sm:$0xff]  ;;  %v10466_v8 = vld [vmem:[#allocation4 + $0xa9] sm:$0xff] }
 0x6bc   : > { %v10465_v1 = vld [vmem:[#allocation4 + $0x99] sm:$0xff] }
 0x6be   : > { %26933 = vmatmul.mubr.msk.f32.gmra.mrb[76].mxu0 %vm4026_vm3, %v33942_v15  ;;  %27941 = vmatmul.mubr.msk.f32.gmra.mrb[12].mxu1 %vm4026_vm3, %v33942_v15  ;;  %v34705_v15 = vpack.c.bf16 %v22795_v54, %v22794_v43  ;;  %v23473_v43 = vld [vmem:[%s36319_s8 + $0xf0] sm:$0xff]  ;;  %v23474_v54 = vld [vmem:[%s36319_s8 + $0xf8] sm:$0xff] }
 0x6bf   : > { %26935 = vmatprep.mubr.msk.f32.mxu0 %vm4026_vm3, %v33956_v38  ;;  %27943 = vmatprep.mubr.msk.f32.mxu1 %vm4026_vm3, %v33956_v38  ;;  %v23435_v38 = vld [vmem:[%s36319_s8 + $0xc0] sm:$0xff] }
 0x6c2   : > { %26936 = vmatmul.mubr.msk.f32.gmra.mrb[78].mxu0 %vm4026_vm3, %v33958_v3  ;;  %27944 = vmatmul.mubr.msk.f32.gmra.mrb[14].mxu1 %vm4026_vm3, %v33958_v3  ;;  %v23436_v3 = vld [vmem:[%s36319_s8 + $0xc8] sm:$0xff] }
 0x6c3   : > { %26938 = vmatprep.mubr.msk.f32.mxu0 %vm4026_vm3, %v33972_v53  ;;  %27946 = vmatprep.mubr.msk.f32.mxu1 %vm4026_vm3, %v33972_v53  ;;  %v34721_v53 = vpack.c.bf16 %v23436_v3, %v23435_v38  ;;  %v22867_v38 = vld [vmem:[%s36316_s5 + $0x108] sm:$0xff]  ;;  %v29030_v3 = vpack.c.bf16 %v23474_v54, %v23473_v43  ;;  %v10470_v43 = vld [vmem:[#allocation4 + $0xd9] sm:$0xff] }
 0x6c4   : > { %v10471_v54 = vld [vmem:[#allocation4 + $0xe1] sm:$0xff] }
 0x6c6   : > { %26939 = vmatmul.mubr.msk.f32.gmra.mrb[80].mxu0 %vm4026_vm3, %v33974_v56  ;;  %27947 = vmatmul.mubr.msk.f32.gmra.mrb[16].mxu1 %vm4026_vm3, %v33974_v56  ;;  %v36790_v56 = vld [vmem:[#allocation37_spill] sm:$0xff] }
 0x6c7   : > { %26941 = vmatprep.mubr.msk.f32.mxu0 %vm4026_vm3, %v33988_v16  ;;  %27949 = vmatprep.mubr.msk.f32.mxu1 %vm4026_vm3, %v33988_v16  ;;  %v36791_v16 = vld [vmem:[#allocation39_spill] sm:$0xff] }
 0x6ca   : > { %26942 = vmatmul.mubr.msk.f32.gmra.mrb[82].mxu0 %vm4026_vm3, %v33990_v24  ;;  %27950 = vmatmul.mubr.msk.f32.gmra.mrb[18].mxu1 %vm4026_vm3, %v33990_v24  ;;  %v36792_v24 = vld [vmem:[#allocation14_spill] sm:$0xff] }
 0x6cb   : > { %26944 = vmatprep.mubr.msk.f32.mxu0 %vm4026_vm3, %v34004_v46  ;;  %27952 = vmatprep.mubr.msk.f32.mxu1 %vm4026_vm3, %v34004_v46  ;;  %v36793_v46 = vld [vmem:[#allocation15_spill] sm:$0xff] }
 0x6ce   : > { %26945 = vmatmul.mubr.msk.f32.gmra.mrb[84].mxu0 %vm4026_vm3, %v34006_v51  ;;  %27953 = vmatmul.mubr.msk.f32.gmra.mrb[20].mxu1 %vm4026_vm3, %v34006_v51  ;;  %v36794_v51 = vld [vmem:[#allocation29_spill] sm:$0xff] }
 0x6cf   : > { %26947 = vmatprep.mubr.msk.f32.mxu0 %vm4026_vm3, %v34020_v11  ;;  %27955 = vmatprep.mubr.msk.f32.mxu1 %vm4026_vm3, %v34020_v11  ;;  %v36795_v11 = vld [vmem:[#allocation31_spill] sm:$0xff] }
 0x6d2   : > { %26948 = vmatmul.mubr.msk.f32.gmra.mrb[86].mxu0 %vm4026_vm3, %v34022_v9  ;;  %27956 = vmatmul.mubr.msk.f32.gmra.mrb[22].mxu1 %vm4026_vm3, %v34022_v9  ;;  %v36796_v9 = vld [vmem:[#allocation33_spill] sm:$0xff] }
 0x6d3   : > { %26950 = vmatprep.mubr.msk.f32.mxu0 %vm4026_vm3, %v34036_v27  ;;  %27958 = vmatprep.mubr.msk.f32.mxu1 %vm4026_vm3, %v34036_v27  ;;  %v36797_v27 = vld [vmem:[#allocation34_spill] sm:$0xff] }
 0x6d6   : > { %26951 = vmatmul.mubr.msk.f32.gmra.mrb[88].mxu0 %vm4026_vm3, %v34038_v37  ;;  %27959 = vmatmul.mubr.msk.f32.gmra.mrb[24].mxu1 %vm4026_vm3, %v34038_v37  ;;  %v34825_v37 = vld [vmem:[#allocation4 + $0x181] sm:$0xff] }
 0x6d7   : > { %26953 = vmatprep.mubr.msk.f32.mxu0 %vm4026_vm3, %v34052_v6  ;;  %27961 = vmatprep.mubr.msk.f32.mxu1 %vm4026_vm3, %v34052_v6  ;;  %v34831_v6 = vld [vmem:[#allocation4 + $0x189] sm:$0xff] }
 0x6da   : > { %26954 = vmatmul.mubr.msk.f32.gmra.mrb[90].mxu0 %vm4026_vm3, %v34054_v60  ;;  %27962 = vmatmul.mubr.msk.f32.gmra.mrb[26].mxu1 %vm4026_vm3, %v34054_v60  ;;  %v22796_v60 = vld [vmem:[%s36316_s5 + $0xd0] sm:$0xff] }
 0x6db   : > { %26956 = vmatprep.mubr.msk.f32.mxu0 %vm4026_vm3, %v34065_v47  ;;  %27964 = vmatprep.mubr.msk.f32.mxu1 %vm4026_vm3, %v34065_v47  ;;  %v22797_v47 = vld [vmem:[%s36316_s5 + $0xd8] sm:$0xff] }
 0x6de   : > { %26957 = vmatmul.mubr.msk.f32.gmra.mrb[92].mxu0 %vm4026_vm3, %v34067_v5  ;;  %27965 = vmatmul.mubr.msk.f32.gmra.mrb[28].mxu1 %vm4026_vm3, %v34067_v5  ;;  %v28878_v5 = vpack.c.bf16 %v22797_v47, %v22796_v60  ;;  %v10074_v60 = vld [vmem:[#allocation4 + $0x90] sm:$0xff]  ;;  %v10075_v47 = vld [vmem:[#allocation4 + $0x98] sm:$0xff] }
 0x6df   : > { %26959 = vmatprep.mubr.msk.f32.mxu0 %vm4026_vm3, %v34661_v62  ;;  %27967 = vmatprep.mubr.msk.f32.mxu1 %vm4026_vm3, %v34661_v62 }
 0x6e2   : > { %26960 = vmatmul.mubr.msk.f32.gmra.mrb[94].mxu0 %vm4026_vm3, %v34667_v17  ;;  %27968 = vmatmul.mubr.msk.f32.gmra.mrb[30].mxu1 %vm4026_vm3, %v34667_v17 }
 0x6e3   : > { %26970 = vmatprep.mubr.msk.f32.mxu0 %vm4026_vm3, %v34093_v26  ;;  %27978 = vmatprep.mubr.msk.f32.mxu1 %vm4026_vm3, %v34093_v26  ;;  %v23437_v26 = vld [vmem:[%s36319_s8 + $0xd0] sm:$0xff] }
 0x6e6   : > { %26971 = vmatmul.mubr.msk.f32.vlgmr.msra.gmra.mrb[64].mxu0 %vm4026_vm3, %v34106_v48  ;;  %27979 = vmatmul.mubr.msk.f32.vlgmr.msra.gmra.mrb[0].mxu1 %vm4026_vm3, %v34106_v48  ;;  %v23438_v48 = vld [vmem:[%s36319_s8 + $0xd8] sm:$0xff] }
 0x6e7   : > { %28869 = vmatpush3.bf16.msra.mxu0 %v34541_v50  ;;  %26973 = vmatprep.mubr.msk.f32.mxu0 %vm4026_vm3, %v34121_v13  ;;  %v36822_v50 = vld [vmem:[#allocation28_spill] sm:$0xff] }
 0x6e8   : > { %27981 = vmatprep.mubr.msk.f32.mxu1 %vm4026_vm3, %v34121_v13  ;;  %28871 = vmatprep.subr.bf16.mxu0 %v28870_v31  ;;  %v22830_v13 = vld [vmem:[%s36316_s5 + $0xe0] sm:$0xff] }
 0x6e9   : > { %29013 = vmatpush3.bf16.msra.mxu1 %v34557_v59  ;;  %v34995_v59 = vld [vmem:[#allocation4 + $0x18a] sm:$0xff] }
 0x6ea   : > { %26974 = vmatmul.mubr.msk.f32.gmra.mrb[66].mxu0 %vm4026_vm3, %v34129_v30  ;;  %27982 = vmatmul.mubr.msk.f32.gmra.mrb[2].mxu1 %vm4026_vm3, %v34129_v30  ;;  %v22831_v30 = vld [vmem:[%s36316_s5 + $0xe8] sm:$0xff] }
 0x6eb   : > { %26976 = vmatprep.mubr.msk.f32.mxu0 %vm4026_vm3, %v34136_v22  ;;  %27984 = vmatprep.mubr.msk.f32.mxu1 %vm4026_vm3, %v34136_v22  ;;  %v29022_v22 = vpack.c.bf16 %v23438_v48, %v23437_v26  ;;  %v10077_v26 = vld [vmem:[#allocation4 + $0xb0] sm:$0xff]  ;;  %v10078_v48 = vld [vmem:[#allocation4 + $0xc0] sm:$0xff] }
 0x6ec   : > { %28873 = vmatpush3.bf16.msra.mxu0 %v28870_v31  ;;  %29015 = vmatprep.subr.bf16.mxu1 %v29014_v14  ;;  %v10066_v31 = vld [vmem:[#allocation4 + $0x30] sm:$0xff] }
 0x6ed   : > { %29017 = vmatpush3.bf16.msra.mxu1 %v29014_v14  ;;  %28875 = vmatprep.subr.bf16.mxu0 %v34705_v15  ;;  %v10068_v14 = vld [vmem:[#allocation4 + $0x48] sm:$0xff] }
 0x6ee   : > { %26977 = vmatmul.mubr.msk.f32.gmra.mrb[68].mxu0 %vm4026_vm3, %v34143_v28  ;;  %27985 = vmatmul.mubr.msk.f32.gmra.mrb[4].mxu1 %vm4026_vm3, %v34143_v28  ;;  %v34869_v28 = vpack.c.bf16 %v22831_v30, %v22830_v13  ;;  %v10079_v13 = vld [vmem:[#allocation4 + $0xc8] sm:$0xff]  ;;  %v10080_v30 = vld [vmem:[#allocation4 + $0xd8] sm:$0xff] }
 0x6ef   : > { %26979 = vmatprep.mubr.msk.f32.mxu0 %vm4026_vm3, %v34149_v33  ;;  %27987 = vmatprep.mubr.msk.f32.mxu1 %vm4026_vm3, %v34149_v33  ;;  %v23471_v33 = vld [vmem:[%s36319_s8 + $0xe0] sm:$0xff] }
 0x6f0   : > { %29019 = vmatprep.subr.bf16.mxu1 %v34721_v53 }
 0x6f2   : > { %26980 = vmatmul.mubr.msk.f32.gmra.mrb[70].mxu0 %vm4026_vm3, %v34155_v45  ;;  %27988 = vmatmul.mubr.msk.f32.gmra.mrb[6].mxu1 %vm4026_vm3, %v34155_v45  ;;  %v23472_v45 = vld [vmem:[%s36319_s8 + $0xe8] sm:$0xff] }
 0x6f3   : > { %26982 = vmatprep.mubr.msk.f32.mxu0 %vm4026_vm3, %v34161_v52  ;;  %27990 = vmatprep.mubr.msk.f32.mxu1 %vm4026_vm3, %v34161_v52  ;;  %v36798_v52 = vld [vmem:[#allocation36_spill] sm:$0xff] }
 0x6f6   : > { %26983 = vmatmul.mubr.msk.f32.gmra.mrb[72].mxu0 %vm4026_vm3, %v34167_v57  ;;  %27991 = vmatmul.mubr.msk.f32.gmra.mrb[8].mxu1 %vm4026_vm3, %v34167_v57  ;;  %v34885_v57 = vpack.c.bf16 %v23472_v45, %v23471_v33  ;;  %v10083_v33 = vld [vmem:[#allocation4 + $0xf8] sm:$0xff]  ;;  %v10084_v45 = vld [vmem:[#allocation4 + $0x108] sm:$0xff] }
 0x6f7   : > { %26985 = vmatprep.mubr.msk.f32.mxu0 %vm4026_vm3, %v34173_v58  ;;  %27993 = vmatprep.mubr.msk.f32.mxu1 %vm4026_vm3, %v34173_v58  ;;  %v36799_v58 = vld [vmem:[#allocation38_spill] sm:$0xff] }
 0x6fa   : > { %26986 = vmatmul.mubr.msk.f32.gmra.mrb[74].mxu0 %vm4026_vm3, %v34179_v2  ;;  %27994 = vmatmul.mubr.msk.f32.gmra.mrb[10].mxu1 %vm4026_vm3, %v34179_v2  ;;  %v36800_v2 = vld [vmem:[#allocation6_spill] sm:$0xff] }
 0x6fb   : > { %26988 = vmatprep.mubr.msk.f32.mxu0 %vm4026_vm3, %v34185_v12  ;;  %27996 = vmatprep.mubr.msk.f32.mxu1 %vm4026_vm3, %v34185_v12  ;;  %v36801_v12 = vld [vmem:[#allocation7_spill] sm:$0xff] }
 0x6fe   : > { %26989 = vmatmul.mubr.msk.f32.gmra.mrb[76].mxu0 %vm4026_vm3, %v34191_v18  ;;  %27997 = vmatmul.mubr.msk.f32.gmra.mrb[12].mxu1 %vm4026_vm3, %v34191_v18  ;;  %v36802_v18 = vld [vmem:[#allocation8_spill] sm:$0xff] }
 0x6ff   : > { %26991 = vmatprep.mubr.msk.f32.mxu0 %vm4026_vm3, %v34197_v21  ;;  %27999 = vmatprep.mubr.msk.f32.mxu1 %vm4026_vm3, %v34197_v21  ;;  %v36803_v21 = vld [vmem:[#allocation9_spill] sm:$0xff] }
 0x702   : > { %26992 = vmatmul.mubr.msk.f32.gmra.mrb[78].mxu0 %vm4026_vm3, %v34203_v61  ;;  %28000 = vmatmul.mubr.msk.f32.gmra.mrb[14].mxu1 %vm4026_vm3, %v34203_v61  ;;  %v36804_v61 = vld [vmem:[#allocation10_spill] sm:$0xff] }
 0x703   : > { %26994 = vmatprep.mubr.msk.f32.mxu0 %vm4026_vm3, %v34209_v39  ;;  %28002 = vmatprep.mubr.msk.f32.mxu1 %vm4026_vm3, %v34209_v39  ;;  %v36805_v39 = vld [vmem:[#allocation11_spill] sm:$0xff] }
 0x706   : > { %26995 = vmatmul.mubr.msk.f32.gmra.mrb[80].mxu0 %vm4026_vm3, %v34215_v40  ;;  %28003 = vmatmul.mubr.msk.f32.gmra.mrb[16].mxu1 %vm4026_vm3, %v34215_v40  ;;  %v36806_v40 = vld [vmem:[#allocation12_spill] sm:$0xff] }
 0x707   : > { %26997 = vmatprep.mubr.msk.f32.mxu0 %vm4026_vm3, %v34221_v36  ;;  %28005 = vmatprep.mubr.msk.f32.mxu1 %vm4026_vm3, %v34221_v36  ;;  %v36807_v36 = vld [vmem:[#allocation13_spill] sm:$0xff] }
 0x70a   : > { %26998 = vmatmul.mubr.msk.f32.gmra.mrb[82].mxu0 %vm4026_vm3, %v34227_v42  ;;  %28006 = vmatmul.mubr.msk.f32.gmra.mrb[18].mxu1 %vm4026_vm3, %v34227_v42  ;;  %v36808_v42 = vld [vmem:[#allocation40_spill] sm:$0xff] }
 0x70b   : > { %27000 = vmatprep.mubr.msk.f32.mxu0 %vm4026_vm3, %v34233_v32  ;;  %28008 = vmatprep.mubr.msk.f32.mxu1 %vm4026_vm3, %v34233_v32  ;;  %v36809_v32 = vld [vmem:[#allocation41_spill] sm:$0xff] }
 0x70e   : > { %27001 = vmatmul.mubr.msk.f32.gmra.mrb[84].mxu0 %vm4026_vm3, %v34239_v55  ;;  %28009 = vmatmul.mubr.msk.f32.gmra.mrb[20].mxu1 %vm4026_vm3, %v34239_v55  ;;  %v36810_v55 = vld [vmem:[#allocation16_spill] sm:$0xff] }
 0x70f   : > { %27003 = vmatprep.mubr.msk.f32.mxu0 %vm4026_vm3, %v36790_v56  ;;  %28011 = vmatprep.mubr.msk.f32.mxu1 %vm4026_vm3, %v36790_v56 }
 0x712   : > { %27004 = vmatmul.mubr.msk.f32.gmra.mrb[86].mxu0 %vm4026_vm3, %v36791_v16  ;;  %28012 = vmatmul.mubr.msk.f32.gmra.mrb[22].mxu1 %vm4026_vm3, %v36791_v16  ;;  %v23507_v16 = vld [vmem:[%s36319_s8 + $0x100] sm:$0xff] }
 0x713   : > { %27006 = vmatprep.mubr.msk.f32.mxu0 %vm4026_vm3, %v36792_v24  ;;  %28014 = vmatprep.mubr.msk.f32.mxu1 %vm4026_vm3, %v36792_v24  ;;  %v23508_v24 = vld [vmem:[%s36319_s8 + $0x108] sm:$0xff] }
 0x716   : > { %27007 = vmatmul.mubr.msk.f32.gmra.mrb[88].mxu0 %vm4026_vm3, %v36793_v46  ;;  %28015 = vmatmul.mubr.msk.f32.gmra.mrb[24].mxu1 %vm4026_vm3, %v36793_v46  ;;  %v10070_v46 = vld [vmem:[#allocation4 + $0x60] sm:$0xff] }
 0x717   : > { %27009 = vmatprep.mubr.msk.f32.mxu0 %vm4026_vm3, %v36794_v51  ;;  %28017 = vmatprep.mubr.msk.f32.mxu1 %vm4026_vm3, %v36794_v51  ;;  %v35039_v51 = vpack.c.bf16 %v23508_v24, %v23507_v16  ;;  %v10478_v16 = vld [vmem:[#allocation4 + $0x139] sm:$0xff]  ;;  %v10479_v24 = vld [vmem:[#allocation4 + $0x141] sm:$0xff] }
 0x71a   : > { %27010 = vmatmul.mubr.msk.f32.gmra.mrb[90].mxu0 %vm4026_vm3, %v36795_v11  ;;  %28018 = vmatmul.mubr.msk.f32.gmra.mrb[26].mxu1 %vm4026_vm3, %v36795_v11  ;;  %v10071_v11 = vld [vmem:[#allocation4 + $0x68] sm:$0xff] }
 0x71b   : > { %27012 = vmatprep.mubr.msk.f32.mxu0 %vm4026_vm3, %v36796_v9  ;;  %28020 = vmatprep.mubr.msk.f32.mxu1 %vm4026_vm3, %v36796_v9  ;;  %v10072_v9 = vld [vmem:[#allocation4 + $0x78] sm:$0xff] }
 0x71e   : > { %27013 = vmatmul.mubr.msk.f32.gmra.mrb[92].mxu0 %vm4026_vm3, %v36797_v27  ;;  %28021 = vmatmul.mubr.msk.f32.gmra.mrb[28].mxu1 %vm4026_vm3, %v36797_v27  ;;  %v10073_v27 = vld [vmem:[#allocation4 + $0x80] sm:$0xff] }
 0x71f   : > { %27015 = vmatprep.mubr.msk.f32.mxu0 %vm4026_vm3, %v34825_v37  ;;  %28023 = vmatprep.mubr.msk.f32.mxu1 %vm4026_vm3, %v34825_v37 }
 0x722   : > { %27016 = vmatmul.mubr.msk.f32.gmra.mrb[94].mxu0 %vm4026_vm3, %v34831_v6  ;;  %28024 = vmatmul.mubr.msk.f32.gmra.mrb[30].mxu1 %vm4026_vm3, %v34831_v6 }
 0x723   : > { %27026 = vmatprep.mubr.msk.f32.mxu0 %vm4026_vm3, %v34309_v10  ;;  %28034 = vmatprep.mubr.msk.f32.mxu1 %vm4026_vm3, %v34309_v10  ;;  %v36811_v10 = vld [vmem:[#allocation17_spill] sm:$0xff] }
 0x726   : > { %27027 = vmatmul.mubr.msk.f32.vlgmr.msra.gmra.mrb[64].mxu0 %vm4026_vm3, %v34322_v35  ;;  %28035 = vmatmul.mubr.msk.f32.vlgmr.msra.gmra.mrb[0].mxu1 %vm4026_vm3, %v34322_v35  ;;  %v36812_v35 = vld [vmem:[#allocation18_spill] sm:$0xff] }
 0x727   : > { %28877 = vmatpush3.bf16.msra.mxu0 %v34705_v15  ;;  %27029 = vmatprep.mubr.msk.f32.mxu0 %vm4026_vm3, %v34337_v19  ;;  %v22866_v15 = vld [vmem:[%s36316_s5 + $0x100] sm:$0xff] }
 0x728   : > { %28037 = vmatprep.mubr.msk.f32.mxu1 %vm4026_vm3, %v34337_v19  ;;  %28879 = vmatprep.subr.bf16.mxu0 %v28878_v5  ;;  %v36813_v19 = vld [vmem:[#allocation19_spill] sm:$0xff]  ;;  %v35027_v56 = vpack.c.bf16 %v22867_v38, %v22866_v15  ;;  %v10473_v15 = vld [vmem:[#allocation4 + $0xf9] sm:$0xff] }
 0x729   : > { %29021 = vmatpush3.bf16.msra.mxu1 %v34721_v53  ;;  %v10069_v53 = vld [vmem:[#allocation4 + $0x50] sm:$0xff] }
 0x72a   : > { %27030 = vmatmul.mubr.msk.f32.gmra.mrb[66].mxu0 %vm4026_vm3, %v34345_v20  ;;  %28038 = vmatmul.mubr.msk.f32.gmra.mrb[2].mxu1 %vm4026_vm3, %v34345_v20  ;;  %v36815_v20 = vld [vmem:[#allocation21_spill] sm:$0xff]  ;;  %v10474_v38 = vld [vmem:[#allocation4 + $0x109] sm:$0xff] }
 0x72b   : > { %27032 = vmatprep.mubr.msk.f32.mxu0 %vm4026_vm3, %v36798_v52  ;;  %28040 = vmatprep.mubr.msk.f32.mxu1 %vm4026_vm3, %v36798_v52  ;;  %v10085_v52 = vld [vmem:[#allocation4 + $0x110] sm:$0xff] }
 0x72c   : > { %28881 = vmatpush3.bf16.msra.mxu0 %v28878_v5  ;;  %29023 = vmatprep.subr.bf16.mxu1 %v29022_v22  ;;  %v10076_v5 = vld [vmem:[#allocation4 + $0xa8] sm:$0xff] }
 0x72d   : > { %29025 = vmatpush3.bf16.msra.mxu1 %v29022_v22  ;;  %28883 = vmatprep.subr.bf16.mxu0 %v34869_v28  ;;  %v10081_v22 = vld [vmem:[#allocation4 + $0xe0] sm:$0xff] }
 0x72e   : > { %27033 = vmatmul.mubr.msk.f32.gmra.mrb[68].mxu0 %vm4026_vm3, %v36799_v58  ;;  %28041 = vmatmul.mubr.msk.f32.gmra.mrb[4].mxu1 %vm4026_vm3, %v36799_v58  ;;  %v10087_v58 = vld [vmem:[#allocation4 + $0x128] sm:$0xff] }
 0x72f   : > { %27035 = vmatprep.mubr.msk.f32.mxu0 %vm4026_vm3, %v36800_v2  ;;  %28043 = vmatprep.mubr.msk.f32.mxu1 %vm4026_vm3, %v36800_v2  ;;  %v10088_v2 = vld [vmem:[#allocation4 + $0x138] sm:$0xff] }
 0x730   : > { %29027 = vmatprep.subr.bf16.mxu1 %v34885_v57 }
 0x732   : > { %27036 = vmatmul.mubr.msk.f32.gmra.mrb[70].mxu0 %vm4026_vm3, %v36801_v12  ;;  %28044 = vmatmul.mubr.msk.f32.gmra.mrb[6].mxu1 %vm4026_vm3, %v36801_v12  ;;  %v10089_v12 = vld [vmem:[#allocation4 + $0x140] sm:$0xff] }
 0x733   : > { %27038 = vmatprep.mubr.msk.f32.mxu0 %vm4026_vm3, %v36802_v18  ;;  %28046 = vmatprep.mubr.msk.f32.mxu1 %vm4026_vm3, %v36802_v18  ;;  %v10090_v18 = vld [vmem:[#allocation4 + $0x150] sm:$0xff] }
 0x736   : > { %27039 = vmatmul.mubr.msk.f32.gmra.mrb[72].mxu0 %vm4026_vm3, %v36803_v21  ;;  %28047 = vmatmul.mubr.msk.f32.gmra.mrb[8].mxu1 %vm4026_vm3, %v36803_v21  ;;  %v10091_v21 = vld [vmem:[#allocation4 + $0x158] sm:$0xff] }
 0x737   : > { %27041 = vmatprep.mubr.msk.f32.mxu0 %vm4026_vm3, %v36804_v61  ;;  %28049 = vmatprep.mubr.msk.f32.mxu1 %vm4026_vm3, %v36804_v61  ;;  %v10092_v61 = vld [vmem:[#allocation4 + $0x168] sm:$0xff] }
 0x73a   : > { %27042 = vmatmul.mubr.msk.f32.gmra.mrb[74].mxu0 %vm4026_vm3, %v36805_v39  ;;  %28050 = vmatmul.mubr.msk.f32.gmra.mrb[10].mxu1 %vm4026_vm3, %v36805_v39  ;;  %v10093_v39 = vld [vmem:[#allocation4 + $0x170] sm:$0xff] }
 0x73b   : > { %27044 = vmatprep.mubr.msk.f32.mxu0 %vm4026_vm3, %v36806_v40  ;;  %28052 = vmatprep.mubr.msk.f32.mxu1 %vm4026_vm3, %v36806_v40  ;;  %v10096_v40 = vld [vmem:[#allocation4 + $0x198] sm:$0xff] }
 0x73e   : > { %27045 = vmatmul.mubr.msk.f32.gmra.mrb[76].mxu0 %vm4026_vm3, %v36807_v36  ;;  %28053 = vmatmul.mubr.msk.f32.gmra.mrb[12].mxu1 %vm4026_vm3, %v36807_v36  ;;  %v10097_v36 = vld [vmem:[#allocation4 + $0x1a0] sm:$0xff] }
 0x73f   : > { %27047 = vmatprep.mubr.msk.f32.mxu0 %vm4026_vm3, %v36808_v42  ;;  %28055 = vmatprep.mubr.msk.f32.mxu1 %vm4026_vm3, %v36808_v42  ;;  %v22868_v42 = vld [vmem:[%s36316_s5 + $0x110] sm:$0xff] }
 0x742   : > { %27048 = vmatmul.mubr.msk.f32.gmra.mrb[78].mxu0 %vm4026_vm3, %v36809_v32  ;;  %28056 = vmatmul.mubr.msk.f32.gmra.mrb[14].mxu1 %vm4026_vm3, %v36809_v32  ;;  %v10456_v32 = vld [vmem:[#allocation4 + $0x31] sm:$0xff] }
 0x743   : > { %27050 = vmatprep.mubr.msk.f32.mxu0 %vm4026_vm3, %v36810_v55  ;;  %28058 = vmatprep.mubr.msk.f32.mxu1 %vm4026_vm3, %v36810_v55  ;;  %v10457_v55 = vld [vmem:[#allocation4 + $0x39] sm:$0xff] }
 0x746   : > { %27051 = vmatmul.mubr.msk.f32.gmra.mrb[80].mxu0 %vm4026_vm3, %v36811_v10  ;;  %28059 = vmatmul.mubr.msk.f32.gmra.mrb[16].mxu1 %vm4026_vm3, %v36811_v10  ;;  %v23509_v10 = vld [vmem:[%s36319_s8 + $0x110] sm:$0xff] }
 0x747   : > { %27053 = vmatprep.mubr.msk.f32.mxu0 %vm4026_vm3, %v36812_v35  ;;  %28061 = vmatprep.mubr.msk.f32.mxu1 %vm4026_vm3, %v36812_v35  ;;  %v23510_v35 = vld [vmem:[%s36319_s8 + $0x118] sm:$0xff] }
 0x74a   : > { %27054 = vmatmul.mubr.msk.f32.gmra.mrb[82].mxu0 %vm4026_vm3, %v36813_v19  ;;  %28062 = vmatmul.mubr.msk.f32.gmra.mrb[18].mxu1 %vm4026_vm3, %v36813_v19  ;;  %v10458_v19 = vld [vmem:[#allocation4 + $0x49] sm:$0xff] }
 0x74b   : > { %27056 = vmatprep.mubr.msk.f32.mxu0 %vm4026_vm3, %v36814_v23  ;;  %28064 = vmatprep.mubr.msk.f32.mxu1 %vm4026_vm3, %v36814_v23  ;;  %v29038_v23 = vpack.c.bf16 %v23510_v35, %v23509_v10  ;;  %v10871_v10 = vld [vmem:[#allocation4 + $0x15a] sm:$0xff]  ;;  %v10872_v35 = vld [vmem:[#allocation4 + $0x16a] sm:$0xff] }
 0x74e   : > { %27057 = vmatmul.mubr.msk.f32.gmra.mrb[84].mxu0 %vm4026_vm3, %v36815_v20  ;;  %28065 = vmatmul.mubr.msk.f32.gmra.mrb[20].mxu1 %vm4026_vm3, %v36815_v20  ;;  %v10459_v20 = vld [vmem:[#allocation4 + $0x51] sm:$0xff] }
 0x74f   : > { %27059 = vmatprep.mubr.msk.f32.mxu0 %vm4026_vm3, %v36816_v34  ;;  %28067 = vmatprep.mubr.msk.f32.mxu1 %vm4026_vm3, %v36816_v34  ;;  %v18380_v34 = vld [vmem:[%s36320_s9] sm:$0xff] }
 0x752   : > { %27060 = vmatmul.mubr.msk.f32.gmra.mrb[86].mxu0 %vm4026_vm3, %v36817_v25  ;;  %28068 = vmatmul.mubr.msk.f32.gmra.mrb[22].mxu1 %vm4026_vm3, %v36817_v25  ;;  %v18381_v25 = vld [vmem:[%s36320_s9 + $0x8] sm:$0xff] }
 0x753   : > { %27062 = vmatprep.mubr.msk.f32.mxu0 %vm4026_vm3, %v36818_v7  ;;  %28070 = vmatprep.mubr.msk.f32.mxu1 %vm4026_vm3, %v36818_v7  ;;  %v10460_v7 = vld [vmem:[#allocation4 + $0x61] sm:$0xff] }
 0x756   : > { %27063 = vmatmul.mubr.msk.f32.gmra.mrb[88].mxu0 %vm4026_vm3, %v36819_v63  ;;  %28071 = vmatmul.mubr.msk.f32.gmra.mrb[24].mxu1 %vm4026_vm3, %v36819_v63  ;;  %v35131_v63 = vpack.c.bf16 %v18381_v25, %v18380_v34  ;;  %v18348_v34 = vld [vmem:[#allocation5] sm:$0xff]  ;;  %v23576_v25 = vld [vmem:[%s36320_s9 + $0x28] sm:$0xff] }
 0x757   : > { %27065 = vmatprep.mubr.msk.f32.mxu0 %vm4026_vm3, %v36820_v49  ;;  %28073 = vmatprep.mubr.msk.f32.mxu1 %vm4026_vm3, %v36820_v49  ;;  %v10461_v49 = vld [vmem:[#allocation4 + $0x69] sm:$0xff] }
 0x75a   : > { %27066 = vmatmul.mubr.msk.f32.gmra.mrb[90].mxu0 %vm4026_vm3, %v36821_v4  ;;  %28074 = vmatmul.mubr.msk.f32.gmra.mrb[26].mxu1 %vm4026_vm3, %v36821_v4  ;;  %v10462_v4 = vld [vmem:[#allocation4 + $0x79] sm:$0xff] }
 0x75b   : > { %27068 = vmatprep.mubr.msk.f32.mxu0 %vm4026_vm3, %v36822_v50  ;;  %28076 = vmatprep.mubr.msk.f32.mxu1 %vm4026_vm3, %v36822_v50  ;;  %v10463_v50 = vld [vmem:[#allocation4 + $0x81] sm:$0xff] }
 0x75e   : > { %27069 = vmatmul.mubr.msk.f32.gmra.mrb[92].mxu0 %vm4026_vm3, %v36823_v29  ;;  %28077 = vmatmul.mubr.msk.f32.gmra.mrb[28].mxu1 %vm4026_vm3, %v36823_v29  ;;  %v10464_v29 = vld [vmem:[#allocation4 + $0x91] sm:$0xff] }
 0x75f   : > { %27071 = vmatprep.mubr.msk.f32.mxu0 %vm4026_vm3, %v34989_v0  ;;  %28079 = vmatprep.mubr.msk.f32.mxu1 %vm4026_vm3, %v34989_v0 }
 0x762   : > { %27072 = vmatmul.mubr.msk.f32.gmra.mrb[94].mxu0 %vm4026_vm3, %v34995_v59  ;;  %28080 = vmatmul.mubr.msk.f32.gmra.mrb[30].mxu1 %vm4026_vm3, %v34995_v59 }
 0x763   : > { %27082 = vmatprep.mubr.msk.f32.mxu0 %vm4026_vm3, %v10066_v31  ;;  %28090 = vmatprep.mubr.msk.f32.mxu1 %vm4026_vm3, %v10066_v31  ;;  %v10467_v31 = vld [vmem:[#allocation4 + $0xb1] sm:$0xff] }
 0x766   : > { %27083 = vmatmul.mubr.msk.f32.vlgmr.msra.gmra.mrb[64].mxu0 %vm4026_vm3, %v10067_v44  ;;  %28091 = vmatmul.mubr.msk.f32.vlgmr.msra.gmra.mrb[0].mxu1 %vm4026_vm3, %v10067_v44  ;;  %v10469_v44 = vld [vmem:[#allocation4 + $0xc9] sm:$0xff] }
 0x767   : > { %28885 = vmatpush3.bf16.msra.mxu0 %v34869_v28  ;;  %27085 = vmatprep.mubr.msk.f32.mxu0 %vm4026_vm3, %v10068_v14  ;;  %v10082_v28 = vld [vmem:[#allocation4 + $0xf0] sm:$0xff] }
 0x768   : > { %28093 = vmatprep.mubr.msk.f32.mxu1 %vm4026_vm3, %v10068_v14  ;;  %28887 = vmatprep.subr.bf16.mxu0 %v28886_v41  ;;  %v10472_v14 = vld [vmem:[#allocation4 + $0xf1] sm:$0xff] }
 0x769   : > { %29029 = vmatpush3.bf16.msra.mxu1 %v34885_v57  ;;  %v10086_v57 = vld [vmem:[#allocation4 + $0x120] sm:$0xff] }
 0x76a   : > { %27086 = vmatmul.mubr.msk.f32.gmra.mrb[66].mxu0 %vm4026_vm3, %v10069_v53  ;;  %28094 = vmatmul.mubr.msk.f32.gmra.mrb[2].mxu1 %vm4026_vm3, %v10069_v53  ;;  %v10476_v53 = vld [vmem:[#allocation4 + $0x121] sm:$0xff] }
 0x76b   : > { %27088 = vmatprep.mubr.msk.f32.mxu0 %vm4026_vm3, %v10070_v46  ;;  %28096 = vmatprep.mubr.msk.f32.mxu1 %vm4026_vm3, %v10070_v46  ;;  %v10480_v46 = vld [vmem:[#allocation4 + $0x151] sm:$0xff] }
 0x76c   : > { %28889 = vmatpush3.bf16.msra.mxu0 %v28886_v41  ;;  %29031 = vmatprep.subr.bf16.mxu1 %v29030_v3  ;;  %v10468_v41 = vld [vmem:[#allocation4 + $0xc1] sm:$0xff] }
 0x76d   : > { %29033 = vmatpush3.bf16.msra.mxu1 %v29030_v3  ;;  %28891 = vmatprep.subr.bf16.mxu0 %v35027_v56  ;;  %v10475_v3 = vld [vmem:[#allocation4 + $0x111] sm:$0xff] }
 0x76e   : > { %27089 = vmatmul.mubr.msk.f32.gmra.mrb[68].mxu0 %vm4026_vm3, %v10071_v11  ;;  %28097 = vmatmul.mubr.msk.f32.gmra.mrb[4].mxu1 %vm4026_vm3, %v10071_v11  ;;  %v10482_v11 = vld [vmem:[#allocation4 + $0x169] sm:$0xff] }
 0x76f   : > { %27091 = vmatprep.mubr.msk.f32.mxu0 %vm4026_vm3, %v10072_v9  ;;  %28099 = vmatprep.mubr.msk.f32.mxu1 %vm4026_vm3, %v10072_v9  ;;  %v10483_v9 = vld [vmem:[#allocation4 + $0x171] sm:$0xff] }
 0x770   : > { %29035 = vmatprep.subr.bf16.mxu1 %v35039_v51 }
 0x772   : > { %27092 = vmatmul.mubr.msk.f32.gmra.mrb[70].mxu0 %vm4026_vm3, %v10073_v27  ;;  %28100 = vmatmul.mubr.msk.f32.gmra.mrb[6].mxu1 %vm4026_vm3, %v10073_v27  ;;  %v10486_v27 = vld [vmem:[#allocation4 + $0x199] sm:$0xff] }
 0x773   : > { %27094 = vmatprep.mubr.msk.f32.mxu0 %vm4026_vm3, %v10074_v60  ;;  %28102 = vmatprep.mubr.msk.f32.mxu1 %vm4026_vm3, %v10074_v60  ;;  %v10487_v60 = vld [vmem:[#allocation4 + $0x1a1] sm:$0xff] }
 0x776   : > { %27095 = vmatmul.mubr.msk.f32.gmra.mrb[72].mxu0 %vm4026_vm3, %v10075_v47  ;;  %28103 = vmatmul.mubr.msk.f32.gmra.mrb[8].mxu1 %vm4026_vm3, %v10075_v47  ;;  %v10846_v47 = vld [vmem:[#allocation4 + $0x32] sm:$0xff] }
 0x777   : > { %27097 = vmatprep.mubr.msk.f32.mxu0 %vm4026_vm3, %v10076_v5  ;;  %28105 = vmatprep.mubr.msk.f32.mxu1 %vm4026_vm3, %v10076_v5  ;;  %v18383_v5 = vld [vmem:[%s36320_s9 + $0x18] sm:$0xff] }
 0x77a   : > { %27098 = vmatmul.mubr.msk.f32.gmra.mrb[74].mxu0 %vm4026_vm3, %v10077_v26  ;;  %28106 = vmatmul.mubr.msk.f32.gmra.mrb[10].mxu1 %vm4026_vm3, %v10077_v26 }
 0x77b   : > { %27100 = vmatprep.mubr.msk.f32.mxu0 %vm4026_vm3, %v10078_v48  ;;  %28108 = vmatprep.mubr.msk.f32.mxu1 %vm4026_vm3, %v10078_v48  ;;  %v10848_v48 = vld [vmem:[#allocation4 + $0x4a] sm:$0xff] }
 0x77e   : > { %27101 = vmatmul.mubr.msk.f32.gmra.mrb[76].mxu0 %vm4026_vm3, %v10079_v13  ;;  %28109 = vmatmul.mubr.msk.f32.gmra.mrb[12].mxu1 %vm4026_vm3, %v10079_v13  ;;  %v10849_v13 = vld [vmem:[#allocation4 + $0x52] sm:$0xff] }
 0x77f   : > { %27103 = vmatprep.mubr.msk.f32.mxu0 %vm4026_vm3, %v10080_v30  ;;  %28111 = vmatprep.mubr.msk.f32.mxu1 %vm4026_vm3, %v10080_v30  ;;  %v10850_v30 = vld [vmem:[#allocation4 + $0x62] sm:$0xff] }
 0x782   : > { %27104 = vmatmul.mubr.msk.f32.gmra.mrb[78].mxu0 %vm4026_vm3, %v10081_v22  ;;  %28112 = vmatmul.mubr.msk.f32.gmra.mrb[14].mxu1 %vm4026_vm3, %v10081_v22  ;;  %v10851_v22 = vld [vmem:[#allocation4 + $0x6a] sm:$0xff] }
 0x783   : > { %27106 = vmatprep.mubr.msk.f32.mxu0 %vm4026_vm3, %v10082_v28  ;;  %28114 = vmatprep.mubr.msk.f32.mxu1 %vm4026_vm3, %v10082_v28  ;;  %v10852_v28 = vld [vmem:[#allocation4 + $0x7a] sm:$0xff] }
 0x786   : > { %27107 = vmatmul.mubr.msk.f32.gmra.mrb[80].mxu0 %vm4026_vm3, %v10083_v33  ;;  %28115 = vmatmul.mubr.msk.f32.gmra.mrb[16].mxu1 %vm4026_vm3, %v10083_v33  ;;  %v10853_v33 = vld [vmem:[#allocation4 + $0x82] sm:$0xff] }
 0x787   : > { %27109 = vmatprep.mubr.msk.f32.mxu0 %vm4026_vm3, %v10084_v45  ;;  %28117 = vmatprep.mubr.msk.f32.mxu1 %vm4026_vm3, %v10084_v45  ;;  %v10854_v45 = vld [vmem:[#allocation4 + $0x92] sm:$0xff] }
 0x78a   : > { %27110 = vmatmul.mubr.msk.f32.gmra.mrb[82].mxu0 %vm4026_vm3, %v10085_v52  ;;  %28118 = vmatmul.mubr.msk.f32.gmra.mrb[18].mxu1 %vm4026_vm3, %v10085_v52  ;;  %v10855_v52 = vld [vmem:[#allocation4 + $0x9a] sm:$0xff] }
 0x78b   : > { %27112 = vmatprep.mubr.msk.f32.mxu0 %vm4026_vm3, %v10086_v57  ;;  %28120 = vmatprep.mubr.msk.f32.mxu1 %vm4026_vm3, %v10086_v57  ;;  %v10856_v57 = vld [vmem:[#allocation4 + $0xaa] sm:$0xff] }
 0x78e   : > { %27113 = vmatmul.mubr.msk.f32.gmra.mrb[84].mxu0 %vm4026_vm3, %v10087_v58  ;;  %28121 = vmatmul.mubr.msk.f32.gmra.mrb[20].mxu1 %vm4026_vm3, %v10087_v58  ;;  %v10857_v58 = vld [vmem:[#allocation4 + $0xb2] sm:$0xff] }
 0x78f   : > { %27115 = vmatprep.mubr.msk.f32.mxu0 %vm4026_vm3, %v10088_v2  ;;  %28123 = vmatprep.mubr.msk.f32.mxu1 %vm4026_vm3, %v10088_v2  ;;  %v10858_v2 = vld [vmem:[#allocation4 + $0xc2] sm:$0xff] }
 0x792   : > { %27116 = vmatmul.mubr.msk.f32.gmra.mrb[86].mxu0 %vm4026_vm3, %v10089_v12  ;;  %28124 = vmatmul.mubr.msk.f32.gmra.mrb[22].mxu1 %vm4026_vm3, %v10089_v12  ;;  %v10859_v12 = vld [vmem:[#allocation4 + $0xca] sm:$0xff] }
 0x793   : > { %27118 = vmatprep.mubr.msk.f32.mxu0 %vm4026_vm3, %v10090_v18  ;;  %28126 = vmatprep.mubr.msk.f32.mxu1 %vm4026_vm3, %v10090_v18  ;;  %v10860_v18 = vld [vmem:[#allocation4 + $0xda] sm:$0xff] }
 0x796   : > { %27119 = vmatmul.mubr.msk.f32.gmra.mrb[88].mxu0 %vm4026_vm3, %v10091_v21  ;;  %28127 = vmatmul.mubr.msk.f32.gmra.mrb[24].mxu1 %vm4026_vm3, %v10091_v21  ;;  %v10861_v21 = vld [vmem:[#allocation4 + $0xe2] sm:$0xff] }
 0x797   : > { %27121 = vmatprep.mubr.msk.f32.mxu0 %vm4026_vm3, %v10092_v61  ;;  %28129 = vmatprep.mubr.msk.f32.mxu1 %vm4026_vm3, %v10092_v61  ;;  %v10862_v61 = vld [vmem:[#allocation4 + $0xf2] sm:$0xff] }
 0x79a   : > { %27122 = vmatmul.mubr.msk.f32.gmra.mrb[90].mxu0 %vm4026_vm3, %v10093_v39  ;;  %28130 = vmatmul.mubr.msk.f32.gmra.mrb[26].mxu1 %vm4026_vm3, %v10093_v39  ;;  %v10863_v39 = vld [vmem:[#allocation4 + $0xfa] sm:$0xff] }
 0x79b   : > { %27124 = vmatprep.mubr.msk.f32.mxu0 %vm4026_vm3, %v34661_v62  ;;  %28132 = vmatprep.mubr.msk.f32.mxu1 %vm4026_vm3, %v34661_v62  ;;  %v22869_v62 = vld [vmem:[%s36316_s5 + $0x118] sm:$0xff] }
 0x79e   : > { %27125 = vmatmul.mubr.msk.f32.gmra.mrb[92].mxu0 %vm4026_vm3, %v34667_v17  ;;  %28133 = vmatmul.mubr.msk.f32.gmra.mrb[28].mxu1 %vm4026_vm3, %v34667_v17  ;;  %v28894_v17 = vpack.c.bf16 %v22869_v62, %v22868_v42  ;;  %v10866_v42 = vld [vmem:[#allocation4 + $0x122] sm:$0xff]  ;;  %v10867_v62 = vld [vmem:[#allocation4 + $0x12a] sm:$0xff] }
 0x79f   : > { %27127 = vmatprep.mubr.msk.f32.mxu0 %vm4026_vm3, %v10096_v40  ;;  %28135 = vmatprep.mubr.msk.f32.mxu1 %vm4026_vm3, %v10096_v40  ;;  %v10864_v40 = vld [vmem:[#allocation4 + $0x10a] sm:$0xff] }
 0x7a2   : > { %27128 = vmatmul.mubr.msk.f32.gmra.mrb[94].mxu0 %vm4026_vm3, %v10097_v36  ;;  %28136 = vmatmul.mubr.msk.f32.gmra.mrb[30].mxu1 %vm4026_vm3, %v10097_v36  ;;  %v10865_v36 = vld [vmem:[#allocation4 + $0x112] sm:$0xff] }
 0x7a3   : > { %27138 = vmatprep.mubr.msk.f32.mxu0 %vm4026_vm3, %v10456_v32  ;;  %28146 = vmatprep.mubr.msk.f32.mxu1 %vm4026_vm3, %v10456_v32  ;;  %v10868_v32 = vld [vmem:[#allocation4 + $0x13a] sm:$0xff] }
 0x7a6   : > { %27139 = vmatmul.mubr.msk.f32.vlgmr.msra.gmra.mrb[64].mxu0 %vm4026_vm3, %v10457_v55  ;;  %28147 = vmatmul.mubr.msk.f32.vlgmr.msra.gmra.mrb[0].mxu1 %vm4026_vm3, %v10457_v55  ;;  %v10870_v55 = vld [vmem:[#allocation4 + $0x152] sm:$0xff] }
 0x7a7   : > { %28893 = vmatpush3.bf16.msra.mxu0 %v35027_v56  ;;  %27141 = vmatprep.mubr.msk.f32.mxu0 %vm4026_vm3, %v10458_v19  ;;  %v10477_v56 = vld [vmem:[#allocation4 + $0x129] sm:$0xff] }
 0x7a8   : > { %28149 = vmatprep.mubr.msk.f32.mxu1 %vm4026_vm3, %v10458_v19  ;;  %28895 = vmatprep.subr.bf16.mxu0 %v28894_v17  ;;  %v10873_v19 = vld [vmem:[#allocation4 + $0x172] sm:$0xff] }
 0x7a9   : > { %29037 = vmatpush3.bf16.msra.mxu1 %v35039_v51  ;;  %v10481_v51 = vld [vmem:[#allocation4 + $0x159] sm:$0xff] }
 0x7aa   : > { %27142 = vmatmul.mubr.msk.f32.gmra.mrb[66].mxu0 %vm4026_vm3, %v10459_v20  ;;  %28150 = vmatmul.mubr.msk.f32.gmra.mrb[2].mxu1 %vm4026_vm3, %v10459_v20  ;;  %v10877_v20 = vld [vmem:[#allocation4 + $0x1a2] sm:$0xff] }
 0x7ab   : > { %27144 = vmatprep.mubr.msk.f32.mxu0 %vm4026_vm3, %v10460_v7  ;;  %28152 = vmatprep.mubr.msk.f32.mxu1 %vm4026_vm3, %v10460_v7  ;;  %v18349_v7 = vld [vmem:[#allocation5 + $0x8] sm:$0xff] }
 0x7ac   : > { %28897 = vmatpush3.bf16.msra.mxu0 %v28894_v17  ;;  %29039 = vmatprep.subr.bf16.mxu1 %v29038_v23  ;;  %v10869_v17 = vld [vmem:[#allocation4 + $0x142] sm:$0xff] }
 0x7ad   : > { %29041 = vmatpush3.bf16.msra.mxu1 %v29038_v23  ;;  %v10876_v23 = vld [vmem:[#allocation4 + $0x19a] sm:$0xff] }
 0x7ae   : > { %27145 = vmatmul.mubr.msk.f32.gmra.mrb[68].mxu0 %vm4026_vm3, %v10461_v49  ;;  %28153 = vmatmul.mubr.msk.f32.gmra.mrb[4].mxu1 %vm4026_vm3, %v10461_v49  ;;  %v23578_v49 = vld [vmem:[%s36320_s9 + $0x38] sm:$0xff] }
 0x7af   : > { %27147 = vmatprep.mubr.msk.f32.mxu0 %vm4026_vm3, %v10462_v4  ;;  %28155 = vmatprep.mubr.msk.f32.mxu1 %vm4026_vm3, %v10462_v4 }
 0x7b0   : > { %29043 = vmatprep.subr.bf16.mxu1 %v35131_v63 }
 0x7b2   : > { %27148 = vmatmul.mubr.msk.f32.gmra.mrb[70].mxu0 %vm4026_vm3, %v10463_v50  ;;  %28156 = vmatmul.mubr.msk.f32.gmra.mrb[6].mxu1 %vm4026_vm3, %v10463_v50  ;;  %v23611_v50 = vld [vmem:[%s36320_s9 + $0x40] sm:$0xff] }
 0x7b3   : > { %27150 = vmatprep.mubr.msk.f32.mxu0 %vm4026_vm3, %v10464_v29  ;;  %28158 = vmatprep.mubr.msk.f32.mxu1 %vm4026_vm3, %v10464_v29  ;;  %v23612_v29 = vld [vmem:[%s36320_s9 + $0x48] sm:$0xff] }
 0x7b6   : > { %27151 = vmatmul.mubr.msk.f32.gmra.mrb[72].mxu0 %vm4026_vm3, %v10465_v1  ;;  %28159 = vmatmul.mubr.msk.f32.gmra.mrb[8].mxu1 %vm4026_vm3, %v10465_v1  ;;  %v35287_v1 = vpack.c.bf16 %v23612_v29, %v23611_v50 }
 0x7b7   : > { %27153 = vmatprep.mubr.msk.f32.mxu0 %vm4026_vm3, %v10466_v8  ;;  %28161 = vmatprep.mubr.msk.f32.mxu1 %vm4026_vm3, %v10466_v8  ;;  %v35293_v8 = vld [vmem:[%s36317_s6] ss:$0 sm:$0xff] }
 0x7ba   : > { %27154 = vmatmul.mubr.msk.f32.gmra.mrb[74].mxu0 %vm4026_vm3, %v10467_v31  ;;  %28162 = vmatmul.mubr.msk.f32.gmra.mrb[10].mxu1 %vm4026_vm3, %v10467_v31 }
 0x7bb   : > { %27156 = vmatprep.mubr.msk.f32.mxu0 %vm4026_vm3, %v10468_v41  ;;  %28164 = vmatprep.mubr.msk.f32.mxu1 %vm4026_vm3, %v10468_v41 }
 0x7be   : > { %27157 = vmatmul.mubr.msk.f32.gmra.mrb[76].mxu0 %vm4026_vm3, %v10469_v44  ;;  %28165 = vmatmul.mubr.msk.f32.gmra.mrb[12].mxu1 %vm4026_vm3, %v10469_v44 }
 0x7bf   : > { %27159 = vmatprep.mubr.msk.f32.mxu0 %vm4026_vm3, %v10470_v43  ;;  %28167 = vmatprep.mubr.msk.f32.mxu1 %vm4026_vm3, %v10470_v43 }
 0x7c2   : > { %27160 = vmatmul.mubr.msk.f32.gmra.mrb[78].mxu0 %vm4026_vm3, %v10471_v54  ;;  %28168 = vmatmul.mubr.msk.f32.gmra.mrb[14].mxu1 %vm4026_vm3, %v10471_v54 }
 0x7c3   : > { %27162 = vmatprep.mubr.msk.f32.mxu0 %vm4026_vm3, %v10472_v14  ;;  %28170 = vmatprep.mubr.msk.f32.mxu1 %vm4026_vm3, %v10472_v14 }
 0x7c6   : > { %27163 = vmatmul.mubr.msk.f32.gmra.mrb[80].mxu0 %vm4026_vm3, %v10473_v15  ;;  %28171 = vmatmul.mubr.msk.f32.gmra.mrb[16].mxu1 %vm4026_vm3, %v10473_v15 }
 0x7c7   : > { %27165 = vmatprep.mubr.msk.f32.mxu0 %vm4026_vm3, %v10474_v38  ;;  %28173 = vmatprep.mubr.msk.f32.mxu1 %vm4026_vm3, %v10474_v38 }
 0x7ca   : > { %27166 = vmatmul.mubr.msk.f32.gmra.mrb[82].mxu0 %vm4026_vm3, %v10475_v3  ;;  %28174 = vmatmul.mubr.msk.f32.gmra.mrb[18].mxu1 %vm4026_vm3, %v10475_v3 }
 0x7cb   : > { %27168 = vmatprep.mubr.msk.f32.mxu0 %vm4026_vm3, %v10476_v53  ;;  %28176 = vmatprep.mubr.msk.f32.mxu1 %vm4026_vm3, %v10476_v53 }
 0x7ce   : > { %27169 = vmatmul.mubr.msk.f32.gmra.mrb[84].mxu0 %vm4026_vm3, %v10477_v56  ;;  %28177 = vmatmul.mubr.msk.f32.gmra.mrb[20].mxu1 %vm4026_vm3, %v10477_v56 }
 0x7cf   : > { %27171 = vmatprep.mubr.msk.f32.mxu0 %vm4026_vm3, %v10478_v16  ;;  %28179 = vmatprep.mubr.msk.f32.mxu1 %vm4026_vm3, %v10478_v16 }
 0x7d2   : > { %27172 = vmatmul.mubr.msk.f32.gmra.mrb[86].mxu0 %vm4026_vm3, %v10479_v24  ;;  %28180 = vmatmul.mubr.msk.f32.gmra.mrb[22].mxu1 %vm4026_vm3, %v10479_v24 }
 0x7d3   : > { %27174 = vmatprep.mubr.msk.f32.mxu0 %vm4026_vm3, %v10480_v46  ;;  %28182 = vmatprep.mubr.msk.f32.mxu1 %vm4026_vm3, %v10480_v46 }
 0x7d6   : > { %27175 = vmatmul.mubr.msk.f32.gmra.mrb[88].mxu0 %vm4026_vm3, %v10481_v51  ;;  %28183 = vmatmul.mubr.msk.f32.gmra.mrb[24].mxu1 %vm4026_vm3, %v10481_v51 }
 0x7d7   : > { %27177 = vmatprep.mubr.msk.f32.mxu0 %vm4026_vm3, %v10482_v11  ;;  %28185 = vmatprep.mubr.msk.f32.mxu1 %vm4026_vm3, %v10482_v11 }
 0x7da   : > { %27178 = vmatmul.mubr.msk.f32.gmra.mrb[90].mxu0 %vm4026_vm3, %v10483_v9  ;;  %28186 = vmatmul.mubr.msk.f32.gmra.mrb[26].mxu1 %vm4026_vm3, %v10483_v9 }
 0x7db   : > { %27180 = vmatprep.mubr.msk.f32.mxu0 %vm4026_vm3, %v34825_v37  ;;  %28188 = vmatprep.mubr.msk.f32.mxu1 %vm4026_vm3, %v34825_v37  ;;  %v18382_v37 = vld [vmem:[%s36320_s9 + $0x10] sm:$0xff] }
 0x7dc   : > { %v29046_v26 = vpack.c.bf16 %v18383_v5, %v18382_v37 }
 0x7de   : > { %27181 = vmatmul.mubr.msk.f32.gmra.mrb[92].mxu0 %vm4026_vm3, %v34831_v6  ;;  %28189 = vmatmul.mubr.msk.f32.gmra.mrb[28].mxu1 %vm4026_vm3, %v34831_v6  ;;  %v10847_v6 = vld [vmem:[#allocation4 + $0x3a] sm:$0xff] }
 0x7df   : > { %27183 = vmatprep.mubr.msk.f32.mxu0 %vm4026_vm3, %v10486_v27  ;;  %28191 = vmatprep.mubr.msk.f32.mxu1 %vm4026_vm3, %v10486_v27 }
 0x7e2   : > { %27184 = vmatmul.mubr.msk.f32.gmra.mrb[94].mxu0 %vm4026_vm3, %v10487_v60  ;;  %28192 = vmatmul.mubr.msk.f32.gmra.mrb[30].mxu1 %vm4026_vm3, %v10487_v60 }
 0x7e3   : > { %27194 = vmatprep.mubr.msk.f32.mxu0 %vm4026_vm3, %v10846_v47  ;;  %28202 = vmatprep.mubr.msk.f32.mxu1 %vm4026_vm3, %v10846_v47 }
 0x7e6   : > { %27195 = vmatmul.mubr.msk.f32.vlgmr.msra.gmra.mrb[64].mxu0 %vm4026_vm3, %v10847_v6  ;;  %28203 = vmatmul.mubr.msk.f32.vlgmr.msra.gmra.mrb[0].mxu1 %vm4026_vm3, %v10847_v6 }
 0x7e7   : > { %27197 = vmatprep.mubr.msk.f32.mxu0 %vm4026_vm3, %v10848_v48  ;;  %28205 = vmatprep.mubr.msk.f32.mxu1 %vm4026_vm3, %v10848_v48 }
 0x7e8   : > { %29045 = vmatpush3.bf16.msra.mxu1 %v35131_v63  ;;  %v23577_v63 = vld [vmem:[%s36320_s9 + $0x30] sm:$0xff] }
 0x7e9   : > { %29047 = vmatprep.subr.bf16.mxu1 %v29046_v26  ;;  %v29054_v4 = vpack.c.bf16 %v23578_v49, %v23577_v63 }
 0x7ea   : > { %27198 = vmatmul.mubr.msk.f32.gmra.mrb[66].mxu0 %vm4026_vm3, %v10849_v13  ;;  %28206 = vmatmul.mubr.msk.f32.gmra.mrb[2].mxu1 %vm4026_vm3, %v10849_v13 }
 0x7eb   : > { %27200 = vmatprep.mubr.msk.f32.mxu0 %vm4026_vm3, %v10850_v30  ;;  %28208 = vmatprep.mubr.msk.f32.mxu1 %vm4026_vm3, %v10850_v30 }
 0x7ec   : > { %29049 = vmatpush3.bf16.msra.mxu1 %v29046_v26 }
 0x7ee   : > { %27201 = vmatmul.mubr.msk.f32.gmra.mrb[68].mxu0 %vm4026_vm3, %v10851_v22  ;;  %28209 = vmatmul.mubr.msk.f32.gmra.mrb[4].mxu1 %vm4026_vm3, %v10851_v22 }
 0x7ef   : > { %27203 = vmatprep.mubr.msk.f32.mxu0 %vm4026_vm3, %v10852_v28  ;;  %28211 = vmatprep.mubr.msk.f32.mxu1 %vm4026_vm3, %v10852_v28 }
 0x7f2   : > { %27204 = vmatmul.mubr.msk.f32.gmra.mrb[70].mxu0 %vm4026_vm3, %v10853_v33  ;;  %28212 = vmatmul.mubr.msk.f32.gmra.mrb[6].mxu1 %vm4026_vm3, %v10853_v33 }
 0x7f3   : > { %27206 = vmatprep.mubr.msk.f32.mxu0 %vm4026_vm3, %v10854_v45  ;;  %28214 = vmatprep.mubr.msk.f32.mxu1 %vm4026_vm3, %v10854_v45 }
 0x7f6   : > { %27207 = vmatmul.mubr.msk.f32.gmra.mrb[72].mxu0 %vm4026_vm3, %v10855_v52  ;;  %28215 = vmatmul.mubr.msk.f32.gmra.mrb[8].mxu1 %vm4026_vm3, %v10855_v52 }
 0x7f7   : > { %27209 = vmatprep.mubr.msk.f32.mxu0 %vm4026_vm3, %v10856_v57  ;;  %28217 = vmatprep.mubr.msk.f32.mxu1 %vm4026_vm3, %v10856_v57 }
 0x7fa   : > { %27210 = vmatmul.mubr.msk.f32.gmra.mrb[74].mxu0 %vm4026_vm3, %v10857_v58  ;;  %28218 = vmatmul.mubr.msk.f32.gmra.mrb[10].mxu1 %vm4026_vm3, %v10857_v58 }
 0x7fb   : > { %27212 = vmatprep.mubr.msk.f32.mxu0 %vm4026_vm3, %v10858_v2  ;;  %28220 = vmatprep.mubr.msk.f32.mxu1 %vm4026_vm3, %v10858_v2 }
 0x7fe   : > { %27213 = vmatmul.mubr.msk.f32.gmra.mrb[76].mxu0 %vm4026_vm3, %v10859_v12  ;;  %28221 = vmatmul.mubr.msk.f32.gmra.mrb[12].mxu1 %vm4026_vm3, %v10859_v12 }
 0x7ff   : > { %27215 = vmatprep.mubr.msk.f32.mxu0 %vm4026_vm3, %v10860_v18  ;;  %28223 = vmatprep.mubr.msk.f32.mxu1 %vm4026_vm3, %v10860_v18 }
 0x802   : > { %27216 = vmatmul.mubr.msk.f32.gmra.mrb[78].mxu0 %vm4026_vm3, %v10861_v21  ;;  %28224 = vmatmul.mubr.msk.f32.gmra.mrb[14].mxu1 %vm4026_vm3, %v10861_v21 }
 0x803   : > { %27218 = vmatprep.mubr.msk.f32.mxu0 %vm4026_vm3, %v10862_v61  ;;  %28226 = vmatprep.mubr.msk.f32.mxu1 %vm4026_vm3, %v10862_v61 }
 0x806   : > { %27219 = vmatmul.mubr.msk.f32.gmra.mrb[80].mxu0 %vm4026_vm3, %v10863_v39  ;;  %28227 = vmatmul.mubr.msk.f32.gmra.mrb[16].mxu1 %vm4026_vm3, %v10863_v39 }
 0x807   : > { %27221 = vmatprep.mubr.msk.f32.mxu0 %vm4026_vm3, %v10864_v40  ;;  %28229 = vmatprep.mubr.msk.f32.mxu1 %vm4026_vm3, %v10864_v40 }
 0x80a   : > { %27222 = vmatmul.mubr.msk.f32.gmra.mrb[82].mxu0 %vm4026_vm3, %v10865_v36  ;;  %28230 = vmatmul.mubr.msk.f32.gmra.mrb[18].mxu1 %vm4026_vm3, %v10865_v36 }
 0x80b   : > { %27224 = vmatprep.mubr.msk.f32.mxu0 %vm4026_vm3, %v10866_v42  ;;  %28232 = vmatprep.mubr.msk.f32.mxu1 %vm4026_vm3, %v10866_v42 }
 0x80e   : > { %27225 = vmatmul.mubr.msk.f32.gmra.mrb[84].mxu0 %vm4026_vm3, %v10867_v62  ;;  %28233 = vmatmul.mubr.msk.f32.gmra.mrb[20].mxu1 %vm4026_vm3, %v10867_v62 }
 0x80f   : > { %27227 = vmatprep.mubr.msk.f32.mxu0 %vm4026_vm3, %v10868_v32  ;;  %28235 = vmatprep.mubr.msk.f32.mxu1 %vm4026_vm3, %v10868_v32 }
 0x812   : > { %27228 = vmatmul.mubr.msk.f32.gmra.mrb[86].mxu0 %vm4026_vm3, %v10869_v17  ;;  %28236 = vmatmul.mubr.msk.f32.gmra.mrb[22].mxu1 %vm4026_vm3, %v10869_v17 }
 0x813   : > { %27230 = vmatprep.mubr.msk.f32.mxu0 %vm4026_vm3, %v10870_v55  ;;  %28238 = vmatprep.mubr.msk.f32.mxu1 %vm4026_vm3, %v10870_v55 }
 0x816   : > { %27231 = vmatmul.mubr.msk.f32.gmra.mrb[88].mxu0 %vm4026_vm3, %v10871_v10  ;;  %28239 = vmatmul.mubr.msk.f32.gmra.mrb[24].mxu1 %vm4026_vm3, %v10871_v10 }
 0x817   : > { %27233 = vmatprep.mubr.msk.f32.mxu0 %vm4026_vm3, %v10872_v35  ;;  %28241 = vmatprep.mubr.msk.f32.mxu1 %vm4026_vm3, %v10872_v35 }
 0x81a   : > { %27234 = vmatmul.mubr.msk.f32.gmra.mrb[90].mxu0 %vm4026_vm3, %v10873_v19  ;;  %28242 = vmatmul.mubr.msk.f32.gmra.mrb[26].mxu1 %vm4026_vm3, %v10873_v19 }
 0x81b   : > { %27236 = vmatprep.mubr.msk.f32.mxu0 %vm4026_vm3, %v34989_v0  ;;  %28244 = vmatprep.mubr.msk.f32.mxu1 %vm4026_vm3, %v34989_v0  ;;  %v23575_v0 = vld [vmem:[%s36320_s9 + $0x20] sm:$0xff] }
 0x81e   : > { %27237 = vmatmul.mubr.msk.f32.gmra.mrb[92].mxu0 %vm4026_vm3, %v34995_v59  ;;  %28245 = vmatmul.mubr.msk.f32.gmra.mrb[28].mxu1 %vm4026_vm3, %v34995_v59  ;;  %v29050_v59 = vpack.c.bf16 %v23576_v25, %v23575_v0 }
 0x81f   : > { %27239 = vmatprep.mubr.msk.f32.mxu0 %vm4026_vm3, %v10876_v23  ;;  %28247 = vmatprep.mubr.msk.f32.mxu1 %vm4026_vm3, %v10876_v23 }
 0x820   : > { %29051 = vmatprep.subr.bf16.mxu1 %v29050_v59 }
 0x822   : > { %27240 = vmatmul.mubr.msk.f32.gmra.mrb[94].mxu0 %vm4026_vm3, %v10877_v20  ;;  %28248 = vmatmul.mubr.msk.f32.gmra.mrb[30].mxu1 %vm4026_vm3, %v10877_v20 }
 0x823   : > { %28258 = vmatprep.mubr.msk.f32.mxu1 %vm4026_vm3, %v18348_v34 }
 0x826   : > { %28259 = vmatmul.mubr.msk.f32.vlgmr.msra.gmra.mrb[0].mxu1 %vm4026_vm3, %v18349_v7 }
 0x827   : > { %29053 = vmatpush3.bf16.msra.mxu1 %v29050_v59 }
 0x828   : > { %29055 = vmatprep.subr.bf16.mxu1 %v29054_v4 }
 0x82b   : > { %29057 = vmatpush3.bf16.msra.mxu1 %v29054_v4 }
 0x82c   : > { %29059 = vmatprep.subr.bf16.mxu1 %v35287_v1 }
 0x8b9   : > { %v27196_v31 = vpop.f32.mrb[64].mxu0 }
 0x8ba   : > { %v29178_v41 = vadd.f32 %v27196_v31, %v35293_v8  ;;  %v11045_v44 = vpop.f32.mrb[65].mxu0 }
 0x8bb   : > { %v29179_v43 = vadd.f32 %v35293_v8, %v11045_v44 }
 0x8bc   : > { %11292 = vst.msk [vmem:[#allocation5 + $0x21] sm:$0xff] %vm4026_vm3, %v29178_v41 }
 0x8bd   : > { %11291 = vst.msk [vmem:[#allocation5 + $0x19] sm:$0xff] %vm4026_vm3, %v29179_v43  ;;  %v27199_v54 = vpop.f32.mrb[66].mxu0 }
 0x8be   : > { %v29180_v14 = vadd.f32 %v27199_v54, %v35293_v8  ;;  %v11055_v15 = vpop.f32.mrb[67].mxu0 }
 0x8bf   : > { %v29181_v38 = vadd.f32 %v35293_v8, %v11055_v15 }
 0x8c0   : > { %11294 = vst.msk [vmem:[#allocation5 + $0x39] sm:$0xff] %vm4026_vm3, %v29180_v14 }
 0x8c1   : > { %11293 = vst.msk [vmem:[#allocation5 + $0x31] sm:$0xff] %vm4026_vm3, %v29181_v38  ;;  %v27202_v3 = vpop.f32.mrb[68].mxu0 }
 0x8c2   : > { %v29182_v53 = vadd.f32 %v27202_v3, %v35293_v8  ;;  %v11065_v56 = vpop.f32.mrb[69].mxu0 }
 0x8c3   : > { %v29183_v16 = vadd.f32 %v35293_v8, %v11065_v56 }
 0x8c4   : > { %11296 = vst.msk [vmem:[#allocation5 + $0x51] sm:$0xff] %vm4026_vm3, %v29182_v53  ;;  %v35306_v24 = vld [vmem:[#allocation5 + $0x18] sm:$0xff]  ;;  %v35308_v46 = vld [vmem:[#allocation5 + $0x20] sm:$0xff] }
 0x8c5   : > { %11295 = vst.msk [vmem:[#allocation5 + $0x49] sm:$0xff] %vm4026_vm3, %v29183_v16  ;;  %v27205_v51 = vpop.f32.mrb[70].mxu0  ;;  %28261 = vmatprep.mubr.msk.f32.mxu1 %vm4026_vm3, %v35306_v24 }
 0x8c6   : > { %v29184_v11 = vadd.f32 %v27205_v51, %v35293_v8  ;;  %v11075_v9 = vpop.f32.mrb[71].mxu0  ;;  %28262 = vmatmul.mubr.msk.f32.gmra.mrb[2].mxu1 %vm4026_vm3, %v35308_v46 }
 0x8c7   : > { %v29185_v27 = vadd.f32 %v35293_v8, %v11075_v9 }
 0x8c8   : > { %11298 = vst.msk [vmem:[#allocation5 + $0x69] sm:$0xff] %vm4026_vm3, %v29184_v11  ;;  %v35318_v60 = vld [vmem:[#allocation5 + $0x30] sm:$0xff]  ;;  %v35320_v47 = vld [vmem:[#allocation5 + $0x38] sm:$0xff] }
 0x8c9   : > { %11297 = vst.msk [vmem:[#allocation5 + $0x61] sm:$0xff] %vm4026_vm3, %v29185_v27  ;;  %v27208_v37 = vpop.f32.mrb[72].mxu0  ;;  %28264 = vmatprep.mubr.msk.f32.mxu1 %vm4026_vm3, %v35318_v60 }
 0x8ca   : > { %v29186_v5 = vadd.f32 %v27208_v37, %v35293_v8  ;;  %v11085_v6 = vpop.f32.mrb[73].mxu0  ;;  %28265 = vmatmul.mubr.msk.f32.gmra.mrb[4].mxu1 %vm4026_vm3, %v35320_v47 }
 0x8cb   : > { %v29187_v26 = vadd.f32 %v35293_v8, %v11085_v6 }
 0x8cc   : > { %11300 = vst.msk [vmem:[#allocation5 + $0x81] sm:$0xff] %vm4026_vm3, %v29186_v5  ;;  %v35330_v48 = vld [vmem:[#allocation5 + $0x48] sm:$0xff]  ;;  %v35332_v13 = vld [vmem:[#allocation5 + $0x50] sm:$0xff] }
 0x8cd   : > { %11299 = vst.msk [vmem:[#allocation5 + $0x79] sm:$0xff] %vm4026_vm3, %v29187_v26  ;;  %v27211_v30 = vpop.f32.mrb[74].mxu0  ;;  %28267 = vmatprep.mubr.msk.f32.mxu1 %vm4026_vm3, %v35330_v48 }
 0x8ce   : > { %v29188_v22 = vadd.f32 %v27211_v30, %v35293_v8  ;;  %v11095_v28 = vpop.f32.mrb[75].mxu0  ;;  %28268 = vmatmul.mubr.msk.f32.gmra.mrb[6].mxu1 %vm4026_vm3, %v35332_v13 }
 0x8cf   : > { %v29189_v33 = vadd.f32 %v35293_v8, %v11095_v28 }
 0x8d0   : > { %11302 = vst.msk [vmem:[#allocation5 + $0x99] sm:$0xff] %vm4026_vm3, %v29188_v22  ;;  %v35342_v45 = vld [vmem:[#allocation5 + $0x60] sm:$0xff]  ;;  %v35344_v52 = vld [vmem:[#allocation5 + $0x68] sm:$0xff] }
 0x8d1   : > { %11301 = vst.msk [vmem:[#allocation5 + $0x91] sm:$0xff] %vm4026_vm3, %v29189_v33  ;;  %v27214_v57 = vpop.f32.mrb[76].mxu0  ;;  %28270 = vmatprep.mubr.msk.f32.mxu1 %vm4026_vm3, %v35342_v45 }
 0x8d2   : > { %v29190_v58 = vadd.f32 %v27214_v57, %v35293_v8  ;;  %v11105_v2 = vpop.f32.mrb[77].mxu0  ;;  %28271 = vmatmul.mubr.msk.f32.gmra.mrb[8].mxu1 %vm4026_vm3, %v35344_v52 }
 0x8d3   : > { %v29191_v12 = vadd.f32 %v35293_v8, %v11105_v2 }
 0x8d4   : > { %11304 = vst.msk [vmem:[#allocation5 + $0xb1] sm:$0xff] %vm4026_vm3, %v29190_v58  ;;  %v35354_v18 = vld [vmem:[#allocation5 + $0x78] sm:$0xff]  ;;  %v35356_v21 = vld [vmem:[#allocation5 + $0x80] sm:$0xff] }
 0x8d5   : > { %11303 = vst.msk [vmem:[#allocation5 + $0xa9] sm:$0xff] %vm4026_vm3, %v29191_v12  ;;  %v27217_v61 = vpop.f32.mrb[78].mxu0  ;;  %28273 = vmatprep.mubr.msk.f32.mxu1 %vm4026_vm3, %v35354_v18 }
 0x8d6   : > { %v29192_v39 = vadd.f32 %v27217_v61, %v35293_v8  ;;  %v11115_v40 = vpop.f32.mrb[79].mxu0  ;;  %28274 = vmatmul.mubr.msk.f32.gmra.mrb[10].mxu1 %vm4026_vm3, %v35356_v21 }
 0x8d7   : > { %v29193_v36 = vadd.f32 %v35293_v8, %v11115_v40 }
 0x8d8   : > { %11306 = vst.msk [vmem:[#allocation5 + $0xc9] sm:$0xff] %vm4026_vm3, %v29192_v39  ;;  %v35366_v42 = vld [vmem:[#allocation5 + $0x90] sm:$0xff]  ;;  %v35368_v62 = vld [vmem:[#allocation5 + $0x98] sm:$0xff] }
 0x8d9   : > { %11305 = vst.msk [vmem:[#allocation5 + $0xc1] sm:$0xff] %vm4026_vm3, %v29193_v36  ;;  %v27220_v32 = vpop.f32.mrb[80].mxu0  ;;  %28276 = vmatprep.mubr.msk.f32.mxu1 %vm4026_vm3, %v35366_v42 }
 0x8da   : > { %v29194_v17 = vadd.f32 %v27220_v32, %v35293_v8  ;;  %v11125_v55 = vpop.f32.mrb[81].mxu0  ;;  %28277 = vmatmul.mubr.msk.f32.gmra.mrb[12].mxu1 %vm4026_vm3, %v35368_v62  ;;  %v18737_v32 = vld [vmem:[#allocation5 + $0x1] sm:$0xff] }
 0x8db   : > { %v29195_v10 = vadd.f32 %v35293_v8, %v11125_v55  ;;  %v18738_v55 = vld [vmem:[#allocation5 + $0x9] sm:$0xff] }
 0x8dc   : > { %11308 = vst.msk [vmem:[#allocation5 + $0xe1] sm:$0xff] %vm4026_vm3, %v29194_v17  ;;  %v35378_v35 = vld [vmem:[#allocation5 + $0xa8] sm:$0xff]  ;;  %v35380_v19 = vld [vmem:[#allocation5 + $0xb0] sm:$0xff] }
 0x8dd   : > { %11307 = vst.msk [vmem:[#allocation5 + $0xd9] sm:$0xff] %vm4026_vm3, %v29195_v10  ;;  %v27223_v23 = vpop.f32.mrb[82].mxu0  ;;  %28279 = vmatprep.mubr.msk.f32.mxu1 %vm4026_vm3, %v35378_v35  ;;  %v23614_v17 = vld [vmem:[%s36320_s9 + $0x58] sm:$0xff] }
 0x8de   : > { %v29196_v20 = vadd.f32 %v27223_v23, %v35293_v8  ;;  %v11135_v34 = vpop.f32.mrb[83].mxu0  ;;  %28280 = vmatmul.mubr.msk.f32.gmra.mrb[14].mxu1 %vm4026_vm3, %v35380_v19  ;;  %v23647_v23 = vld [vmem:[%s36320_s9 + $0x60] sm:$0xff] }
 0x8df   : > { %v29197_v0 = vadd.f32 %v35293_v8, %v11135_v34  ;;  %v35493_v34 = vld [vmem:[#allocation5 + $0x19] sm:$0xff] }
 0x8e0   : > { %11310 = vst.msk [vmem:[#allocation5 + $0xf9] sm:$0xff] %vm4026_vm3, %v29196_v20  ;;  %v35390_v25 = vld [vmem:[#allocation5 + $0xc0] sm:$0xff]  ;;  %v35392_v59 = vld [vmem:[#allocation5 + $0xc8] sm:$0xff]  ;;  %v23648_v20 = vld [vmem:[%s36320_s9 + $0x68] sm:$0xff] }
 0x8e1   : > { %11309 = vst.msk [vmem:[#allocation5 + $0xf1] sm:$0xff] %vm4026_vm3, %v29197_v0  ;;  %v27226_v7 = vpop.f32.mrb[84].mxu0  ;;  %28282 = vmatprep.mubr.msk.f32.mxu1 %vm4026_vm3, %v35390_v25  ;;  %v35498_v0 = vpack.c.bf16 %v23648_v20, %v23647_v23  ;;  %v23649_v23 = vld [vmem:[%s36320_s9 + $0x70] sm:$0xff]  ;;  %v23650_v20 = vld [vmem:[%s36320_s9 + $0x78] sm:$0xff] }
 0x8e2   : > { %v29198_v63 = vadd.f32 %v27226_v7, %v35293_v8  ;;  %v11145_v49 = vpop.f32.mrb[85].mxu0  ;;  %28283 = vmatmul.mubr.msk.f32.gmra.mrb[16].mxu1 %vm4026_vm3, %v35392_v59  ;;  %v35500_v7 = vld [vmem:[#allocation5 + $0x21] sm:$0xff] }
 0x8e3   : > { %v29199_v4 = vadd.f32 %v35293_v8, %v11145_v49  ;;  %v35513_v49 = vld [vmem:[#allocation5 + $0x49] sm:$0xff] }
 0x8e4   : > { %11312 = vst.msk [vmem:[#allocation5 + $0x111] sm:$0xff] %vm4026_vm3, %v29198_v63  ;;  %v35402_v50 = vld [vmem:[#allocation5 + $0xd8] sm:$0xff]  ;;  %v35404_v29 = vld [vmem:[#allocation5 + $0xe0] sm:$0xff] }
 0x8e5   : > { %11311 = vst.msk [vmem:[#allocation5 + $0x109] sm:$0xff] %vm4026_vm3, %v29199_v4  ;;  %v27229_v31 = vpop.f32.mrb[86].mxu0  ;;  %28285 = vmatprep.mubr.msk.f32.mxu1 %vm4026_vm3, %v35402_v50  ;;  %v35504_v63 = vld [vmem:[#allocation5 + $0x31] sm:$0xff] }
 0x8e6   : > { %v29200_v41 = vadd.f32 %v27229_v31, %v35293_v8  ;;  %v11155_v44 = vpop.f32.mrb[87].mxu0  ;;  %28286 = vmatmul.mubr.msk.f32.gmra.mrb[18].mxu1 %vm4026_vm3, %v35404_v29  ;;  %v35517_v4 = vld [vmem:[#allocation5 + $0x51] sm:$0xff]  ;;  %v35521_v31 = vld [vmem:[#allocation5 + $0x61] sm:$0xff] }
 0x8e7   : > { %v29201_v43 = vadd.f32 %v35293_v8, %v11155_v44  ;;  %v35529_v44 = vld [vmem:[#allocation5 + $0x79] sm:$0xff] }
 0x8e8   : > { %11314 = vst.msk [vmem:[#allocation5 + $0x129] sm:$0xff] %vm4026_vm3, %v29200_v41  ;;  %v35414_v54 = vld [vmem:[#allocation5 + $0xf0] sm:$0xff]  ;;  %v35416_v14 = vld [vmem:[#allocation5 + $0xf8] sm:$0xff] }
 0x8e9   : > { %11313 = vst.msk [vmem:[#allocation5 + $0x121] sm:$0xff] %vm4026_vm3, %v29201_v43  ;;  %v27232_v15 = vpop.f32.mrb[88].mxu0  ;;  %28288 = vmatprep.mubr.msk.f32.mxu1 %vm4026_vm3, %v35414_v54  ;;  %v35525_v41 = vld [vmem:[#allocation5 + $0x69] sm:$0xff]  ;;  %v35533_v43 = vld [vmem:[#allocation5 + $0x81] sm:$0xff] }
 0x8ea   : > { %v29202_v38 = vadd.f32 %v27232_v15, %v35293_v8  ;;  %v11165_v3 = vpop.f32.mrb[89].mxu0  ;;  %28289 = vmatmul.mubr.msk.f32.gmra.mrb[20].mxu1 %vm4026_vm3, %v35416_v14  ;;  %v35537_v15 = vld [vmem:[#allocation5 + $0x91] sm:$0xff] }
 0x8eb   : > { %v29203_v53 = vadd.f32 %v35293_v8, %v11165_v3  ;;  %v35545_v3 = vld [vmem:[#allocation5 + $0xa9] sm:$0xff] }
 0x8ec   : > { %11316 = vst.msk [vmem:[#allocation5 + $0x141] sm:$0xff] %vm4026_vm3, %v29202_v38  ;;  %v35426_v56 = vld [vmem:[#allocation5 + $0x108] sm:$0xff]  ;;  %v35428_v16 = vld [vmem:[#allocation5 + $0x110] sm:$0xff]  ;;  %v35541_v38 = vld [vmem:[#allocation5 + $0x99] sm:$0xff] }
 0x8ed   : > { %11315 = vst.msk [vmem:[#allocation5 + $0x139] sm:$0xff] %vm4026_vm3, %v29203_v53  ;;  %v27235_v51 = vpop.f32.mrb[90].mxu0  ;;  %28291 = vmatprep.mubr.msk.f32.mxu1 %vm4026_vm3, %v35426_v56  ;;  %v35549_v53 = vld [vmem:[#allocation5 + $0xb1] sm:$0xff] }
 0x8ee   : > { %v29204_v11 = vadd.f32 %v27235_v51, %v35293_v8  ;;  %v11175_v9 = vpop.f32.mrb[91].mxu0  ;;  %28292 = vmatmul.mubr.msk.f32.gmra.mrb[22].mxu1 %vm4026_vm3, %v35428_v16  ;;  %v35553_v51 = vld [vmem:[#allocation5 + $0xc1] sm:$0xff] }
 0x8ef   : > { %v29205_v27 = vadd.f32 %v35293_v8, %v11175_v9  ;;  %v35561_v9 = vld [vmem:[#allocation5 + $0xd9] sm:$0xff] }
 0x8f0   : > { %11318 = vst.msk [vmem:[#allocation5 + $0x159] sm:$0xff] %vm4026_vm3, %v29204_v11  ;;  %v35438_v37 = vld [vmem:[#allocation5 + $0x120] sm:$0xff]  ;;  %v35440_v5 = vld [vmem:[#allocation5 + $0x128] sm:$0xff] }
 0x8f1   : > { %11317 = vst.msk [vmem:[#allocation5 + $0x151] sm:$0xff] %vm4026_vm3, %v29205_v27  ;;  %v27238_v6 = vpop.f32.mrb[92].mxu0  ;;  %28294 = vmatprep.mubr.msk.f32.mxu1 %vm4026_vm3, %v35438_v37  ;;  %v35557_v11 = vld [vmem:[#allocation5 + $0xc9] sm:$0xff]  ;;  %v35565_v27 = vld [vmem:[#allocation5 + $0xe1] sm:$0xff] }
 0x8f2   : > { %v29206_v26 = vadd.f32 %v27238_v6, %v35293_v8  ;;  %v11185_v30 = vpop.f32.mrb[93].mxu0  ;;  %28295 = vmatmul.mubr.msk.f32.gmra.mrb[24].mxu1 %vm4026_vm3, %v35440_v5  ;;  %v35569_v6 = vld [vmem:[#allocation5 + $0xf1] sm:$0xff] }
 0x8f3   : > { %v29207_v22 = vadd.f32 %v35293_v8, %v11185_v30  ;;  %v35577_v30 = vld [vmem:[#allocation5 + $0x109] sm:$0xff] }
 0x8f4   : > { %11320 = vst.msk [vmem:[#allocation5 + $0x171] sm:$0xff] %vm4026_vm3, %v29206_v26  ;;  %v35450_v28 = vld [vmem:[#allocation5 + $0x138] sm:$0xff]  ;;  %v35452_v33 = vld [vmem:[#allocation5 + $0x140] sm:$0xff] }
 0x8f5   : > { %11319 = vst.msk [vmem:[#allocation5 + $0x169] sm:$0xff] %vm4026_vm3, %v29207_v22  ;;  %v27241_v57 = vpop.f32.mrb[94].mxu0  ;;  %28297 = vmatprep.mubr.msk.f32.mxu1 %vm4026_vm3, %v35450_v28  ;;  %v35573_v26 = vld [vmem:[#allocation5 + $0xf9] sm:$0xff]  ;;  %v35581_v22 = vld [vmem:[#allocation5 + $0x111] sm:$0xff] }
 0x8f6   : > { %v29208_v58 = vadd.f32 %v27241_v57, %v35293_v8  ;;  %v11195_v2 = vpop.f32.mrb[95].mxu0  ;;  %28298 = vmatmul.mubr.msk.f32.gmra.mrb[26].mxu1 %vm4026_vm3, %v35452_v33  ;;  %v35585_v57 = vld [vmem:[#allocation5 + $0x121] sm:$0xff] }
 0x8f7   : > { %v29209_v12 = vadd.f32 %v35293_v8, %v11195_v2  ;;  %v23613_v8 = vld [vmem:[%s36320_s9 + $0x50] sm:$0xff] }
 0x8f8   : > { %11322 = vst.msk [vmem:[#allocation5 + $0x189] sm:$0xff] %vm4026_vm3, %v29208_v58  ;;  %v35462_v61 = vld [vmem:[#allocation5 + $0x150] sm:$0xff]  ;;  %v35464_v39 = vld [vmem:[#allocation5 + $0x158] sm:$0xff]  ;;  %v29062_v10 = vpack.c.bf16 %v23614_v17, %v23613_v8 }
 0x8f9   : > { %11321 = vst.msk [vmem:[#allocation5 + $0x181] sm:$0xff] %vm4026_vm3, %v29209_v12  ;;  %28300 = vmatprep.mubr.msk.f32.mxu1 %vm4026_vm3, %v35462_v61  ;;  %v35589_v58 = vld [vmem:[#allocation5 + $0x129] sm:$0xff]  ;;  %v35593_v2 = vld [vmem:[#allocation5 + $0x139] sm:$0xff]  ;;  %v35597_v12 = vld [vmem:[#allocation5 + $0x141] sm:$0xff] }
 0x8fa   : > { %28301 = vmatmul.mubr.msk.f32.gmra.mrb[28].mxu1 %vm4026_vm3, %v35464_v39  ;;  %36824 = vst [vmem:[#allocation32_spill] sm:$0xff] %v35593_v2  ;;  %36825 = vst [vmem:[#allocation35_spill] sm:$0xff] %v35597_v12  ;;  %v35605_v8 = vld [vmem:[#allocation5 + $0x159] sm:$0xff] }
 0x8fb   : > { %36827 = vst [vmem:[#allocation39_spill] sm:$0xff] %v35605_v8 }
 0x8fc   : > { %v35471_v40 = vld [vmem:[#allocation5 + $0x168] sm:$0xff]  ;;  %v35473_v36 = vld [vmem:[#allocation5 + $0x170] sm:$0xff] }
 0x8fd   : > { %28303 = vmatprep.mubr.msk.f32.mxu1 %vm4026_vm3, %v35471_v40  ;;  %v35609_v17 = vld [vmem:[#allocation5 + $0x169] sm:$0xff] }
 0x8fe   : > { %28304 = vmatmul.mubr.msk.f32.gmra.mrb[30].mxu1 %vm4026_vm3, %v35473_v36  ;;  %36828 = vst [vmem:[#allocation14_spill] sm:$0xff] %v35609_v17 }
 0x8ff   : > { %28314 = vmatprep.mubr.msk.f32.mxu1 %vm4026_vm3, %v18737_v32  ;;  %v35601_v32 = vld [vmem:[#allocation5 + $0x151] sm:$0xff] }
 0x900   : > { %36826 = vst [vmem:[#allocation37_spill] sm:$0xff] %v35601_v32 }
 0x902   : > { %28315 = vmatmul.mubr.msk.f32.vlgmr.msra.gmra.mrb[0].mxu1 %vm4026_vm3, %v18738_v55  ;;  %v19127_v55 = vld [vmem:[#allocation5 + $0x2] sm:$0xff] }
 0x903   : > { %29061 = vmatpush3.bf16.msra.mxu1 %v35287_v1  ;;  %28317 = vmatprep.mubr.msk.f32.mxu1 %vm4026_vm3, %v35493_v34  ;;  %v35509_v1 = vld [vmem:[#allocation5 + $0x39] sm:$0xff] }
 0x904   : > { %29063 = vmatprep.subr.bf16.mxu1 %v29062_v10 }
 0x906   : > { %28318 = vmatmul.mubr.msk.f32.gmra.mrb[2].mxu1 %vm4026_vm3, %v35500_v7 }
 0x907   : > { %28320 = vmatprep.mubr.msk.f32.mxu1 %vm4026_vm3, %v35504_v63  ;;  %29065 = vmatpush3.bf16.msra.mxu1 %v29062_v10  ;;  %v35613_v10 = vld [vmem:[#allocation5 + $0x171] sm:$0xff] }
 0x908   : > { %29067 = vmatprep.subr.bf16.mxu1 %v35498_v0  ;;  %36829 = vst [vmem:[#allocation15_spill] sm:$0xff] %v35613_v10 }
 0x90a   : > { %28321 = vmatmul.mubr.msk.f32.gmra.mrb[4].mxu1 %vm4026_vm3, %v35509_v1 }
 0x90b   : > { %28323 = vmatprep.mubr.msk.f32.mxu1 %vm4026_vm3, %v35513_v49 }
 0x90e   : > { %28324 = vmatmul.mubr.msk.f32.gmra.mrb[6].mxu1 %vm4026_vm3, %v35517_v4 }
 0x90f   : > { %28326 = vmatprep.mubr.msk.f32.mxu1 %vm4026_vm3, %v35521_v31 }
 0x912   : > { %28327 = vmatmul.mubr.msk.f32.gmra.mrb[8].mxu1 %vm4026_vm3, %v35525_v41 }
 0x913   : > { %28329 = vmatprep.mubr.msk.f32.mxu1 %vm4026_vm3, %v35529_v44 }
 0x916   : > { %28330 = vmatmul.mubr.msk.f32.gmra.mrb[10].mxu1 %vm4026_vm3, %v35533_v43 }
 0x917   : > { %28332 = vmatprep.mubr.msk.f32.mxu1 %vm4026_vm3, %v35537_v15 }
 0x91a   : > { %28333 = vmatmul.mubr.msk.f32.gmra.mrb[12].mxu1 %vm4026_vm3, %v35541_v38 }
 0x91b   : > { %28335 = vmatprep.mubr.msk.f32.mxu1 %vm4026_vm3, %v35545_v3 }
 0x91e   : > { %28336 = vmatmul.mubr.msk.f32.gmra.mrb[14].mxu1 %vm4026_vm3, %v35549_v53 }
 0x91f   : > { %28338 = vmatprep.mubr.msk.f32.mxu1 %vm4026_vm3, %v35553_v51 }
 0x922   : > { %28339 = vmatmul.mubr.msk.f32.gmra.mrb[16].mxu1 %vm4026_vm3, %v35557_v11 }
 0x923   : > { %28341 = vmatprep.mubr.msk.f32.mxu1 %vm4026_vm3, %v35561_v9 }
 0x926   : > { %28342 = vmatmul.mubr.msk.f32.gmra.mrb[18].mxu1 %vm4026_vm3, %v35565_v27 }
 0x927   : > { %28344 = vmatprep.mubr.msk.f32.mxu1 %vm4026_vm3, %v35569_v6 }
 0x92a   : > { %28345 = vmatmul.mubr.msk.f32.gmra.mrb[20].mxu1 %vm4026_vm3, %v35573_v26 }
 0x92b   : > { %28347 = vmatprep.mubr.msk.f32.mxu1 %vm4026_vm3, %v35577_v30 }
 0x92e   : > { %28348 = vmatmul.mubr.msk.f32.gmra.mrb[22].mxu1 %vm4026_vm3, %v35581_v22 }
 0x92f   : > { %28350 = vmatprep.mubr.msk.f32.mxu1 %vm4026_vm3, %v35585_v57 }
 0x932   : > { %28351 = vmatmul.mubr.msk.f32.gmra.mrb[24].mxu1 %vm4026_vm3, %v35589_v58 }
 0x933   : > { %28353 = vmatprep.mubr.msk.f32.mxu1 %vm4026_vm3, %v35593_v2  ;;  %v35631_v2 = vld [vmem:[#allocation5 + $0x1a] sm:$0xff] }
 0x936   : > { %28354 = vmatmul.mubr.msk.f32.gmra.mrb[26].mxu1 %vm4026_vm3, %v35597_v12  ;;  %v23684_v12 = vld [vmem:[%s36320_s9 + $0x88] sm:$0xff] }
 0x937   : > { %28356 = vmatprep.mubr.msk.f32.mxu1 %vm4026_vm3, %v35601_v32  ;;  %v29070_v32 = vpack.c.bf16 %v23650_v20, %v23649_v23  ;;  %v35638_v23 = vld [vmem:[#allocation5 + $0x22] sm:$0xff]  ;;  %v35642_v20 = vld [vmem:[#allocation5 + $0x32] sm:$0xff] }
 0x938   : > { %36830 = vst [vmem:[#allocation29_spill] sm:$0xff] %v35642_v20 }
 0x93a   : > { %28357 = vmatmul.mubr.msk.f32.gmra.mrb[28].mxu1 %vm4026_vm3, %v35605_v8  ;;  %v19128_v8 = vld [vmem:[#allocation5 + $0xa] sm:$0xff] }
 0x93b   : > { %28359 = vmatprep.mubr.msk.f32.mxu1 %vm4026_vm3, %v35609_v17  ;;  %v23683_v17 = vld [vmem:[%s36320_s9 + $0x80] sm:$0xff] }
 0x93e   : > { %28360 = vmatmul.mubr.msk.f32.gmra.mrb[30].mxu1 %vm4026_vm3, %v35613_v10 }
 0x93f   : > { %28370 = vmatprep.mubr.msk.f32.mxu1 %vm4026_vm3, %v19127_v55  ;;  %v35636_v55 = vpack.c.bf16 %v23684_v12, %v23683_v17  ;;  %v35651_v12 = vld [vmem:[#allocation5 + $0x4a] sm:$0xff]  ;;  %v35659_v17 = vld [vmem:[#allocation5 + $0x62] sm:$0xff] }
 0x940   : > { %36832 = vst [vmem:[#allocation33_spill] sm:$0xff] %v35651_v12  ;;  %36834 = vst [vmem:[#allocation36_spill] sm:$0xff] %v35659_v17 }
 0x942   : > { %28371 = vmatmul.mubr.msk.f32.vlgmr.msra.gmra.mrb[0].mxu1 %vm4026_vm3, %v19128_v8  ;;  %v35655_v8 = vld [vmem:[#allocation5 + $0x52] sm:$0xff] }
 0x943   : > { %29069 = vmatpush3.bf16.msra.mxu1 %v35498_v0  ;;  %28373 = vmatprep.mubr.msk.f32.mxu1 %vm4026_vm3, %v35631_v2  ;;  %v35647_v0 = vld [vmem:[#allocation5 + $0x3a] sm:$0xff]  ;;  %36833 = vst [vmem:[#allocation34_spill] sm:$0xff] %v35655_v8 }
 0x944   : > { %29071 = vmatprep.subr.bf16.mxu1 %v29070_v32  ;;  %36831 = vst [vmem:[#allocation31_spill] sm:$0xff] %v35647_v0 }
 0x946   : > { %28374 = vmatmul.mubr.msk.f32.gmra.mrb[2].mxu1 %vm4026_vm3, %v35638_v23 }
 0x947   : > { %28376 = vmatprep.mubr.msk.f32.mxu1 %vm4026_vm3, %v35642_v20  ;;  %29073 = vmatpush3.bf16.msra.mxu1 %v29070_v32  ;;  %v35663_v32 = vld [vmem:[#allocation5 + $0x6a] sm:$0xff]  ;;  %v23720_v20 = vld [vmem:[%s36320_s9 + $0xa8] sm:$0xff] }
 0x948   : > { %29075 = vmatprep.subr.bf16.mxu1 %v35636_v55  ;;  %36835 = vst [vmem:[#allocation38_spill] sm:$0xff] %v35663_v32 }
 0x94a   : > { %28377 = vmatmul.mubr.msk.f32.gmra.mrb[4].mxu1 %vm4026_vm3, %v35647_v0  ;;  %v35667_v0 = vld [vmem:[#allocation5 + $0x7a] sm:$0xff] }
 0x94b   : > { %28379 = vmatprep.mubr.msk.f32.mxu1 %vm4026_vm3, %v35651_v12  ;;  %36836 = vst [vmem:[#allocation6_spill] sm:$0xff] %v35667_v0  ;;  %v35671_v12 = vld [vmem:[#allocation5 + $0x82] sm:$0xff] }
 0x94c   : > { %36837 = vst [vmem:[#allocation7_spill] sm:$0xff] %v35671_v12 }
 0x94e   : > { %28380 = vmatmul.mubr.msk.f32.gmra.mrb[6].mxu1 %vm4026_vm3, %v35655_v8  ;;  %v35675_v8 = vld [vmem:[#allocation5 + $0x92] sm:$0xff] }
 0x94f   : > { %28382 = vmatprep.mubr.msk.f32.mxu1 %vm4026_vm3, %v35659_v17  ;;  %36838 = vst [vmem:[#allocation8_spill] sm:$0xff] %v35675_v8  ;;  %v35679_v17 = vld [vmem:[#allocation5 + $0x9a] sm:$0xff] }
 0x950   : > { %36839 = vst [vmem:[#allocation9_spill] sm:$0xff] %v35679_v17 }
 0x952   : > { %28383 = vmatmul.mubr.msk.f32.gmra.mrb[8].mxu1 %vm4026_vm3, %v35663_v32  ;;  %v35683_v32 = vld [vmem:[#allocation5 + $0xaa] sm:$0xff] }
 0x953   : > { %28385 = vmatprep.mubr.msk.f32.mxu1 %vm4026_vm3, %v35667_v0  ;;  %36840 = vst [vmem:[#allocation10_spill] sm:$0xff] %v35683_v32  ;;  %v35687_v0 = vld [vmem:[#allocation5 + $0xb2] sm:$0xff] }
 0x954   : > { %36841 = vst [vmem:[#allocation11_spill] sm:$0xff] %v35687_v0 }
 0x956   : > { %28386 = vmatmul.mubr.msk.f32.gmra.mrb[10].mxu1 %vm4026_vm3, %v35671_v12  ;;  %v35691_v12 = vld [vmem:[#allocation5 + $0xc2] sm:$0xff] }
 0x957   : > { %28388 = vmatprep.mubr.msk.f32.mxu1 %vm4026_vm3, %v35675_v8  ;;  %36842 = vst [vmem:[#allocation12_spill] sm:$0xff] %v35691_v12  ;;  %v35695_v8 = vld [vmem:[#allocation5 + $0xca] sm:$0xff] }
 0x958   : > { %36843 = vst [vmem:[#allocation13_spill] sm:$0xff] %v35695_v8 }
 0x95a   : > { %28389 = vmatmul.mubr.msk.f32.gmra.mrb[12].mxu1 %vm4026_vm3, %v35679_v17  ;;  %v35699_v17 = vld [vmem:[#allocation5 + $0xda] sm:$0xff] }
 0x95b   : > { %28391 = vmatprep.mubr.msk.f32.mxu1 %vm4026_vm3, %v35683_v32  ;;  %36844 = vst [vmem:[#allocation40_spill] sm:$0xff] %v35699_v17  ;;  %v35703_v32 = vld [vmem:[#allocation5 + $0xe2] sm:$0xff] }
 0x95c   : > { %36845 = vst [vmem:[#allocation41_spill] sm:$0xff] %v35703_v32 }
 0x95e   : > { %28392 = vmatmul.mubr.msk.f32.gmra.mrb[14].mxu1 %vm4026_vm3, %v35687_v0  ;;  %v35707_v0 = vld [vmem:[#allocation5 + $0xf2] sm:$0xff] }
 0x95f   : > { %28394 = vmatprep.mubr.msk.f32.mxu1 %vm4026_vm3, %v35691_v12  ;;  %36846 = vst [vmem:[#allocation16_spill] sm:$0xff] %v35707_v0  ;;  %v35711_v12 = vld [vmem:[#allocation5 + $0xfa] sm:$0xff] }
 0x960   : > { %36847 = vst [vmem:[#allocation17_spill] sm:$0xff] %v35711_v12 }
 0x962   : > { %28395 = vmatmul.mubr.msk.f32.gmra.mrb[16].mxu1 %vm4026_vm3, %v35695_v8  ;;  %v35715_v8 = vld [vmem:[#allocation5 + $0x10a] sm:$0xff] }
 0x963   : > { %28397 = vmatprep.mubr.msk.f32.mxu1 %vm4026_vm3, %v35699_v17  ;;  %36848 = vst [vmem:[#allocation18_spill] sm:$0xff] %v35715_v8  ;;  %v35719_v17 = vld [vmem:[#allocation5 + $0x112] sm:$0xff] }
 0x964   : > { %36849 = vst [vmem:[#allocation19_spill] sm:$0xff] %v35719_v17 }
 0x966   : > { %28398 = vmatmul.mubr.msk.f32.gmra.mrb[18].mxu1 %vm4026_vm3, %v35703_v32  ;;  %v35723_v32 = vld [vmem:[#allocation5 + $0x122] sm:$0xff] }
 0x967   : > { %28400 = vmatprep.mubr.msk.f32.mxu1 %vm4026_vm3, %v35707_v0  ;;  %36850 = vst [vmem:[#allocation20_spill] sm:$0xff] %v35723_v32  ;;  %v35727_v0 = vld [vmem:[#allocation5 + $0x12a] sm:$0xff] }
 0x968   : > { %36851 = vst [vmem:[#allocation21_spill] sm:$0xff] %v35727_v0 }
 0x96a   : > { %28401 = vmatmul.mubr.msk.f32.gmra.mrb[20].mxu1 %vm4026_vm3, %v35711_v12  ;;  %v35731_v12 = vld [vmem:[#allocation5 + $0x13a] sm:$0xff] }
 0x96b   : > { %28403 = vmatprep.mubr.msk.f32.mxu1 %vm4026_vm3, %v35715_v8  ;;  %36852 = vst [vmem:[#allocation22_spill] sm:$0xff] %v35731_v12  ;;  %v35735_v8 = vld [vmem:[#allocation5 + $0x142] sm:$0xff] }
 0x96c   : > { %36853 = vst [vmem:[#allocation23_spill] sm:$0xff] %v35735_v8 }
 0x96e   : > { %28404 = vmatmul.mubr.msk.f32.gmra.mrb[22].mxu1 %vm4026_vm3, %v35719_v17  ;;  %v35739_v17 = vld [vmem:[#allocation5 + $0x152] sm:$0xff] }
 0x96f   : > { %28406 = vmatprep.mubr.msk.f32.mxu1 %vm4026_vm3, %v35723_v32  ;;  %36854 = vst [vmem:[#allocation24_spill] sm:$0xff] %v35739_v17  ;;  %v35743_v32 = vld [vmem:[#allocation5 + $0x15a] sm:$0xff] }
 0x970   : > { %36855 = vst [vmem:[#allocation25_spill] sm:$0xff] %v35743_v32 }
 0x972   : > { %28407 = vmatmul.mubr.msk.f32.gmra.mrb[24].mxu1 %vm4026_vm3, %v35727_v0  ;;  %v35747_v0 = vld [vmem:[#allocation5 + $0x16a] sm:$0xff] }
 0x973   : > { %28409 = vmatprep.mubr.msk.f32.mxu1 %vm4026_vm3, %v35731_v12  ;;  %36856 = vst [vmem:[#allocation26_spill] sm:$0xff] %v35747_v0  ;;  %v35751_v12 = vld [vmem:[#allocation5 + $0x172] sm:$0xff] }
 0x974   : > { %36857 = vst [vmem:[#allocation27_spill] sm:$0xff] %v35751_v12 }
 0x976   : > { %28410 = vmatmul.mubr.msk.f32.gmra.mrb[26].mxu1 %vm4026_vm3, %v35735_v8  ;;  %v23685_v8 = vld [vmem:[%s36320_s9 + $0x90] sm:$0xff] }
 0x977   : > { %28412 = vmatprep.mubr.msk.f32.mxu1 %vm4026_vm3, %v35739_v17  ;;  %v23686_v17 = vld [vmem:[%s36320_s9 + $0x98] sm:$0xff] }
 0x97a   : > { %28413 = vmatmul.mubr.msk.f32.gmra.mrb[28].mxu1 %vm4026_vm3, %v35743_v32  ;;  %v29078_v32 = vpack.c.bf16 %v23686_v17, %v23685_v8  ;;  %v23755_v8 = vld [vmem:[%s36320_s9 + $0xc0] sm:$0xff]  ;;  %v23756_v17 = vld [vmem:[%s36320_s9 + $0xc8] sm:$0xff] }
 0x97b   : > { %28415 = vmatprep.mubr.msk.f32.mxu1 %vm4026_vm3, %v35747_v0  ;;  %v23719_v0 = vld [vmem:[%s36320_s9 + $0xa0] sm:$0xff] }
 0x97e   : > { %28416 = vmatmul.mubr.msk.f32.gmra.mrb[30].mxu1 %vm4026_vm3, %v35751_v12  ;;  %v29082_v12 = vpack.c.bf16 %v23720_v20, %v23719_v0  ;;  %v23722_v20 = vld [vmem:[%s36320_s9 + $0xb8] sm:$0xff] }
 0x97f   : > { %28426 = vmatprep.mubr.msk.f32.mxu1 %vm4026_vm3, %v35306_v24  ;;  %v35828_v24 = vld [vmem:[#allocation5 + $0x180] sm:$0xff] }
 0x982   : > { %28427 = vmatmul.mubr.msk.f32.vlgmr.msra.gmra.mrb[0].mxu1 %vm4026_vm3, %v35308_v46  ;;  %v35832_v46 = vld [vmem:[#allocation5 + $0x188] sm:$0xff] }
 0x983   : > { %29077 = vmatpush3.bf16.msra.mxu1 %v35636_v55  ;;  %28429 = vmatprep.mubr.msk.f32.mxu1 %vm4026_vm3, %v35318_v60  ;;  %v23721_v55 = vld [vmem:[%s36320_s9 + $0xb0] sm:$0xff] }
 0x984   : > { %29079 = vmatprep.subr.bf16.mxu1 %v29078_v32  ;;  %v29086_v0 = vpack.c.bf16 %v23722_v20, %v23721_v55  ;;  %v36861_v55 = vld [vmem:[#allocation39_spill] sm:$0xff]  ;;  %v36862_v20 = vld [vmem:[#allocation14_spill] sm:$0xff] }
 0x986   : > { %28430 = vmatmul.mubr.msk.f32.gmra.mrb[2].mxu1 %vm4026_vm3, %v35320_v47 }
 0x987   : > { %28432 = vmatprep.mubr.msk.f32.mxu1 %vm4026_vm3, %v35330_v48  ;;  %29081 = vmatpush3.bf16.msra.mxu1 %v29078_v32  ;;  %v29090_v32 = vpack.c.bf16 %v23756_v17, %v23755_v8  ;;  %v35912_v8 = vld [vmem:[#allocation5 + $0x189] sm:$0xff]  ;;  %v23757_v17 = vld [vmem:[%s36320_s9 + $0xd0] sm:$0xff] }
 0x988   : > { %29083 = vmatprep.subr.bf16.mxu1 %v29082_v12  ;;  %36864 = vst [vmem:[#allocation30_spill] sm:$0xff] %v35912_v8 }
 0x98a   : > { %28433 = vmatmul.mubr.msk.f32.gmra.mrb[4].mxu1 %vm4026_vm3, %v35332_v13 }
 0x98b   : > { %28435 = vmatprep.mubr.msk.f32.mxu1 %vm4026_vm3, %v35342_v45 }
 0x98e   : > { %28436 = vmatmul.mubr.msk.f32.gmra.mrb[6].mxu1 %vm4026_vm3, %v35344_v52 }
 0x98f   : > { %28438 = vmatprep.mubr.msk.f32.mxu1 %vm4026_vm3, %v35354_v18 }
 0x992   : > { %28439 = vmatmul.mubr.msk.f32.gmra.mrb[8].mxu1 %vm4026_vm3, %v35356_v21 }
 0x993   : > { %28441 = vmatprep.mubr.msk.f32.mxu1 %vm4026_vm3, %v35366_v42 }
 0x996   : > { %28442 = vmatmul.mubr.msk.f32.gmra.mrb[10].mxu1 %vm4026_vm3, %v35368_v62 }
 0x997   : > { %28444 = vmatprep.mubr.msk.f32.mxu1 %vm4026_vm3, %v35378_v35 }
 0x99a   : > { %28445 = vmatmul.mubr.msk.f32.gmra.mrb[12].mxu1 %vm4026_vm3, %v35380_v19 }
 0x99b   : > { %28447 = vmatprep.mubr.msk.f32.mxu1 %vm4026_vm3, %v35390_v25 }
 0x99e   : > { %28448 = vmatmul.mubr.msk.f32.gmra.mrb[14].mxu1 %vm4026_vm3, %v35392_v59 }
 0x99f   : > { %28450 = vmatprep.mubr.msk.f32.mxu1 %vm4026_vm3, %v35402_v50 }
 0x9a2   : > { %28451 = vmatmul.mubr.msk.f32.gmra.mrb[16].mxu1 %vm4026_vm3, %v35404_v29 }
 0x9a3   : > { %28453 = vmatprep.mubr.msk.f32.mxu1 %vm4026_vm3, %v35414_v54 }
 0x9a6   : > { %28454 = vmatmul.mubr.msk.f32.gmra.mrb[18].mxu1 %vm4026_vm3, %v35416_v14 }
 0x9a7   : > { %28456 = vmatprep.mubr.msk.f32.mxu1 %vm4026_vm3, %v35426_v56 }
 0x9aa   : > { %28457 = vmatmul.mubr.msk.f32.gmra.mrb[20].mxu1 %vm4026_vm3, %v35428_v16 }
 0x9ab   : > { %28459 = vmatprep.mubr.msk.f32.mxu1 %vm4026_vm3, %v35438_v37 }
 0x9ae   : > { %28460 = vmatmul.mubr.msk.f32.gmra.mrb[22].mxu1 %vm4026_vm3, %v35440_v5 }
 0x9af   : > { %28462 = vmatprep.mubr.msk.f32.mxu1 %vm4026_vm3, %v35450_v28 }
 0x9b2   : > { %28463 = vmatmul.mubr.msk.f32.gmra.mrb[24].mxu1 %vm4026_vm3, %v35452_v33 }
 0x9b3   : > { %28465 = vmatprep.mubr.msk.f32.mxu1 %vm4026_vm3, %v35462_v61 }
 0x9b6   : > { %28466 = vmatmul.mubr.msk.f32.gmra.mrb[26].mxu1 %vm4026_vm3, %v35464_v39 }
 0x9b7   : > { %28468 = vmatprep.mubr.msk.f32.mxu1 %vm4026_vm3, %v35471_v40 }
 0x9ba   : > { %28469 = vmatmul.mubr.msk.f32.gmra.mrb[28].mxu1 %vm4026_vm3, %v35473_v36 }
 0x9bb   : > { %28471 = vmatprep.mubr.msk.f32.mxu1 %vm4026_vm3, %v35828_v24 }
 0x9be   : > { %28472 = vmatmul.mubr.msk.f32.gmra.mrb[30].mxu1 %vm4026_vm3, %v35832_v46 }
 0x9bf   : > { %28482 = vmatprep.mubr.msk.f32.mxu1 %vm4026_vm3, %v35493_v34  ;;  %v36858_v34 = vld [vmem:[#allocation32_spill] sm:$0xff] }
 0x9c2   : > { %28483 = vmatmul.mubr.msk.f32.vlgmr.msra.gmra.mrb[0].mxu1 %vm4026_vm3, %v35500_v7  ;;  %v36859_v7 = vld [vmem:[#allocation35_spill] sm:$0xff] }
 0x9c3   : > { %29085 = vmatpush3.bf16.msra.mxu1 %v29082_v12  ;;  %28485 = vmatprep.mubr.msk.f32.mxu1 %vm4026_vm3, %v35504_v63  ;;  %v36860_v12 = vld [vmem:[#allocation37_spill] sm:$0xff] }
 0x9c4   : > { %29087 = vmatprep.subr.bf16.mxu1 %v29086_v0 }
 0x9c6   : > { %28486 = vmatmul.mubr.msk.f32.gmra.mrb[2].mxu1 %vm4026_vm3, %v35509_v1 }
 0x9c7   : > { %28488 = vmatprep.mubr.msk.f32.mxu1 %vm4026_vm3, %v35513_v49  ;;  %29089 = vmatpush3.bf16.msra.mxu1 %v29086_v0  ;;  %v35908_v0 = vld [vmem:[#allocation5 + $0x181] sm:$0xff] }
 0x9c8   : > { %29091 = vmatprep.subr.bf16.mxu1 %v29090_v32  ;;  %36863 = vst [vmem:[#allocation28_spill] sm:$0xff] %v35908_v0 }
 0x9ca   : > { %28489 = vmatmul.mubr.msk.f32.gmra.mrb[4].mxu1 %vm4026_vm3, %v35517_v4 }
 0x9cb   : > { %28491 = vmatprep.mubr.msk.f32.mxu1 %vm4026_vm3, %v35521_v31 }
 0x9ce   : > { %28492 = vmatmul.mubr.msk.f32.gmra.mrb[6].mxu1 %vm4026_vm3, %v35525_v41 }
 0x9cf   : > { %28494 = vmatprep.mubr.msk.f32.mxu1 %vm4026_vm3, %v35529_v44 }
 0x9d2   : > { %28495 = vmatmul.mubr.msk.f32.gmra.mrb[8].mxu1 %vm4026_vm3, %v35533_v43 }
 0x9d3   : > { %28497 = vmatprep.mubr.msk.f32.mxu1 %vm4026_vm3, %v35537_v15 }
 0x9d6   : > { %28498 = vmatmul.mubr.msk.f32.gmra.mrb[10].mxu1 %vm4026_vm3, %v35541_v38 }
 0x9d7   : > { %28500 = vmatprep.mubr.msk.f32.mxu1 %vm4026_vm3, %v35545_v3 }
 0x9da   : > { %28501 = vmatmul.mubr.msk.f32.gmra.mrb[12].mxu1 %vm4026_vm3, %v35549_v53 }
 0x9db   : > { %28503 = vmatprep.mubr.msk.f32.mxu1 %vm4026_vm3, %v35553_v51 }
 0x9de   : > { %28504 = vmatmul.mubr.msk.f32.gmra.mrb[14].mxu1 %vm4026_vm3, %v35557_v11 }
 0x9df   : > { %28506 = vmatprep.mubr.msk.f32.mxu1 %vm4026_vm3, %v35561_v9 }
 0x9e2   : > { %28507 = vmatmul.mubr.msk.f32.gmra.mrb[16].mxu1 %vm4026_vm3, %v35565_v27 }
 0x9e3   : > { %28509 = vmatprep.mubr.msk.f32.mxu1 %vm4026_vm3, %v35569_v6 }
 0x9e6   : > { %28510 = vmatmul.mubr.msk.f32.gmra.mrb[18].mxu1 %vm4026_vm3, %v35573_v26 }
 0x9e7   : > { %28512 = vmatprep.mubr.msk.f32.mxu1 %vm4026_vm3, %v35577_v30 }
 0x9ea   : > { %28513 = vmatmul.mubr.msk.f32.gmra.mrb[20].mxu1 %vm4026_vm3, %v35581_v22 }
 0x9eb   : > { %28515 = vmatprep.mubr.msk.f32.mxu1 %vm4026_vm3, %v35585_v57 }
 0x9ee   : > { %28516 = vmatmul.mubr.msk.f32.gmra.mrb[22].mxu1 %vm4026_vm3, %v35589_v58 }
 0x9ef   : > { %28518 = vmatprep.mubr.msk.f32.mxu1 %vm4026_vm3, %v36858_v34 }
 0x9f2   : > { %28519 = vmatmul.mubr.msk.f32.gmra.mrb[24].mxu1 %vm4026_vm3, %v36859_v7  ;;  %v36866_v7 = vld [vmem:[#allocation31_spill] sm:$0xff] }
 0x9f3   : > { %28521 = vmatprep.mubr.msk.f32.mxu1 %vm4026_vm3, %v36860_v12  ;;  %v36865_v12 = vld [vmem:[#allocation29_spill] sm:$0xff] }
 0x9f6   : > { %28522 = vmatmul.mubr.msk.f32.gmra.mrb[26].mxu1 %vm4026_vm3, %v36861_v55  ;;  %v23758_v55 = vld [vmem:[%s36320_s9 + $0xd8] sm:$0xff] }
 0x9f7   : > { %28524 = vmatprep.mubr.msk.f32.mxu1 %vm4026_vm3, %v36862_v20  ;;  %v23792_v20 = vld [vmem:[%s36320_s9 + $0xe8] sm:$0xff] }
 0x9fa   : > { %28525 = vmatmul.mubr.msk.f32.gmra.mrb[28].mxu1 %vm4026_vm3, %v35613_v10  ;;  %v29094_v10 = vpack.c.bf16 %v23758_v55, %v23757_v17  ;;  %v36868_v55 = vld [vmem:[#allocation34_spill] sm:$0xff]  ;;  %v36869_v17 = vld [vmem:[#allocation36_spill] sm:$0xff] }
 0x9fb   : > { %28527 = vmatprep.mubr.msk.f32.mxu1 %vm4026_vm3, %v35908_v0  ;;  %v23791_v0 = vld [vmem:[%s36320_s9 + $0xe0] sm:$0xff] }
 0x9fe   : > { %28528 = vmatmul.mubr.msk.f32.gmra.mrb[30].mxu1 %vm4026_vm3, %v35912_v8  ;;  %v29098_v8 = vpack.c.bf16 %v23792_v20, %v23791_v0  ;;  %v36872_v20 = vld [vmem:[#allocation7_spill] sm:$0xff]  ;;  %v36873_v0 = vld [vmem:[#allocation8_spill] sm:$0xff] }
 0x9ff   : > { %28538 = vmatprep.mubr.msk.f32.mxu1 %vm4026_vm3, %v35631_v2  ;;  %v36867_v2 = vld [vmem:[#allocation33_spill] sm:$0xff] }
 0xa02   : > { %28539 = vmatmul.mubr.msk.f32.vlgmr.msra.gmra.mrb[0].mxu1 %vm4026_vm3, %v35638_v23  ;;  %v36870_v23 = vld [vmem:[#allocation38_spill] sm:$0xff] }
 0xa03   : > { %29093 = vmatpush3.bf16.msra.mxu1 %v29090_v32  ;;  %28541 = vmatprep.mubr.msk.f32.mxu1 %vm4026_vm3, %v36865_v12  ;;  %v36871_v32 = vld [vmem:[#allocation6_spill] sm:$0xff] }
 0xa04   : > { %29095 = vmatprep.subr.bf16.mxu1 %v29094_v10 }
 0xa06   : > { %28542 = vmatmul.mubr.msk.f32.gmra.mrb[2].mxu1 %vm4026_vm3, %v36866_v7 }
 0xa07   : > { %28544 = vmatprep.mubr.msk.f32.mxu1 %vm4026_vm3, %v36867_v2  ;;  %29097 = vmatpush3.bf16.msra.mxu1 %v29094_v10  ;;  %v36874_v10 = vld [vmem:[#allocation9_spill] sm:$0xff]  ;;  %v36875_v2 = vld [vmem:[#allocation10_spill] sm:$0xff] }
 0xa08   : > { %29099 = vmatprep.subr.bf16.mxu1 %v29098_v8 }
 0xa0a   : > { %28545 = vmatmul.mubr.msk.f32.gmra.mrb[4].mxu1 %vm4026_vm3, %v36868_v55  ;;  %v36876_v55 = vld [vmem:[#allocation11_spill] sm:$0xff] }
 0xa0b   : > { %28547 = vmatprep.mubr.msk.f32.mxu1 %vm4026_vm3, %v36869_v17  ;;  %v36877_v17 = vld [vmem:[#allocation12_spill] sm:$0xff] }
 0xa0e   : > { %28548 = vmatmul.mubr.msk.f32.gmra.mrb[6].mxu1 %vm4026_vm3, %v36870_v23  ;;  %v36878_v23 = vld [vmem:[#allocation13_spill] sm:$0xff] }
 0xa0f   : > { %28550 = vmatprep.mubr.msk.f32.mxu1 %vm4026_vm3, %v36871_v32  ;;  %v36879_v32 = vld [vmem:[#allocation40_spill] sm:$0xff] }
 0xa12   : > { %28551 = vmatmul.mubr.msk.f32.gmra.mrb[8].mxu1 %vm4026_vm3, %v36872_v20  ;;  %v36880_v20 = vld [vmem:[#allocation41_spill] sm:$0xff] }
 0xa13   : > { %28553 = vmatprep.mubr.msk.f32.mxu1 %vm4026_vm3, %v36873_v0  ;;  %v36881_v0 = vld [vmem:[#allocation16_spill] sm:$0xff] }
 0xa16   : > { %28554 = vmatmul.mubr.msk.f32.gmra.mrb[10].mxu1 %vm4026_vm3, %v36874_v10  ;;  %v36882_v10 = vld [vmem:[#allocation17_spill] sm:$0xff] }
 0xa17   : > { %28556 = vmatprep.mubr.msk.f32.mxu1 %vm4026_vm3, %v36875_v2  ;;  %v36883_v2 = vld [vmem:[#allocation18_spill] sm:$0xff] }
 0xa1a   : > { %28557 = vmatmul.mubr.msk.f32.gmra.mrb[12].mxu1 %vm4026_vm3, %v36876_v55  ;;  %v36884_v55 = vld [vmem:[#allocation19_spill] sm:$0xff] }
 0xa1b   : > { %28559 = vmatprep.mubr.msk.f32.mxu1 %vm4026_vm3, %v36877_v17  ;;  %v36885_v17 = vld [vmem:[#allocation20_spill] sm:$0xff] }
 0xa1e   : > { %28560 = vmatmul.mubr.msk.f32.gmra.mrb[14].mxu1 %vm4026_vm3, %v36878_v23  ;;  %v36886_v23 = vld [vmem:[#allocation21_spill] sm:$0xff] }
 0xa1f   : > { %28562 = vmatprep.mubr.msk.f32.mxu1 %vm4026_vm3, %v36879_v32  ;;  %v36887_v32 = vld [vmem:[#allocation22_spill] sm:$0xff] }
 0xa22   : > { %28563 = vmatmul.mubr.msk.f32.gmra.mrb[16].mxu1 %vm4026_vm3, %v36880_v20  ;;  %v36888_v20 = vld [vmem:[#allocation23_spill] sm:$0xff] }
 0xa23   : > { %28565 = vmatprep.mubr.msk.f32.mxu1 %vm4026_vm3, %v36881_v0  ;;  %v36889_v0 = vld [vmem:[#allocation24_spill] sm:$0xff] }
 0xa26   : > { %28566 = vmatmul.mubr.msk.f32.gmra.mrb[18].mxu1 %vm4026_vm3, %v36882_v10  ;;  %v36890_v10 = vld [vmem:[#allocation25_spill] sm:$0xff] }
 0xa27   : > { %28568 = vmatprep.mubr.msk.f32.mxu1 %vm4026_vm3, %v36883_v2  ;;  %v36891_v2 = vld [vmem:[#allocation26_spill] sm:$0xff] }
 0xa2a   : > { %28569 = vmatmul.mubr.msk.f32.gmra.mrb[20].mxu1 %vm4026_vm3, %v36884_v55  ;;  %v36892_v55 = vld [vmem:[#allocation27_spill] sm:$0xff] }
 0xa2b   : > { %28571 = vmatprep.mubr.msk.f32.mxu1 %vm4026_vm3, %v36885_v17  ;;  %v35988_v17 = vld [vmem:[#allocation5 + $0x182] sm:$0xff] }
 0xa2c   : > { %36893 = vst [vmem:[#allocation32_spill] sm:$0xff] %v35988_v17 }
 0xa2e   : > { %28572 = vmatmul.mubr.msk.f32.gmra.mrb[22].mxu1 %vm4026_vm3, %v36886_v23 }
 0xa2f   : > { %28574 = vmatprep.mubr.msk.f32.mxu1 %vm4026_vm3, %v36887_v32  ;;  %v35992_v32 = vld [vmem:[#allocation5 + $0x18a] sm:$0xff] }
 0xa30   : > { %36894 = vst [vmem:[#allocation29_spill] sm:$0xff] %v35992_v32 }
 0xa32   : > { %28575 = vmatmul.mubr.msk.f32.gmra.mrb[24].mxu1 %vm4026_vm3, %v36888_v20 }
 0xa33   : > { %28577 = vmatprep.mubr.msk.f32.mxu1 %vm4026_vm3, %v36889_v0  ;;  %v23793_v0 = vld [vmem:[%s36320_s9 + $0xf0] sm:$0xff] }
 0xa36   : > { %28578 = vmatmul.mubr.msk.f32.gmra.mrb[26].mxu1 %vm4026_vm3, %v36890_v10  ;;  %v23794_v10 = vld [vmem:[%s36320_s9 + $0xf8] sm:$0xff] }
 0xa37   : > { %28580 = vmatprep.mubr.msk.f32.mxu1 %vm4026_vm3, %v36891_v2  ;;  %v23828_v2 = vld [vmem:[%s36320_s9 + $0x108] sm:$0xff] }
 0xa3a   : > { %28581 = vmatmul.mubr.msk.f32.gmra.mrb[28].mxu1 %vm4026_vm3, %v36892_v55  ;;  %v29102_v55 = vpack.c.bf16 %v23794_v10, %v23793_v0 }
 0xa3b   : > { %28583 = vmatprep.mubr.msk.f32.mxu1 %vm4026_vm3, %v35988_v17  ;;  %v23827_v17 = vld [vmem:[%s36320_s9 + $0x100] sm:$0xff] }
 0xa3e   : > { %28584 = vmatmul.mubr.msk.f32.gmra.mrb[30].mxu1 %vm4026_vm3, %v35992_v32  ;;  %v29106_v32 = vpack.c.bf16 %v23828_v2, %v23827_v17 }
 0xa3f   : > { %28594 = vmatprep.mubr.msk.f32.mxu1 %vm4026_vm3, %v35318_v60  ;;  %v20718_v60 = vld [vmem:[#allocation5 + $0x198] sm:$0xff] }
 0xa42   : > { %28595 = vmatmul.mubr.msk.f32.vlgmr.msra.gmra.mrb[0].mxu1 %vm4026_vm3, %v35320_v47  ;;  %v20719_v47 = vld [vmem:[#allocation5 + $0x1a0] sm:$0xff] }
 0xa43   : > { %29101 = vmatpush3.bf16.msra.mxu1 %v29098_v8  ;;  %28597 = vmatprep.mubr.msk.f32.mxu1 %vm4026_vm3, %v35330_v48  ;;  %v23829_v48 = vld [vmem:[%s36320_s9 + $0x110] sm:$0xff] }
 0xa44   : > { %29103 = vmatprep.subr.bf16.mxu1 %v29102_v55 }
 0xa46   : > { %28598 = vmatmul.mubr.msk.f32.gmra.mrb[2].mxu1 %vm4026_vm3, %v35332_v13  ;;  %v23830_v13 = vld [vmem:[%s36320_s9 + $0x118] sm:$0xff] }
 0xa47   : > { %28600 = vmatprep.mubr.msk.f32.mxu1 %vm4026_vm3, %v35342_v45  ;;  %29105 = vmatpush3.bf16.msra.mxu1 %v29102_v55  ;;  %v29110_v45 = vpack.c.bf16 %v23830_v13, %v23829_v48 }
 0xa48   : > { %29107 = vmatprep.subr.bf16.mxu1 %v29106_v32 }
 0xa4a   : > { %28601 = vmatmul.mubr.msk.f32.gmra.mrb[4].mxu1 %vm4026_vm3, %v35344_v52  ;;  %v36895_v52 = vld [vmem:[#allocation35_spill] sm:$0xff] }
 0xa4b   : > { %28603 = vmatprep.mubr.msk.f32.mxu1 %vm4026_vm3, %v35354_v18  ;;  %v36896_v18 = vld [vmem:[#allocation37_spill] sm:$0xff] }
 0xa4e   : > { %28604 = vmatmul.mubr.msk.f32.gmra.mrb[6].mxu1 %vm4026_vm3, %v35356_v21  ;;  %v36897_v21 = vld [vmem:[#allocation39_spill] sm:$0xff] }
 0xa4f   : > { %28606 = vmatprep.mubr.msk.f32.mxu1 %vm4026_vm3, %v35366_v42  ;;  %v36898_v42 = vld [vmem:[#allocation14_spill] sm:$0xff] }
 0xa52   : > { %28607 = vmatmul.mubr.msk.f32.gmra.mrb[8].mxu1 %vm4026_vm3, %v35368_v62  ;;  %v36899_v62 = vld [vmem:[#allocation15_spill] sm:$0xff] }
 0xa53   : > { %28609 = vmatprep.mubr.msk.f32.mxu1 %vm4026_vm3, %v35378_v35  ;;  %v36900_v35 = vld [vmem:[#allocation28_spill] sm:$0xff] }
 0xa56   : > { %28610 = vmatmul.mubr.msk.f32.gmra.mrb[10].mxu1 %vm4026_vm3, %v35380_v19  ;;  %v21108_v19 = vld [vmem:[#allocation5 + $0x199] sm:$0xff] }
 0xa57   : > { %28612 = vmatprep.mubr.msk.f32.mxu1 %vm4026_vm3, %v35390_v25  ;;  %v36901_v25 = vld [vmem:[#allocation30_spill] sm:$0xff] }
 0xa5a   : > { %28613 = vmatmul.mubr.msk.f32.gmra.mrb[12].mxu1 %vm4026_vm3, %v35392_v59  ;;  %v21109_v59 = vld [vmem:[#allocation5 + $0x1a1] sm:$0xff] }
 0xa5b   : > { %28615 = vmatprep.mubr.msk.f32.mxu1 %vm4026_vm3, %v35402_v50  ;;  %v36902_v50 = vld [vmem:[#allocation33_spill] sm:$0xff] }
 0xa5e   : > { %28616 = vmatmul.mubr.msk.f32.gmra.mrb[14].mxu1 %vm4026_vm3, %v35404_v29  ;;  %v36903_v29 = vld [vmem:[#allocation34_spill] sm:$0xff] }
 0xa5f   : > { %28618 = vmatprep.mubr.msk.f32.mxu1 %vm4026_vm3, %v35414_v54  ;;  %v36904_v54 = vld [vmem:[#allocation36_spill] sm:$0xff] }
 0xa62   : > { %28619 = vmatmul.mubr.msk.f32.gmra.mrb[16].mxu1 %vm4026_vm3, %v35416_v14  ;;  %v36905_v14 = vld [vmem:[#allocation38_spill] sm:$0xff] }
 0xa63   : > { %28621 = vmatprep.mubr.msk.f32.mxu1 %vm4026_vm3, %v35426_v56  ;;  %v36906_v56 = vld [vmem:[#allocation6_spill] sm:$0xff] }
 0xa66   : > { %28622 = vmatmul.mubr.msk.f32.gmra.mrb[18].mxu1 %vm4026_vm3, %v35428_v16  ;;  %v36907_v16 = vld [vmem:[#allocation7_spill] sm:$0xff] }
 0xa67   : > { %28624 = vmatprep.mubr.msk.f32.mxu1 %vm4026_vm3, %v35438_v37  ;;  %v36908_v37 = vld [vmem:[#allocation8_spill] sm:$0xff] }
 0xa6a   : > { %28625 = vmatmul.mubr.msk.f32.gmra.mrb[20].mxu1 %vm4026_vm3, %v35440_v5  ;;  %v36909_v5 = vld [vmem:[#allocation9_spill] sm:$0xff] }
 0xa6b   : > { %28627 = vmatprep.mubr.msk.f32.mxu1 %vm4026_vm3, %v35450_v28  ;;  %v36910_v28 = vld [vmem:[#allocation10_spill] sm:$0xff] }
 0xa6e   : > { %28628 = vmatmul.mubr.msk.f32.gmra.mrb[22].mxu1 %vm4026_vm3, %v35452_v33  ;;  %v36911_v33 = vld [vmem:[#allocation11_spill] sm:$0xff] }
 0xa6f   : > { %28630 = vmatprep.mubr.msk.f32.mxu1 %vm4026_vm3, %v35462_v61  ;;  %v36912_v61 = vld [vmem:[#allocation12_spill] sm:$0xff] }
 0xa72   : > { %28631 = vmatmul.mubr.msk.f32.gmra.mrb[24].mxu1 %vm4026_vm3, %v35464_v39  ;;  %v36913_v39 = vld [vmem:[#allocation13_spill] sm:$0xff] }
 0xa73   : > { %28633 = vmatprep.mubr.msk.f32.mxu1 %vm4026_vm3, %v35471_v40  ;;  %v36914_v40 = vld [vmem:[#allocation40_spill] sm:$0xff] }
 0xa76   : > { %28634 = vmatmul.mubr.msk.f32.gmra.mrb[26].mxu1 %vm4026_vm3, %v35473_v36  ;;  %v36915_v36 = vld [vmem:[#allocation41_spill] sm:$0xff] }
 0xa77   : > { %28636 = vmatprep.mubr.msk.f32.mxu1 %vm4026_vm3, %v35828_v24 }
 0xa7a   : > { %28637 = vmatmul.mubr.msk.f32.gmra.mrb[28].mxu1 %vm4026_vm3, %v35832_v46 }
 0xa7b   : > { %28639 = vmatprep.mubr.msk.f32.mxu1 %vm4026_vm3, %v20718_v60 }
 0xa7e   : > { %28640 = vmatmul.mubr.msk.f32.gmra.mrb[30].mxu1 %vm4026_vm3, %v20719_v47 }
 0xa7f   : > { %28650 = vmatprep.mubr.msk.f32.mxu1 %vm4026_vm3, %v35504_v63  ;;  %v36916_v63 = vld [vmem:[#allocation16_spill] sm:$0xff] }
 0xa82   : > { %28651 = vmatmul.mubr.msk.f32.vlgmr.msra.gmra.mrb[0].mxu1 %vm4026_vm3, %v35509_v1  ;;  %v36917_v1 = vld [vmem:[#allocation17_spill] sm:$0xff] }
 0xa83   : > { %29109 = vmatpush3.bf16.msra.mxu1 %v29106_v32  ;;  %28653 = vmatprep.mubr.msk.f32.mxu1 %vm4026_vm3, %v35513_v49  ;;  %v36918_v49 = vld [vmem:[#allocation18_spill] sm:$0xff] }
 0xa84   : > { %29111 = vmatprep.subr.bf16.mxu1 %v29110_v45 }
 0xa86   : > { %28654 = vmatmul.mubr.msk.f32.gmra.mrb[2].mxu1 %vm4026_vm3, %v35517_v4  ;;  %v36919_v4 = vld [vmem:[#allocation19_spill] sm:$0xff] }
 0xa87   : > { %28656 = vmatprep.mubr.msk.f32.mxu1 %vm4026_vm3, %v35521_v31  ;;  %29113 = vmatpush3.bf16.msra.mxu1 %v29110_v45  ;;  %v36920_v31 = vld [vmem:[#allocation20_spill] sm:$0xff] }
 0xa8a   : > { %28657 = vmatmul.mubr.msk.f32.gmra.mrb[4].mxu1 %vm4026_vm3, %v35525_v41  ;;  %v36921_v41 = vld [vmem:[#allocation22_spill] sm:$0xff] }
 0xa8b   : > { %28659 = vmatprep.mubr.msk.f32.mxu1 %vm4026_vm3, %v35529_v44  ;;  %v36922_v44 = vld [vmem:[#allocation24_spill] sm:$0xff] }
 0xa8e   : > { %28660 = vmatmul.mubr.msk.f32.gmra.mrb[6].mxu1 %vm4026_vm3, %v35533_v43  ;;  %v36923_v43 = vld [vmem:[#allocation25_spill] sm:$0xff] }
 0xa8f   : > { %28662 = vmatprep.mubr.msk.f32.mxu1 %vm4026_vm3, %v35537_v15  ;;  %v36924_v15 = vld [vmem:[#allocation26_spill] sm:$0xff] }
 0xa92   : > { %28663 = vmatmul.mubr.msk.f32.gmra.mrb[8].mxu1 %vm4026_vm3, %v35541_v38  ;;  %v36925_v38 = vld [vmem:[#allocation27_spill] sm:$0xff] }
 0xa93   : > { %28665 = vmatprep.mubr.msk.f32.mxu1 %vm4026_vm3, %v35545_v3  ;;  %v36926_v3 = vld [vmem:[#allocation32_spill] sm:$0xff] }
 0xa96   : > { %28666 = vmatmul.mubr.msk.f32.gmra.mrb[10].mxu1 %vm4026_vm3, %v35549_v53  ;;  %v21498_v53 = vld [vmem:[#allocation5 + $0x19a] sm:$0xff] }
 0xa97   : > { %28668 = vmatprep.mubr.msk.f32.mxu1 %vm4026_vm3, %v35553_v51  ;;  %v36927_v51 = vld [vmem:[#allocation29_spill] sm:$0xff] }
 0xa9a   : > { %28669 = vmatmul.mubr.msk.f32.gmra.mrb[12].mxu1 %vm4026_vm3, %v35557_v11  ;;  %v21499_v11 = vld [vmem:[#allocation5 + $0x1a2] sm:$0xff] }
 0xa9b   : > { %28671 = vmatprep.mubr.msk.f32.mxu1 %vm4026_vm3, %v35561_v9  ;;  %v36203_v9 = vld [vmem:[%s36321_s10] ss:$0 sm:$0xff] }
 0xa9e   : > { %28672 = vmatmul.mubr.msk.f32.gmra.mrb[14].mxu1 %vm4026_vm3, %v35565_v27 }
 0xa9f   : > { %28674 = vmatprep.mubr.msk.f32.mxu1 %vm4026_vm3, %v35569_v6 }
 0xaa2   : > { %28675 = vmatmul.mubr.msk.f32.gmra.mrb[16].mxu1 %vm4026_vm3, %v35573_v26 }
 0xaa3   : > { %28677 = vmatprep.mubr.msk.f32.mxu1 %vm4026_vm3, %v35577_v30 }
 0xaa6   : > { %28678 = vmatmul.mubr.msk.f32.gmra.mrb[18].mxu1 %vm4026_vm3, %v35581_v22 }
 0xaa7   : > { %28680 = vmatprep.mubr.msk.f32.mxu1 %vm4026_vm3, %v35585_v57 }
 0xaaa   : > { %28681 = vmatmul.mubr.msk.f32.gmra.mrb[20].mxu1 %vm4026_vm3, %v35589_v58 }
 0xaab   : > { %28683 = vmatprep.mubr.msk.f32.mxu1 %vm4026_vm3, %v36858_v34 }
 0xaae   : > { %28684 = vmatmul.mubr.msk.f32.gmra.mrb[22].mxu1 %vm4026_vm3, %v36895_v52 }
 0xaaf   : > { %28686 = vmatprep.mubr.msk.f32.mxu1 %vm4026_vm3, %v36896_v18 }
 0xab2   : > { %28687 = vmatmul.mubr.msk.f32.gmra.mrb[24].mxu1 %vm4026_vm3, %v36897_v21 }
 0xab3   : > { %28689 = vmatprep.mubr.msk.f32.mxu1 %vm4026_vm3, %v36898_v42 }
 0xab6   : > { %28690 = vmatmul.mubr.msk.f32.gmra.mrb[26].mxu1 %vm4026_vm3, %v36899_v62 }
 0xab7   : > { %28692 = vmatprep.mubr.msk.f32.mxu1 %vm4026_vm3, %v36900_v35 }
 0xaba   : > { %28693 = vmatmul.mubr.msk.f32.gmra.mrb[28].mxu1 %vm4026_vm3, %v36901_v25 }
 0xabb   : > { %28695 = vmatprep.mubr.msk.f32.mxu1 %vm4026_vm3, %v21108_v19 }
 0xabe   : > { %28696 = vmatmul.mubr.msk.f32.gmra.mrb[30].mxu1 %vm4026_vm3, %v21109_v59 }
 0xabf   : > { %28706 = vmatprep.mubr.msk.f32.mxu1 %vm4026_vm3, %v36865_v12 }
 0xac2   : > { %28707 = vmatmul.mubr.msk.f32.vlgmr.msra.gmra.mrb[0].mxu1 %vm4026_vm3, %v36866_v7 }
 0xac3   : > { %28709 = vmatprep.mubr.msk.f32.mxu1 %vm4026_vm3, %v36902_v50 }
 0xac6   : > { %28710 = vmatmul.mubr.msk.f32.gmra.mrb[2].mxu1 %vm4026_vm3, %v36903_v29 }
 0xac7   : > { %28712 = vmatprep.mubr.msk.f32.mxu1 %vm4026_vm3, %v36904_v54 }
 0xaca   : > { %28713 = vmatmul.mubr.msk.f32.gmra.mrb[4].mxu1 %vm4026_vm3, %v36905_v14 }
 0xacb   : > { %28715 = vmatprep.mubr.msk.f32.mxu1 %vm4026_vm3, %v36906_v56 }
 0xace   : > { %28716 = vmatmul.mubr.msk.f32.gmra.mrb[6].mxu1 %vm4026_vm3, %v36907_v16 }
 0xacf   : > { %28718 = vmatprep.mubr.msk.f32.mxu1 %vm4026_vm3, %v36908_v37 }
 0xad2   : > { %28719 = vmatmul.mubr.msk.f32.gmra.mrb[8].mxu1 %vm4026_vm3, %v36909_v5 }
 0xad3   : > { %28721 = vmatprep.mubr.msk.f32.mxu1 %vm4026_vm3, %v36910_v28 }
 0xad6   : > { %28722 = vmatmul.mubr.msk.f32.gmra.mrb[10].mxu1 %vm4026_vm3, %v36911_v33 }
 0xad7   : > { %28724 = vmatprep.mubr.msk.f32.mxu1 %vm4026_vm3, %v36912_v61 }
 0xada   : > { %28725 = vmatmul.mubr.msk.f32.gmra.mrb[12].mxu1 %vm4026_vm3, %v36913_v39 }
 0xadb   : > { %28727 = vmatprep.mubr.msk.f32.mxu1 %vm4026_vm3, %v36914_v40 }
 0xade   : > { %28728 = vmatmul.mubr.msk.f32.gmra.mrb[14].mxu1 %vm4026_vm3, %v36915_v36 }
 0xadf   : > { %28730 = vmatprep.mubr.msk.f32.mxu1 %vm4026_vm3, %v36916_v63 }
 0xae2   : > { %28731 = vmatmul.mubr.msk.f32.gmra.mrb[16].mxu1 %vm4026_vm3, %v36917_v1 }
 0xae3   : > { %28733 = vmatprep.mubr.msk.f32.mxu1 %vm4026_vm3, %v36918_v49 }
 0xae6   : > { %28734 = vmatmul.mubr.msk.f32.gmra.mrb[18].mxu1 %vm4026_vm3, %v36919_v4 }
 0xae7   : > { %28736 = vmatprep.mubr.msk.f32.mxu1 %vm4026_vm3, %v36920_v31 }
 0xaea   : > { %28737 = vmatmul.mubr.msk.f32.gmra.mrb[20].mxu1 %vm4026_vm3, %v36886_v23 }
 0xaeb   : > { %28739 = vmatprep.mubr.msk.f32.mxu1 %vm4026_vm3, %v36921_v41 }
 0xaee   : > { %28740 = vmatmul.mubr.msk.f32.gmra.mrb[22].mxu1 %vm4026_vm3, %v36888_v20 }
 0xaef   : > { %28742 = vmatprep.mubr.msk.f32.mxu1 %vm4026_vm3, %v36922_v44 }
 0xaf2   : > { %28743 = vmatmul.mubr.msk.f32.gmra.mrb[24].mxu1 %vm4026_vm3, %v36923_v43 }
 0xaf3   : > { %28745 = vmatprep.mubr.msk.f32.mxu1 %vm4026_vm3, %v36924_v15 }
 0xaf6   : > { %28746 = vmatmul.mubr.msk.f32.gmra.mrb[26].mxu1 %vm4026_vm3, %v36925_v38 }
 0xaf7   : > { %28748 = vmatprep.mubr.msk.f32.mxu1 %vm4026_vm3, %v36926_v3 }
 0xafa   : > { %28749 = vmatmul.mubr.msk.f32.gmra.mrb[28].mxu1 %vm4026_vm3, %v36927_v51 }
 0xafb   : > { %28751 = vmatprep.mubr.msk.f32.mxu1 %vm4026_vm3, %v21498_v53 }
 0xafe   : > { %28752 = vmatmul.mubr.msk.f32.gmra.mrb[30].mxu1 %vm4026_vm3, %v21499_v11 }
 0xb95   : > { %v28708_v27 = vpop.f32.mrb[0].mxu1 }
 0xb96   : > { %v29210_v6 = vadd.f32 %v28708_v27, %v36203_v9  ;;  %v21667_v26 = vpop.f32.mrb[1].mxu1 }
 0xb97   : > { %v29211_v30 = vadd.f32 %v36203_v9, %v21667_v26 }
 0xb98   : > { %21859 = vst.msk [vmem:[%s36210_s28 + $0x8] sm:$0xff] %vm419_vm1, %v29210_v6 }
 0xb99   : > { %21858 = vst.msk [vmem:[%s36210_s28] sm:$0xff] %vm419_vm1, %v29211_v30  ;;  %v28711_v22 = vpop.f32.mrb[2].mxu1 }
 0xb9a   : > { %v29212_v57 = vadd.f32 %v28711_v22, %v36203_v9  ;;  %v21677_v58 = vpop.f32.mrb[3].mxu1 }
 0xb9b   : > { %v29213_v24 = vadd.f32 %v36203_v9, %v21677_v58 }
 0xb9c   : > { %21861 = vst.msk [vmem:[%s36210_s28 + $0x18] sm:$0xff] %vm419_vm1, %v29212_v57 }
 0xb9d   : > { %21860 = vst.msk [vmem:[%s36210_s28 + $0x10] sm:$0xff] %vm419_vm1, %v29213_v24  ;;  %v28714_v46 = vpop.f32.mrb[4].mxu1 }
 0xb9e   : > { %v29214_v34 = vadd.f32 %v28714_v46, %v36203_v9  ;;  %v21687_v7 = vpop.f32.mrb[5].mxu1 }
 0xb9f   : > { %v29215_v12 = vadd.f32 %v36203_v9, %v21687_v7 }
 0xba0   : > { %21863 = vst.msk [vmem:[%s36210_s28 + $0x28] sm:$0xff] %vm419_vm1, %v29214_v34 }
 0xba1   : > { %21862 = vst.msk [vmem:[%s36210_s28 + $0x20] sm:$0xff] %vm419_vm1, %v29215_v12  ;;  %v28717_v8 = vpop.f32.mrb[6].mxu1 }
 0xba2   : > { %v29216_v2 = vadd.f32 %v28717_v8, %v36203_v9  ;;  %v21697_v55 = vpop.f32.mrb[7].mxu1 }
 0xba3   : > { %v29217_v17 = vadd.f32 %v36203_v9, %v21697_v55 }
 0xba4   : > { %21865 = vst.msk [vmem:[%s36210_s28 + $0x38] sm:$0xff] %vm419_vm1, %v29216_v2 }
 0xba5   : > { %21864 = vst.msk [vmem:[%s36210_s28 + $0x30] sm:$0xff] %vm419_vm1, %v29217_v17  ;;  %v28720_v23 = vpop.f32.mrb[8].mxu1 }
 0xba6   : > { %v29218_v32 = vadd.f32 %v28720_v23, %v36203_v9  ;;  %v21707_v20 = vpop.f32.mrb[9].mxu1 }
 0xba7   : > { %v29219_v0 = vadd.f32 %v36203_v9, %v21707_v20 }
 0xba8   : > { %21867 = vst.msk [vmem:[%s36210_s28 + $0x48] sm:$0xff] %vm419_vm1, %v29218_v32 }
 0xba9   : > { %21866 = vst.msk [vmem:[%s36210_s28 + $0x40] sm:$0xff] %vm419_vm1, %v29219_v0  ;;  %v28723_v10 = vpop.f32.mrb[10].mxu1 }
 0xbaa   : > { %v29220_v60 = vadd.f32 %v28723_v10, %v36203_v9  ;;  %v21717_v47 = vpop.f32.mrb[11].mxu1 }
 0xbab   : > { %v29221_v48 = vadd.f32 %v36203_v9, %v21717_v47 }
 0xbac   : > { %21869 = vst.msk [vmem:[%s36210_s28 + $0x58] sm:$0xff] %vm419_vm1, %v29220_v60 }
 0xbad   : > { %21868 = vst.msk [vmem:[%s36210_s28 + $0x50] sm:$0xff] %vm419_vm1, %v29221_v48  ;;  %v28726_v13 = vpop.f32.mrb[12].mxu1 }
 0xbae   : > { %v29222_v45 = vadd.f32 %v28726_v13, %v36203_v9  ;;  %v21727_v52 = vpop.f32.mrb[13].mxu1 }
 0xbaf   : > { %v29223_v18 = vadd.f32 %v36203_v9, %v21727_v52 }
 0xbb0   : > { %21871 = vst.msk [vmem:[%s36210_s28 + $0x68] sm:$0xff] %vm419_vm1, %v29222_v45 }
 0xbb1   : > { %21870 = vst.msk [vmem:[%s36210_s28 + $0x60] sm:$0xff] %vm419_vm1, %v29223_v18  ;;  %v28729_v21 = vpop.f32.mrb[14].mxu1 }
 0xbb2   : > { %v29224_v42 = vadd.f32 %v28729_v21, %v36203_v9  ;;  %v21737_v62 = vpop.f32.mrb[15].mxu1 }
 0xbb3   : > { %v29225_v35 = vadd.f32 %v36203_v9, %v21737_v62 }
 0xbb4   : > { %21873 = vst.msk [vmem:[%s36210_s28 + $0x78] sm:$0xff] %vm419_vm1, %v29224_v42 }
 0xbb5   : > { %21872 = vst.msk [vmem:[%s36210_s28 + $0x70] sm:$0xff] %vm419_vm1, %v29225_v35  ;;  %v28732_v19 = vpop.f32.mrb[16].mxu1 }
 0xbb6   : > { %v29226_v25 = vadd.f32 %v28732_v19, %v36203_v9  ;;  %v21747_v59 = vpop.f32.mrb[17].mxu1 }
 0xbb7   : > { %v29227_v50 = vadd.f32 %v36203_v9, %v21747_v59 }
 0xbb8   : > { %21875 = vst.msk [vmem:[%s36210_s28 + $0x88] sm:$0xff] %vm419_vm1, %v29226_v25 }
 0xbb9   : > { %21874 = vst.msk [vmem:[%s36210_s28 + $0x80] sm:$0xff] %vm419_vm1, %v29227_v50  ;;  %v28735_v29 = vpop.f32.mrb[18].mxu1 }
 0xbba   : > { %v29228_v54 = vadd.f32 %v28735_v29, %v36203_v9  ;;  %v21757_v14 = vpop.f32.mrb[19].mxu1 }
 0xbbb   : > { %v29229_v56 = vadd.f32 %v36203_v9, %v21757_v14 }
 0xbbc   : > { %21877 = vst.msk [vmem:[%s36210_s28 + $0x98] sm:$0xff] %vm419_vm1, %v29228_v54 }
 0xbbd   : > { %21876 = vst.msk [vmem:[%s36210_s28 + $0x90] sm:$0xff] %vm419_vm1, %v29229_v56  ;;  %v28738_v16 = vpop.f32.mrb[20].mxu1 }
 0xbbe   : > { %v29230_v37 = vadd.f32 %v28738_v16, %v36203_v9  ;;  %v21767_v5 = vpop.f32.mrb[21].mxu1 }
 0xbbf   : > { %v29231_v28 = vadd.f32 %v36203_v9, %v21767_v5 }
 0xbc0   : > { %21879 = vst.msk [vmem:[%s36210_s28 + $0xa8] sm:$0xff] %vm419_vm1, %v29230_v37 }
 0xbc1   : > { %21878 = vst.msk [vmem:[%s36210_s28 + $0xa0] sm:$0xff] %vm419_vm1, %v29231_v28  ;;  %v28741_v33 = vpop.f32.mrb[22].mxu1 }
 0xbc2   : > { %v29232_v61 = vadd.f32 %v28741_v33, %v36203_v9  ;;  %v21777_v39 = vpop.f32.mrb[23].mxu1 }
 0xbc3   : > { %v29233_v40 = vadd.f32 %v36203_v9, %v21777_v39 }
 0xbc4   : > { %21881 = vst.msk [vmem:[%s36210_s28 + $0xb8] sm:$0xff] %vm419_vm1, %v29232_v61 }
 0xbc5   : > { %21880 = vst.msk [vmem:[%s36210_s28 + $0xb0] sm:$0xff] %vm419_vm1, %v29233_v40  ;;  %v28744_v36 = vpop.f32.mrb[24].mxu1 }
 0xbc6   : > { %v29234_v63 = vadd.f32 %v28744_v36, %v36203_v9  ;;  %v21787_v1 = vpop.f32.mrb[25].mxu1 }
 0xbc7   : > { %v29235_v49 = vadd.f32 %v36203_v9, %v21787_v1 }
 0xbc8   : > { %21883 = vst.msk [vmem:[%s36210_s28 + $0xc8] sm:$0xff] %vm419_vm1, %v29234_v63 }
 0xbc9   : > { %21882 = vst.msk [vmem:[%s36210_s28 + $0xc0] sm:$0xff] %vm419_vm1, %v29235_v49  ;;  %v28747_v4 = vpop.f32.mrb[26].mxu1 }
 0xbca   : > { %v29236_v31 = vadd.f32 %v28747_v4, %v36203_v9  ;;  %v21797_v41 = vpop.f32.mrb[27].mxu1 }
 0xbcb   : > { %v29237_v44 = vadd.f32 %v36203_v9, %v21797_v41 }
 0xbcc   : > { %21885 = vst.msk [vmem:[%s36210_s28 + $0xd8] sm:$0xff] %vm419_vm1, %v29236_v31 }
 0xbcd   : > { %21884 = vst.msk [vmem:[%s36210_s28 + $0xd0] sm:$0xff] %vm419_vm1, %v29237_v44  ;;  %v28750_v43 = vpop.f32.mrb[28].mxu1 }
 0xbce   : > { %v29238_v15 = vadd.f32 %v28750_v43, %v36203_v9  ;;  %v21807_v38 = vpop.f32.mrb[29].mxu1 }
 0xbcf   : > { %v29239_v3 = vadd.f32 %v36203_v9, %v21807_v38 }
 0xbd0   : > { %21887 = vst.msk [vmem:[%s36210_s28 + $0xe8] sm:$0xff] %vm419_vm1, %v29238_v15 }
 0xbd1   : > { %21886 = vst.msk [vmem:[%s36210_s28 + $0xe0] sm:$0xff] %vm419_vm1, %v29239_v3  ;;  %v28753_v53 = vpop.f32.mrb[30].mxu1 }
 0xbd2   : > { %v29240_v51 = vadd.f32 %v28753_v53, %v36203_v9  ;;  %v21817_v11 = vpop.f32.mrb[31].mxu1 }
 0xbd3   : > { %v29241_v27 = vadd.f32 %v36203_v9, %v21817_v11 }
 0xbd4   : > { %21889 = vst.msk [vmem:[%s36210_s28 + $0xf8] sm:$0xff] %vm419_vm1, %v29240_v51 }
 0xbd5   : > { %21888 = vst.msk [vmem:[%s36210_s28 + $0xf0] sm:$0xff] %vm419_vm1, %v29241_v27 }
 0xbd6 PF: > { %s21_s17 = sadd.s32 1, %s30857_s17  }
 0xbd7   : > { %p18_p4 = scmp.ge.s32.totalorder %s21_s17, 4  }
 0xbd9   :  { %20 = sbr.rel (!%p18_p4) target bundleno = 1 (0x1), region = 150 }

</bundles_post_ra>
